<compile_context>
chip_gen: v6e
topology: v6e:2x2x1
jax: 0.10.0
libtpu: 0.0.40
codegen_flags: <defaults>
</compile_context>

<pallas_src>
import functools

import jax
import jax.numpy as jnp
from jax.experimental import pallas as pl
from jax.experimental.pallas import tpu as pltpu

EPS = 1e-5            # nn.InstanceNorm2d default eps
LEAK = 0.2            # LeakyReLU negative slope
# MXU operand dtype for the conv matmuls (perf feedback: bf16 on v6e/v7x, accumulate f32).
CONV_MXU_DTYPE = jnp.bfloat16


# --------------------------- conv block kernel ---------------------------
def _conv_block_kernel(norm, p_ref, w_ref, b_ref, o_ref):
    """im2col conv (one wide-K MXU matmul) + bias + LeakyReLU [+ InstanceNorm].

    Per grid step (= one sample):
      p_ref: (M, K)     im2col patches, M = Ho*Wo, K = 9*Cin
      w_ref: (K, Cout)
      b_ref: (1, Cout)
      o_ref: (M, Cout)
    """
    p = p_ref[...]
    w = w_ref[...]
    # Single wide-K matmul; bf16 operands, f32 accumulation on the MXU.
    y = jnp.dot(p.astype(CONV_MXU_DTYPE), w.astype(CONV_MXU_DTYPE),
                preferred_element_type=jnp.float32)
    y = y + b_ref[...].astype(jnp.float32)
    # LeakyReLU(0.2)
    y = jnp.where(y >= 0.0, y, LEAK * y)
    if norm:
        # InstanceNorm2d (affine=False): per-channel stats over this sample's spatial
        # positions.  Single pass: var = E[y^2] - mean^2 (biased), eps = 1e-5.
        inv_m = 1.0 / y.shape[0]
        mean = jnp.sum(y, axis=0, keepdims=True) * inv_m
        msq = jnp.sum(y * y, axis=0, keepdims=True) * inv_m
        var = jnp.maximum(msq - mean * mean, 0.0)
        y = (y - mean) * jax.lax.rsqrt(var + EPS)
    o_ref[...] = y.astype(o_ref.dtype)


def conv_block(x, w_hwio, b, *, norm):
    """Conv2d(3x3, stride=2, pad=1) -> LeakyReLU(0.2) [-> InstanceNorm2d].

    x: (N, H, W, Cin) NHWC.  w_hwio: (3, 3, Cin, Cout).  Returns (N, Ho, Wo, Cout).
    """
    N, H, W, Cin = x.shape
    Cout = w_hwio.shape[-1]
    Ho, Wo = (H + 1) // 2, (W + 1) // 2
    M, K = Ho * Wo, 9 * Cin

    # im2col (XLA layout plumbing): pad once, 9 strided taps, concat on the contraction
    # axis -> (N, M, 9*Cin).  The kernel then issues ONE matmul with K = 9*Cin.
    xp = jnp.pad(x, ((0, 0), (1, 1), (1, 1), (0, 0)))
    taps = []
    for dy in range(3):
        for dx in range(3):
            taps.append(xp[:, dy:dy + 2 * Ho:2, dx:dx + 2 * Wo:2, :])
    patches = jnp.concatenate(taps, axis=-1).reshape(N, M, K)
    wmat = w_hwio.reshape(K, Cout)   # (dy, dx, cin) order matches the concat above

    out = pl.pallas_call(
        functools.partial(_conv_block_kernel, norm),
        out_shape=jax.ShapeDtypeStruct((N, M, Cout), x.dtype),
        grid_spec=pltpu.PrefetchScalarGridSpec(
            num_scalar_prefetch=0,
            grid=(N,),                                   # one sample per grid step
            in_specs=[
                pl.BlockSpec((None, M, K), lambda n: (n, 0, 0)),
                pl.BlockSpec((K, Cout), lambda n: (0, 0)),
                pl.BlockSpec((1, Cout), lambda n: (0, 0)),
            ],
            out_specs=pl.BlockSpec((None, M, Cout), lambda n: (n, 0, 0)),
        ),
        compiler_params=pltpu.CompilerParams(
            dimension_semantics=("parallel",),           # megacore: split batch across TCs
        ),
    )(patches, wmat, b.reshape(1, Cout))
    return out.reshape(N, Ho, Wo, Cout)


# --------------------------- linear + softmax head ---------------------------
def _linear_softmax_kernel(f_ref, w_ref, b_ref, o_ref):
    logits = jnp.dot(f_ref[...], w_ref[...],
                     preferred_element_type=jnp.float32) + b_ref[...]
    m = jnp.max(logits, axis=-1, keepdims=True)
    e = jnp.exp(logits - m)
    o_ref[...] = (e / jnp.sum(e, axis=-1, keepdims=True)).astype(o_ref.dtype)


def linear_softmax(feat, w, b):
    N = feat.shape[0]
    n_classes = w.shape[-1]
    return pl.pallas_call(
        _linear_softmax_kernel,
        out_shape=jax.ShapeDtypeStruct((N, n_classes), feat.dtype),
        in_specs=[pl.BlockSpec(memory_space=pltpu.MemorySpace.VMEM)] * 3,
        out_specs=pl.BlockSpec(memory_space=pltpu.MemorySpace.VMEM),
    )(feat, w, b.reshape(1, n_classes))


# --------------------------- full forward ---------------------------
def classifier_forward(x_nchw, params):
    """Forward of Classifier.  x_nchw: (N, C, H, W) float32 (PyTorch layout)."""
    x = jnp.transpose(x_nchw, (0, 2, 3, 1))                      # NCHW -> NHWC
    y = conv_block(x, params["w1"], params["b1"], norm=False)
    y = conv_block(y, params["w2"], params["b2"], norm=True)
    y = conv_block(y, params["w3"], params["b3"], norm=True)
    y = conv_block(y, params["w4"], params["b4"], norm=True)
    n, ho, wo, c = y.shape
    # PyTorch .view flattens in NCHW order.
    feat = jnp.transpose(y, (0, 3, 1, 2)).reshape(n, c * ho * wo)
    return linear_softmax(feat, params["wl"], params["bl"])


# --------------------------- pure-JAX reference ---------------------------
def _conv_block_ref(x, w, b, norm):
    y = jax.lax.conv_general_dilated(
        x, w, window_strides=(2, 2), padding=[(1, 1), (1, 1)],
        dimension_numbers=("NHWC", "HWIO", "NHWC")) + b
    y = jnp.where(y >= 0.0, y, LEAK * y)
    if norm:
        mean = y.mean(axis=(1, 2), keepdims=True)
        var = ((y - mean) ** 2).mean(axis=(1, 2), keepdims=True)
        y = (y - mean) / jnp.sqrt(var + EPS)
    return y


def classifier_ref(x_nchw, params):
    x = jnp.transpose(x_nchw, (0, 2, 3, 1))
    y = _conv_block_ref(x, params["w1"], params["b1"], False)
    y = _conv_block_ref(y, params["w2"], params["b2"], True)
    y = _conv_block_ref(y, params["w3"], params["b3"], True)
    y = _conv_block_ref(y, params["w4"], params["b4"], True)
    n, ho, wo, c = y.shape
    feat = jnp.transpose(y, (0, 3, 1, 2)).reshape(n, c * ho * wo)
    logits = feat @ params["wl"] + params["bl"]
    return jax.nn.softmax(logits, axis=-1)


# --------------------------- params ---------------------------
def init_params(key, channels, img_size, n_classes):
    """Deterministic synthetic params.  Conv weights stored HWIO (PyTorch OIHW would be
    transposed (2,3,1,0) when porting)."""
    def conv_p(k, cin, cout):
        k1, k2 = jax.random.split(k)
        bound = (9.0 * cin) ** -0.5
        w = jax.random.uniform(k1, (3, 3, cin, cout), jnp.float32, -bound, bound)
        b = jax.random.uniform(k2, (cout,), jnp.float32, -bound, bound)
        return w, b

    ks = jax.random.split(key, 5)
    w1, b1 = conv_p(ks[0], channels, 64)
    w2, b2 = conv_p(ks[1], 64, 128)
    w3, b3 = conv_p(ks[2], 128, 256)
    w4, b4 = conv_p(ks[3], 256, 512)
    feat_dim = 512 * (img_size // 2 ** 4) ** 2
    kl1, kl2 = jax.random.split(ks[4])
    bound = float(feat_dim) ** -0.5
    wl = jax.random.uniform(kl1, (feat_dim, n_classes), jnp.float32, -bound, bound)
    bl = jax.random.uniform(kl2, (n_classes,), jnp.float32, -bound, bound)
    return {"w1": w1, "b1": b1, "w2": w2, "b2": b2,
            "w3": w3, "b3": b3, "w4": w4, "b4": b4,
            "wl": wl, "bl": bl}


if __name__ == "__main__":
    key = jax.random.PRNGKey(0)
    k_x, k_p = jax.random.split(key)

    # Small shapes consistent with the module: 4 stride-2 blocks need img_size >= 32
    # for a non-degenerate (2x2) final feature map (PixelDA default img_size is 32).
    N, CHANNELS, IMG, N_CLASSES = 2, 3, 32, 10
    x = jax.random.normal(k_x, (N, CHANNELS, IMG, IMG), jnp.float32)   # NCHW like PyTorch
    params = init_params(k_p, CHANNELS, IMG, N_CLASSES)

    out = jax.jit(classifier_forward)(x, params)
    out = jax.block_until_ready(out)

    ref = classifier_ref(x, params)
    assert out.shape == (N, N_CLASSES)
    assert jnp.allclose(jnp.sum(out, axis=-1), 1.0, atol=1e-3), "softmax rows must sum to 1"
    # bf16 MXU operands (f32 accumulation) vs f32 XLA reference -> relaxed tolerance.
    assert jnp.allclose(out, ref, atol=2e-2, rtol=2e-2), "mismatch vs JAX reference"

    print("KERNEL_OK")
</pallas_src>

<mosaic_0001>
module attributes {stable_mosaic.version = 11 : i64} {
  func.func @_conv_block_kernel(%arg0: i32, %arg1: memref<1x256x27xf32, #tpu.memory_space<vmem>>, %arg2: memref<27x64xf32, #tpu.memory_space<vmem>>, %arg3: memref<1x64xf32, #tpu.memory_space<vmem>>, %arg4: memref<1x256x64xf32, #tpu.memory_space<vmem>>) attributes {dimension_semantics = [#tpu.dimension_semantics<parallel>], iteration_bounds = array<i64: 2>, scalar_prefetch = 0 : i64, scratch_operands = 0 : i64, tpu.core_type = #tpu.core_type<tc>, window_params = [{transform_indices = @transform_0, window_bounds = array<i64: 1, 256, 27>}, {pipeline_mode = #tpu.pipeline_mode<synchronous>, transform_indices = @transform_1, window_bounds = array<i64: 27, 64>}, {pipeline_mode = #tpu.pipeline_mode<synchronous>, transform_indices = @transform_2, window_bounds = array<i64: 1, 64>}, {transform_indices = @transform_3, window_bounds = array<i64: 1, 256, 64>}]} {
    %c0 = arith.constant 0 : index
    %c0_0 = arith.constant 0 : index
    %c0_1 = arith.constant 0 : index
    %0 = vector.load %arg1[%c0, %c0_0, %c0_1] : memref<1x256x27xf32, #tpu.memory_space<vmem>>, vector<1x256x27xf32>
    %1 = vector.shape_cast %0 : vector<1x256x27xf32> to vector<256x27xf32>
    %c0_2 = arith.constant 0 : index
    %c0_3 = arith.constant 0 : index
    %2 = vector.load %arg2[%c0_2, %c0_3] : memref<27x64xf32, #tpu.memory_space<vmem>>, vector<27x64xf32>
    %3 = arith.truncf %1 : vector<256x27xf32> to vector<256x27xbf16>
    %4 = arith.truncf %2 : vector<27x64xf32> to vector<27x64xbf16>
    %cst = arith.constant dense<0.000000e+00> : vector<256x64xf32>
    %5 = tpu.matmul %3, %4, %cst {dimension_numbers = #tpu.dot_dimension_numbers<[1], [0], [0], [1], [0, 0, 1, 1], [], []>} : vector<256x27xbf16>, vector<27x64xbf16>, vector<256x64xf32> -> vector<256x64xf32>
    %c0_4 = arith.constant 0 : index
    %c0_5 = arith.constant 0 : index
    %6 = vector.load %arg3[%c0_4, %c0_5] : memref<1x64xf32, #tpu.memory_space<vmem>>, vector<1x64xf32>
    %7 = vector.broadcast %6 : vector<1x64xf32> to vector<256x64xf32>
    %8 = arith.addf %5, %7 : vector<256x64xf32>
    %cst_6 = arith.constant 0.000000e+00 : f32
    %9 = vector.broadcast %cst_6 : f32 to vector<256x64xf32>
    %10 = arith.cmpf oge, %8, %9 : vector<256x64xf32>
    %cst_7 = arith.constant 2.000000e-01 : f32
    %11 = vector.broadcast %cst_7 : f32 to vector<256x64xf32>
    %12 = arith.mulf %11, %8 : vector<256x64xf32>
    %13 = arith.select %10, %8, %12 : vector<256x64xi1>, vector<256x64xf32>
    %c0_8 = arith.constant 0 : index
    %c0_9 = arith.constant 0 : index
    %c0_10 = arith.constant 0 : index
    %14 = vector.load %arg4[%c0_8, %c0_9, %c0_10] : memref<1x256x64xf32, #tpu.memory_space<vmem>>, vector<1x256x64xf32>
    %15 = vector.shape_cast %14 : vector<1x256x64xf32> to vector<256x64xf32>
    %16 = vector.shape_cast %13 : vector<256x64xf32> to vector<1x256x64xf32>
    tpu.vector_store %arg4[%c0_8, %c0_9, %c0_10], %16 {strides = array<i32>} : memref<1x256x64xf32, #tpu.memory_space<vmem>>, vector<1x256x64xf32>,
    return
  }
  func.func @transform_0(%arg0: i32) -> (i32, i32, i32) {
    %c0_i32 = arith.constant 0 : i32
    %c0_i32_0 = arith.constant 0 : i32
    %c0_i32_1 = arith.constant 0 : i32
    return %arg0, %c0_i32, %c0_i32_0 : i32, i32, i32
  }
  func.func @transform_1(%arg0: i32) -> (i32, i32) {
    %c0_i32 = arith.constant 0 : i32
    %c0_i32_0 = arith.constant 0 : i32
    %c0_i32_1 = arith.constant 0 : i32
    return %c0_i32, %c0_i32_0 : i32, i32
  }
  func.func @transform_2(%arg0: i32) -> (i32, i32) {
    %c0_i32 = arith.constant 0 : i32
    %c0_i32_0 = arith.constant 0 : i32
    %c0_i32_1 = arith.constant 0 : i32
    return %c0_i32, %c0_i32_0 : i32, i32
  }
  func.func @transform_3(%arg0: i32) -> (i32, i32, i32) {
    %c0_i32 = arith.constant 0 : i32
    %c0_i32_0 = arith.constant 0 : i32
    %c0_i32_1 = arith.constant 0 : i32
    return %arg0, %c0_i32, %c0_i32_0 : i32, i32, i32
  }
}

module attributes {stable_mosaic.version = 11 : i64} {
  func.func @_conv_block_kernel(%arg0: i32, %arg1: memref<1x64x576xf32, #tpu.memory_space<vmem>>, %arg2: memref<576x128xf32, #tpu.memory_space<vmem>>, %arg3: memref<1x128xf32, #tpu.memory_space<vmem>>, %arg4: memref<1x64x128xf32, #tpu.memory_space<vmem>>) attributes {dimension_semantics = [#tpu.dimension_semantics<parallel>], iteration_bounds = array<i64: 2>, scalar_prefetch = 0 : i64, scratch_operands = 0 : i64, tpu.core_type = #tpu.core_type<tc>, window_params = [{transform_indices = @transform_0, window_bounds = array<i64: 1, 64, 576>}, {pipeline_mode = #tpu.pipeline_mode<synchronous>, transform_indices = @transform_1, window_bounds = array<i64: 576, 128>}, {pipeline_mode = #tpu.pipeline_mode<synchronous>, transform_indices = @transform_2, window_bounds = array<i64: 1, 128>}, {transform_indices = @transform_3, window_bounds = array<i64: 1, 64, 128>}]} {
    %c0 = arith.constant 0 : index
    %c0_0 = arith.constant 0 : index
    %c0_1 = arith.constant 0 : index
    %0 = vector.load %arg1[%c0, %c0_0, %c0_1] : memref<1x64x576xf32, #tpu.memory_space<vmem>>, vector<1x64x576xf32>
    %1 = vector.shape_cast %0 : vector<1x64x576xf32> to vector<64x576xf32>
    %c0_2 = arith.constant 0 : index
    %c0_3 = arith.constant 0 : index
    %2 = vector.load %arg2[%c0_2, %c0_3] : memref<576x128xf32, #tpu.memory_space<vmem>>, vector<576x128xf32>
    %3 = arith.truncf %1 : vector<64x576xf32> to vector<64x576xbf16>
    %4 = arith.truncf %2 : vector<576x128xf32> to vector<576x128xbf16>
    %cst = arith.constant dense<0.000000e+00> : vector<64x128xf32>
    %5 = tpu.matmul %3, %4, %cst {dimension_numbers = #tpu.dot_dimension_numbers<[1], [0], [0], [1], [0, 0, 1, 1], [], []>} : vector<64x576xbf16>, vector<576x128xbf16>, vector<64x128xf32> -> vector<64x128xf32>
    %c0_4 = arith.constant 0 : index
    %c0_5 = arith.constant 0 : index
    %6 = vector.load %arg3[%c0_4, %c0_5] : memref<1x128xf32, #tpu.memory_space<vmem>>, vector<1x128xf32>
    %7 = vector.broadcast %6 : vector<1x128xf32> to vector<64x128xf32>
    %8 = arith.addf %5, %7 : vector<64x128xf32>
    %cst_6 = arith.constant 0.000000e+00 : f32
    %9 = vector.broadcast %cst_6 : f32 to vector<64x128xf32>
    %10 = arith.cmpf oge, %8, %9 : vector<64x128xf32>
    %cst_7 = arith.constant 2.000000e-01 : f32
    %11 = vector.broadcast %cst_7 : f32 to vector<64x128xf32>
    %12 = arith.mulf %11, %8 : vector<64x128xf32>
    %13 = arith.select %10, %8, %12 : vector<64x128xi1>, vector<64x128xf32>
    %cst_8 = arith.constant dense<0.000000e+00> : vector<128xf32>
    %14 = vector.multi_reduction <add>, %13, %cst_8 [0] : vector<64x128xf32> to vector<128xf32>
    %15 = vector.shape_cast %14 : vector<128xf32> to vector<1x128xf32>
    %cst_9 = arith.constant 1.562500e-02 : f32
    %16 = vector.broadcast %cst_9 : f32 to vector<1x128xf32>
    %17 = arith.mulf %15, %16 : vector<1x128xf32>
    %18 = arith.mulf %13, %13 : vector<64x128xf32>
    %cst_10 = arith.constant dense<0.000000e+00> : vector<128xf32>
    %19 = vector.multi_reduction <add>, %18, %cst_10 [0] : vector<64x128xf32> to vector<128xf32>
    %20 = vector.shape_cast %19 : vector<128xf32> to vector<1x128xf32>
    %cst_11 = arith.constant 1.562500e-02 : f32
    %21 = vector.broadcast %cst_11 : f32 to vector<1x128xf32>
    %22 = arith.mulf %20, %21 : vector<1x128xf32>
    %23 = arith.mulf %17, %17 : vector<1x128xf32>
    %24 = arith.subf %22, %23 : vector<1x128xf32>
    %cst_12 = arith.constant 0.000000e+00 : f32
    %25 = vector.broadcast %cst_12 : f32 to vector<1x128xf32>
    %26 = arith.maximumf %24, %25 : vector<1x128xf32>
    %27 = vector.broadcast %17 : vector<1x128xf32> to vector<64x128xf32>
    %28 = arith.subf %13, %27 : vector<64x128xf32>
    %cst_13 = arith.constant 9.99999974E-6 : f32
    %29 = vector.broadcast %cst_13 : f32 to vector<1x128xf32>
    %30 = arith.addf %26, %29 : vector<1x128xf32>
    %31 = math.rsqrt %30 : vector<1x128xf32>
    %32 = vector.broadcast %31 : vector<1x128xf32> to vector<64x128xf32>
    %33 = arith.mulf %28, %32 : vector<64x128xf32>
    %c0_14 = arith.constant 0 : index
    %c0_15 = arith.constant 0 : index
    %c0_16 = arith.constant 0 : index
    %34 = vector.load %arg4[%c0_14, %c0_15, %c0_16] : memref<1x64x128xf32, #tpu.memory_space<vmem>>, vector<1x64x128xf32>
    %35 = vector.shape_cast %34 : vector<1x64x128xf32> to vector<64x128xf32>
    %36 = vector.shape_cast %33 : vector<64x128xf32> to vector<1x64x128xf32>
    tpu.vector_store %arg4[%c0_14, %c0_15, %c0_16], %36 {strides = array<i32>} : memref<1x64x128xf32, #tpu.memory_space<vmem>>, vector<1x64x128xf32>,
    return
  }
  func.func @transform_0(%arg0: i32) -> (i32, i32, i32) {
    %c0_i32 = arith.constant 0 : i32
    %c0_i32_0 = arith.constant 0 : i32
    %c0_i32_1 = arith.constant 0 : i32
    return %arg0, %c0_i32, %c0_i32_0 : i32, i32, i32
  }
  func.func @transform_1(%arg0: i32) -> (i32, i32) {
    %c0_i32 = arith.constant 0 : i32
    %c0_i32_0 = arith.constant 0 : i32
    %c0_i32_1 = arith.constant 0 : i32
    return %c0_i32, %c0_i32_0 : i32, i32
  }
  func.func @transform_2(%arg0: i32) -> (i32, i32) {
    %c0_i32 = arith.constant 0 : i32
    %c0_i32_0 = arith.constant 0 : i32
    %c0_i32_1 = arith.constant 0 : i32
    return %c0_i32, %c0_i32_0 : i32, i32
  }
  func.func @transform_3(%arg0: i32) -> (i32, i32, i32) {
    %c0_i32 = arith.constant 0 : i32
    %c0_i32_0 = arith.constant 0 : i32
    %c0_i32_1 = arith.constant 0 : i32
    return %arg0, %c0_i32, %c0_i32_0 : i32, i32, i32
  }
}

module attributes {stable_mosaic.version = 11 : i64} {
  func.func @_conv_block_kernel(%arg0: i32, %arg1: memref<1x16x1152xf32, #tpu.memory_space<vmem>>, %arg2: memref<1152x256xf32, #tpu.memory_space<vmem>>, %arg3: memref<1x256xf32, #tpu.memory_space<vmem>>, %arg4: memref<1x16x256xf32, #tpu.memory_space<vmem>>) attributes {dimension_semantics = [#tpu.dimension_semantics<parallel>], iteration_bounds = array<i64: 2>, scalar_prefetch = 0 : i64, scratch_operands = 0 : i64, tpu.core_type = #tpu.core_type<tc>, window_params = [{transform_indices = @transform_0, window_bounds = array<i64: 1, 16, 1152>}, {pipeline_mode = #tpu.pipeline_mode<synchronous>, transform_indices = @transform_1, window_bounds = array<i64: 1152, 256>}, {pipeline_mode = #tpu.pipeline_mode<synchronous>, transform_indices = @transform_2, window_bounds = array<i64: 1, 256>}, {transform_indices = @transform_3, window_bounds = array<i64: 1, 16, 256>}]} {
    %c0 = arith.constant 0 : index
    %c0_0 = arith.constant 0 : index
    %c0_1 = arith.constant 0 : index
    %0 = vector.load %arg1[%c0, %c0_0, %c0_1] : memref<1x16x1152xf32, #tpu.memory_space<vmem>>, vector<1x16x1152xf32>
    %1 = vector.shape_cast %0 : vector<1x16x1152xf32> to vector<16x1152xf32>
    %c0_2 = arith.constant 0 : index
    %c0_3 = arith.constant 0 : index
    %2 = vector.load %arg2[%c0_2, %c0_3] : memref<1152x256xf32, #tpu.memory_space<vmem>>, vector<1152x256xf32>
    %3 = arith.truncf %1 : vector<16x1152xf32> to vector<16x1152xbf16>
    %4 = arith.truncf %2 : vector<1152x256xf32> to vector<1152x256xbf16>
    %cst = arith.constant dense<0.000000e+00> : vector<16x256xf32>
    %5 = tpu.matmul %3, %4, %cst {dimension_numbers = #tpu.dot_dimension_numbers<[1], [0], [0], [1], [0, 0, 1, 1], [], []>} : vector<16x1152xbf16>, vector<1152x256xbf16>, vector<16x256xf32> -> vector<16x256xf32>
    %c0_4 = arith.constant 0 : index
    %c0_5 = arith.constant 0 : index
    %6 = vector.load %arg3[%c0_4, %c0_5] : memref<1x256xf32, #tpu.memory_space<vmem>>, vector<1x256xf32>
    %7 = vector.broadcast %6 : vector<1x256xf32> to vector<16x256xf32>
    %8 = arith.addf %5, %7 : vector<16x256xf32>
    %cst_6 = arith.constant 0.000000e+00 : f32
    %9 = vector.broadcast %cst_6 : f32 to vector<16x256xf32>
    %10 = arith.cmpf oge, %8, %9 : vector<16x256xf32>
    %cst_7 = arith.constant 2.000000e-01 : f32
    %11 = vector.broadcast %cst_7 : f32 to vector<16x256xf32>
    %12 = arith.mulf %11, %8 : vector<16x256xf32>
    %13 = arith.select %10, %8, %12 : vector<16x256xi1>, vector<16x256xf32>
    %cst_8 = arith.constant dense<0.000000e+00> : vector<256xf32>
    %14 = vector.multi_reduction <add>, %13, %cst_8 [0] : vector<16x256xf32> to vector<256xf32>
    %15 = vector.shape_cast %14 : vector<256xf32> to vector<1x256xf32>
    %cst_9 = arith.constant 6.250000e-02 : f32
    %16 = vector.broadcast %cst_9 : f32 to vector<1x256xf32>
    %17 = arith.mulf %15, %16 : vector<1x256xf32>
    %18 = arith.mulf %13, %13 : vector<16x256xf32>
    %cst_10 = arith.constant dense<0.000000e+00> : vector<256xf32>
    %19 = vector.multi_reduction <add>, %18, %cst_10 [0] : vector<16x256xf32> to vector<256xf32>
    %20 = vector.shape_cast %19 : vector<256xf32> to vector<1x256xf32>
    %cst_11 = arith.constant 6.250000e-02 : f32
    %21 = vector.broadcast %cst_11 : f32 to vector<1x256xf32>
    %22 = arith.mulf %20, %21 : vector<1x256xf32>
    %23 = arith.mulf %17, %17 : vector<1x256xf32>
    %24 = arith.subf %22, %23 : vector<1x256xf32>
    %cst_12 = arith.constant 0.000000e+00 : f32
    %25 = vector.broadcast %cst_12 : f32 to vector<1x256xf32>
    %26 = arith.maximumf %24, %25 : vector<1x256xf32>
    %27 = vector.broadcast %17 : vector<1x256xf32> to vector<16x256xf32>
    %28 = arith.subf %13, %27 : vector<16x256xf32>
    %cst_13 = arith.constant 9.99999974E-6 : f32
    %29 = vector.broadcast %cst_13 : f32 to vector<1x256xf32>
    %30 = arith.addf %26, %29 : vector<1x256xf32>
    %31 = math.rsqrt %30 : vector<1x256xf32>
    %32 = vector.broadcast %31 : vector<1x256xf32> to vector<16x256xf32>
    %33 = arith.mulf %28, %32 : vector<16x256xf32>
    %c0_14 = arith.constant 0 : index
    %c0_15 = arith.constant 0 : index
    %c0_16 = arith.constant 0 : index
    %34 = vector.load %arg4[%c0_14, %c0_15, %c0_16] : memref<1x16x256xf32, #tpu.memory_space<vmem>>, vector<1x16x256xf32>
    %35 = vector.shape_cast %34 : vector<1x16x256xf32> to vector<16x256xf32>
    %36 = vector.shape_cast %33 : vector<16x256xf32> to vector<1x16x256xf32>
    tpu.vector_store %arg4[%c0_14, %c0_15, %c0_16], %36 {strides = array<i32>} : memref<1x16x256xf32, #tpu.memory_space<vmem>>, vector<1x16x256xf32>,
    return
  }
  func.func @transform_0(%arg0: i32) -> (i32, i32, i32) {
    %c0_i32 = arith.constant 0 : i32
    %c0_i32_0 = arith.constant 0 : i32
    %c0_i32_1 = arith.constant 0 : i32
    return %arg0, %c0_i32, %c0_i32_0 : i32, i32, i32
  }
  func.func @transform_1(%arg0: i32) -> (i32, i32) {
    %c0_i32 = arith.constant 0 : i32
    %c0_i32_0 = arith.constant 0 : i32
    %c0_i32_1 = arith.constant 0 : i32
    return %c0_i32, %c0_i32_0 : i32, i32
  }
  func.func @transform_2(%arg0: i32) -> (i32, i32) {
    %c0_i32 = arith.constant 0 : i32
    %c0_i32_0 = arith.constant 0 : i32
    %c0_i32_1 = arith.constant 0 : i32
    return %c0_i32, %c0_i32_0 : i32, i32
  }
  func.func @transform_3(%arg0: i32) -> (i32, i32, i32) {
    %c0_i32 = arith.constant 0 : i32
    %c0_i32_0 = arith.constant 0 : i32
    %c0_i32_1 = arith.constant 0 : i32
    return %arg0, %c0_i32, %c0_i32_0 : i32, i32, i32
  }
}

module attributes {stable_mosaic.version = 11 : i64} {
  func.func @_conv_block_kernel(%arg0: i32, %arg1: memref<1x4x2304xf32, #tpu.memory_space<vmem>>, %arg2: memref<2304x512xf32, #tpu.memory_space<vmem>>, %arg3: memref<1x512xf32, #tpu.memory_space<vmem>>, %arg4: memref<1x4x512xf32, #tpu.memory_space<vmem>>) attributes {dimension_semantics = [#tpu.dimension_semantics<parallel>], iteration_bounds = array<i64: 2>, scalar_prefetch = 0 : i64, scratch_operands = 0 : i64, tpu.core_type = #tpu.core_type<tc>, window_params = [{transform_indices = @transform_0, window_bounds = array<i64: 1, 4, 2304>}, {pipeline_mode = #tpu.pipeline_mode<synchronous>, transform_indices = @transform_1, window_bounds = array<i64: 2304, 512>}, {pipeline_mode = #tpu.pipeline_mode<synchronous>, transform_indices = @transform_2, window_bounds = array<i64: 1, 512>}, {transform_indices = @transform_3, window_bounds = array<i64: 1, 4, 512>}]} {
    %c0 = arith.constant 0 : index
    %c0_0 = arith.constant 0 : index
    %c0_1 = arith.constant 0 : index
    %0 = vector.load %arg1[%c0, %c0_0, %c0_1] : memref<1x4x2304xf32, #tpu.memory_space<vmem>>, vector<1x4x2304xf32>
    %1 = vector.shape_cast %0 : vector<1x4x2304xf32> to vector<4x2304xf32>
    %c0_2 = arith.constant 0 : index
    %c0_3 = arith.constant 0 : index
    %2 = vector.load %arg2[%c0_2, %c0_3] : memref<2304x512xf32, #tpu.memory_space<vmem>>, vector<2304x512xf32>
    %3 = arith.truncf %1 : vector<4x2304xf32> to vector<4x2304xbf16>
    %4 = arith.truncf %2 : vector<2304x512xf32> to vector<2304x512xbf16>
    %cst = arith.constant dense<0.000000e+00> : vector<4x512xf32>
    %5 = tpu.matmul %3, %4, %cst {dimension_numbers = #tpu.dot_dimension_numbers<[1], [0], [0], [1], [0, 0, 1, 1], [], []>} : vector<4x2304xbf16>, vector<2304x512xbf16>, vector<4x512xf32> -> vector<4x512xf32>
    %c0_4 = arith.constant 0 : index
    %c0_5 = arith.constant 0 : index
    %6 = vector.load %arg3[%c0_4, %c0_5] : memref<1x512xf32, #tpu.memory_space<vmem>>, vector<1x512xf32>
    %7 = vector.broadcast %6 : vector<1x512xf32> to vector<4x512xf32>
    %8 = arith.addf %5, %7 : vector<4x512xf32>
    %cst_6 = arith.constant 0.000000e+00 : f32
    %9 = vector.broadcast %cst_6 : f32 to vector<4x512xf32>
    %10 = arith.cmpf oge, %8, %9 : vector<4x512xf32>
    %cst_7 = arith.constant 2.000000e-01 : f32
    %11 = vector.broadcast %cst_7 : f32 to vector<4x512xf32>
    %12 = arith.mulf %11, %8 : vector<4x512xf32>
    %13 = arith.select %10, %8, %12 : vector<4x512xi1>, vector<4x512xf32>
    %cst_8 = arith.constant dense<0.000000e+00> : vector<512xf32>
    %14 = vector.multi_reduction <add>, %13, %cst_8 [0] : vector<4x512xf32> to vector<512xf32>
    %15 = vector.shape_cast %14 : vector<512xf32> to vector<1x512xf32>
    %cst_9 = arith.constant 2.500000e-01 : f32
    %16 = vector.broadcast %cst_9 : f32 to vector<1x512xf32>
    %17 = arith.mulf %15, %16 : vector<1x512xf32>
    %18 = arith.mulf %13, %13 : vector<4x512xf32>
    %cst_10 = arith.constant dense<0.000000e+00> : vector<512xf32>
    %19 = vector.multi_reduction <add>, %18, %cst_10 [0] : vector<4x512xf32> to vector<512xf32>
    %20 = vector.shape_cast %19 : vector<512xf32> to vector<1x512xf32>
    %cst_11 = arith.constant 2.500000e-01 : f32
    %21 = vector.broadcast %cst_11 : f32 to vector<1x512xf32>
    %22 = arith.mulf %20, %21 : vector<1x512xf32>
    %23 = arith.mulf %17, %17 : vector<1x512xf32>
    %24 = arith.subf %22, %23 : vector<1x512xf32>
    %cst_12 = arith.constant 0.000000e+00 : f32
    %25 = vector.broadcast %cst_12 : f32 to vector<1x512xf32>
    %26 = arith.maximumf %24, %25 : vector<1x512xf32>
    %27 = vector.broadcast %17 : vector<1x512xf32> to vector<4x512xf32>
    %28 = arith.subf %13, %27 : vector<4x512xf32>
    %cst_13 = arith.constant 9.99999974E-6 : f32
    %29 = vector.broadcast %cst_13 : f32 to vector<1x512xf32>
    %30 = arith.addf %26, %29 : vector<1x512xf32>
    %31 = math.rsqrt %30 : vector<1x512xf32>
    %32 = vector.broadcast %31 : vector<1x512xf32> to vector<4x512xf32>
    %33 = arith.mulf %28, %32 : vector<4x512xf32>
    %c0_14 = arith.constant 0 : index
    %c0_15 = arith.constant 0 : index
    %c0_16 = arith.constant 0 : index
    %34 = vector.load %arg4[%c0_14, %c0_15, %c0_16] : memref<1x4x512xf32, #tpu.memory_space<vmem>>, vector<1x4x512xf32>
    %35 = vector.shape_cast %34 : vector<1x4x512xf32> to vector<4x512xf32>
    %36 = vector.shape_cast %33 : vector<4x512xf32> to vector<1x4x512xf32>
    tpu.vector_store %arg4[%c0_14, %c0_15, %c0_16], %36 {strides = array<i32>} : memref<1x4x512xf32, #tpu.memory_space<vmem>>, vector<1x4x512xf32>,
    return
  }
  func.func @transform_0(%arg0: i32) -> (i32, i32, i32) {
    %c0_i32 = arith.constant 0 : i32
    %c0_i32_0 = arith.constant 0 : i32
    %c0_i32_1 = arith.constant 0 : i32
    return %arg0, %c0_i32, %c0_i32_0 : i32, i32, i32
  }
  func.func @transform_1(%arg0: i32) -> (i32, i32) {
    %c0_i32 = arith.constant 0 : i32
    %c0_i32_0 = arith.constant 0 : i32
    %c0_i32_1 = arith.constant 0 : i32
    return %c0_i32, %c0_i32_0 : i32, i32
  }
  func.func @transform_2(%arg0: i32) -> (i32, i32) {
    %c0_i32 = arith.constant 0 : i32
    %c0_i32_0 = arith.constant 0 : i32
    %c0_i32_1 = arith.constant 0 : i32
    return %c0_i32, %c0_i32_0 : i32, i32
  }
  func.func @transform_3(%arg0: i32) -> (i32, i32, i32) {
    %c0_i32 = arith.constant 0 : i32
    %c0_i32_0 = arith.constant 0 : i32
    %c0_i32_1 = arith.constant 0 : i32
    return %arg0, %c0_i32, %c0_i32_0 : i32, i32, i32
  }
}

module attributes {stable_mosaic.version = 11 : i64} {
  func.func @_linear_softmax_kernel(%arg0: memref<2x2048xf32, #tpu.memory_space<vmem>>, %arg1: memref<2048x10xf32, #tpu.memory_space<vmem>>, %arg2: memref<1x10xf32, #tpu.memory_space<vmem>>, %arg3: memref<2x10xf32, #tpu.memory_space<vmem>>) attributes {dimension_semantics = [], scalar_prefetch = 0 : i64, scratch_operands = 0 : i64, tpu.core_type = #tpu.core_type<tc>} {
    %c0 = arith.constant 0 : index
    %c0_0 = arith.constant 0 : index
    %0 = vector.load %arg0[%c0, %c0_0] : memref<2x2048xf32, #tpu.memory_space<vmem>>, vector<2x2048xf32>
    %c0_1 = arith.constant 0 : index
    %c0_2 = arith.constant 0 : index
    %1 = vector.load %arg1[%c0_1, %c0_2] : memref<2048x10xf32, #tpu.memory_space<vmem>>, vector<2048x10xf32>
    %cst = arith.constant dense<0.000000e+00> : vector<2x10xf32>
    %2 = tpu.matmul %0, %1, %cst {dimension_numbers = #tpu.dot_dimension_numbers<[1], [0], [0], [1], [0, 0, 1, 1], [], []>} : vector<2x2048xf32>, vector<2048x10xf32>, vector<2x10xf32> -> vector<2x10xf32>
    %c0_3 = arith.constant 0 : index
    %c0_4 = arith.constant 0 : index
    %3 = vector.load %arg2[%c0_3, %c0_4] : memref<1x10xf32, #tpu.memory_space<vmem>>, vector<1x10xf32>
    %4 = vector.broadcast %3 : vector<1x10xf32> to vector<2x10xf32>
    %5 = arith.addf %2, %4 : vector<2x10xf32>
    %cst_5 = arith.constant dense<0xFF800000> : vector<2xf32>
    %6 = vector.multi_reduction <maximumf>, %5, %cst_5 [1] : vector<2x10xf32> to vector<2xf32>
    %7 = vector.shape_cast %6 : vector<2xf32> to vector<2x1xf32>
    %8 = vector.broadcast %7 : vector<2x1xf32> to vector<2x10xf32>
    %9 = arith.subf %5, %8 : vector<2x10xf32>
    %10 = math.exp %9 : vector<2x10xf32>
    %cst_6 = arith.constant dense<0.000000e+00> : vector<2xf32>
    %11 = vector.multi_reduction <add>, %10, %cst_6 [1] : vector<2x10xf32> to vector<2xf32>
    %12 = vector.shape_cast %11 : vector<2xf32> to vector<2x1xf32>
    %13 = vector.broadcast %12 : vector<2x1xf32> to vector<2x10xf32>
    %14 = arith.divf %10, %13 : vector<2x10xf32>
    %c0_7 = arith.constant 0 : index
    %c0_8 = arith.constant 0 : index
    %15 = vector.load %arg3[%c0_7, %c0_8] : memref<2x10xf32, #tpu.memory_space<vmem>>, vector<2x10xf32>
    tpu.vector_store %arg3[%c0_7, %c0_8], %14 {strides = array<i32>} : memref<2x10xf32, #tpu.memory_space<vmem>>, vector<2x10xf32>,
    return
  }
}

</mosaic_0001>

<bundles_post_ra>
// kernel: classifier_forward.5
= control target key start
LH: loop header
LB: loop body
LE: loop exit
PB: predicated region body
PF: predicated region fallthrough
CT: control target
= control target key end

     0   :  { %8 = vsyncpa [#allocation3], 0  ;;  %s829_s12 = smov 0   ;;  %s1029_s0 = inlined_call_operand.vmem [shape: f32[2,256,27], index: 0, kind: input, shape index: {}]   ;;  %s1030_s1 = inlined_call_operand.vmem [shape: f32[27,64], index: 1, kind: input, shape index: {}]   ;;  %s1031_s2 = inlined_call_operand.hbm [shape: f32[1,64], index: 2, kind: input, shape index: {}]   ;;  %s1032_s3 = inlined_call_operand.vmem [shape: f32[2,256,64], index: 3, kind: output, shape index: {}]  }
   0x1 LB: > { %s659_s13 = sadd.s32 4294967295, %s805_s12   ;;  %p661_p0 = scmp.ge.s32.totalorder %s805_s12, 1  ;;  %s805_s12 = sphi %s829_s12, %s14_s12  }
   0x2   : > { %p113_p1 = scmp.lt.s32.totalorder %s805_s12, 3  ;;  %p757_p3 = scmp.eq.s32.totalorder %s659_s13, 0 }
   0x3   : > { %s807_s15 = smov [#allocation2]  }
   0x4   : > { %p837_p2 = pnand %p661_p0, %p113_p1  ;;  %s129_s16 = sshll.u32 %s807_s15, 4  ;;  %s130_s16 = int_to_ptr.vmem [resolvable:$true] %s129_s16 }
   0x5   : > { %s780_s17 = scalar_lea.vmem %s130_s16, 16  ;;  %s787_s18 = scalar_lea.vmem %s130_s16, 32 }
   0x6   : > { %p753_p4 = pneg %p837_p2  ;;  %p781_p7 = scmp.ne.s32.totalorder %s130_s16, %s780_s17 }
   0x7   : > { %p788_p10 = scmp.lt.s32.totalorder %s130_s16, %s130_s16  ;;  %p789_p11 = scmp.lt.s32.totalorder %s787_s18, %s780_s17 }
   0x8   : > { %p754_p5 = pnand %p757_p3, %p753_p4 }
   0x9   : > { %p790_p12 = por %p789_p11, %p788_p10 }
   0xa   : > { %p771_p6 = pneg %p754_p5 }
   0xc   : > { %p783_p8 = pnand %p781_p7, %p771_p6 }
   0xe   : > { %p784_p9 = pneg %p783_p8 }
  0x10   : > { %p791_p13 = pnand %p790_p12, %p784_p9 }
  0x12   : > { %794 = shalt.err (!%p791_p13)
}
  0x13   : > { %756 = dma.hbm_to_vmem [thread:$0]  (!%p754_p5), %s1031_s2, 16, %s130_s16, [#allocation3]  }
  0x14   : > { %150 = sbr.rel (%p837_p2) target bundleno = 270 (0x10e), region = 32 }
  0x19   : > { %800 = dma.done.wait (%p757_p3), [#allocation3], 16  }
  0x1a   : > { %802 = vsyncadd (%p757_p3), [#allocation3], 4294967280  ;;  %p174_p0 = scmp.lt.s32.totalorder %s659_s13, 1  ;;  %vm295_vm0 = vcmask 1044480   ;;  %vm296_vm1 = vcmask 1045504   ;;  %v808_v0 = vmov 65535  }
  0x1b   : > { %v297_v1 = vsel %vm295_vm0, 4294967295, %v808_v0  ;;  %v219_v2 = vld [vmem:[%s1030_s1 + $0x10] sm:$0xff]  ;;  %v220_v3 = vld [vmem:[%s1030_s1 + $0x18] sm:$0x7]  ;;  %v217_v5 = vld [vmem:[%s1030_s1] sm:$0xff]  ;;  %vm246_vm2 = vcmask 220160  }
  0x1c   : > { %s1035_s13 = smov (!%p174_p0, %s659_s13), 1  ;;  %v298_v4 = vsel %vm296_vm1, %v297_v1, 0  ;;  %v238_v6 = vpack.c.bf16 %v220_v3, %v219_v2  ;;  %v218_v7 = vld [vmem:[%s1030_s1 + $0x8] sm:$0xff]  ;;  %v921_v58 = vld [vmem:[#allocation2] ss:$0 sm:$0xff]  ;;  %vm559_vm3 = vcmask 523264  }
  0x1d   : > { %s689_s21 = sshll.u32 %s1035_s13, 8  ;;  %v237_v14 = vpack.c.bf16 %v218_v7, %v217_v5 }
  0x1e   : > { %s859_s24 = scalar_lea.vmem %s1029_s0, %s689_s21  ;;  %v300_v13 = vand.u32 %v298_v4, %v238_v6  ;;  %s930_s8 = scalar_lea.vmem %s1032_s3, %s689_s21 }
  0x1f   : > { %v185_v8 = vld [vmem:[%s859_s24] sm:$0xff]  ;;  %v186_v9 = vld [vmem:[%s859_s24 + $0x8] sm:$0xff]  ;;  %v187_v16 = vld [vmem:[%s859_s24 + $0x10] sm:$0xff] }
  0x20   : > { %v221_v10 = vpack.c.bf16 %v186_v9, %v185_v8  ;;  %v201_v11 = vld [vmem:[%s859_s24 + $0x80] sm:$0xff]  ;;  %v202_v12 = vld [vmem:[%s859_s24 + $0x88] sm:$0xff]  ;;  %709 = vmatprep.subr.bf16.mxu0 %v300_v13  ;;  %745 = vmatprep.subr.bf16.mxu1 %v300_v13  ;;  %v188_v17 = vld [vmem:[%s859_s24 + $0x18] sm:$0xff] }
  0x21   : > { %v229_v15 = vpack.c.bf16 %v202_v12, %v201_v11  ;;  %710 = vmatpush3.bf16.msra.mxu0 %v300_v13  ;;  %747 = vmatpush3.bf16.msra.mxu1 %v300_v13  ;;  %v203_v18 = vld [vmem:[%s859_s24 + $0x90] sm:$0xff]  ;;  %v204_v19 = vld [vmem:[%s859_s24 + $0x98] sm:$0xff]  ;;  %v189_v20 = vld [vmem:[%s859_s24 + $0x20] sm:$0xff]  ;;  %v222_v24 = vpack.c.bf16 %v188_v17, %v187_v16 }
  0x22   : > { %713 = vmatprep.mubr.msk.bf16.mxu0 %vm246_vm2, %v221_v10  ;;  %711 = vmatprep.subr.bf16.mxu0 %v237_v14  ;;  %v190_v21 = vld [vmem:[%s859_s24 + $0x28] sm:$0xff]  ;;  %v205_v22 = vld [vmem:[%s859_s24 + $0xa0] sm:$0xff]  ;;  %v230_v25 = vpack.c.bf16 %v204_v19, %v203_v18  ;;  %v191_v28 = vld [vmem:[%s859_s24 + $0x30] sm:$0xff] }
  0x23   : > { %746 = vmatprep.subr.bf16.mxu1 %v237_v14  ;;  %v206_v23 = vld [vmem:[%s859_s24 + $0xa8] sm:$0xff]  ;;  %729 = vmatprep.mubr.msk.bf16.mxu1 %vm246_vm2, %v229_v15  ;;  %v223_v26 = vpack.c.bf16 %v190_v21, %v189_v20  ;;  %v192_v29 = vld [vmem:[%s859_s24 + $0x38] sm:$0xff]  ;;  %v207_v30 = vld [vmem:[%s859_s24 + $0xb0] sm:$0xff] }
  0x24   : > { %v231_v27 = vpack.c.bf16 %v206_v23, %v205_v22  ;;  %v208_v31 = vld [vmem:[%s859_s24 + $0xb8] sm:$0xff]  ;;  %v193_v32 = vld [vmem:[%s859_s24 + $0x40] sm:$0xff]  ;;  %v194_v33 = vld [vmem:[%s859_s24 + $0x48] sm:$0xff]  ;;  %v224_v36 = vpack.c.bf16 %v192_v29, %v191_v28 }
  0x25   : > { %712 = vmatpush3.bf16.msra.mxu0 %v237_v14  ;;  %748 = vmatpush3.bf16.msra.mxu1 %v237_v14  ;;  %v209_v34 = vld [vmem:[%s859_s24 + $0xc0] sm:$0xff]  ;;  %v210_v35 = vld [vmem:[%s859_s24 + $0xc8] sm:$0xff]  ;;  %v232_v37 = vpack.c.bf16 %v208_v31, %v207_v30  ;;  %v225_v38 = vpack.c.bf16 %v194_v33, %v193_v32  ;;  %v195_v40 = vld [vmem:[%s859_s24 + $0x50] sm:$0xff] }
  0x26   : > { %v233_v39 = vpack.c.bf16 %v210_v35, %v209_v34  ;;  %v196_v41 = vld [vmem:[%s859_s24 + $0x58] sm:$0xff]  ;;  %v211_v42 = vld [vmem:[%s859_s24 + $0xd0] sm:$0xff]  ;;  %v197_v44 = vld [vmem:[%s859_s24 + $0x60] sm:$0xff] }
  0x27   : > { %v212_v43 = vld [vmem:[%s859_s24 + $0xd8] sm:$0xff]  ;;  %v198_v45 = vld [vmem:[%s859_s24 + $0x68] sm:$0xff]  ;;  %v213_v46 = vld [vmem:[%s859_s24 + $0xe0] sm:$0xff]  ;;  %v226_v48 = vpack.c.bf16 %v196_v41, %v195_v40 }
  0x28   : > { %714 = vmatmul.mubr.msk.bf16.vlgmr.msra.gmra.mxu0 %vm246_vm2, %v222_v24  ;;  %730 = vmatmul.mubr.msk.bf16.vlgmr.msra.gmra.mxu1 %vm246_vm2, %v230_v25  ;;  %v214_v47 = vld [vmem:[%s859_s24 + $0xe8] sm:$0xff]  ;;  %v234_v49 = vpack.c.bf16 %v212_v43, %v211_v42  ;;  %v227_v50 = vpack.c.bf16 %v198_v45, %v197_v44  ;;  %v199_v52 = vld [vmem:[%s859_s24 + $0x70] sm:$0xff]  ;;  %v200_v53 = vld [vmem:[%s859_s24 + $0x78] sm:$0xff] }
  0x29   : > { %717 = vmatprep.mubr.msk.bf16.mxu0 %vm246_vm2, %v223_v26  ;;  %733 = vmatprep.mubr.msk.bf16.mxu1 %vm246_vm2, %v231_v27  ;;  %v235_v51 = vpack.c.bf16 %v214_v47, %v213_v46  ;;  %v215_v54 = vld [vmem:[%s859_s24 + $0xf0] sm:$0xff]  ;;  %v216_v55 = vld [vmem:[%s859_s24 + $0xf8] sm:$0xff]  ;;  %v228_v56 = vpack.c.bf16 %v200_v53, %v199_v52 }
  0x2a   : > { %v236_v57 = vpack.c.bf16 %v216_v55, %v215_v54 }
  0x30   : > { %718 = vmatmul.mubr.msk.bf16.gmra.mxu0 %vm246_vm2, %v224_v36  ;;  %734 = vmatmul.mubr.msk.bf16.gmra.mxu1 %vm246_vm2, %v232_v37 }
  0x31   : > { %721 = vmatprep.mubr.msk.bf16.mxu0 %vm246_vm2, %v225_v38  ;;  %737 = vmatprep.mubr.msk.bf16.mxu1 %vm246_vm2, %v233_v39 }
  0x38   : > { %722 = vmatmul.mubr.msk.bf16.gmra.mxu0 %vm246_vm2, %v226_v48  ;;  %738 = vmatmul.mubr.msk.bf16.gmra.mxu1 %vm246_vm2, %v234_v49 }
  0x39   : > { %725 = vmatprep.mubr.msk.bf16.mxu0 %vm246_vm2, %v227_v50  ;;  %741 = vmatprep.mubr.msk.bf16.mxu1 %vm246_vm2, %v235_v51 }
  0x40   : > { %726 = vmatmul.mubr.msk.bf16.gmra.mxu0 %vm246_vm2, %v228_v56  ;;  %742 = vmatmul.mubr.msk.bf16.gmra.mxu1 %vm246_vm2, %v236_v57 }
  0xe8   : > { %v715_v59 = vpop.f32.mrf.mxu0  ;;  %v731_v60 = vpop.f32.mrf.mxu1 }
  0xe9   : > { %v345_v61 = vadd.f32 %v715_v59, %v921_v58  ;;  %v409_v62 = vadd.f32 %v731_v60, %v921_v58 }
  0xea   : > { %v336_v63 = vpop.f32.mrf.mxu0  ;;  %v400_v0 = vpop.f32.mrf.mxu1 }
  0xeb   : > { %vm465_vm4 = vcmp.ge.f32.partialorder %v345_v61, 0.0  ;;  %v497_v1 = vmul.f32 0.2, %v345_v61  ;;  %vm481_vm5 = vcmp.ge.f32.partialorder %v409_v62, 0.0  ;;  %v513_v2 = vmul.f32 0.2, %v409_v62 }
  0xec   : > { %v337_v3 = vadd.f32 %v921_v58, %v336_v63  ;;  %v401_v4 = vadd.f32 %v921_v58, %v400_v0  ;;  %v716_v5 = vpop.f32.mrf.mxu0  ;;  %v732_v6 = vpop.f32.mrf.mxu1 }
  0xed   : > { %v529_v7 = vsel %vm465_vm4, %v345_v61, %v497_v1  ;;  %v545_v8 = vsel %vm481_vm5, %v409_v62, %v513_v2  ;;  %v348_v9 = vadd.f32 %v716_v5, %v921_v58  ;;  %v412_v10 = vadd.f32 %v732_v6, %v921_v58 }
  0xee   : > { %562 = vst.msk [vmem:[%s930_s8 + $0x10] sm:$0xff] %vm559_vm3, %v529_v7  ;;  %578 = vst.msk [vmem:[%s930_s8 + $0x90] sm:$0xff] %vm559_vm3, %v545_v8  ;;  %vm463_vm6 = vcmp.ge.f32.partialorder %v337_v3, 0.0  ;;  %v495_v11 = vmul.f32 0.2, %v337_v3  ;;  %vm479_vm7 = vcmp.ge.f32.partialorder %v401_v4, 0.0  ;;  %v339_v13 = vpop.f32.mrf.mxu0  ;;  %v403_v14 = vpop.f32.mrf.mxu1 }
  0xef   : > { %v511_v12 = vmul.f32 0.2, %v401_v4  ;;  %vm466_vm8 = vcmp.ge.f32.partialorder %v348_v9, 0.0  ;;  %v498_v15 = vmul.f32 0.2, %v348_v9  ;;  %vm482_vm9 = vcmp.ge.f32.partialorder %v412_v10, 0.0 }
  0xf0   : > { %v514_v16 = vmul.f32 0.2, %v412_v10  ;;  %v527_v17 = vsel %vm463_vm6, %v337_v3, %v495_v11  ;;  %v340_v19 = vadd.f32 %v921_v58, %v339_v13  ;;  %v404_v20 = vadd.f32 %v921_v58, %v403_v14  ;;  %v719_v21 = vpop.f32.mrf.mxu0  ;;  %v735_v22 = vpop.f32.mrf.mxu1 }
  0xf1   : > { %v543_v18 = vsel %vm479_vm7, %v401_v4, %v511_v12  ;;  %560 = vst.msk [vmem:[%s930_s8] sm:$0xff] %vm559_vm3, %v527_v17  ;;  %v530_v23 = vsel %vm466_vm8, %v348_v9, %v498_v15  ;;  %v361_v25 = vadd.f32 %v719_v21, %v921_v58  ;;  %v425_v26 = vadd.f32 %v735_v22, %v921_v58 }
  0xf2   : > { %576 = vst.msk [vmem:[%s930_s8 + $0x80] sm:$0xff] %vm559_vm3, %v543_v18  ;;  %v546_v24 = vsel %vm482_vm9, %v412_v10, %v514_v16  ;;  %563 = vst.msk [vmem:[%s930_s8 + $0x18] sm:$0xff] %vm559_vm3, %v530_v23  ;;  %vm464_vm10 = vcmp.ge.f32.partialorder %v340_v19, 0.0  ;;  %v496_v27 = vmul.f32 0.2, %v340_v19  ;;  %vm480_vm11 = vcmp.ge.f32.partialorder %v404_v20, 0.0  ;;  %v352_v29 = vpop.f32.mrf.mxu0  ;;  %v416_v30 = vpop.f32.mrf.mxu1 }
  0xf3   : > { %579 = vst.msk [vmem:[%s930_s8 + $0x98] sm:$0xff] %vm559_vm3, %v546_v24  ;;  %v512_v28 = vmul.f32 0.2, %v404_v20  ;;  %vm469_vm12 = vcmp.ge.f32.partialorder %v361_v25, 0.0  ;;  %v501_v31 = vmul.f32 0.2, %v361_v25  ;;  %v353_v35 = vadd.f32 %v921_v58, %v352_v29 }
  0xf4   : > { %vm485_vm13 = vcmp.ge.f32.partialorder %v425_v26, 0.0  ;;  %v517_v32 = vmul.f32 0.2, %v425_v26  ;;  %v528_v33 = vsel %vm464_vm10, %v340_v19, %v496_v27  ;;  %v417_v36 = vadd.f32 %v921_v58, %v416_v30  ;;  %v720_v37 = vpop.f32.mrf.mxu0  ;;  %v736_v38 = vpop.f32.mrf.mxu1 }
  0xf5   : > { %v544_v34 = vsel %vm480_vm11, %v404_v20, %v512_v28  ;;  %561 = vst.msk [vmem:[%s930_s8 + $0x8] sm:$0xff] %vm559_vm3, %v528_v33  ;;  %v533_v39 = vsel %vm469_vm12, %v361_v25, %v501_v31  ;;  %v364_v41 = vadd.f32 %v720_v37, %v921_v58  ;;  %v428_v42 = vadd.f32 %v736_v38, %v921_v58 }
  0xf6   : > { %577 = vst.msk [vmem:[%s930_s8 + $0x88] sm:$0xff] %vm559_vm3, %v544_v34  ;;  %v549_v40 = vsel %vm485_vm13, %v425_v26, %v517_v32  ;;  %566 = vst.msk [vmem:[%s930_s8 + $0x30] sm:$0xff] %vm559_vm3, %v533_v39  ;;  %vm467_vm14 = vcmp.ge.f32.partialorder %v353_v35, 0.0  ;;  %v499_v43 = vmul.f32 0.2, %v353_v35  ;;  %vm483_vm15 = vcmp.ge.f32.partialorder %v417_v36, 0.0  ;;  %v355_v45 = vpop.f32.mrf.mxu0  ;;  %v419_v46 = vpop.f32.mrf.mxu1 }
  0xf7   : > { %582 = vst.msk [vmem:[%s930_s8 + $0xb0] sm:$0xff] %vm559_vm3, %v549_v40  ;;  %v515_v44 = vmul.f32 0.2, %v417_v36  ;;  %vm470_vm0 = vcmp.ge.f32.partialorder %v364_v41, 0.0  ;;  %v502_v47 = vmul.f32 0.2, %v364_v41  ;;  %v356_v51 = vadd.f32 %v921_v58, %v355_v45 }
  0xf8   : > { %vm486_vm1 = vcmp.ge.f32.partialorder %v428_v42, 0.0  ;;  %v518_v48 = vmul.f32 0.2, %v428_v42  ;;  %v531_v49 = vsel %vm467_vm14, %v353_v35, %v499_v43  ;;  %v420_v52 = vadd.f32 %v921_v58, %v419_v46  ;;  %v723_v53 = vpop.f32.mrf.mxu0  ;;  %v739_v54 = vpop.f32.mrf.mxu1 }
  0xf9   : > { %v547_v50 = vsel %vm483_vm15, %v417_v36, %v515_v44  ;;  %564 = vst.msk [vmem:[%s930_s8 + $0x20] sm:$0xff] %vm559_vm3, %v531_v49  ;;  %v534_v55 = vsel %vm470_vm0, %v364_v41, %v502_v47  ;;  %v377_v57 = vadd.f32 %v723_v53, %v921_v58  ;;  %v441_v59 = vadd.f32 %v739_v54, %v921_v58 }
  0xfa   : > { %580 = vst.msk [vmem:[%s930_s8 + $0xa0] sm:$0xff] %vm559_vm3, %v547_v50  ;;  %v550_v56 = vsel %vm486_vm1, %v428_v42, %v518_v48  ;;  %567 = vst.msk [vmem:[%s930_s8 + $0x38] sm:$0xff] %vm559_vm3, %v534_v55  ;;  %vm468_vm2 = vcmp.ge.f32.partialorder %v356_v51, 0.0  ;;  %v500_v60 = vmul.f32 0.2, %v356_v51  ;;  %vm484_vm4 = vcmp.ge.f32.partialorder %v420_v52, 0.0  ;;  %v368_v62 = vpop.f32.mrf.mxu0  ;;  %v432_v63 = vpop.f32.mrf.mxu1 }
  0xfb   : > { %583 = vst.msk [vmem:[%s930_s8 + $0xb8] sm:$0xff] %vm559_vm3, %v550_v56  ;;  %v516_v61 = vmul.f32 0.2, %v420_v52  ;;  %vm473_vm5 = vcmp.ge.f32.partialorder %v377_v57, 0.0  ;;  %v505_v0 = vmul.f32 0.2, %v377_v57  ;;  %v369_v4 = vadd.f32 %v921_v58, %v368_v62 }
  0xfc   : > { %vm489_vm6 = vcmp.ge.f32.partialorder %v441_v59, 0.0  ;;  %v521_v1 = vmul.f32 0.2, %v441_v59  ;;  %v532_v2 = vsel %vm468_vm2, %v356_v51, %v500_v60  ;;  %v433_v5 = vadd.f32 %v921_v58, %v432_v63  ;;  %v724_v6 = vpop.f32.mrf.mxu0  ;;  %v740_v7 = vpop.f32.mrf.mxu1 }
  0xfd   : > { %v548_v3 = vsel %vm484_vm4, %v420_v52, %v516_v61  ;;  %565 = vst.msk [vmem:[%s930_s8 + $0x28] sm:$0xff] %vm559_vm3, %v532_v2  ;;  %v537_v8 = vsel %vm473_vm5, %v377_v57, %v505_v0  ;;  %v380_v10 = vadd.f32 %v724_v6, %v921_v58  ;;  %v444_v11 = vadd.f32 %v740_v7, %v921_v58 }
  0xfe   : > { %581 = vst.msk [vmem:[%s930_s8 + $0xa8] sm:$0xff] %vm559_vm3, %v548_v3  ;;  %v553_v9 = vsel %vm489_vm6, %v441_v59, %v521_v1  ;;  %570 = vst.msk [vmem:[%s930_s8 + $0x50] sm:$0xff] %vm559_vm3, %v537_v8  ;;  %vm471_vm7 = vcmp.ge.f32.partialorder %v369_v4, 0.0  ;;  %v503_v12 = vmul.f32 0.2, %v369_v4  ;;  %vm487_vm8 = vcmp.ge.f32.partialorder %v433_v5, 0.0  ;;  %v371_v14 = vpop.f32.mrf.mxu0  ;;  %v435_v15 = vpop.f32.mrf.mxu1 }
  0xff   : > { %586 = vst.msk [vmem:[%s930_s8 + $0xd0] sm:$0xff] %vm559_vm3, %v553_v9  ;;  %v519_v13 = vmul.f32 0.2, %v433_v5  ;;  %vm474_vm9 = vcmp.ge.f32.partialorder %v380_v10, 0.0  ;;  %v506_v16 = vmul.f32 0.2, %v380_v10  ;;  %v372_v20 = vadd.f32 %v921_v58, %v371_v14 }
 0x100   : > { %vm490_vm10 = vcmp.ge.f32.partialorder %v444_v11, 0.0  ;;  %v522_v17 = vmul.f32 0.2, %v444_v11  ;;  %v535_v18 = vsel %vm471_vm7, %v369_v4, %v503_v12  ;;  %v436_v21 = vadd.f32 %v921_v58, %v435_v15  ;;  %v727_v22 = vpop.f32.mrf.mxu0  ;;  %v743_v23 = vpop.f32.mrf.mxu1 }
 0x101   : > { %v551_v19 = vsel %vm487_vm8, %v433_v5, %v519_v13  ;;  %568 = vst.msk [vmem:[%s930_s8 + $0x40] sm:$0xff] %vm559_vm3, %v535_v18  ;;  %v538_v24 = vsel %vm474_vm9, %v380_v10, %v506_v16  ;;  %v393_v26 = vadd.f32 %v727_v22, %v921_v58  ;;  %v457_v27 = vadd.f32 %v743_v23, %v921_v58 }
 0x102   : > { %584 = vst.msk [vmem:[%s930_s8 + $0xc0] sm:$0xff] %vm559_vm3, %v551_v19  ;;  %v554_v25 = vsel %vm490_vm10, %v444_v11, %v522_v17  ;;  %571 = vst.msk [vmem:[%s930_s8 + $0x58] sm:$0xff] %vm559_vm3, %v538_v24  ;;  %vm472_vm11 = vcmp.ge.f32.partialorder %v372_v20, 0.0  ;;  %v504_v28 = vmul.f32 0.2, %v372_v20  ;;  %vm488_vm12 = vcmp.ge.f32.partialorder %v436_v21, 0.0  ;;  %v384_v30 = vpop.f32.mrf.mxu0  ;;  %v448_v31 = vpop.f32.mrf.mxu1 }
 0x103   : > { %587 = vst.msk [vmem:[%s930_s8 + $0xd8] sm:$0xff] %vm559_vm3, %v554_v25  ;;  %v520_v29 = vmul.f32 0.2, %v436_v21  ;;  %vm477_vm13 = vcmp.ge.f32.partialorder %v393_v26, 0.0  ;;  %v509_v32 = vmul.f32 0.2, %v393_v26  ;;  %v385_v36 = vadd.f32 %v921_v58, %v384_v30 }
 0x104   : > { %vm493_vm14 = vcmp.ge.f32.partialorder %v457_v27, 0.0  ;;  %v525_v33 = vmul.f32 0.2, %v457_v27  ;;  %v536_v34 = vsel %vm472_vm11, %v372_v20, %v504_v28  ;;  %v449_v37 = vadd.f32 %v921_v58, %v448_v31  ;;  %v728_v38 = vpop.f32.mrf.mxu0  ;;  %v744_v39 = vpop.f32.mrf.mxu1 }
 0x105   : > { %v552_v35 = vsel %vm488_vm12, %v436_v21, %v520_v29  ;;  %569 = vst.msk [vmem:[%s930_s8 + $0x48] sm:$0xff] %vm559_vm3, %v536_v34  ;;  %v541_v40 = vsel %vm477_vm13, %v393_v26, %v509_v32  ;;  %v396_v42 = vadd.f32 %v728_v38, %v921_v58  ;;  %v460_v43 = vadd.f32 %v744_v39, %v921_v58 }
 0x106   : > { %585 = vst.msk [vmem:[%s930_s8 + $0xc8] sm:$0xff] %vm559_vm3, %v552_v35  ;;  %v557_v41 = vsel %vm493_vm14, %v457_v27, %v525_v33  ;;  %574 = vst.msk [vmem:[%s930_s8 + $0x70] sm:$0xff] %vm559_vm3, %v541_v40  ;;  %vm475_vm15 = vcmp.ge.f32.partialorder %v385_v36, 0.0  ;;  %v507_v44 = vmul.f32 0.2, %v385_v36  ;;  %vm491_vm0 = vcmp.ge.f32.partialorder %v449_v37, 0.0  ;;  %v387_v46 = vpop.f32.mrf.mxu0  ;;  %v451_v47 = vpop.f32.mrf.mxu1 }
 0x107   : > { %590 = vst.msk [vmem:[%s930_s8 + $0xf0] sm:$0xff] %vm559_vm3, %v557_v41  ;;  %v523_v45 = vmul.f32 0.2, %v449_v37  ;;  %vm478_vm1 = vcmp.ge.f32.partialorder %v396_v42, 0.0  ;;  %v510_v48 = vmul.f32 0.2, %v396_v42  ;;  %v388_v52 = vadd.f32 %v921_v58, %v387_v46 }
 0x108   : > { %vm494_vm2 = vcmp.ge.f32.partialorder %v460_v43, 0.0  ;;  %v526_v49 = vmul.f32 0.2, %v460_v43  ;;  %v539_v50 = vsel %vm475_vm15, %v385_v36, %v507_v44  ;;  %v452_v53 = vadd.f32 %v921_v58, %v451_v47 }
 0x109   : > { %v555_v51 = vsel %vm491_vm0, %v449_v37, %v523_v45  ;;  %572 = vst.msk [vmem:[%s930_s8 + $0x60] sm:$0xff] %vm559_vm3, %v539_v50  ;;  %v542_v54 = vsel %vm478_vm1, %v396_v42, %v510_v48  ;;  %vm476_vm4 = vcmp.ge.f32.partialorder %v388_v52, 0.0  ;;  %v508_v56 = vmul.f32 0.2, %v388_v52 }
 0x10a   : > { %588 = vst.msk [vmem:[%s930_s8 + $0xe0] sm:$0xff] %vm559_vm3, %v555_v51  ;;  %v558_v55 = vsel %vm494_vm2, %v460_v43, %v526_v49  ;;  %575 = vst.msk [vmem:[%s930_s8 + $0x78] sm:$0xff] %vm559_vm3, %v542_v54  ;;  %vm492_vm5 = vcmp.ge.f32.partialorder %v452_v53, 0.0  ;;  %v524_v57 = vmul.f32 0.2, %v452_v53 }
 0x10b   : > { %591 = vst.msk [vmem:[%s930_s8 + $0xf8] sm:$0xff] %vm559_vm3, %v558_v55  ;;  %v540_v59 = vsel %vm476_vm4, %v388_v52, %v508_v56 }
 0x10c   : > { %v556_v60 = vsel %vm492_vm5, %v452_v53, %v524_v57  ;;  %573 = vst.msk [vmem:[%s930_s8 + $0x68] sm:$0xff] %vm559_vm3, %v540_v59 }
 0x10d   : > { %589 = vst.msk [vmem:[%s930_s8 + $0xe8] sm:$0xff] %vm559_vm3, %v556_v60 }
 0x10e PF: > { %s14_s12 = sadd.s32 1, %s805_s12  }
 0x10f   : > { %p11_p1 = scmp.ge.s32.totalorder %s14_s12, 4  }
 0x111   :  { %13 = sbr.rel (!%p11_p1) target bundleno = 1 (0x1), region = 67 }
 0x116   :  { %613 = vsyncpa [#allocation3], 1 }
 0x117   :  { %615 = vsyncpa [#allocation3 + $0x1], 1 }

// kernel: classifier_forward.6
= control target key start
LH: loop header
LB: loop body
LE: loop exit
PB: predicated region body
PF: predicated region fallthrough
CT: control target
= control target key end

     0   :  { %s866_s12 = smov 0   ;;  %s1182_s0 = inlined_call_operand.vmem [shape: f32[2,64,576], index: 0, kind: input, shape index: {}]   ;;  %s1183_s1 = inlined_call_operand.vmem [shape: f32[576,128], index: 1, kind: input, shape index: {}]   ;;  %s1184_s2 = inlined_call_operand.vmem [shape: f32[1,128], index: 2, kind: input, shape index: {}]   ;;  %s1185_s3 = inlined_call_operand.vmem [shape: f32[2,64,128], index: 3, kind: output, shape index: {}]  }
   0x1 LB: > { %s699_s13 = sadd.s32 4294967295, %s844_s12   ;;  %p703_p0 = scmp.ge.s32.totalorder %s844_s12, 1  ;;  %s844_s12 = sphi %s866_s12, %s13_s12  }
   0x2   : > { %p137_p1 = scmp.lt.s32.totalorder %s844_s12, 3 }
   0x4   : > { %p138_p2 = pnand %p703_p0, %p137_p1 }
   0x5   : > { %p939_p3 = scmp.lt.s32.totalorder (!%p138_p2), %s699_s13, 1 }
   0x6   : > { %141 = sbr.rel (%p138_p2) target bundleno = 339 (0x153), region = 32 }
   0xb   : > { %v242_v0 = vld [vmem:[%s1183_s1 + $0xf0] sm:$0xff]  ;;  %v243_v1 = vld [vmem:[%s1183_s1 + $0xf8] sm:$0xff]  ;;  %v240_v11 = vld [vmem:[%s1183_s1 + $0xe0] sm:$0xff]  ;;  %s1188_s13 = smov (!%p939_p3, %s699_s13), 1  ;;  %vm347_vm0 = vcmask 523264  }
   0xc   : > { %v274_v2 = vld [vmem:[%s1183_s1 + $0x1f0] sm:$0xff]  ;;  %v319_v3 = vpack.c.bf16 %v243_v1, %v242_v0  ;;  %v275_v4 = vld [vmem:[%s1183_s1 + $0x1f8] sm:$0xff]  ;;  %v241_v13 = vld [vmem:[%s1183_s1 + $0xe8] sm:$0xff]  ;;  %s827_s24 = smul.u32 320, %s1188_s13  ;;  %s714_s15 = sshll.u32 %s1188_s13, 6 }
   0xd   : > { %v226_v5 = vld [vmem:[%s1183_s1 + $0x70] sm:$0xff]  ;;  %v227_v6 = vld [vmem:[%s1183_s1 + $0x78] sm:$0xff]  ;;  %v335_v7 = vpack.c.bf16 %v275_v4, %v274_v2  ;;  %v272_v14 = vld [vmem:[%s1183_s1 + $0x1e0] sm:$0xff]  ;;  %v318_v16 = vpack.c.bf16 %v241_v13, %v240_v11  ;;  %s170_s19 = scalar_lea.vmem %s1185_s3, %s714_s15 }
   0xe   : > { %v311_v8 = vpack.c.bf16 %v227_v6, %v226_v5  ;;  %v258_v9 = vld [vmem:[%s1183_s1 + $0x170] sm:$0xff]  ;;  %v259_v10 = vld [vmem:[%s1183_s1 + $0x178] sm:$0xff]  ;;  %715 = vmatprep.subr.bf16.mxu0 %v319_v3  ;;  %v273_v15 = vld [vmem:[%s1183_s1 + $0x1e8] sm:$0xff]  ;;  %s1040_s18 = scalar_lea.vmem %s1182_s0, %s827_s24 }
   0xf   : > { %v327_v12 = vpack.c.bf16 %v259_v10, %v258_v9  ;;  %755 = vmatprep.subr.bf16.mxu1 %v335_v7  ;;  %v334_v17 = vpack.c.bf16 %v273_v15, %v272_v14  ;;  %v224_v18 = vld [vmem:[%s1183_s1 + $0x60] sm:$0xff]  ;;  %v225_v19 = vld [vmem:[%s1183_s1 + $0x68] sm:$0xff]  ;;  %v238_v23 = vld [vmem:[%s1183_s1 + $0xd0] sm:$0xff] }
  0x10   : > { %716 = vmatpush3.bf16.msra.mxu0 %v311_v8  ;;  %v256_v20 = vld [vmem:[%s1183_s1 + $0x160] sm:$0xff]  ;;  %v310_v21 = vpack.c.bf16 %v225_v19, %v224_v18  ;;  %v257_v22 = vld [vmem:[%s1183_s1 + $0x168] sm:$0xff]  ;;  %v239_v24 = vld [vmem:[%s1183_s1 + $0xd8] sm:$0xff] }
  0x11   : > { %756 = vmatpush3.bf16.msra.mxu1 %v327_v12  ;;  %717 = vmatprep.subr.bf16.mxu0 %v318_v16  ;;  %v326_v25 = vpack.c.bf16 %v257_v22, %v256_v20  ;;  %v317_v26 = vpack.c.bf16 %v239_v24, %v238_v23  ;;  %v270_v27 = vld [vmem:[%s1183_s1 + $0x1d0] sm:$0xff]  ;;  %v271_v28 = vld [vmem:[%s1183_s1 + $0x1d8] sm:$0xff]  ;;  %v236_v35 = vld [vmem:[%s1183_s1 + $0xc0] sm:$0xff] }
  0x12   : > { %757 = vmatprep.subr.bf16.mxu1 %v334_v17  ;;  %v222_v29 = vld [vmem:[%s1183_s1 + $0x50] sm:$0xff]  ;;  %v333_v30 = vpack.c.bf16 %v271_v28, %v270_v27  ;;  %v223_v31 = vld [vmem:[%s1183_s1 + $0x58] sm:$0xff]  ;;  %v237_v36 = vld [vmem:[%s1183_s1 + $0xc8] sm:$0xff] }
  0x13   : > { %v254_v32 = vld [vmem:[%s1183_s1 + $0x150] sm:$0xff]  ;;  %v255_v33 = vld [vmem:[%s1183_s1 + $0x158] sm:$0xff]  ;;  %v309_v34 = vpack.c.bf16 %v223_v31, %v222_v29  ;;  %v268_v37 = vld [vmem:[%s1183_s1 + $0x1c0] sm:$0xff]  ;;  %v316_v39 = vpack.c.bf16 %v237_v36, %v236_v35 }
  0x14   : > { %718 = vmatpush3.bf16.msra.mxu0 %v310_v21  ;;  %v325_v38 = vpack.c.bf16 %v255_v33, %v254_v32  ;;  %v269_v40 = vld [vmem:[%s1183_s1 + $0x1c8] sm:$0xff]  ;;  %v220_v41 = vld [vmem:[%s1183_s1 + $0x40] sm:$0xff]  ;;  %v234_v46 = vld [vmem:[%s1183_s1 + $0xb0] sm:$0xff] }
  0x15   : > { %758 = vmatpush3.bf16.msra.mxu1 %v326_v25  ;;  %719 = vmatprep.subr.bf16.mxu0 %v317_v26  ;;  %v221_v42 = vld [vmem:[%s1183_s1 + $0x48] sm:$0xff]  ;;  %v332_v43 = vpack.c.bf16 %v269_v40, %v268_v37  ;;  %v252_v44 = vld [vmem:[%s1183_s1 + $0x140] sm:$0xff]  ;;  %v235_v47 = vld [vmem:[%s1183_s1 + $0xb8] sm:$0xff] }
  0x16   : > { %759 = vmatprep.subr.bf16.mxu1 %v333_v30  ;;  %v253_v45 = vld [vmem:[%s1183_s1 + $0x148] sm:$0xff]  ;;  %v266_v48 = vld [vmem:[%s1183_s1 + $0x1b0] sm:$0xff]  ;;  %v267_v49 = vld [vmem:[%s1183_s1 + $0x1b8] sm:$0xff]  ;;  %v308_v50 = vpack.c.bf16 %v221_v42, %v220_v41  ;;  %v315_v52 = vpack.c.bf16 %v235_v47, %v234_v46 }
  0x17   : > { %v324_v51 = vpack.c.bf16 %v253_v45, %v252_v44  ;;  %v218_v53 = vld [vmem:[%s1183_s1 + $0x30] sm:$0xff]  ;;  %v219_v54 = vld [vmem:[%s1183_s1 + $0x38] sm:$0xff]  ;;  %v331_v56 = vpack.c.bf16 %v267_v49, %v266_v48  ;;  %v232_v58 = vld [vmem:[%s1183_s1 + $0xa0] sm:$0xff] }
  0x18   : > { %720 = vmatpush3.bf16.msra.mxu0 %v309_v34  ;;  %v250_v55 = vld [vmem:[%s1183_s1 + $0x130] sm:$0xff]  ;;  %v251_v57 = vld [vmem:[%s1183_s1 + $0x138] sm:$0xff]  ;;  %v233_v59 = vld [vmem:[%s1183_s1 + $0xa8] sm:$0xff]  ;;  %v307_v62 = vpack.c.bf16 %v219_v54, %v218_v53 }
  0x19   : > { %760 = vmatpush3.bf16.msra.mxu1 %v325_v38  ;;  %721 = vmatprep.subr.bf16.mxu0 %v316_v39  ;;  %v264_v60 = vld [vmem:[%s1183_s1 + $0x1a0] sm:$0xff]  ;;  %v265_v61 = vld [vmem:[%s1183_s1 + $0x1a8] sm:$0xff]  ;;  %v323_v63 = vpack.c.bf16 %v251_v57, %v250_v55  ;;  %v314_v0 = vpack.c.bf16 %v233_v59, %v232_v58  ;;  %v230_v6 = vld [vmem:[%s1183_s1 + $0x90] sm:$0xff] }
  0x1a   : > { %761 = vmatprep.subr.bf16.mxu1 %v332_v43  ;;  %v216_v1 = vld [vmem:[%s1183_s1 + $0x20] sm:$0xff]  ;;  %v217_v2 = vld [vmem:[%s1183_s1 + $0x28] sm:$0xff]  ;;  %v330_v4 = vpack.c.bf16 %v265_v61, %v264_v60  ;;  %v231_v7 = vld [vmem:[%s1183_s1 + $0x98] sm:$0xff] }
  0x1b   : > { %v248_v3 = vld [vmem:[%s1183_s1 + $0x120] sm:$0xff]  ;;  %v249_v5 = vld [vmem:[%s1183_s1 + $0x128] sm:$0xff]  ;;  %v262_v8 = vld [vmem:[%s1183_s1 + $0x190] sm:$0xff]  ;;  %v306_v11 = vpack.c.bf16 %v217_v2, %v216_v1  ;;  %v313_v16 = vpack.c.bf16 %v231_v7, %v230_v6 }
  0x1c   : > { %722 = vmatpush3.bf16.msra.mxu0 %v308_v50  ;;  %v263_v9 = vld [vmem:[%s1183_s1 + $0x198] sm:$0xff]  ;;  %v214_v10 = vld [vmem:[%s1183_s1 + $0x10] sm:$0xff]  ;;  %v322_v15 = vpack.c.bf16 %v249_v5, %v248_v3  ;;  %v228_v17 = vld [vmem:[%s1183_s1 + $0x80] sm:$0xff] }
  0x1d   : > { %762 = vmatpush3.bf16.msra.mxu1 %v324_v51  ;;  %723 = vmatprep.subr.bf16.mxu0 %v315_v52  ;;  %v215_v12 = vld [vmem:[%s1183_s1 + $0x18] sm:$0xff]  ;;  %v246_v13 = vld [vmem:[%s1183_s1 + $0x110] sm:$0xff]  ;;  %v173_v18 = vld [vmem:[%s1040_s18 + $0x8] sm:$0xff]  ;;  %v329_v20 = vpack.c.bf16 %v263_v9, %v262_v8 }
  0x1e   : > { %763 = vmatprep.subr.bf16.mxu1 %v331_v56  ;;  %v247_v14 = vld [vmem:[%s1183_s1 + $0x118] sm:$0xff]  ;;  %v178_v19 = vld [vmem:[%s1040_s18 + $0x30] sm:$0xff]  ;;  %v229_v21 = vld [vmem:[%s1183_s1 + $0x88] sm:$0xff]  ;;  %v305_v28 = vpack.c.bf16 %v215_v12, %v214_v10 }
  0x1f   : > { %v285_v22 = vpack.c.bf16 %v178_v19, %v173_v18  ;;  %v175_v23 = vld [vmem:[%s1040_s18 + $0x18] sm:$0xff]  ;;  %v180_v24 = vld [vmem:[%s1040_s18 + $0x40] sm:$0xff]  ;;  %v261_v26 = vld [vmem:[%s1183_s1 + $0x188] sm:$0xff]  ;;  %v321_v29 = vpack.c.bf16 %v247_v14, %v246_v13  ;;  %v312_v30 = vpack.c.bf16 %v229_v21, %v228_v17 }
  0x20   : > { %724 = vmatpush3.bf16.msra.mxu0 %v307_v62  ;;  %v260_v25 = vld [vmem:[%s1183_s1 + $0x180] sm:$0xff]  ;;  %v287_v27 = vpack.c.bf16 %v180_v24, %v175_v23  ;;  %v213_v32 = vld [vmem:[%s1183_s1 + $0x8] sm:$0xff]  ;;  %v282_v36 = vld [vmem:[%s1183_s1 + $0x230] sm:$0xff] }
  0x21   : > { %764 = vmatpush3.bf16.msra.mxu1 %v323_v63  ;;  %725 = vmatprep.subr.bf16.mxu0 %v314_v0  ;;  %v212_v31 = vld [vmem:[%s1183_s1] sm:$0xff]  ;;  %v328_v34 = vpack.c.bf16 %v261_v26, %v260_v25  ;;  %v245_v35 = vld [vmem:[%s1183_s1 + $0x108] sm:$0xff]  ;;  %v283_v37 = vld [vmem:[%s1183_s1 + $0x238] sm:$0xff] }
  0x22   : > { %765 = vmatprep.subr.bf16.mxu1 %v330_v4  ;;  %392 = vmatprep.mubr.bf16.mxu0 %v285_v22  ;;  %v244_v33 = vld [vmem:[%s1183_s1 + $0x100] sm:$0xff]  ;;  %v304_v38 = vpack.c.bf16 %v213_v32, %v212_v31  ;;  %v177_v40 = vld [vmem:[%s1040_s18 + $0x28] sm:$0xff]  ;;  %v174_v42 = vld [vmem:[%s1040_s18 + $0x10] sm:$0xff]  ;;  %v339_v44 = vpack.c.bf16 %v283_v37, %v282_v36 }
  0x23   : > { %457 = vmatprep.mubr.bf16.mxu1 %v287_v27  ;;  %v172_v39 = vld [vmem:[%s1040_s18] sm:$0xff]  ;;  %v320_v41 = vpack.c.bf16 %v245_v35, %v244_v33  ;;  %v179_v43 = vld [vmem:[%s1040_s18 + $0x38] sm:$0xff]  ;;  %v185_v47 = vld [vmem:[%s1040_s18 + $0x68] sm:$0xff] }
  0x24   : > { %726 = vmatpush3.bf16.msra.mxu0 %v306_v11  ;;  %v183_v45 = vld [vmem:[%s1040_s18 + $0x58] sm:$0xff]  ;;  %v188_v46 = vld [vmem:[%s1040_s18 + $0x80] sm:$0xff]  ;;  %v190_v48 = vld [vmem:[%s1040_s18 + $0x90] sm:$0xff]  ;;  %v284_v49 = vpack.c.bf16 %v177_v40, %v172_v39  ;;  %v286_v52 = vpack.c.bf16 %v179_v43, %v174_v42 }
  0x25   : > { %766 = vmatpush3.bf16.msra.mxu1 %v322_v15  ;;  %727 = vmatprep.subr.bf16.mxu0 %v313_v16  ;;  %v280_v50 = vld [vmem:[%s1183_s1 + $0x220] sm:$0xff]  ;;  %v281_v51 = vld [vmem:[%s1183_s1 + $0x228] sm:$0xff]  ;;  %v290_v53 = vpack.c.bf16 %v188_v46, %v183_v45  ;;  %v292_v54 = vpack.c.bf16 %v190_v48, %v185_v47  ;;  %v278_v56 = vld [vmem:[%s1183_s1 + $0x210] sm:$0xff] }
  0x26   : > { %767 = vmatprep.subr.bf16.mxu1 %v329_v20  ;;  %v338_v55 = vpack.c.bf16 %v281_v51, %v280_v50  ;;  %v279_v57 = vld [vmem:[%s1183_s1 + $0x218] sm:$0xff]  ;;  %v182_v58 = vld [vmem:[%s1040_s18 + $0x50] sm:$0xff]  ;;  %v184_v60 = vld [vmem:[%s1040_s18 + $0x60] sm:$0xff] }
  0x27   : > { %v187_v59 = vld [vmem:[%s1040_s18 + $0x78] sm:$0xff]  ;;  %v189_v61 = vld [vmem:[%s1040_s18 + $0x88] sm:$0xff]  ;;  %v198_v63 = vld [vmem:[%s1040_s18 + $0xd0] sm:$0xff]  ;;  %v337_v0 = vpack.c.bf16 %v279_v57, %v278_v56 }
  0x28   : > { %728 = vmatpush3.bf16.msra.mxu0 %v305_v28  ;;  %v193_v62 = vld [vmem:[%s1040_s18 + $0xa8] sm:$0xff]  ;;  %v195_v1 = vld [vmem:[%s1040_s18 + $0xb8] sm:$0xff]  ;;  %v200_v2 = vld [vmem:[%s1040_s18 + $0xe0] sm:$0xff]  ;;  %v289_v3 = vpack.c.bf16 %v187_v59, %v182_v58  ;;  %v291_v6 = vpack.c.bf16 %v189_v61, %v184_v60 }
  0x29   : > { %768 = vmatpush3.bf16.msra.mxu1 %v321_v29  ;;  %729 = vmatprep.subr.bf16.mxu0 %v312_v30  ;;  %v276_v4 = vld [vmem:[%s1183_s1 + $0x200] sm:$0xff]  ;;  %v277_v5 = vld [vmem:[%s1183_s1 + $0x208] sm:$0xff]  ;;  %v295_v7 = vpack.c.bf16 %v198_v63, %v193_v62  ;;  %v297_v8 = vpack.c.bf16 %v200_v2, %v195_v1  ;;  %v194_v12 = vld [vmem:[%s1040_s18 + $0xb0] sm:$0xff] }
  0x2a   : > { %769 = vmatprep.subr.bf16.mxu1 %v328_v34  ;;  %v336_v9 = vpack.c.bf16 %v277_v5, %v276_v4  ;;  %v192_v10 = vld [vmem:[%s1040_s18 + $0xa0] sm:$0xff]  ;;  %v197_v11 = vld [vmem:[%s1040_s18 + $0xc8] sm:$0xff]  ;;  %v199_v13 = vld [vmem:[%s1040_s18 + $0xd8] sm:$0xff] }
  0x2b   : > { %v203_v14 = vld [vmem:[%s1040_s18 + $0xf8] sm:$0xff]  ;;  %v208_v15 = vld [vmem:[%s1040_s18 + $0x120] sm:$0xff]  ;;  %v205_v16 = vld [vmem:[%s1040_s18 + $0x108] sm:$0xff]  ;;  %v294_v18 = vpack.c.bf16 %v197_v11, %v192_v10  ;;  %v296_v19 = vpack.c.bf16 %v199_v13, %v194_v12 }
  0x2c   : > { %730 = vmatpush3.bf16.msra.mxu0 %v304_v38  ;;  %v210_v17 = vld [vmem:[%s1040_s18 + $0x130] sm:$0xff]  ;;  %v300_v20 = vpack.c.bf16 %v208_v15, %v203_v14  ;;  %v207_v23 = vld [vmem:[%s1040_s18 + $0x118] sm:$0xff]  ;;  %v204_v24 = vld [vmem:[%s1040_s18 + $0x100] sm:$0xff] }
  0x2d   : > { %770 = vmatpush3.bf16.msra.mxu1 %v320_v41  ;;  %803 = vmatprep.subr.bf16.mxu0 %v339_v44  ;;  %v302_v21 = vpack.c.bf16 %v210_v17, %v205_v16  ;;  %v202_v22 = vld [vmem:[%s1040_s18 + $0xf0] sm:$0xff]  ;;  %v209_v25 = vld [vmem:[%s1040_s18 + $0x128] sm:$0xff]  ;;  %v176_v26 = vld [vmem:[%s1040_s18 + $0x20] sm:$0xff] }
  0x2e   : > { %819 = vmatprep.subr.bf16.mxu1 %v339_v44  ;;  %v181_v27 = vld [vmem:[%s1040_s18 + $0x48] sm:$0xff]  ;;  %v196_v28 = vld [vmem:[%s1040_s18 + $0xc0] sm:$0xff]  ;;  %v299_v30 = vpack.c.bf16 %v207_v23, %v202_v22  ;;  %v301_v31 = vpack.c.bf16 %v209_v25, %v204_v24  ;;  %v186_v34 = vld [vmem:[%s1040_s18 + $0x70] sm:$0xff] }
  0x2f   : > { %393 = vmatmul.mubr.bf16.vlgmr.msra.gmra.mxu0 %v284_v49  ;;  %v201_v29 = vld [vmem:[%s1040_s18 + $0xe8] sm:$0xff]  ;;  %v288_v32 = vpack.c.bf16 %v181_v27, %v176_v26  ;;  %v191_v35 = vld [vmem:[%s1040_s18 + $0x98] sm:$0xff]  ;;  %v206_v36 = vld [vmem:[%s1040_s18 + $0x110] sm:$0xff] }
  0x30   : > { %458 = vmatmul.mubr.bf16.vlgmr.msra.gmra.mxu1 %v286_v52  ;;  %804 = vmatpush3.bf16.msra.mxu0 %v339_v44  ;;  %v298_v33 = vpack.c.bf16 %v201_v29, %v196_v28  ;;  %v211_v37 = vld [vmem:[%s1040_s18 + $0x138] sm:$0xff]  ;;  %v293_v38 = vpack.c.bf16 %v191_v35, %v186_v34 }
  0x31   : > { %400 = vmatprep.mubr.bf16.mxu0 %v290_v53  ;;  %465 = vmatprep.mubr.bf16.mxu1 %v292_v54  ;;  %v303_v39 = vpack.c.bf16 %v211_v37, %v206_v36 }
  0x32   : > { %805 = vmatprep.subr.bf16.mxu0 %v338_v55  ;;  %823 = vmatpush3.bf16.msra.mxu1 %v339_v44 }
  0x33   : > { %820 = vmatprep.subr.bf16.mxu1 %v338_v55 }
  0x34   : > { %806 = vmatpush3.bf16.msra.mxu0 %v338_v55 }
  0x35   : > { %807 = vmatprep.subr.bf16.mxu0 %v337_v0 }
  0x36   : > { %824 = vmatpush3.bf16.msra.mxu1 %v338_v55 }
  0x37   : > { %401 = vmatmul.mubr.bf16.gmra.mxu0 %v289_v3  ;;  %821 = vmatprep.subr.bf16.mxu1 %v337_v0  ;;  %v707_v3 = vld [vmem:[%s1184_s2] ss:$0 sm:$0xff] }
  0x38   : > { %466 = vmatmul.mubr.bf16.gmra.mxu1 %v291_v6  ;;  %408 = vmatprep.mubr.bf16.mxu0 %v295_v7 }
  0x39   : > { %473 = vmatprep.mubr.bf16.mxu1 %v297_v8  ;;  %808 = vmatpush3.bf16.msra.mxu0 %v337_v0 }
  0x3a   : > { %809 = vmatprep.subr.bf16.mxu0 %v336_v9  ;;  %825 = vmatpush3.bf16.msra.mxu1 %v337_v0 }
  0x3b   : > { %822 = vmatprep.subr.bf16.mxu1 %v336_v9 }
  0x3d   : > { %810 = vmatpush3.bf16.msra.mxu0 %v336_v9 }
  0x3e   : > { %826 = vmatpush3.bf16.msra.mxu1 %v336_v9 }
  0x3f   : > { %409 = vmatmul.mubr.bf16.gmra.mxu0 %v294_v18 }
  0x40   : > { %474 = vmatmul.mubr.bf16.gmra.mxu1 %v296_v19  ;;  %416 = vmatprep.mubr.bf16.mxu0 %v300_v20 }
  0x41   : > { %481 = vmatprep.mubr.bf16.mxu1 %v302_v21 }
  0x47   : > { %417 = vmatmul.mubr.bf16.gmra.mxu0 %v299_v30 }
  0x48   : > { %482 = vmatmul.mubr.bf16.gmra.mxu1 %v301_v31  ;;  %811 = vmatprep.mubr.msk.bf16.mxu0 %vm347_vm0, %v288_v32 }
  0x49   : > { %815 = vmatprep.mubr.msk.bf16.mxu1 %vm347_vm0, %v298_v33 }
  0x4f   : > { %812 = vmatmul.mubr.msk.bf16.vlgmr.msra.gmra.mxu0 %vm347_vm0, %v293_v38 }
  0x50   : > { %816 = vmatmul.mubr.msk.bf16.vlgmr.msra.gmra.mxu1 %vm347_vm0, %v303_v39 }
  0xef   : > { %v731_v40 = vpop.f32.mrf.mxu0 }
  0xf0   : > { %v771_v41 = vpop.f32.mrf.mxu1 }
  0xf1   : > { %v732_v42 = vpop.f32.mrf.mxu0 }
  0xf2   : > { %v772_v43 = vpop.f32.mrf.mxu1  ;;  %v733_v1 = vadd.f32 %v732_v42, %v731_v40 }
  0xf3   : > { %v734_v44 = vpop.f32.mrf.mxu0  ;;  %v773_v10 = vadd.f32 %v772_v43, %v771_v41 }
  0xf4   : > { %v774_v45 = vpop.f32.mrf.mxu1  ;;  %v395_v9 = vadd.f32 %v733_v1, %v707_v3 }
  0xf5   : > { %v735_v46 = vpop.f32.mrf.mxu0 }
  0xf6   : > { %v775_v47 = vpop.f32.mrf.mxu1  ;;  %v736_v12 = vadd.f32 %v735_v46, %v734_v44  ;;  %v460_v24 = vadd.f32 %v773_v10, %v395_v9 }
  0xf7   : > { %v737_v48 = vpop.f32.mrf.mxu0  ;;  %v776_v26 = vadd.f32 %v775_v47, %v774_v45 }
  0xf8   : > { %v777_v49 = vpop.f32.mrf.mxu1  ;;  %v398_v25 = vadd.f32 %v736_v12, %v707_v3 }
  0xf9   : > { %v738_v50 = vpop.f32.mrf.mxu0 }
  0xfa   : > { %v778_v51 = vpop.f32.mrf.mxu1  ;;  %v739_v5 = vadd.f32 %v738_v50, %v737_v48  ;;  %v463_v44 = vadd.f32 %v776_v26, %v398_v25 }
  0xfb   : > { %v740_v52 = vpop.f32.mrf.mxu0  ;;  %v779_v15 = vadd.f32 %v778_v51, %v777_v49 }
  0xfc   : > { %v780_v53 = vpop.f32.mrf.mxu1  ;;  %v403_v14 = vadd.f32 %v739_v5, %v707_v3 }
  0xfd   : > { %v741_v54 = vpop.f32.mrf.mxu0 }
  0xfe   : > { %v781_v55 = vpop.f32.mrf.mxu1  ;;  %v742_v7 = vadd.f32 %v741_v54, %v740_v52  ;;  %v468_v31 = vadd.f32 %v779_v15, %v403_v14 }
  0xff   : > { %v743_v56 = vpop.f32.mrf.mxu0  ;;  %v782_v19 = vadd.f32 %v781_v55, %v780_v53 }
 0x100   : > { %v783_v57 = vpop.f32.mrf.mxu1  ;;  %v406_v18 = vadd.f32 %v742_v7, %v707_v3 }
 0x101   : > { %v744_v58 = vpop.f32.mrf.mxu0 }
 0x102   : > { %v784_v59 = vpop.f32.mrf.mxu1  ;;  %v745_v16 = vadd.f32 %v744_v58, %v743_v56  ;;  %v471_v35 = vadd.f32 %v782_v19, %v406_v18 }
 0x103   : > { %v746_v60 = vpop.f32.mrf.mxu0  ;;  %v785_v30 = vadd.f32 %v784_v59, %v783_v57 }
 0x104   : > { %v786_v61 = vpop.f32.mrf.mxu1  ;;  %v411_v29 = vadd.f32 %v745_v16, %v707_v3 }
 0x105   : > { %v747_v62 = vpop.f32.mrf.mxu0 }
 0x106   : > { %v787_v63 = vpop.f32.mrf.mxu1  ;;  %v748_v21 = vadd.f32 %v747_v62, %v746_v60  ;;  %v476_v47 = vadd.f32 %v785_v30, %v411_v29 }
 0x107   : > { %v749_v0 = vpop.f32.mrf.mxu0  ;;  %v788_v34 = vadd.f32 %v787_v63, %v786_v61 }
 0x108   : > { %v789_v2 = vpop.f32.mrf.mxu1  ;;  %v414_v37 = vadd.f32 %v748_v21, %v707_v3 }
 0x109   : > { %v750_v4 = vpop.f32.mrf.mxu0 }
 0x10a   : > { %v790_v6 = vpop.f32.mrf.mxu1  ;;  %v751_v22 = vadd.f32 %v750_v4, %v749_v0  ;;  %v479_v54 = vadd.f32 %v788_v34, %v414_v37 }
 0x10b   : > { %v752_v8 = vpop.f32.mrf.mxu0  ;;  %v791_v39 = vadd.f32 %v790_v6, %v789_v2 }
 0x10c   : > { %v792_v11 = vpop.f32.mrf.mxu1  ;;  %v419_v38 = vadd.f32 %v751_v22, %v707_v3 }
 0x10d   : > { %v753_v13 = vpop.f32.mrf.mxu0 }
 0x10e   : > { %v793_v17 = vpop.f32.mrf.mxu1  ;;  %v754_v27 = vadd.f32 %v753_v13, %v752_v8  ;;  %v484_v52 = vadd.f32 %v791_v39, %v419_v38 }
 0x10f   : > { %v813_v20 = vpop.f32.mrf.mxu0  ;;  %v794_v43 = vadd.f32 %v793_v17, %v792_v11 }
 0x110   : > { %v817_v23 = vpop.f32.mrf.mxu1  ;;  %v533_v40 = vadd.f32 %v813_v20, %v468_v31  ;;  %v422_v42 = vadd.f32 %v754_v27, %v707_v3 }
 0x111   : > { %v524_v28 = vpop.f32.mrf.mxu0  ;;  %v549_v61 = vadd.f32 %v817_v23, %v484_v52 }
 0x112   : > { %v525_v32 = vadd.f32 %v524_v28, %v460_v24  ;;  %v540_v33 = vpop.f32.mrf.mxu1  ;;  %v565_v51 = vmul.f32 0.2, %v533_v40  ;;  %vm557_vm2 = vcmp.ge.f32.partialorder %v533_v40, 0.0  ;;  %v487_v55 = vadd.f32 %v794_v43, %v422_v42 }
 0x113   : > { %v814_v36 = vpop.f32.mrf.mxu0  ;;  %v541_v53 = vadd.f32 %v540_v33, %v476_v47  ;;  %v569_v9 = vmul.f32 0.2, %v549_v61  ;;  %vm561_vm7 = vcmp.ge.f32.partialorder %v549_v61, 0.0 }
 0x114   : > { %v818_v41 = vpop.f32.mrf.mxu1  ;;  %v563_v45 = vmul.f32 0.2, %v525_v32  ;;  %v536_v48 = vadd.f32 %v814_v36, %v471_v35  ;;  %vm555_vm1 = vcmp.ge.f32.partialorder %v525_v32, 0.0  ;;  %v1153_v60 = vsel %vm557_vm2, %v533_v40, %v565_v51 }
 0x115   : > { %v527_v46 = vpop.f32.mrf.mxu0  ;;  %v567_v62 = vmul.f32 0.2, %v541_v53  ;;  %vm559_vm5 = vcmp.ge.f32.partialorder %v541_v53, 0.0  ;;  %v552_v4 = vadd.f32 %v818_v41, %v487_v55  ;;  %v595_v6 = vmul.f32 %v1153_v60, %v1153_v60 }
 0x116   : > { %v528_v49 = vadd.f32 %v527_v46, %v463_v44  ;;  %v543_v50 = vpop.f32.mrf.mxu1  ;;  %v1151_v56 = vsel %vm555_vm1, %v525_v32, %v563_v45  ;;  %v566_v57 = vmul.f32 0.2, %v536_v48  ;;  %vm558_vm4 = vcmp.ge.f32.partialorder %v536_v48, 0.0 }
 0x117   : > { %v544_v59 = vadd.f32 %v543_v50, %v479_v54  ;;  %v593_v0 = vmul.f32 %v1151_v56, %v1151_v56  ;;  %v575_v10 = vsel %vm559_vm5, %v541_v53, %v567_v62  ;;  %v570_v14 = vmul.f32 0.2, %v552_v4 }
 0x118   : > { %vm556_vm3 = vcmp.ge.f32.partialorder %v528_v49, 0.0  ;;  %v564_v58 = vmul.f32 0.2, %v528_v49  ;;  %v1163_v3 = vsel %vm558_vm4, %v536_v48, %v566_v57  ;;  %v597_v16 = vmul.f32 %v575_v10, %v575_v10 }
 0x119   : > { %v568_v5 = vmul.f32 0.2, %v544_v59  ;;  %vm560_vm6 = vcmp.ge.f32.partialorder %v544_v59, 0.0  ;;  %v596_v11 = vmul.f32 %v1163_v3, %v1163_v3  ;;  %vm562_vm8 = vcmp.ge.f32.partialorder %v552_v4, 0.0 }
 0x11a   : > { %v1155_v63 = vsel %vm556_vm3, %v528_v49, %v564_v58  ;;  %v577_v19 = vsel %vm561_vm7, %v549_v61, %v569_v9  ;;  %v578_v23 = vsel %vm562_vm8, %v552_v4, %v570_v14 }
 0x11b   : > { %v579_v1 = vadd.f32 %v1155_v63, %v1151_v56  ;;  %v594_v2 = vmul.f32 %v1155_v63, %v1155_v63  ;;  %v576_v15 = vsel %vm560_vm6, %v544_v59, %v568_v5  ;;  %v599_v24 = vmul.f32 %v577_v19, %v577_v19 }
 0x11c   : > { %v598_v21 = vmul.f32 %v576_v15, %v576_v15  ;;  %v600_v27 = vmul.f32 %v578_v23, %v578_v23 }
 0x11d   : > { %v580_v7 = vadd.f32 %v579_v1, %v1153_v60  ;;  %v601_v8 = vadd.f32 %v594_v2, %v593_v0 }
 0x11f   : > { %v602_v12 = vadd.f32 %v601_v8, %v595_v6  ;;  %v581_v13 = vadd.f32 %v580_v7, %v1163_v3 }
 0x121   : > { %v582_v17 = vadd.f32 %v581_v13, %v575_v10  ;;  %v603_v18 = vadd.f32 %v602_v12, %v596_v11 }
 0x123   : > { %v583_v20 = vadd.f32 %v582_v17, %v576_v15  ;;  %v604_v22 = vadd.f32 %v603_v18, %v597_v16 }
 0x125   : > { %v584_v25 = vadd.f32 %v583_v20, %v577_v19  ;;  %v605_v26 = vadd.f32 %v604_v22, %v598_v21 }
 0x127   : > { %v585_v28 = vadd.f32 %v584_v25, %v578_v23  ;;  %v606_v29 = vadd.f32 %v605_v26, %v599_v24 }
 0x129   : > { %v586_v30 = vrot.slane %v585_v28, 4  ;;  %v607_v31 = vadd.f32 %v606_v29, %v600_v27 }
 0x12b   : > { %v587_v32 = vadd.f32 %v586_v30, %v585_v28  ;;  %v608_v33 = vrot.slane %v607_v31, 4 }
 0x12d   : > { %v588_v34 = vrot.slane %v587_v32, 2  ;;  %v609_v35 = vadd.f32 %v608_v33, %v607_v31 }
 0x12f   : > { %v589_v36 = vadd.f32 %v588_v34, %v587_v32  ;;  %v610_v37 = vrot.slane %v609_v35, 2 }
 0x131   : > { %v590_v38 = vrot.slane %v589_v36, 1  ;;  %v611_v39 = vadd.f32 %v610_v37, %v609_v35 }
 0x133   : > { %v591_v40 = vadd.f32 %v590_v38, %v589_v36  ;;  %v612_v41 = vrot.slane %v611_v39, 1 }
 0x135   : > { %v592_v42 = vmul.f32 0.015625, %v591_v40  ;;  %v613_v43 = vadd.f32 %v612_v41, %v611_v39 }
 0x137   : > { %v614_v44 = vmul.f32 0.015625, %v613_v43  ;;  %v615_v46 = vmul.f32 %v592_v42, %v592_v42  ;;  %v618_v49 = vsub.f32 %v1151_v56, %v592_v42  ;;  %v619_v50 = vsub.f32 %v1155_v63, %v592_v42 }
 0x138   : > { %v620_v51 = vsub.f32 %v1153_v60, %v592_v42  ;;  %v621_v52 = vsub.f32 %v1163_v3, %v592_v42  ;;  %v622_v54 = vsub.f32 %v575_v10, %v592_v42  ;;  %v623_v55 = vsub.f32 %v576_v15, %v592_v42 }
 0x139   : > { %v616_v45 = vsub.f32 %v614_v44, %v615_v46  ;;  %v624_v57 = vsub.f32 %v577_v19, %v592_v42  ;;  %v625_v58 = vsub.f32 %v578_v23, %v592_v42 }
 0x13b   : > { %v617_v47 = vmax.f32 %v616_v45, 0.0 }
 0x13d   : > { %v626_v48 = vadd.f32 1e-05, %v617_v47 }
 0x13f   : > { %836 = vrsqrt.f32 %v626_v48 }
 0x14c   : > { %v837_v53 = vpop.eup %836 }
 0x14d   : > { %v628_v59 = vmul.f32 %v837_v53, %v618_v49  ;;  %v629_v61 = vmul.f32 %v837_v53, %v619_v50  ;;  %v630_v62 = vmul.f32 %v837_v53, %v620_v51  ;;  %v631_v0 = vmul.f32 %v837_v53, %v621_v52 }
 0x14e   : > { %v632_v56 = vmul.f32 %v837_v53, %v622_v54  ;;  %v633_v1 = vmul.f32 %v837_v53, %v623_v55  ;;  %v634_v63 = vmul.f32 %v837_v53, %v624_v57  ;;  %v635_v2 = vmul.f32 %v837_v53, %v625_v58 }
 0x14f   : > { %636 = vst [vmem:[%s170_s19] sm:$0xff] %v628_v59  ;;  %637 = vst [vmem:[%s170_s19 + $0x8] sm:$0xff] %v629_v61 }
 0x150   : > { %638 = vst [vmem:[%s170_s19 + $0x10] sm:$0xff] %v630_v62  ;;  %639 = vst [vmem:[%s170_s19 + $0x18] sm:$0xff] %v631_v0 }
 0x151   : > { %640 = vst [vmem:[%s170_s19 + $0x20] sm:$0xff] %v632_v56  ;;  %641 = vst [vmem:[%s170_s19 + $0x28] sm:$0xff] %v633_v1 }
 0x152   : > { %642 = vst [vmem:[%s170_s19 + $0x30] sm:$0xff] %v634_v63  ;;  %643 = vst [vmem:[%s170_s19 + $0x38] sm:$0xff] %v635_v2 }
 0x153 PF: > { %s13_s12 = sadd.s32 1, %s844_s12  }
 0x154   : > { %p10_p4 = scmp.ge.s32.totalorder %s13_s12, 4  }
 0x156   :  { %12 = sbr.rel (!%p10_p4) target bundleno = 1 (0x1), region = 62 }

// kernel: classifier_forward.7
= control target key start
LH: loop header
LB: loop body
LE: loop exit
PB: predicated region body
PF: predicated region fallthrough
CT: control target
= control target key end

     0   :  { %s1037_s12 = smov 0   ;;  %s1961_s0 = inlined_call_operand.vmem [shape: f32[2,16,1152], index: 0, kind: input, shape index: {}]   ;;  %s1962_s1 = inlined_call_operand.vmem [shape: f32[1152,256], index: 1, kind: input, shape index: {}]   ;;  %s1963_s2 = inlined_call_operand.vmem [shape: f32[1,256], index: 2, kind: input, shape index: {}]   ;;  %s1964_s3 = inlined_call_operand.vmem [shape: f32[2,16,256], index: 3, kind: output, shape index: {}]  }
   0x1 LB: > { %s983_s13 = sadd.s32 4294967295, %s1014_s12   ;;  %p987_p0 = scmp.ge.s32.totalorder %s1014_s12, 1  ;;  %s1014_s12 = sphi %s1037_s12, %s13_s12  }
   0x2   : > { %p137_p1 = scmp.lt.s32.totalorder %s1014_s12, 3 }
   0x4   : > { %p138_p2 = pnand %p987_p0, %p137_p1 }
   0x5   : > { %p1251_p3 = scmp.lt.s32.totalorder (!%p138_p2), %s983_s13, 1 }
   0x6   : > { %141 = sbr.rel (%p138_p2) target bundleno = 419 (0x1a3), region = 32 }
   0xb   : > { %v219_v0 = vld [vmem:[%s1962_s1 + $0xe8] sm:$0xff]  ;;  %v221_v1 = vld [vmem:[%s1962_s1 + $0xf8] sm:$0xff]  ;;  %v218_v2 = vld [vmem:[%s1962_s1 + $0xe0] sm:$0xff]  ;;  %s1967_s13 = smov (!%p1251_p3, %s983_s13), 1 }
   0xc   : > { %v502_v3 = vpack.c.bf16 %v221_v1, %v219_v0  ;;  %v220_v4 = vld [vmem:[%s1962_s1 + $0xf0] sm:$0xff]  ;;  %v283_v5 = vld [vmem:[%s1962_s1 + $0x2e8] sm:$0xff]  ;;  %v285_v6 = vld [vmem:[%s1962_s1 + $0x2f8] sm:$0xff]  ;;  %s994_s6 = smul.u32 144, %s1967_s13 }
   0xd   : > { %v501_v7 = vpack.c.bf16 %v220_v4, %v218_v2  ;;  %v534_v8 = vpack.c.bf16 %v285_v6, %v283_v5  ;;  %v282_v9 = vld [vmem:[%s1962_s1 + $0x2e0] sm:$0xff]  ;;  %v284_v10 = vld [vmem:[%s1962_s1 + $0x2f0] sm:$0xff]  ;;  %v215_v11 = vld [vmem:[%s1962_s1 + $0xc8] sm:$0xff] }
   0xe   : > { %643 = vmatprep.subr.bf16.mxu0 %v502_v3  ;;  %v533_v12 = vpack.c.bf16 %v284_v10, %v282_v9  ;;  %v217_v13 = vld [vmem:[%s1962_s1 + $0xd8] sm:$0xff]  ;;  %v214_v14 = vld [vmem:[%s1962_s1 + $0xc0] sm:$0xff]  ;;  %v216_v15 = vld [vmem:[%s1962_s1 + $0xd0] sm:$0xff]  ;;  %s1337_s27 = scalar_lea.vmem %s1961_s0, %s994_s6 }
   0xf   : > { %644 = vmatpush1.bf16.msra.mxu0 %v501_v7  ;;  %686 = vmatprep.subr.bf16.mxu1 %v534_v8  ;;  %v500_v16 = vpack.c.bf16 %v217_v13, %v215_v11  ;;  %v499_v17 = vpack.c.bf16 %v216_v15, %v214_v14  ;;  %v279_v18 = vld [vmem:[%s1962_s1 + $0x2c8] sm:$0xff]  ;;  %v281_v19 = vld [vmem:[%s1962_s1 + $0x2d8] sm:$0xff]  ;;  %v278_v20 = vld [vmem:[%s1962_s1 + $0x2c0] sm:$0xff] }
  0x10   : > { %687 = vmatpush1.bf16.msra.mxu1 %v533_v12  ;;  %v532_v21 = vpack.c.bf16 %v281_v19, %v279_v18  ;;  %v280_v22 = vld [vmem:[%s1962_s1 + $0x2d0] sm:$0xff]  ;;  %v211_v23 = vld [vmem:[%s1962_s1 + $0xa8] sm:$0xff]  ;;  %v213_v24 = vld [vmem:[%s1962_s1 + $0xb8] sm:$0xff] }
  0x11   : > { %645 = vmatprep.subr.bf16.mxu0 %v500_v16  ;;  %v531_v25 = vpack.c.bf16 %v280_v22, %v278_v20  ;;  %v498_v26 = vpack.c.bf16 %v213_v24, %v211_v23  ;;  %v210_v27 = vld [vmem:[%s1962_s1 + $0xa0] sm:$0xff]  ;;  %v212_v28 = vld [vmem:[%s1962_s1 + $0xb0] sm:$0xff]  ;;  %v275_v29 = vld [vmem:[%s1962_s1 + $0x2a8] sm:$0xff] }
  0x12   : > { %688 = vmatprep.subr.bf16.mxu1 %v532_v21  ;;  %v277_v30 = vld [vmem:[%s1962_s1 + $0x2b8] sm:$0xff]  ;;  %v274_v31 = vld [vmem:[%s1962_s1 + $0x2a0] sm:$0xff]  ;;  %v276_v32 = vld [vmem:[%s1962_s1 + $0x2b0] sm:$0xff]  ;;  %v497_v33 = vpack.c.bf16 %v212_v28, %v210_v27 }
  0x13   : > { %646 = vmatpush1.bf16.msra.mxu0 %v499_v17  ;;  %v530_v34 = vpack.c.bf16 %v277_v30, %v275_v29  ;;  %v207_v35 = vld [vmem:[%s1962_s1 + $0x88] sm:$0xff]  ;;  %v209_v36 = vld [vmem:[%s1962_s1 + $0x98] sm:$0xff]  ;;  %v206_v37 = vld [vmem:[%s1962_s1 + $0x80] sm:$0xff]  ;;  %v529_v38 = vpack.c.bf16 %v276_v32, %v274_v31 }
  0x14   : > { %689 = vmatpush1.bf16.msra.mxu1 %v531_v25  ;;  %647 = vmatprep.subr.bf16.mxu0 %v498_v26  ;;  %v496_v39 = vpack.c.bf16 %v209_v36, %v207_v35  ;;  %v208_v40 = vld [vmem:[%s1962_s1 + $0x90] sm:$0xff]  ;;  %v271_v41 = vld [vmem:[%s1962_s1 + $0x288] sm:$0xff]  ;;  %v273_v42 = vld [vmem:[%s1962_s1 + $0x298] sm:$0xff] }
  0x15   : > { %690 = vmatprep.subr.bf16.mxu1 %v530_v34  ;;  %v528_v43 = vpack.c.bf16 %v273_v42, %v271_v41  ;;  %v270_v44 = vld [vmem:[%s1962_s1 + $0x280] sm:$0xff]  ;;  %v272_v45 = vld [vmem:[%s1962_s1 + $0x290] sm:$0xff]  ;;  %v203_v46 = vld [vmem:[%s1962_s1 + $0x68] sm:$0xff]  ;;  %v495_v48 = vpack.c.bf16 %v208_v40, %v206_v37 }
  0x16   : > { %v205_v47 = vld [vmem:[%s1962_s1 + $0x78] sm:$0xff]  ;;  %v267_v49 = vld [vmem:[%s1962_s1 + $0x268] sm:$0xff]  ;;  %v527_v51 = vpack.c.bf16 %v272_v45, %v270_v44  ;;  %v202_v53 = vld [vmem:[%s1962_s1 + $0x60] sm:$0xff] }
  0x17   : > { %648 = vmatpush1.bf16.msra.mxu0 %v497_v33  ;;  %v269_v50 = vld [vmem:[%s1962_s1 + $0x278] sm:$0xff]  ;;  %v494_v52 = vpack.c.bf16 %v205_v47, %v203_v46  ;;  %v204_v54 = vld [vmem:[%s1962_s1 + $0x70] sm:$0xff]  ;;  %v266_v55 = vld [vmem:[%s1962_s1 + $0x260] sm:$0xff] }
  0x18   : > { %691 = vmatpush1.bf16.msra.mxu1 %v529_v38  ;;  %649 = vmatprep.subr.bf16.mxu0 %v496_v39  ;;  %v526_v56 = vpack.c.bf16 %v269_v50, %v267_v49  ;;  %v268_v57 = vld [vmem:[%s1962_s1 + $0x270] sm:$0xff]  ;;  %v199_v58 = vld [vmem:[%s1962_s1 + $0x48] sm:$0xff]  ;;  %v201_v59 = vld [vmem:[%s1962_s1 + $0x58] sm:$0xff]  ;;  %v493_v62 = vpack.c.bf16 %v204_v54, %v202_v53 }
  0x19   : > { %692 = vmatprep.subr.bf16.mxu1 %v528_v43  ;;  %v263_v60 = vld [vmem:[%s1962_s1 + $0x248] sm:$0xff]  ;;  %v265_v61 = vld [vmem:[%s1962_s1 + $0x258] sm:$0xff]  ;;  %v525_v63 = vpack.c.bf16 %v268_v57, %v266_v55  ;;  %v492_v0 = vpack.c.bf16 %v201_v59, %v199_v58  ;;  %v198_v1 = vld [vmem:[%s1962_s1 + $0x40] sm:$0xff] }
  0x1a   : > { %v200_v2 = vld [vmem:[%s1962_s1 + $0x50] sm:$0xff]  ;;  %v262_v3 = vld [vmem:[%s1962_s1 + $0x240] sm:$0xff]  ;;  %v524_v4 = vpack.c.bf16 %v265_v61, %v263_v60  ;;  %v195_v6 = vld [vmem:[%s1962_s1 + $0x28] sm:$0xff] }
  0x1b   : > { %650 = vmatpush1.bf16.msra.mxu0 %v495_v48  ;;  %v264_v5 = vld [vmem:[%s1962_s1 + $0x250] sm:$0xff]  ;;  %v197_v7 = vld [vmem:[%s1962_s1 + $0x38] sm:$0xff]  ;;  %v259_v8 = vld [vmem:[%s1962_s1 + $0x228] sm:$0xff]  ;;  %v491_v10 = vpack.c.bf16 %v200_v2, %v198_v1 }
  0x1c   : > { %693 = vmatpush1.bf16.msra.mxu1 %v527_v51  ;;  %651 = vmatprep.subr.bf16.mxu0 %v494_v52  ;;  %v261_v9 = vld [vmem:[%s1962_s1 + $0x238] sm:$0xff]  ;;  %v523_v11 = vpack.c.bf16 %v264_v5, %v262_v3  ;;  %v490_v12 = vpack.c.bf16 %v197_v7, %v195_v6  ;;  %v194_v13 = vld [vmem:[%s1962_s1 + $0x20] sm:$0xff]  ;;  %v196_v14 = vld [vmem:[%s1962_s1 + $0x30] sm:$0xff] }
  0x1d   : > { %694 = vmatprep.subr.bf16.mxu1 %v526_v56  ;;  %v258_v15 = vld [vmem:[%s1962_s1 + $0x220] sm:$0xff]  ;;  %v522_v16 = vpack.c.bf16 %v261_v9, %v259_v8  ;;  %v260_v17 = vld [vmem:[%s1962_s1 + $0x230] sm:$0xff]  ;;  %v191_v18 = vld [vmem:[%s1962_s1 + $0x8] sm:$0xff]  ;;  %v489_v22 = vpack.c.bf16 %v196_v14, %v194_v13 }
  0x1e   : > { %v193_v19 = vld [vmem:[%s1962_s1 + $0x18] sm:$0xff]  ;;  %v255_v20 = vld [vmem:[%s1962_s1 + $0x208] sm:$0xff]  ;;  %v521_v23 = vpack.c.bf16 %v260_v17, %v258_v15  ;;  %v190_v25 = vld [vmem:[%s1962_s1] sm:$0xff] }
  0x1f   : > { %652 = vmatpush1.bf16.msra.mxu0 %v493_v62  ;;  %v257_v21 = vld [vmem:[%s1962_s1 + $0x218] sm:$0xff]  ;;  %v488_v24 = vpack.c.bf16 %v193_v19, %v191_v18  ;;  %v192_v26 = vld [vmem:[%s1962_s1 + $0x10] sm:$0xff]  ;;  %v254_v27 = vld [vmem:[%s1962_s1 + $0x200] sm:$0xff] }
  0x20   : > { %695 = vmatpush1.bf16.msra.mxu1 %v525_v63  ;;  %653 = vmatprep.subr.bf16.mxu0 %v492_v0  ;;  %v520_v28 = vpack.c.bf16 %v257_v21, %v255_v20  ;;  %v256_v29 = vld [vmem:[%s1962_s1 + $0x210] sm:$0xff]  ;;  %v251_v30 = vld [vmem:[%s1962_s1 + $0x1e8] sm:$0xff]  ;;  %v253_v31 = vld [vmem:[%s1962_s1 + $0x1f8] sm:$0xff]  ;;  %v487_v34 = vpack.c.bf16 %v192_v26, %v190_v25 }
  0x21   : > { %696 = vmatprep.subr.bf16.mxu1 %v524_v4  ;;  %v315_v32 = vld [vmem:[%s1962_s1 + $0x3e8] sm:$0xff]  ;;  %v317_v33 = vld [vmem:[%s1962_s1 + $0x3f8] sm:$0xff]  ;;  %v519_v35 = vpack.c.bf16 %v256_v29, %v254_v27  ;;  %v518_v36 = vpack.c.bf16 %v253_v31, %v251_v30  ;;  %v250_v37 = vld [vmem:[%s1962_s1 + $0x1e0] sm:$0xff] }
  0x22   : > { %v252_v38 = vld [vmem:[%s1962_s1 + $0x1f0] sm:$0xff]  ;;  %v314_v39 = vld [vmem:[%s1962_s1 + $0x3e0] sm:$0xff]  ;;  %v550_v40 = vpack.c.bf16 %v317_v33, %v315_v32  ;;  %v247_v42 = vld [vmem:[%s1962_s1 + $0x1c8] sm:$0xff] }
  0x23   : > { %654 = vmatpush1.bf16.msra.mxu0 %v491_v10  ;;  %v316_v41 = vld [vmem:[%s1962_s1 + $0x3f0] sm:$0xff]  ;;  %v249_v43 = vld [vmem:[%s1962_s1 + $0x1d8] sm:$0xff]  ;;  %v311_v44 = vld [vmem:[%s1962_s1 + $0x3c8] sm:$0xff]  ;;  %v517_v46 = vpack.c.bf16 %v252_v38, %v250_v37 }
  0x24   : > { %697 = vmatpush1.bf16.msra.mxu1 %v523_v11  ;;  %655 = vmatprep.subr.bf16.mxu0 %v490_v12  ;;  %v313_v45 = vld [vmem:[%s1962_s1 + $0x3d8] sm:$0xff]  ;;  %v549_v47 = vpack.c.bf16 %v316_v41, %v314_v39  ;;  %v516_v48 = vpack.c.bf16 %v249_v43, %v247_v42  ;;  %v246_v49 = vld [vmem:[%s1962_s1 + $0x1c0] sm:$0xff]  ;;  %v248_v50 = vld [vmem:[%s1962_s1 + $0x1d0] sm:$0xff] }
  0x25   : > { %698 = vmatprep.subr.bf16.mxu1 %v522_v16  ;;  %v310_v51 = vld [vmem:[%s1962_s1 + $0x3c0] sm:$0xff]  ;;  %v548_v52 = vpack.c.bf16 %v313_v45, %v311_v44  ;;  %v312_v53 = vld [vmem:[%s1962_s1 + $0x3d0] sm:$0xff]  ;;  %v243_v54 = vld [vmem:[%s1962_s1 + $0x1a8] sm:$0xff]  ;;  %v515_v58 = vpack.c.bf16 %v248_v50, %v246_v49 }
  0x26   : > { %v245_v55 = vld [vmem:[%s1962_s1 + $0x1b8] sm:$0xff]  ;;  %v307_v56 = vld [vmem:[%s1962_s1 + $0x3a8] sm:$0xff]  ;;  %v547_v59 = vpack.c.bf16 %v312_v53, %v310_v51  ;;  %v242_v61 = vld [vmem:[%s1962_s1 + $0x1a0] sm:$0xff] }
  0x27   : > { %656 = vmatpush1.bf16.msra.mxu0 %v489_v22  ;;  %v309_v57 = vld [vmem:[%s1962_s1 + $0x3b8] sm:$0xff]  ;;  %v514_v60 = vpack.c.bf16 %v245_v55, %v243_v54  ;;  %v244_v62 = vld [vmem:[%s1962_s1 + $0x1b0] sm:$0xff]  ;;  %v306_v63 = vld [vmem:[%s1962_s1 + $0x3a0] sm:$0xff] }
  0x28   : > { %699 = vmatpush1.bf16.msra.mxu1 %v521_v23  ;;  %657 = vmatprep.subr.bf16.mxu0 %v488_v24  ;;  %v546_v0 = vpack.c.bf16 %v309_v57, %v307_v56  ;;  %v308_v1 = vld [vmem:[%s1962_s1 + $0x3b0] sm:$0xff]  ;;  %v239_v2 = vld [vmem:[%s1962_s1 + $0x188] sm:$0xff]  ;;  %v241_v3 = vld [vmem:[%s1962_s1 + $0x198] sm:$0xff]  ;;  %v513_v6 = vpack.c.bf16 %v244_v62, %v242_v61 }
  0x29   : > { %700 = vmatprep.subr.bf16.mxu1 %v520_v28  ;;  %v303_v4 = vld [vmem:[%s1962_s1 + $0x388] sm:$0xff]  ;;  %v305_v5 = vld [vmem:[%s1962_s1 + $0x398] sm:$0xff]  ;;  %v238_v7 = vld [vmem:[%s1962_s1 + $0x180] sm:$0xff]  ;;  %v545_v9 = vpack.c.bf16 %v308_v1, %v306_v63  ;;  %v512_v10 = vpack.c.bf16 %v241_v3, %v239_v2 }
  0x2a   : > { %v240_v8 = vld [vmem:[%s1962_s1 + $0x190] sm:$0xff]  ;;  %v302_v11 = vld [vmem:[%s1962_s1 + $0x380] sm:$0xff]  ;;  %v235_v13 = vld [vmem:[%s1962_s1 + $0x168] sm:$0xff]  ;;  %v544_v14 = vpack.c.bf16 %v305_v5, %v303_v4 }
  0x2b   : > { %658 = vmatpush1.bf16.msra.mxu0 %v487_v34  ;;  %v304_v12 = vld [vmem:[%s1962_s1 + $0x390] sm:$0xff]  ;;  %v237_v15 = vld [vmem:[%s1962_s1 + $0x178] sm:$0xff]  ;;  %v173_v16 = vld [vmem:[%s1337_s27 + $0x8] sm:$0xff]  ;;  %v511_v21 = vpack.c.bf16 %v240_v8, %v238_v7 }
  0x2c   : > { %701 = vmatpush1.bf16.msra.mxu1 %v519_v35  ;;  %659 = vmatprep.subr.bf16.mxu0 %v518_v36  ;;  %v182_v17 = vld [vmem:[%s1337_s27 + $0x50] sm:$0xff]  ;;  %v299_v18 = vld [vmem:[%s1962_s1 + $0x368] sm:$0xff]  ;;  %v301_v19 = vld [vmem:[%s1962_s1 + $0x378] sm:$0xff]  ;;  %v543_v24 = vpack.c.bf16 %v304_v12, %v302_v11  ;;  %v510_v25 = vpack.c.bf16 %v237_v15, %v235_v13 }
  0x2d   : > { %702 = vmatprep.subr.bf16.mxu1 %v550_v40  ;;  %v479_v20 = vpack.c.bf16 %v182_v17, %v173_v16  ;;  %v234_v22 = vld [vmem:[%s1962_s1 + $0x160] sm:$0xff]  ;;  %v175_v23 = vld [vmem:[%s1337_s27 + $0x18] sm:$0xff]  ;;  %v236_v26 = vld [vmem:[%s1962_s1 + $0x170] sm:$0xff]  ;;  %v542_v29 = vpack.c.bf16 %v301_v19, %v299_v18 }
  0x2e   : > { %v298_v27 = vld [vmem:[%s1962_s1 + $0x360] sm:$0xff]  ;;  %v300_v30 = vld [vmem:[%s1962_s1 + $0x370] sm:$0xff]  ;;  %v231_v31 = vld [vmem:[%s1962_s1 + $0x148] sm:$0xff]  ;;  %v509_v36 = vpack.c.bf16 %v236_v26, %v234_v22 }
  0x2f   : > { %660 = vmatpush2.bf16.msra.mxu0 %v517_v46  ;;  %v184_v28 = vld [vmem:[%s1337_s27 + $0x60] sm:$0xff]  ;;  %v233_v32 = vld [vmem:[%s1962_s1 + $0x158] sm:$0xff]  ;;  %675 = vmatprep.mubr.bf16.mxu0 %v479_v20  ;;  %v295_v34 = vld [vmem:[%s1962_s1 + $0x348] sm:$0xff]  ;;  %v541_v37 = vpack.c.bf16 %v300_v30, %v298_v27 }
  0x30   : > { %703 = vmatpush2.bf16.msra.mxu1 %v549_v47  ;;  %661 = vmatprep.subr.bf16.mxu0 %v516_v48  ;;  %v481_v33 = vpack.c.bf16 %v184_v28, %v175_v23  ;;  %v297_v35 = vld [vmem:[%s1962_s1 + $0x358] sm:$0xff]  ;;  %v508_v38 = vpack.c.bf16 %v233_v32, %v231_v31  ;;  %v230_v39 = vld [vmem:[%s1962_s1 + $0x140] sm:$0xff]  ;;  %v232_v40 = vld [vmem:[%s1962_s1 + $0x150] sm:$0xff] }
  0x31   : > { %704 = vmatprep.subr.bf16.mxu1 %v548_v52  ;;  %v294_v41 = vld [vmem:[%s1962_s1 + $0x340] sm:$0xff]  ;;  %v540_v42 = vpack.c.bf16 %v297_v35, %v295_v34  ;;  %v296_v43 = vld [vmem:[%s1962_s1 + $0x350] sm:$0xff]  ;;  %v227_v44 = vld [vmem:[%s1962_s1 + $0x128] sm:$0xff]  ;;  %v507_v48 = vpack.c.bf16 %v232_v40, %v230_v39 }
  0x32   : > { %718 = vmatprep.mubr.bf16.mxu1 %v481_v33  ;;  %v229_v45 = vld [vmem:[%s1962_s1 + $0x138] sm:$0xff]  ;;  %v291_v46 = vld [vmem:[%s1962_s1 + $0x328] sm:$0xff]  ;;  %v539_v49 = vpack.c.bf16 %v296_v43, %v294_v41  ;;  %v226_v51 = vld [vmem:[%s1962_s1 + $0x120] sm:$0xff] }
  0x33   : > { %662 = vmatpush2.bf16.msra.mxu0 %v515_v58  ;;  %v293_v47 = vld [vmem:[%s1962_s1 + $0x338] sm:$0xff]  ;;  %v506_v50 = vpack.c.bf16 %v229_v45, %v227_v44  ;;  %v228_v52 = vld [vmem:[%s1962_s1 + $0x130] sm:$0xff]  ;;  %v290_v53 = vld [vmem:[%s1962_s1 + $0x320] sm:$0xff] }
  0x34   : > { %705 = vmatpush2.bf16.msra.mxu1 %v547_v59  ;;  %663 = vmatprep.subr.bf16.mxu0 %v514_v60  ;;  %v538_v54 = vpack.c.bf16 %v293_v47, %v291_v46  ;;  %v292_v55 = vld [vmem:[%s1962_s1 + $0x330] sm:$0xff]  ;;  %v223_v56 = vld [vmem:[%s1962_s1 + $0x108] sm:$0xff]  ;;  %v225_v57 = vld [vmem:[%s1962_s1 + $0x118] sm:$0xff]  ;;  %v505_v60 = vpack.c.bf16 %v228_v52, %v226_v51 }
  0x35   : > { %706 = vmatprep.subr.bf16.mxu1 %v546_v0  ;;  %v287_v58 = vld [vmem:[%s1962_s1 + $0x308] sm:$0xff]  ;;  %v289_v59 = vld [vmem:[%s1962_s1 + $0x318] sm:$0xff]  ;;  %v537_v61 = vpack.c.bf16 %v292_v55, %v290_v53  ;;  %v504_v62 = vpack.c.bf16 %v225_v57, %v223_v56  ;;  %v222_v63 = vld [vmem:[%s1962_s1 + $0x100] sm:$0xff] }
  0x36   : > { %v224_v0 = vld [vmem:[%s1962_s1 + $0x110] sm:$0xff]  ;;  %v286_v1 = vld [vmem:[%s1962_s1 + $0x300] sm:$0xff]  ;;  %v536_v2 = vpack.c.bf16 %v289_v59, %v287_v58  ;;  %v347_v4 = vld [vmem:[%s1962_s1 + $0x4e8] sm:$0xff] }
  0x37   : > { %664 = vmatpush2.bf16.msra.mxu0 %v513_v6  ;;  %v288_v3 = vld [vmem:[%s1962_s1 + $0x310] sm:$0xff]  ;;  %v349_v5 = vld [vmem:[%s1962_s1 + $0x4f8] sm:$0xff]  ;;  %v172_v6 = vld [vmem:[%s1337_s27] sm:$0xff] }
  0x38   : > { %707 = vmatpush2.bf16.msra.mxu1 %v545_v9  ;;  %665 = vmatprep.subr.bf16.mxu0 %v512_v10  ;;  %v411_v7 = vld [vmem:[%s1962_s1 + $0x6e8] sm:$0xff]  ;;  %v413_v8 = vld [vmem:[%s1962_s1 + $0x6f8] sm:$0xff]  ;;  %v503_v9 = vpack.c.bf16 %v224_v0, %v222_v63  ;;  %v346_v11 = vld [vmem:[%s1962_s1 + $0x4e0] sm:$0xff]  ;;  %v535_v13 = vpack.c.bf16 %v288_v3, %v286_v1 }
  0x39   : > { %708 = vmatprep.subr.bf16.mxu1 %v544_v14  ;;  %v181_v10 = vld [vmem:[%s1337_s27 + $0x48] sm:$0xff]  ;;  %v348_v12 = vld [vmem:[%s1962_s1 + $0x4f0] sm:$0xff]  ;;  %v566_v14 = vpack.c.bf16 %v349_v5, %v347_v4  ;;  %v183_v16 = vld [vmem:[%s1337_s27 + $0x58] sm:$0xff]  ;;  %v598_v18 = vpack.c.bf16 %v413_v8, %v411_v7 }
  0x3a   : > { %v174_v15 = vld [vmem:[%s1337_s27 + $0x10] sm:$0xff]  ;;  %v410_v17 = vld [vmem:[%s1962_s1 + $0x6e0] sm:$0xff]  ;;  %v343_v20 = vld [vmem:[%s1962_s1 + $0x4c8] sm:$0xff]  ;;  %v478_v22 = vpack.c.bf16 %v181_v10, %v172_v6 }
  0x3b   : > { %666 = vmatpush2.bf16.msra.mxu0 %v511_v21  ;;  %v412_v19 = vld [vmem:[%s1962_s1 + $0x6f0] sm:$0xff]  ;;  %v345_v21 = vld [vmem:[%s1962_s1 + $0x4d8] sm:$0xff]  ;;  %v407_v23 = vld [vmem:[%s1962_s1 + $0x6c8] sm:$0xff]  ;;  %v480_v26 = vpack.c.bf16 %v183_v16, %v174_v15 }
  0x3c   : > { %709 = vmatpush2.bf16.msra.mxu1 %v543_v24  ;;  %667 = vmatprep.subr.bf16.mxu0 %v510_v25  ;;  %v409_v24 = vld [vmem:[%s1962_s1 + $0x6d8] sm:$0xff]  ;;  %v565_v25 = vpack.c.bf16 %v348_v12, %v346_v11  ;;  %v597_v27 = vpack.c.bf16 %v412_v19, %v410_v17  ;;  %v564_v28 = vpack.c.bf16 %v345_v21, %v343_v20  ;;  %v344_v30 = vld [vmem:[%s1962_s1 + $0x4d0] sm:$0xff]  ;;  %v406_v31 = vld [vmem:[%s1962_s1 + $0x6c0] sm:$0xff] }
  0x3d   : > { %710 = vmatprep.subr.bf16.mxu1 %v542_v29  ;;  %v342_v29 = vld [vmem:[%s1962_s1 + $0x4c0] sm:$0xff]  ;;  %v596_v32 = vpack.c.bf16 %v409_v24, %v407_v23  ;;  %v408_v33 = vld [vmem:[%s1962_s1 + $0x6d0] sm:$0xff]  ;;  %v339_v34 = vld [vmem:[%s1962_s1 + $0x4a8] sm:$0xff] }
  0x3e   : > { %v341_v35 = vld [vmem:[%s1962_s1 + $0x4b8] sm:$0xff]  ;;  %v595_v39 = vpack.c.bf16 %v408_v33, %v406_v31  ;;  %v338_v41 = vld [vmem:[%s1962_s1 + $0x4a0] sm:$0xff]  ;;  %v404_v45 = vld [vmem:[%s1962_s1 + $0x6b0] sm:$0xff] }
  0x3f   : > { %668 = vmatpush2.bf16.msra.mxu0 %v509_v36  ;;  %v403_v36 = vld [vmem:[%s1962_s1 + $0x6a8] sm:$0xff]  ;;  %v562_v40 = vpack.c.bf16 %v341_v35, %v339_v34  ;;  %v402_v43 = vld [vmem:[%s1962_s1 + $0x6a0] sm:$0xff]  ;;  %v337_v47 = vld [vmem:[%s1962_s1 + $0x498] sm:$0xff] }
  0x40   : > { %711 = vmatpush2.bf16.msra.mxu1 %v541_v37  ;;  %669 = vmatprep.subr.bf16.mxu0 %v508_v38  ;;  %v405_v37 = vld [vmem:[%s1962_s1 + $0x6b8] sm:$0xff]  ;;  %v563_v38 = vpack.c.bf16 %v344_v30, %v342_v29  ;;  %v335_v46 = vld [vmem:[%s1962_s1 + $0x488] sm:$0xff]  ;;  %v593_v51 = vpack.c.bf16 %v404_v45, %v402_v43  ;;  %v334_v53 = vld [vmem:[%s1962_s1 + $0x480] sm:$0xff] }
  0x41   : > { %712 = vmatprep.subr.bf16.mxu1 %v540_v42  ;;  %v340_v42 = vld [vmem:[%s1962_s1 + $0x4b0] sm:$0xff]  ;;  %v594_v44 = vpack.c.bf16 %v405_v37, %v403_v36  ;;  %v560_v52 = vpack.c.bf16 %v337_v47, %v335_v46  ;;  %v398_v55 = vld [vmem:[%s1962_s1 + $0x680] sm:$0xff]  ;;  %v331_v58 = vld [vmem:[%s1962_s1 + $0x468] sm:$0xff] }
  0x42   : > { %v400_v57 = vld [vmem:[%s1962_s1 + $0x690] sm:$0xff]  ;;  %v333_v59 = vld [vmem:[%s1962_s1 + $0x478] sm:$0xff]  ;;  %v330_v1 = vld [vmem:[%s1962_s1 + $0x460] sm:$0xff] }
  0x43   : > { %670 = vmatpush2.bf16.msra.mxu0 %v507_v48  ;;  %v399_v48 = vld [vmem:[%s1962_s1 + $0x688] sm:$0xff]  ;;  %v591_v63 = vpack.c.bf16 %v400_v57, %v398_v55  ;;  %v558_v0 = vpack.c.bf16 %v333_v59, %v331_v58  ;;  %v394_v3 = vld [vmem:[%s1962_s1 + $0x660] sm:$0xff]  ;;  %v396_v5 = vld [vmem:[%s1962_s1 + $0x670] sm:$0xff] }
  0x44   : > { %713 = vmatpush2.bf16.msra.mxu1 %v539_v49  ;;  %671 = vmatprep.subr.bf16.mxu0 %v506_v50  ;;  %v401_v49 = vld [vmem:[%s1962_s1 + $0x698] sm:$0xff]  ;;  %v561_v50 = vpack.c.bf16 %v340_v42, %v338_v41  ;;  %v327_v6 = vld [vmem:[%s1962_s1 + $0x448] sm:$0xff]  ;;  %v589_v11 = vpack.c.bf16 %v396_v5, %v394_v3  ;;  %v390_v15 = vld [vmem:[%s1962_s1 + $0x640] sm:$0xff] }
  0x45   : > { %714 = vmatprep.subr.bf16.mxu1 %v538_v54  ;;  %v336_v54 = vld [vmem:[%s1962_s1 + $0x490] sm:$0xff]  ;;  %v592_v56 = vpack.c.bf16 %v401_v49, %v399_v48  ;;  %v329_v7 = vld [vmem:[%s1962_s1 + $0x458] sm:$0xff]  ;;  %v391_v8 = vld [vmem:[%s1962_s1 + $0x648] sm:$0xff] }
  0x46   : > { %v556_v12 = vpack.c.bf16 %v329_v7, %v327_v6  ;;  %v392_v17 = vld [vmem:[%s1962_s1 + $0x650] sm:$0xff]  ;;  %v325_v19 = vld [vmem:[%s1962_s1 + $0x438] sm:$0xff]  ;;  %v387_v20 = vld [vmem:[%s1962_s1 + $0x628] sm:$0xff] }
  0x47   : > { %672 = vmatpush2.bf16.msra.mxu0 %v505_v60  ;;  %v395_v60 = vld [vmem:[%s1962_s1 + $0x668] sm:$0xff]  ;;  %v389_v21 = vld [vmem:[%s1962_s1 + $0x638] sm:$0xff]  ;;  %v322_v23 = vld [vmem:[%s1962_s1 + $0x420] sm:$0xff]  ;;  %v587_v24 = vpack.c.bf16 %v392_v17, %v390_v15 }
  0x48   : > { %715 = vmatpush2.bf16.msra.mxu1 %v537_v61  ;;  %673 = vmatprep.subr.bf16.mxu0 %v504_v62  ;;  %v397_v61 = vld [vmem:[%s1962_s1 + $0x678] sm:$0xff]  ;;  %v559_v62 = vpack.c.bf16 %v336_v54, %v334_v53  ;;  %v586_v29 = vpack.c.bf16 %v389_v21, %v387_v20  ;;  %v319_v30 = vld [vmem:[%s1962_s1 + $0x408] sm:$0xff]  ;;  %v186_v35 = vld [vmem:[%s1337_s27 + $0x70] sm:$0xff] }
  0x49   : > { %716 = vmatprep.subr.bf16.mxu1 %v536_v2  ;;  %v332_v2 = vld [vmem:[%s1962_s1 + $0x470] sm:$0xff]  ;;  %v590_v4 = vpack.c.bf16 %v397_v61, %v395_v60  ;;  %v321_v31 = vld [vmem:[%s1962_s1 + $0x418] sm:$0xff]  ;;  %v177_v34 = vld [vmem:[%s1337_s27 + $0x28] sm:$0xff] }
  0x4a   : > { %v557_v10 = vpack.c.bf16 %v332_v2, %v330_v1  ;;  %v385_v33 = vld [vmem:[%s1962_s1 + $0x618] sm:$0xff]  ;;  %v318_v37 = vld [vmem:[%s1962_s1 + $0x400] sm:$0xff]  ;;  %v552_v41 = vpack.c.bf16 %v321_v31, %v319_v30  ;;  %v384_v43 = vld [vmem:[%s1962_s1 + $0x610] sm:$0xff] }
  0x4b   : > { %674 = vmatpush2.bf16.msra.mxu0 %v503_v9  ;;  %v393_v9 = vld [vmem:[%s1962_s1 + $0x658] sm:$0xff]  ;;  %v382_v42 = vld [vmem:[%s1962_s1 + $0x600] sm:$0xff]  ;;  %v443_v49 = vld [vmem:[%s1962_s1 + $0x7e8] sm:$0xff] }
  0x4c   : > { %717 = vmatpush2.bf16.msra.mxu1 %v535_v13  ;;  %729 = vmatprep.subr.bf16.mxu0 %v566_v14  ;;  %v326_v13 = vld [vmem:[%s1962_s1 + $0x440] sm:$0xff]  ;;  %v328_v14 = vld [vmem:[%s1962_s1 + $0x450] sm:$0xff]  ;;  %v588_v16 = vpack.c.bf16 %v393_v9, %v391_v8  ;;  %v381_v46 = vld [vmem:[%s1962_s1 + $0x5f8] sm:$0xff]  ;;  %v583_v53 = vpack.c.bf16 %v384_v43, %v382_v42 }
  0x4d   : > { %772 = vmatprep.subr.bf16.mxu1 %v598_v18  ;;  %v323_v18 = vld [vmem:[%s1962_s1 + $0x428] sm:$0xff]  ;;  %v179_v47 = vld [vmem:[%s1337_s27 + $0x38] sm:$0xff]  ;;  %v188_v48 = vld [vmem:[%s1337_s27 + $0x80] sm:$0xff] }
  0x4e   : > { %676 = vmatmul.mubr.bf16.vlgmr.msra.gmra.mxu0 %v478_v22  ;;  %v555_v22 = vpack.c.bf16 %v328_v14, %v326_v13  ;;  %v378_v55 = vld [vmem:[%s1962_s1 + $0x5e0] sm:$0xff]  ;;  %v444_v59 = vld [vmem:[%s1962_s1 + $0x7f0] sm:$0xff]  ;;  %v375_v60 = vld [vmem:[%s1962_s1 + $0x5c8] sm:$0xff] }
  0x4f   : > { %730 = vmatpush1.bf16.msra.mxu0 %v565_v25  ;;  %719 = vmatmul.mubr.bf16.vlgmr.msra.gmra.mxu1 %v480_v26  ;;  %v554_v25 = vpack.c.bf16 %v325_v19, %v323_v18  ;;  %v324_v26 = vld [vmem:[%s1962_s1 + $0x430] sm:$0xff]  ;;  %v442_v57 = vld [vmem:[%s1962_s1 + $0x7e0] sm:$0xff]  ;;  %v377_v61 = vld [vmem:[%s1962_s1 + $0x5d8] sm:$0xff] }
  0x50   : > { %773 = vmatpush1.bf16.msra.mxu1 %v597_v27  ;;  %731 = vmatprep.subr.bf16.mxu0 %v564_v28  ;;  %v386_v27 = vld [vmem:[%s1962_s1 + $0x620] sm:$0xff]  ;;  %v388_v28 = vld [vmem:[%s1962_s1 + $0x630] sm:$0xff]  ;;  %v553_v36 = vpack.c.bf16 %v324_v26, %v322_v23  ;;  %v613_v1 = vpack.c.bf16 %v444_v59, %v442_v57  ;;  %v580_v2 = vpack.c.bf16 %v377_v61, %v375_v60  ;;  %v371_v8 = vld [vmem:[%s1962_s1 + $0x5a8] sm:$0xff] }
  0x51   : > { %774 = vmatprep.subr.bf16.mxu1 %v596_v32  ;;  %v383_v32 = vld [vmem:[%s1962_s1 + $0x608] sm:$0xff]  ;;  %v374_v3 = vld [vmem:[%s1962_s1 + $0x5c0] sm:$0xff]  ;;  %v440_v7 = vld [vmem:[%s1962_s1 + $0x7d0] sm:$0xff] }
  0x52   : > { %v584_v45 = vpack.c.bf16 %v385_v33, %v383_v32  ;;  %v438_v5 = vld [vmem:[%s1962_s1 + $0x7c0] sm:$0xff]  ;;  %v373_v9 = vld [vmem:[%s1962_s1 + $0x5b8] sm:$0xff]  ;;  %v436_v19 = vld [vmem:[%s1962_s1 + $0x7b0] sm:$0xff] }
  0x53   : > { %732 = vmatpush1.bf16.msra.mxu0 %v563_v38  ;;  %v320_v38 = vld [vmem:[%s1962_s1 + $0x410] sm:$0xff]  ;;  %v611_v13 = vpack.c.bf16 %v440_v7, %v438_v5  ;;  %v578_v14 = vpack.c.bf16 %v373_v9, %v371_v8  ;;  %v370_v15 = vld [vmem:[%s1962_s1 + $0x5a0] sm:$0xff]  ;;  %v367_v20 = vld [vmem:[%s1962_s1 + $0x588] sm:$0xff] }
  0x54   : > { %775 = vmatpush1.bf16.msra.mxu1 %v595_v39  ;;  %733 = vmatprep.subr.bf16.mxu0 %v562_v40  ;;  %v483_v39 = vpack.c.bf16 %v186_v35, %v177_v34  ;;  %v585_v40 = vpack.c.bf16 %v388_v28, %v386_v27  ;;  %v434_v17 = vld [vmem:[%s1962_s1 + $0x7a0] sm:$0xff]  ;;  %v369_v21 = vld [vmem:[%s1962_s1 + $0x598] sm:$0xff]  ;;  %v368_v28 = vld [vmem:[%s1962_s1 + $0x590] sm:$0xff] }
  0x55   : > { %776 = vmatprep.subr.bf16.mxu1 %v594_v44  ;;  %v379_v44 = vld [vmem:[%s1962_s1 + $0x5e8] sm:$0xff]  ;;  %v433_v23 = vld [vmem:[%s1962_s1 + $0x798] sm:$0xff]  ;;  %v576_v26 = vpack.c.bf16 %v369_v21, %v367_v20  ;;  %v366_v27 = vld [vmem:[%s1962_s1 + $0x580] sm:$0xff] }
  0x56   : > { %761 = vmatprep.mubr.bf16.mxu0 %v483_v39  ;;  %v582_v54 = vpack.c.bf16 %v381_v46, %v379_v44  ;;  %v432_v31 = vld [vmem:[%s1962_s1 + $0x790] sm:$0xff]  ;;  %v363_v32 = vld [vmem:[%s1962_s1 + $0x568] sm:$0xff]  ;;  %v365_v33 = vld [vmem:[%s1962_s1 + $0x578] sm:$0xff] }
  0x57   : > { %734 = vmatpush1.bf16.msra.mxu0 %v561_v50  ;;  %v445_v50 = vld [vmem:[%s1962_s1 + $0x7f8] sm:$0xff]  ;;  %v427_v34 = vld [vmem:[%s1962_s1 + $0x768] sm:$0xff]  ;;  %v362_v39 = vld [vmem:[%s1962_s1 + $0x560] sm:$0xff] }
  0x58   : > { %777 = vmatpush1.bf16.msra.mxu1 %v593_v51  ;;  %735 = vmatprep.subr.bf16.mxu0 %v560_v52  ;;  %v485_v51 = vpack.c.bf16 %v188_v48, %v179_v47  ;;  %v551_v52 = vpack.c.bf16 %v320_v38, %v318_v37  ;;  %v614_v58 = vpack.c.bf16 %v445_v50, %v443_v49  ;;  %v429_v35 = vld [vmem:[%s1962_s1 + $0x778] sm:$0xff]  ;;  %v428_v43 = vld [vmem:[%s1962_s1 + $0x770] sm:$0xff]  ;;  %v359_v44 = vld [vmem:[%s1962_s1 + $0x548] sm:$0xff] }
  0x59   : > { %778 = vmatprep.subr.bf16.mxu1 %v592_v56  ;;  %v380_v56 = vld [vmem:[%s1962_s1 + $0x5f0] sm:$0xff]  ;;  %v574_v38 = vpack.c.bf16 %v365_v33, %v363_v32  ;;  %v606_v42 = vpack.c.bf16 %v429_v35, %v427_v34  ;;  %v423_v46 = vld [vmem:[%s1962_s1 + $0x748] sm:$0xff]  ;;  %v425_v47 = vld [vmem:[%s1962_s1 + $0x758] sm:$0xff] }
  0x5a   : > { %804 = vmatprep.mubr.bf16.mxu1 %v485_v51  ;;  %v358_v51 = vld [vmem:[%s1962_s1 + $0x540] sm:$0xff]  ;;  %v357_v57 = vld [vmem:[%s1962_s1 + $0x538] sm:$0xff]  ;;  %v185_v20 = vld [vmem:[%s1337_s27 + $0x68] sm:$0xff] }
  0x5b   : > { %736 = vmatpush1.bf16.msra.mxu0 %v559_v62  ;;  %v439_v62 = vld [vmem:[%s1962_s1 + $0x7c8] sm:$0xff]  ;;  %v421_v59 = vld [vmem:[%s1962_s1 + $0x738] sm:$0xff]  ;;  %v474_v21 = vld [vmem:[%s1962_s1 + $0x8e0] sm:$0xff] }
  0x5c   : > { %779 = vmatpush1.bf16.msra.mxu1 %v591_v63  ;;  %737 = vmatprep.subr.bf16.mxu0 %v558_v0  ;;  %v441_v63 = vld [vmem:[%s1962_s1 + $0x7d8] sm:$0xff]  ;;  %v581_v0 = vpack.c.bf16 %v380_v56, %v378_v55  ;;  %v424_v55 = vld [vmem:[%s1962_s1 + $0x750] sm:$0xff]  ;;  %v355_v56 = vld [vmem:[%s1962_s1 + $0x528] sm:$0xff] }
  0x5d   : > { %780 = vmatprep.subr.bf16.mxu1 %v590_v4  ;;  %v376_v4 = vld [vmem:[%s1962_s1 + $0x5d0] sm:$0xff]  ;;  %v612_v6 = vpack.c.bf16 %v441_v63, %v439_v62  ;;  %v570_v62 = vpack.c.bf16 %v357_v57, %v355_v56  ;;  %v354_v63 = vld [vmem:[%s1962_s1 + $0x520] sm:$0xff]  ;;  %v353_v5 = vld [vmem:[%s1962_s1 + $0x518] sm:$0xff] }
  0x5e   : > { %v417_v7 = vld [vmem:[%s1962_s1 + $0x718] sm:$0xff]  ;;  %v470_v33 = vld [vmem:[%s1962_s1 + $0x8c0] sm:$0xff]  ;;  %v472_v34 = vld [vmem:[%s1962_s1 + $0x8d0] sm:$0xff] }
  0x5f   : > { %738 = vmatpush1.bf16.msra.mxu0 %v557_v10  ;;  %v435_v10 = vld [vmem:[%s1962_s1 + $0x7a8] sm:$0xff] }
  0x60   : > { %781 = vmatpush1.bf16.msra.mxu1 %v589_v11  ;;  %739 = vmatprep.subr.bf16.mxu0 %v556_v12  ;;  %v437_v11 = vld [vmem:[%s1962_s1 + $0x7b8] sm:$0xff]  ;;  %v579_v12 = vpack.c.bf16 %v376_v4, %v374_v3  ;;  %v420_v3 = vld [vmem:[%s1962_s1 + $0x730] sm:$0xff]  ;;  %v351_v4 = vld [vmem:[%s1962_s1 + $0x508] sm:$0xff] }
  0x61   : > { %782 = vmatprep.subr.bf16.mxu1 %v588_v16  ;;  %v372_v16 = vld [vmem:[%s1962_s1 + $0x5b0] sm:$0xff]  ;;  %v610_v18 = vpack.c.bf16 %v437_v11, %v435_v10  ;;  %v568_v10 = vpack.c.bf16 %v353_v5, %v351_v4  ;;  %v350_v11 = vld [vmem:[%s1962_s1 + $0x500] sm:$0xff]  ;;  %v467_v35 = vld [vmem:[%s1962_s1 + $0x8a8] sm:$0xff] }
  0x63   : > { %740 = vmatpush1.bf16.msra.mxu0 %v555_v22  ;;  %v431_v22 = vld [vmem:[%s1962_s1 + $0x788] sm:$0xff] }
  0x64   : > { %783 = vmatpush1.bf16.msra.mxu1 %v587_v24  ;;  %741 = vmatprep.subr.bf16.mxu0 %v554_v25  ;;  %v577_v24 = vpack.c.bf16 %v372_v16, %v370_v15  ;;  %v609_v25 = vpack.c.bf16 %v436_v19, %v434_v17  ;;  %v608_v30 = vpack.c.bf16 %v433_v23, %v431_v22  ;;  %v416_v15 = vld [vmem:[%s1962_s1 + $0x710] sm:$0xff]  ;;  %v475_v16 = vld [vmem:[%s1962_s1 + $0x8e8] sm:$0xff]  ;;  %v477_v17 = vld [vmem:[%s1962_s1 + $0x8f8] sm:$0xff] }
  0x65   : > { %784 = vmatprep.subr.bf16.mxu1 %v586_v29  ;;  %v430_v29 = vld [vmem:[%s1962_s1 + $0x780] sm:$0xff]  ;;  %v630_v23 = vpack.c.bf16 %v477_v17, %v475_v16 }
  0x66   : > { %v607_v37 = vpack.c.bf16 %v432_v31, %v430_v29  ;;  %v176_v19 = vld [vmem:[%s1337_s27 + $0x20] sm:$0xff] }
  0x67   : > { %742 = vmatpush1.bf16.msra.mxu0 %v553_v36  ;;  %v575_v36 = vpack.c.bf16 %v368_v28, %v366_v27  ;;  %v471_v27 = vld [vmem:[%s1962_s1 + $0x8c8] sm:$0xff]  ;;  %v473_v28 = vld [vmem:[%s1962_s1 + $0x8d8] sm:$0xff]  ;;  %v482_v29 = vpack.c.bf16 %v185_v20, %v176_v19  ;;  %v631_v20 = vld [vmem:[%s1963_s2] sm:$0x3] }
  0x68   : > { %785 = vmatpush1.bf16.msra.mxu1 %v585_v40  ;;  %743 = vmatprep.subr.bf16.mxu0 %v552_v41  ;;  %v364_v40 = vld [vmem:[%s1962_s1 + $0x570] sm:$0xff]  ;;  %v426_v41 = vld [vmem:[%s1962_s1 + $0x760] sm:$0xff]  ;;  %v628_v32 = vpack.c.bf16 %v473_v28, %v471_v27 }
  0x69   : > { %786 = vmatprep.subr.bf16.mxu1 %v584_v45  ;;  %v361_v45 = vld [vmem:[%s1962_s1 + $0x558] sm:$0xff]  ;;  %v573_v48 = vpack.c.bf16 %v364_v40, %v362_v39  ;;  %v605_v49 = vpack.c.bf16 %v428_v43, %v426_v41  ;;  %v466_v39 = vld [vmem:[%s1962_s1 + $0x8a0] sm:$0xff]  ;;  %v468_v40 = vld [vmem:[%s1962_s1 + $0x8b0] sm:$0xff]  ;;  %v1016_v41 = vmov 0  }
  0x6a   : > { %v572_v50 = vpack.c.bf16 %v361_v45, %v359_v44  ;;  %v465_v43 = vld [vmem:[%s1962_s1 + $0x898] sm:$0xff]  ;;  %v625_v44 = vpack.c.bf16 %v468_v40, %v466_v39 }
  0x6b   : > { %744 = vmatpush1.bf16.msra.mxu0 %v551_v52  ;;  %v360_v52 = vld [vmem:[%s1962_s1 + $0x550] sm:$0xff] }
  0x6c   : > { %787 = vmatpush1.bf16.msra.mxu1 %v583_v53  ;;  %745 = vmatprep.subr.bf16.mxu0 %v582_v54  ;;  %v422_v53 = vld [vmem:[%s1962_s1 + $0x740] sm:$0xff]  ;;  %v604_v54 = vpack.c.bf16 %v425_v47, %v423_v46  ;;  %v571_v60 = vpack.c.bf16 %v360_v52, %v358_v51  ;;  %v464_v47 = vld [vmem:[%s1962_s1 + $0x890] sm:$0xff] }
  0x6d   : > { %788 = vmatprep.subr.bf16.mxu1 %v614_v58  ;;  %v419_v58 = vld [vmem:[%s1962_s1 + $0x728] sm:$0xff]  ;;  %v603_v61 = vpack.c.bf16 %v424_v55, %v422_v53  ;;  %v462_v46 = vld [vmem:[%s1962_s1 + $0x880] sm:$0xff]  ;;  %v460_v53 = vld [vmem:[%s1962_s1 + $0x870] sm:$0xff] }
  0x6e   : > { %v458_v52 = vld [vmem:[%s1962_s1 + $0x860] sm:$0xff]  ;;  %v457_v55 = vld [vmem:[%s1962_s1 + $0x858] sm:$0xff] }
  0x6f   : > { %746 = vmatpush2.bf16.msra.mxu0 %v581_v0  ;;  %v356_v0 = vld [vmem:[%s1962_s1 + $0x530] sm:$0xff]  ;;  %v621_v56 = vpack.c.bf16 %v460_v53, %v458_v52 }
  0x70   : > { %789 = vmatpush2.bf16.msra.mxu1 %v613_v1  ;;  %747 = vmatprep.subr.bf16.mxu0 %v580_v2  ;;  %v418_v1 = vld [vmem:[%s1962_s1 + $0x720] sm:$0xff]  ;;  %v602_v2 = vpack.c.bf16 %v421_v59, %v419_v58  ;;  %v569_v8 = vpack.c.bf16 %v356_v0, %v354_v63  ;;  %v456_v59 = vld [vmem:[%s1962_s1 + $0x850] sm:$0xff] }
  0x71   : > { %790 = vmatprep.subr.bf16.mxu1 %v612_v6  ;;  %v415_v6 = vld [vmem:[%s1962_s1 + $0x708] sm:$0xff]  ;;  %v601_v9 = vpack.c.bf16 %v420_v3, %v418_v1  ;;  %v454_v58 = vld [vmem:[%s1962_s1 + $0x840] sm:$0xff]  ;;  %v452_v1 = vld [vmem:[%s1962_s1 + $0x830] sm:$0xff] }
  0x72   : > { %v450_v0 = vld [vmem:[%s1962_s1 + $0x820] sm:$0xff]  ;;  %v449_v3 = vld [vmem:[%s1962_s1 + $0x818] sm:$0xff] }
  0x73   : > { %748 = vmatpush2.bf16.msra.mxu0 %v579_v12  ;;  %v352_v12 = vld [vmem:[%s1962_s1 + $0x510] sm:$0xff]  ;;  %v617_v4 = vpack.c.bf16 %v452_v1, %v450_v0 }
  0x74   : > { %791 = vmatpush2.bf16.msra.mxu1 %v611_v13  ;;  %749 = vmatprep.subr.bf16.mxu0 %v578_v14  ;;  %v414_v13 = vld [vmem:[%s1962_s1 + $0x700] sm:$0xff]  ;;  %v600_v14 = vpack.c.bf16 %v417_v7, %v415_v6  ;;  %v448_v7 = vld [vmem:[%s1962_s1 + $0x810] sm:$0xff] }
  0x75   : > { %792 = vmatprep.subr.bf16.mxu1 %v610_v18  ;;  %v567_v18 = vpack.c.bf16 %v352_v12, %v350_v11  ;;  %v599_v22 = vpack.c.bf16 %v416_v15, %v414_v13  ;;  %v446_v6 = vld [vmem:[%s1962_s1 + $0x800] sm:$0xff]  ;;  %v633_v13 = vlaneseq }
  0x77   : > { %750 = vmatpush2.bf16.msra.mxu0 %v577_v24  ;;  %v476_v24 = vld [vmem:[%s1962_s1 + $0x8f0] sm:$0xff]  ;;  %v634_v16 = vshrl.u32 %v633_v13, 7 }
  0x78   : > { %793 = vmatpush2.bf16.msra.mxu1 %v609_v25  ;;  %751 = vmatprep.subr.bf16.mxu0 %v576_v26  ;;  %v178_v25 = vld [vmem:[%s1337_s27 + $0x30] sm:$0xff]  ;;  %v187_v26 = vld [vmem:[%s1337_s27 + $0x78] sm:$0xff] }
  0x79   : > { %794 = vmatprep.subr.bf16.mxu1 %v608_v30  ;;  %v629_v30 = vpack.c.bf16 %v476_v24, %v474_v21  ;;  %v484_v31 = vpack.c.bf16 %v187_v26, %v178_v25  ;;  %v635_v19 = vsub.s32 0, %v634_v16  ;;  %v639_v21 = vsub.s32 1, %v634_v16 }
  0x7b   : > { %752 = vmatpush2.bf16.msra.mxu0 %v575_v36  ;;  %v469_v36 = vld [vmem:[%s1962_s1 + $0x8b8] sm:$0xff]  ;;  %v636_v24 = vrot.slane %v631_v20, %v635_v19  ;;  %v640_v26 = vrot.slane %v631_v20, %v639_v21 }
  0x7c   : > { %795 = vmatpush2.bf16.msra.mxu1 %v607_v37  ;;  %753 = vmatprep.subr.bf16.mxu0 %v574_v38  ;;  %v627_v37 = vpack.c.bf16 %v472_v34, %v470_v33  ;;  %v626_v38 = vpack.c.bf16 %v469_v36, %v467_v35 }
  0x7d   : > { %796 = vmatprep.subr.bf16.mxu1 %v606_v42  ;;  %v463_v42 = vld [vmem:[%s1962_s1 + $0x888] sm:$0xff] }
  0x7e   : > { %v624_v45 = vpack.c.bf16 %v465_v43, %v463_v42 }
  0x7f   : > { %754 = vmatpush2.bf16.msra.mxu0 %v573_v48  ;;  %v459_v48 = vld [vmem:[%s1962_s1 + $0x868] sm:$0xff] }
  0x80   : > { %797 = vmatpush2.bf16.msra.mxu1 %v605_v49  ;;  %755 = vmatprep.subr.bf16.mxu0 %v572_v50  ;;  %v461_v49 = vld [vmem:[%s1962_s1 + $0x878] sm:$0xff]  ;;  %v623_v50 = vpack.c.bf16 %v464_v47, %v462_v46 }
  0x81   : > { %798 = vmatprep.subr.bf16.mxu1 %v604_v54  ;;  %v622_v51 = vpack.c.bf16 %v461_v49, %v459_v48  ;;  %v455_v54 = vld [vmem:[%s1962_s1 + $0x848] sm:$0xff] }
  0x82   : > { %v620_v57 = vpack.c.bf16 %v457_v55, %v455_v54 }
  0x83   : > { %756 = vmatpush2.bf16.msra.mxu0 %v571_v60  ;;  %v451_v60 = vld [vmem:[%s1962_s1 + $0x828] sm:$0xff] }
  0x84   : > { %799 = vmatpush2.bf16.msra.mxu1 %v603_v61  ;;  %757 = vmatprep.subr.bf16.mxu0 %v570_v62  ;;  %v453_v61 = vld [vmem:[%s1962_s1 + $0x838] sm:$0xff]  ;;  %v619_v62 = vpack.c.bf16 %v456_v59, %v454_v58 }
  0x85   : > { %800 = vmatprep.subr.bf16.mxu1 %v602_v2  ;;  %v618_v63 = vpack.c.bf16 %v453_v61, %v451_v60  ;;  %v447_v2 = vld [vmem:[%s1962_s1 + $0x808] sm:$0xff] }
  0x86   : > { %v616_v5 = vpack.c.bf16 %v449_v3, %v447_v2 }
  0x87   : > { %758 = vmatpush2.bf16.msra.mxu0 %v569_v8  ;;  %v615_v8 = vpack.c.bf16 %v448_v7, %v446_v6 }
  0x88   : > { %801 = vmatpush2.bf16.msra.mxu1 %v601_v9  ;;  %759 = vmatprep.subr.bf16.mxu0 %v568_v10  ;;  %v180_v9 = vld [vmem:[%s1337_s27 + $0x40] sm:$0xff]  ;;  %v189_v10 = vld [vmem:[%s1337_s27 + $0x88] sm:$0xff]  ;;  %s993_s27 = sshll.u32 %s1967_s13, 5 }
  0x89   : > { %802 = vmatprep.subr.bf16.mxu1 %v600_v14  ;;  %v486_v11 = vpack.c.bf16 %v189_v10, %v180_v9  ;;  %s170_s15 = scalar_lea.vmem %s1964_s3, %s993_s27 }
  0x8b   : > { %760 = vmatpush2.bf16.msra.mxu0 %v567_v18 }
  0x8c   : > { %803 = vmatpush2.bf16.msra.mxu1 %v599_v22  ;;  %815 = vmatprep.subr.bf16.mxu0 %v630_v23 }
  0x8e   : > { %762 = vmatmul.mubr.bf16.vlgmr.msra.gmra.mxu0 %v482_v29 }
  0x8f   : > { %816 = vmatpush1.bf16.msra.mxu0 %v629_v30  ;;  %805 = vmatmul.mubr.bf16.vlgmr.msra.gmra.mxu1 %v484_v31 }
  0x90   : > { %817 = vmatprep.subr.bf16.mxu0 %v628_v32  ;;  %847 = vmatprep.mubr.bf16.mxu0 %v1016_v41 }
  0x93   : > { %818 = vmatpush1.bf16.msra.mxu0 %v627_v37 }
  0x94   : > { %819 = vmatprep.subr.bf16.mxu0 %v626_v38 }
  0x97   : > { %820 = vmatpush1.bf16.msra.mxu0 %v625_v44 }
  0x98   : > { %821 = vmatprep.subr.bf16.mxu0 %v624_v45 }
  0x9b   : > { %822 = vmatpush1.bf16.msra.mxu0 %v623_v50 }
  0x9c   : > { %823 = vmatprep.subr.bf16.mxu0 %v622_v51 }
  0x9f   : > { %824 = vmatpush1.bf16.msra.mxu0 %v621_v56 }
  0xa0   : > { %825 = vmatprep.subr.bf16.mxu0 %v620_v57 }
  0xa3   : > { %826 = vmatpush1.bf16.msra.mxu0 %v619_v62 }
  0xa4   : > { %827 = vmatprep.subr.bf16.mxu0 %v618_v63 }
  0xa7   : > { %828 = vmatpush1.bf16.msra.mxu0 %v617_v4 }
  0xa8   : > { %829 = vmatprep.subr.bf16.mxu0 %v616_v5 }
  0xab   : > { %830 = vmatpush1.bf16.msra.mxu0 %v615_v8 }
  0xae   : > { %848 = vmatmul.mubr.bf16.vlgmr.msra.gmra.mxu0 %v486_v11 }
 0x10e   : > { %v677_v12 = vpop.f32.mrf.mxu0 }
 0x10f   : > { %v720_v15 = vpop.f32.mrf.mxu1  ;;  %v678_v28 = vadd.f32 %v677_v12, %v636_v24 }
 0x110   : > { %v679_v14 = vpop.f32.mrf.mxu0 }
 0x111   : > { %v722_v18 = vpop.f32.mrf.mxu1  ;;  %v680_v31 = vadd.f32 %v679_v14, %v640_v26  ;;  %v721_v32 = vadd.f32 %v720_v15, %v678_v28 }
 0x112   : > { %v681_v17 = vpop.f32.mrf.mxu0 }
 0x113   : > { %v724_v23 = vpop.f32.mrf.mxu1  ;;  %v682_v33 = vadd.f32 %v681_v17, %v636_v24  ;;  %v723_v36 = vadd.f32 %v722_v18, %v680_v31 }
 0x114   : > { %v683_v22 = vpop.f32.mrf.mxu0 }
 0x115   : > { %v726_v27 = vpop.f32.mrf.mxu1  ;;  %v684_v37 = vadd.f32 %v683_v22, %v640_v26  ;;  %v725_v39 = vadd.f32 %v724_v23, %v682_v33 }
 0x117   : > { %v727_v43 = vadd.f32 %v726_v27, %v684_v37 }
 0x14e   : > { %v763_v25 = vpop.f32.mrf.mxu0 }
 0x14f   : > { %v806_v30 = vpop.f32.mrf.mxu1  ;;  %v764_v38 = vadd.f32 %v763_v25, %v721_v32 }
 0x150   : > { %v765_v29 = vpop.f32.mrf.mxu0 }
 0x151   : > { %v808_v35 = vpop.f32.mrf.mxu1  ;;  %v766_v40 = vadd.f32 %v765_v29, %v723_v36  ;;  %v807_v44 = vadd.f32 %v806_v30, %v764_v38 }
 0x152   : > { %v767_v34 = vpop.f32.mrf.mxu0 }
 0x153   : > { %v810_v42 = vpop.f32.mrf.mxu1  ;;  %v768_v45 = vadd.f32 %v767_v34, %v725_v39  ;;  %v809_v47 = vadd.f32 %v808_v35, %v766_v40 }
 0x154   : > { %v769_v41 = vpop.f32.mrf.mxu0 }
 0x155   : > { %v770_v48 = vadd.f32 %v769_v41, %v727_v43  ;;  %v812_v50 = vpop.f32.mrf.mxu1  ;;  %v811_v52 = vadd.f32 %v810_v42, %v768_v45 }
 0x157   : > { %v813_v56 = vadd.f32 %v812_v50, %v770_v48 }
 0x16e   : > { %v849_v46 = vpop.f32.mrf.mxu0 }
 0x16f   : > { %v850_v49 = vadd.f32 %v849_v46, %v807_v44 }
 0x170   : > { %v851_v51 = vpop.f32.mrf.mxu0 }
 0x171   : > { %v862_v53 = vmul.f32 0.2, %v850_v49  ;;  %v852_v54 = vadd.f32 %v851_v51, %v809_v47  ;;  %vm858_vm0 = vcmp.ge.f32.partialorder %v850_v49, 0.0 }
 0x172   : > { %v853_v55 = vpop.f32.mrf.mxu0 }
 0x173   : > { %vm859_vm1 = vcmp.ge.f32.partialorder %v852_v54, 0.0  ;;  %v863_v57 = vmul.f32 0.2, %v852_v54  ;;  %v854_v58 = vadd.f32 %v853_v55, %v811_v52  ;;  %v866_v60 = vsel %vm858_vm0, %v850_v49, %v862_v53 }
 0x174   : > { %v855_v59 = vpop.f32.mrf.mxu0  ;;  %v886_v2 = vmul.f32 %v866_v60, %v866_v60 }
 0x175   : > { %vm860_vm2 = vcmp.ge.f32.partialorder %v854_v58, 0.0  ;;  %v864_v61 = vmul.f32 0.2, %v854_v58  ;;  %v856_v62 = vadd.f32 %v855_v59, %v813_v56  ;;  %v1948_v63 = vsel %vm859_vm1, %v852_v54, %v863_v57 }
 0x176   : > { %v887_v5 = vmul.f32 %v1948_v63, %v1948_v63 }
 0x177   : > { %v868_v0 = vsel %vm860_vm2, %v854_v58, %v864_v61  ;;  %vm861_vm3 = vcmp.ge.f32.partialorder %v856_v62, 0.0  ;;  %v865_v1 = vmul.f32 0.2, %v856_v62 }
 0x178   : > { %v870_v3 = vadd.f32 %v868_v0, %v866_v60  ;;  %v888_v4 = vmul.f32 %v868_v0, %v868_v0 }
 0x179   : > { %v869_v6 = vsel %vm861_vm3, %v856_v62, %v865_v1 }
 0x17a   : > { %v871_v7 = vrot.slane %v870_v3, 4  ;;  %v890_v8 = vadd.f32 %v888_v4, %v886_v2  ;;  %v877_v9 = vadd.f32 %v869_v6, %v1948_v63  ;;  %v889_v10 = vmul.f32 %v869_v6, %v869_v6 }
 0x17c   : > { %v872_v11 = vadd.f32 %v871_v7, %v870_v3  ;;  %v891_v12 = vrot.slane %v890_v8, 4  ;;  %v878_v13 = vrot.slane %v877_v9, 4  ;;  %v897_v14 = vadd.f32 %v889_v10, %v887_v5 }
 0x17e   : > { %v873_v15 = vrot.slane %v872_v11, 2  ;;  %v892_v16 = vadd.f32 %v891_v12, %v890_v8  ;;  %v879_v17 = vadd.f32 %v878_v13, %v877_v9  ;;  %v898_v18 = vrot.slane %v897_v14, 4 }
 0x180   : > { %v874_v19 = vadd.f32 %v873_v15, %v872_v11  ;;  %v893_v20 = vrot.slane %v892_v16, 2  ;;  %v880_v21 = vrot.slane %v879_v17, 2  ;;  %v899_v22 = vadd.f32 %v898_v18, %v897_v14 }
 0x182   : > { %v875_v23 = vrot.slane %v874_v19, 1  ;;  %v894_v24 = vadd.f32 %v893_v20, %v892_v16  ;;  %v881_v25 = vadd.f32 %v880_v21, %v879_v17  ;;  %v900_v26 = vrot.slane %v899_v22, 2 }
 0x184   : > { %v876_v27 = vadd.f32 %v875_v23, %v874_v19  ;;  %v895_v28 = vrot.slane %v894_v24, 1  ;;  %v882_v29 = vrot.slane %v881_v25, 1  ;;  %v901_v30 = vadd.f32 %v900_v26, %v899_v22 }
 0x186   : > { %v884_v31 = vmul.f32 0.0625, %v876_v27  ;;  %v896_v32 = vadd.f32 %v895_v28, %v894_v24  ;;  %v883_v33 = vadd.f32 %v882_v29, %v881_v25  ;;  %v902_v34 = vrot.slane %v901_v30, 1 }
 0x188   : > { %v904_v35 = vmul.f32 0.0625, %v896_v32  ;;  %v906_v36 = vmul.f32 %v884_v31, %v884_v31  ;;  %v885_v37 = vmul.f32 0.0625, %v883_v33  ;;  %v903_v38 = vadd.f32 %v902_v34, %v901_v30 }
 0x189   : > { %v912_v47 = vsub.f32 %v866_v60, %v884_v31  ;;  %v914_v48 = vsub.f32 %v868_v0, %v884_v31 }
 0x18a   : > { %v908_v39 = vsub.f32 %v904_v35, %v906_v36  ;;  %v905_v40 = vmul.f32 0.0625, %v903_v38  ;;  %v907_v41 = vmul.f32 %v885_v37, %v885_v37  ;;  %v913_v52 = vsub.f32 %v1948_v63, %v885_v37 }
 0x18b   : > { %v915_v53 = vsub.f32 %v869_v6, %v885_v37 }
 0x18c   : > { %v910_v42 = vmax.f32 %v908_v39, 0.0  ;;  %v909_v43 = vsub.f32 %v905_v40, %v907_v41 }
 0x18e   : > { %v916_v44 = vadd.f32 1e-05, %v910_v42  ;;  %v911_v45 = vmax.f32 %v909_v43, 0.0 }
 0x190   : > { %1004 = vrsqrt.f32 %v916_v44  ;;  %v917_v46 = vadd.f32 1e-05, %v911_v45 }
 0x192   : > { %1006 = vrsqrt.f32 %v917_v46 }
 0x19d   : > { %v1005_v49 = vpop.eup %1004 }
 0x19e   : > { %v920_v50 = vmul.f32 %v1005_v49, %v912_v47  ;;  %v922_v51 = vmul.f32 %v1005_v49, %v914_v48 }
 0x19f   : > { %v1007_v54 = vpop.eup %1006 }
 0x1a0   : > { %924 = vst [vmem:[%s170_s15] sm:$0xff] %v920_v50  ;;  %926 = vst [vmem:[%s170_s15 + $0x10] sm:$0xff] %v922_v51  ;;  %v921_v55 = vmul.f32 %v1007_v54, %v913_v52  ;;  %v923_v56 = vmul.f32 %v1007_v54, %v915_v53 }
 0x1a2   : > { %925 = vst [vmem:[%s170_s15 + $0x8] sm:$0xff] %v921_v55  ;;  %927 = vst [vmem:[%s170_s15 + $0x18] sm:$0xff] %v923_v56 }
 0x1a3 PF: > { %s13_s12 = sadd.s32 1, %s1014_s12  }
 0x1a4   : > { %p10_p4 = scmp.ge.s32.totalorder %s13_s12, 4  }
 0x1a6   :  { %12 = sbr.rel (!%p10_p4) target bundleno = 1 (0x1), region = 62 }

// kernel: classifier_forward.9
= control target key start
LH: loop header
LB: loop body
LE: loop exit
PB: predicated region body
PF: predicated region fallthrough
CT: control target
= control target key end

     0   :  { %v1270_v30 = vmov 1983009808   ;;  %v290_v32 = vlaneseq  ;;  %s2091_s0 = inlined_call_operand.vmem [shape: f32[2,2048], index: 0, kind: input, shape index: {}]   ;;  %s2092_s1 = inlined_call_operand.vmem [shape: f32[2048,10], index: 1, kind: input, shape index: {}]   ;;  %s2093_s2 = inlined_call_operand.vmem [shape: f32[1,10], index: 2, kind: input, shape index: {}]   ;;  %s2094_s3 = inlined_call_operand.hbm [shape: f32[2,10], index: 3, kind: output, shape index: {}]  }
   0x1   :  { %v50_v0 = vld [vmem:[%s2092_s1 + $0xf8] sm:$0xff]  ;;  %v49_v4 = vld [vmem:[%s2092_s1 + $0xf0] sm:$0xff]  ;;  %v48_v8 = vld [vmem:[%s2092_s1 + $0xe8] sm:$0xff]  ;;  %v288_v31 = vunpack.c.l.s4 %v1270_v30 }
   0x2   :  { %v82_v1 = vld [vmem:[%s2092_s1 + $0x1f8] sm:$0xff]  ;;  %958 = vmatprep.subr.mxu0 %v50_v0  ;;  %v81_v5 = vld [vmem:[%s2092_s1 + $0x1f0] sm:$0xff]  ;;  %v80_v9 = vld [vmem:[%s2092_s1 + $0x1e8] sm:$0xff]  ;;  %v291_v42 = vshrl.u32 %v290_v32, 7 }
   0x3   :  { %v34_v2 = vld [vmem:[%s2092_s1 + $0x78] sm:$0xff]  ;;  %993 = vmatprep.subr.mxu1 %v82_v1  ;;  %v33_v6 = vld [vmem:[%s2092_s1 + $0x70] sm:$0xff]  ;;  %v32_v10 = vld [vmem:[%s2092_s1 + $0x68] sm:$0xff]  ;;  %v289_v41 = vunpack.c.0.s8 %v288_v31 }
   0x4   :  { %v66_v3 = vld [vmem:[%s2092_s1 + $0x178] sm:$0xff]  ;;  %959 = vmatpush3.msra.mxu0 %v34_v2  ;;  %v65_v7 = vld [vmem:[%s2092_s1 + $0x170] sm:$0xff]  ;;  %v64_v11 = vld [vmem:[%s2092_s1 + $0x168] sm:$0xff] }
   0x5   :  { %994 = vmatpush3.msra.mxu1 %v66_v3  ;;  %960 = vmatprep.subr.mxu0 %v49_v4  ;;  %v47_v12 = vld [vmem:[%s2092_s1 + $0xe0] sm:$0xff]  ;;  %v46_v16 = vld [vmem:[%s2092_s1 + $0xd8] sm:$0xff]  ;;  %v45_v20 = vld [vmem:[%s2092_s1 + $0xd0] sm:$0xff]  ;;  %v1430_v51 = vsub.s32 %v289_v41, %v291_v42 }
   0x6   :  { %995 = vmatprep.subr.mxu1 %v81_v5  ;;  %961 = vmatpush3.msra.mxu0 %v33_v6  ;;  %v79_v13 = vld [vmem:[%s2092_s1 + $0x1e0] sm:$0xff]  ;;  %v78_v17 = vld [vmem:[%s2092_s1 + $0x1d8] sm:$0xff]  ;;  %v77_v21 = vld [vmem:[%s2092_s1 + $0x1d0] sm:$0xff] }
   0x7   :  { %996 = vmatpush3.msra.mxu1 %v65_v7  ;;  %962 = vmatprep.subr.mxu0 %v48_v8  ;;  %v31_v14 = vld [vmem:[%s2092_s1 + $0x60] sm:$0xff]  ;;  %v30_v18 = vld [vmem:[%s2092_s1 + $0x58] sm:$0xff]  ;;  %v29_v22 = vld [vmem:[%s2092_s1 + $0x50] sm:$0xff] }
   0x8   :  { %997 = vmatprep.subr.mxu1 %v80_v9  ;;  %v63_v15 = vld [vmem:[%s2092_s1 + $0x160] sm:$0xff]  ;;  %963 = vmatpush3.msra.mxu0 %v32_v10  ;;  %v62_v19 = vld [vmem:[%s2092_s1 + $0x158] sm:$0xff]  ;;  %v61_v23 = vld [vmem:[%s2092_s1 + $0x150] sm:$0xff] }
   0x9   :  { %998 = vmatpush3.msra.mxu1 %v64_v11  ;;  %964 = vmatprep.subr.mxu0 %v47_v12  ;;  %v44_v24 = vld [vmem:[%s2092_s1 + $0xc8] sm:$0xff]  ;;  %v43_v28 = vld [vmem:[%s2092_s1 + $0xc0] sm:$0xff]  ;;  %v42_v35 = vld [vmem:[%s2092_s1 + $0xb8] sm:$0xff] }
   0xa   :  { %999 = vmatprep.subr.mxu1 %v79_v13  ;;  %965 = vmatpush3.msra.mxu0 %v31_v14  ;;  %v76_v25 = vld [vmem:[%s2092_s1 + $0x1c8] sm:$0xff]  ;;  %v75_v29 = vld [vmem:[%s2092_s1 + $0x1c0] sm:$0xff]  ;;  %v74_v36 = vld [vmem:[%s2092_s1 + $0x1b8] sm:$0xff] }
   0xb   :  { %1000 = vmatpush3.msra.mxu1 %v63_v15  ;;  %966 = vmatprep.subr.mxu0 %v46_v16  ;;  %v28_v26 = vld [vmem:[%s2092_s1 + $0x48] sm:$0xff]  ;;  %v27_v33 = vld [vmem:[%s2092_s1 + $0x40] sm:$0xff]  ;;  %v26_v37 = vld [vmem:[%s2092_s1 + $0x38] sm:$0xff] }
   0xc   :  { %1001 = vmatprep.subr.mxu1 %v78_v17  ;;  %967 = vmatpush3.msra.mxu0 %v30_v18  ;;  %v60_v27 = vld [vmem:[%s2092_s1 + $0x148] sm:$0xff]  ;;  %v59_v34 = vld [vmem:[%s2092_s1 + $0x140] sm:$0xff]  ;;  %v58_v38 = vld [vmem:[%s2092_s1 + $0x138] sm:$0xff] }
   0xd   :  { %1002 = vmatpush3.msra.mxu1 %v62_v19  ;;  %968 = vmatprep.subr.mxu0 %v45_v20  ;;  %v41_v39 = vld [vmem:[%s2092_s1 + $0xb0] sm:$0xff]  ;;  %v40_v45 = vld [vmem:[%s2092_s1 + $0xa8] sm:$0xff]  ;;  %v39_v49 = vld [vmem:[%s2092_s1 + $0xa0] sm:$0xff] }
   0xe   :  { %1003 = vmatprep.subr.mxu1 %v77_v21  ;;  %969 = vmatpush3.msra.mxu0 %v29_v22  ;;  %v73_v40 = vld [vmem:[%s2092_s1 + $0x1b0] sm:$0xff]  ;;  %v72_v46 = vld [vmem:[%s2092_s1 + $0x1a8] sm:$0xff]  ;;  %v71_v50 = vld [vmem:[%s2092_s1 + $0x1a0] sm:$0xff] }
   0xf   :  { %1004 = vmatpush3.msra.mxu1 %v61_v23  ;;  %970 = vmatprep.subr.mxu0 %v44_v24  ;;  %v25_v43 = vld [vmem:[%s2092_s1 + $0x30] sm:$0xff]  ;;  %v24_v47 = vld [vmem:[%s2092_s1 + $0x28] sm:$0xff]  ;;  %v23_v52 = vld [vmem:[%s2092_s1 + $0x20] sm:$0xff] }
  0x10   :  { %1005 = vmatprep.subr.mxu1 %v76_v25  ;;  %971 = vmatpush3.msra.mxu0 %v28_v26  ;;  %v57_v44 = vld [vmem:[%s2092_s1 + $0x130] sm:$0xff]  ;;  %v56_v48 = vld [vmem:[%s2092_s1 + $0x128] sm:$0xff]  ;;  %v55_v53 = vld [vmem:[%s2092_s1 + $0x120] sm:$0xff] }
  0x11   :  { %1006 = vmatpush3.msra.mxu1 %v60_v27  ;;  %972 = vmatprep.subr.mxu0 %v43_v28  ;;  %v15_v54 = vld [vmem:[%s2091_s0] sm:$0xff]  ;;  %v38_v55 = vld [vmem:[%s2092_s1 + $0x98] sm:$0xff]  ;;  %v37_v60 = vld [vmem:[%s2092_s1 + $0x90] sm:$0xff] }
  0x12   :  { %1007 = vmatprep.subr.mxu1 %v75_v29  ;;  %973 = vmatpush3.msra.mxu0 %v27_v33  ;;  %v70_v56 = vld [vmem:[%s2092_s1 + $0x198] sm:$0xff]  ;;  %v286_v57 = vcombine.high %v15_v54, %v15_v54  ;;  %v69_v61 = vld [vmem:[%s2092_s1 + $0x190] sm:$0xff]  ;;  %v293_v62 = vrot.slane %v15_v54, %v1430_v51  ;;  %v36_v1 = vld [vmem:[%s2092_s1 + $0x88] sm:$0xff] }
  0x13   :  { %1008 = vmatpush3.msra.mxu1 %v59_v34  ;;  %974 = vmatprep.subr.mxu0 %v42_v35  ;;  %v22_v58 = vld [vmem:[%s2092_s1 + $0x18] sm:$0xff]  ;;  %v21_v63 = vld [vmem:[%s2092_s1 + $0x10] sm:$0xff]  ;;  %v68_v2 = vld [vmem:[%s2092_s1 + $0x188] sm:$0xff] }
  0x14   :  { %1009 = vmatprep.subr.mxu1 %v74_v36  ;;  %975 = vmatpush3.msra.mxu0 %v26_v37  ;;  %v54_v59 = vld [vmem:[%s2092_s1 + $0x118] sm:$0xff]  ;;  %v53_v0 = vld [vmem:[%s2092_s1 + $0x110] sm:$0xff]  ;;  %v300_v3 = vrot.slane %v286_v57, %v1430_v51  ;;  %v20_v4 = vld [vmem:[%s2092_s1 + $0x8] sm:$0xff]  ;;  %v301_v8 = vcombine.high %v293_v62, %v293_v62 }
  0x15   :  { %1010 = vmatpush3.msra.mxu1 %v58_v38  ;;  %976 = vmatprep.subr.mxu0 %v41_v39  ;;  %v52_v5 = vld [vmem:[%s2092_s1 + $0x108] sm:$0xff]  ;;  %v35_v6 = vld [vmem:[%s2092_s1 + $0x80] sm:$0xff]  ;;  %v114_v12 = vld [vmem:[%s2092_s1 + $0x2f8] sm:$0xff] }
  0x16   :  { %1011 = vmatprep.subr.mxu1 %v73_v40  ;;  %977 = vmatpush3.msra.mxu0 %v25_v43  ;;  %v67_v7 = vld [vmem:[%s2092_s1 + $0x180] sm:$0xff]  ;;  %v302_v11 = vcombine.high %v300_v3, %v300_v3  ;;  %v146_v13 = vld [vmem:[%s2092_s1 + $0x3f8] sm:$0xff]  ;;  %v113_v16 = vld [vmem:[%s2092_s1 + $0x2f0] sm:$0xff] }
  0x17   :  { %1012 = vmatpush3.msra.mxu1 %v57_v44  ;;  %978 = vmatprep.subr.mxu0 %v40_v45  ;;  %v19_v9 = vld [vmem:[%s2092_s1] sm:$0xff]  ;;  %v98_v14 = vld [vmem:[%s2092_s1 + $0x278] sm:$0xff]  ;;  %v145_v17 = vld [vmem:[%s2092_s1 + $0x3f0] sm:$0xff] }
  0x18   :  { %1013 = vmatprep.subr.mxu1 %v72_v46  ;;  %979 = vmatpush3.msra.mxu0 %v24_v47  ;;  %v51_v10 = vld [vmem:[%s2092_s1 + $0x100] sm:$0xff]  ;;  %v130_v15 = vld [vmem:[%s2092_s1 + $0x378] sm:$0xff]  ;;  %v97_v18 = vld [vmem:[%s2092_s1 + $0x270] sm:$0xff] }
  0x19   :  { %1014 = vmatpush3.msra.mxu1 %v56_v48  ;;  %980 = vmatprep.subr.mxu0 %v39_v49  ;;  %v129_v19 = vld [vmem:[%s2092_s1 + $0x370] sm:$0xff]  ;;  %v112_v20 = vld [vmem:[%s2092_s1 + $0x2e8] sm:$0xff]  ;;  %v111_v24 = vld [vmem:[%s2092_s1 + $0x2e0] sm:$0xff] }
  0x1a   :  { %1015 = vmatprep.subr.mxu1 %v71_v50  ;;  %981 = vmatpush3.msra.mxu0 %v23_v52  ;;  %v144_v21 = vld [vmem:[%s2092_s1 + $0x3e8] sm:$0xff]  ;;  %v143_v25 = vld [vmem:[%s2092_s1 + $0x3e0] sm:$0xff]  ;;  %v110_v28 = vld [vmem:[%s2092_s1 + $0x2d8] sm:$0xff] }
  0x1b   :  { %1016 = vmatpush3.msra.mxu1 %v55_v53  ;;  %982 = vmatprep.subr.mxu0 %v38_v55  ;;  %v96_v22 = vld [vmem:[%s2092_s1 + $0x268] sm:$0xff]  ;;  %v95_v26 = vld [vmem:[%s2092_s1 + $0x260] sm:$0xff]  ;;  %v142_v29 = vld [vmem:[%s2092_s1 + $0x3d8] sm:$0xff] }
  0x1c   :  { %1017 = vmatprep.subr.mxu1 %v70_v56  ;;  %983 = vmatpush3.msra.mxu0 %v22_v58  ;;  %v128_v23 = vld [vmem:[%s2092_s1 + $0x368] sm:$0xff]  ;;  %v127_v27 = vld [vmem:[%s2092_s1 + $0x360] sm:$0xff]  ;;  %v94_v30 = vld [vmem:[%s2092_s1 + $0x258] sm:$0xff] }
  0x1d   :  { %1018 = vmatpush3.msra.mxu1 %v54_v59  ;;  %984 = vmatprep.subr.mxu0 %v37_v60  ;;  %v126_v31 = vld [vmem:[%s2092_s1 + $0x358] sm:$0xff]  ;;  %v109_v32 = vld [vmem:[%s2092_s1 + $0x2d0] sm:$0xff]  ;;  %v108_v36 = vld [vmem:[%s2092_s1 + $0x2c8] sm:$0xff] }
  0x1e   :  { %1019 = vmatprep.subr.mxu1 %v69_v61  ;;  %985 = vmatpush3.msra.mxu0 %v21_v63  ;;  %v141_v33 = vld [vmem:[%s2092_s1 + $0x3d0] sm:$0xff]  ;;  %v140_v37 = vld [vmem:[%s2092_s1 + $0x3c8] sm:$0xff]  ;;  %v107_v40 = vld [vmem:[%s2092_s1 + $0x2c0] sm:$0xff] }
  0x1f   :  { %1020 = vmatpush3.msra.mxu1 %v53_v0  ;;  %986 = vmatprep.subr.mxu0 %v36_v1  ;;  %v93_v34 = vld [vmem:[%s2092_s1 + $0x250] sm:$0xff]  ;;  %v92_v38 = vld [vmem:[%s2092_s1 + $0x248] sm:$0xff]  ;;  %v139_v41 = vld [vmem:[%s2092_s1 + $0x3c0] sm:$0xff] }
  0x20   :  { %1021 = vmatprep.subr.mxu1 %v68_v2  ;;  %987 = vmatpush3.msra.mxu0 %v20_v4  ;;  %v125_v35 = vld [vmem:[%s2092_s1 + $0x350] sm:$0xff]  ;;  %v124_v39 = vld [vmem:[%s2092_s1 + $0x348] sm:$0xff]  ;;  %v91_v42 = vld [vmem:[%s2092_s1 + $0x240] sm:$0xff] }
  0x21   :  { %1022 = vmatpush3.msra.mxu1 %v52_v5  ;;  %988 = vmatprep.subr.mxu0 %v35_v6  ;;  %v123_v43 = vld [vmem:[%s2092_s1 + $0x340] sm:$0xff]  ;;  %v106_v44 = vld [vmem:[%s2092_s1 + $0x2b8] sm:$0xff]  ;;  %v105_v48 = vld [vmem:[%s2092_s1 + $0x2b0] sm:$0xff] }
  0x22   :  { %1023 = vmatprep.subr.mxu1 %v67_v7  ;;  %989 = vmatpush3.msra.mxu0 %v19_v9  ;;  %v138_v45 = vld [vmem:[%s2092_s1 + $0x3b8] sm:$0xff]  ;;  %v137_v49 = vld [vmem:[%s2092_s1 + $0x3b0] sm:$0xff]  ;;  %v104_v53 = vld [vmem:[%s2092_s1 + $0x2a8] sm:$0xff] }
  0x23   :  { %434 = vmatprep.mubr.f32.mxu0 %v301_v8  ;;  %1024 = vmatpush3.msra.mxu1 %v51_v10  ;;  %v90_v46 = vld [vmem:[%s2092_s1 + $0x238] sm:$0xff]  ;;  %v89_v50 = vld [vmem:[%s2092_s1 + $0x230] sm:$0xff]  ;;  %v136_v54 = vld [vmem:[%s2092_s1 + $0x3a8] sm:$0xff] }
  0x24   :  { %435 = vmatmul.mubr.f32.vlgmr.msra.gmra.mxu0 %v293_v62  ;;  %504 = vmatprep.mubr.f32.mxu1 %v302_v11  ;;  %v122_v47 = vld [vmem:[%s2092_s1 + $0x338] sm:$0xff]  ;;  %v121_v52 = vld [vmem:[%s2092_s1 + $0x330] sm:$0xff]  ;;  %v88_v55 = vld [vmem:[%s2092_s1 + $0x228] sm:$0xff] }
  0x25   :  { %1028 = vmatprep.subr.mxu0 %v114_v12  ;;  %1063 = vmatprep.subr.mxu1 %v146_v13  ;;  %v120_v56 = vld [vmem:[%s2092_s1 + $0x328] sm:$0xff]  ;;  %v103_v58 = vld [vmem:[%s2092_s1 + $0x2a0] sm:$0xff]  ;;  %v102_v62 = vld [vmem:[%s2092_s1 + $0x298] sm:$0xff] }
  0x26   :  { %505 = vmatmul.mubr.f32.vlgmr.msra.gmra.mxu1 %v300_v3  ;;  %1029 = vmatpush3.msra.mxu0 %v98_v14  ;;  %v16_v57 = vld [vmem:[%s2091_s0 + $0x8] sm:$0xff]  ;;  %v135_v59 = vld [vmem:[%s2092_s1 + $0x3a0] sm:$0xff]  ;;  %v134_v63 = vld [vmem:[%s2092_s1 + $0x398] sm:$0xff] }
  0x27   :  { %1064 = vmatpush3.msra.mxu1 %v130_v15  ;;  %1030 = vmatprep.subr.mxu0 %v113_v16  ;;  %v87_v60 = vld [vmem:[%s2092_s1 + $0x220] sm:$0xff]  ;;  %v303_v0 = vcombine.high %v16_v57, %v16_v57  ;;  %v86_v1 = vld [vmem:[%s2092_s1 + $0x218] sm:$0xff]  ;;  %v101_v3 = vld [vmem:[%s2092_s1 + $0x290] sm:$0xff]  ;;  %v310_v5 = vrot.slane %v16_v57, %v1430_v51 }
  0x28   :  { %1065 = vmatprep.subr.mxu1 %v145_v17  ;;  %1031 = vmatpush3.msra.mxu0 %v97_v18  ;;  %v119_v61 = vld [vmem:[%s2092_s1 + $0x320] sm:$0xff]  ;;  %v118_v2 = vld [vmem:[%s2092_s1 + $0x318] sm:$0xff]  ;;  %v133_v4 = vld [vmem:[%s2092_s1 + $0x390] sm:$0xff] }
  0x29   :  { %1066 = vmatpush3.msra.mxu1 %v129_v19  ;;  %1032 = vmatprep.subr.mxu0 %v112_v20  ;;  %v85_v6 = vld [vmem:[%s2092_s1 + $0x210] sm:$0xff]  ;;  %v100_v8 = vld [vmem:[%s2092_s1 + $0x288] sm:$0xff]  ;;  %v317_v10 = vrot.slane %v303_v0, %v1430_v51  ;;  %v99_v13 = vld [vmem:[%s2092_s1 + $0x280] sm:$0xff]  ;;  %v318_v15 = vcombine.high %v310_v5, %v310_v5 }
  0x2a   :  { %1067 = vmatprep.subr.mxu1 %v144_v21  ;;  %1033 = vmatpush3.msra.mxu0 %v96_v22  ;;  %v117_v7 = vld [vmem:[%s2092_s1 + $0x310] sm:$0xff]  ;;  %v132_v9 = vld [vmem:[%s2092_s1 + $0x388] sm:$0xff]  ;;  %v131_v14 = vld [vmem:[%s2092_s1 + $0x380] sm:$0xff] }
  0x2b   :  { %1068 = vmatpush3.msra.mxu1 %v128_v23  ;;  %1034 = vmatprep.subr.mxu0 %v111_v24  ;;  %v84_v11 = vld [vmem:[%s2092_s1 + $0x208] sm:$0xff]  ;;  %v83_v16 = vld [vmem:[%s2092_s1 + $0x200] sm:$0xff]  ;;  %v319_v18 = vcombine.high %v317_v10, %v317_v10  ;;  %v178_v19 = vld [vmem:[%s2092_s1 + $0x4f8] sm:$0xff] }
  0x2c   :  { %1069 = vmatprep.subr.mxu1 %v143_v25  ;;  %1035 = vmatpush3.msra.mxu0 %v95_v26  ;;  %v116_v12 = vld [vmem:[%s2092_s1 + $0x308] sm:$0xff]  ;;  %v115_v17 = vld [vmem:[%s2092_s1 + $0x300] sm:$0xff]  ;;  %v210_v20 = vld [vmem:[%s2092_s1 + $0x5f8] sm:$0xff] }
  0x2d   :  { %1070 = vmatpush3.msra.mxu1 %v127_v27  ;;  %1036 = vmatprep.subr.mxu0 %v110_v28  ;;  %v162_v21 = vld [vmem:[%s2092_s1 + $0x478] sm:$0xff]  ;;  %v177_v23 = vld [vmem:[%s2092_s1 + $0x4f0] sm:$0xff]  ;;  %v176_v27 = vld [vmem:[%s2092_s1 + $0x4e8] sm:$0xff] }
  0x2e   :  { %1071 = vmatprep.subr.mxu1 %v142_v29  ;;  %1037 = vmatpush3.msra.mxu0 %v94_v30  ;;  %v194_v22 = vld [vmem:[%s2092_s1 + $0x578] sm:$0xff]  ;;  %v209_v24 = vld [vmem:[%s2092_s1 + $0x5f0] sm:$0xff]  ;;  %v208_v28 = vld [vmem:[%s2092_s1 + $0x5e8] sm:$0xff] }
  0x2f   :  { %1072 = vmatpush3.msra.mxu1 %v126_v31  ;;  %1038 = vmatprep.subr.mxu0 %v109_v32  ;;  %v161_v25 = vld [vmem:[%s2092_s1 + $0x470] sm:$0xff]  ;;  %v160_v29 = vld [vmem:[%s2092_s1 + $0x468] sm:$0xff]  ;;  %v175_v31 = vld [vmem:[%s2092_s1 + $0x4e0] sm:$0xff] }
  0x30   :  { %1073 = vmatprep.subr.mxu1 %v141_v33  ;;  %1039 = vmatpush3.msra.mxu0 %v93_v34  ;;  %v193_v26 = vld [vmem:[%s2092_s1 + $0x570] sm:$0xff]  ;;  %v192_v30 = vld [vmem:[%s2092_s1 + $0x568] sm:$0xff]  ;;  %v207_v32 = vld [vmem:[%s2092_s1 + $0x5e0] sm:$0xff] }
  0x31   :  { %1074 = vmatpush3.msra.mxu1 %v125_v35  ;;  %1040 = vmatprep.subr.mxu0 %v108_v36  ;;  %v159_v33 = vld [vmem:[%s2092_s1 + $0x460] sm:$0xff]  ;;  %v174_v35 = vld [vmem:[%s2092_s1 + $0x4d8] sm:$0xff]  ;;  %v201_v57 = vld [vmem:[%s2092_s1 + $0x5b0] sm:$0xff] }
  0x32   :  { %1075 = vmatprep.subr.mxu1 %v140_v37  ;;  %1041 = vmatpush3.msra.mxu0 %v92_v38  ;;  %v191_v34 = vld [vmem:[%s2092_s1 + $0x560] sm:$0xff]  ;;  %v206_v36 = vld [vmem:[%s2092_s1 + $0x5d8] sm:$0xff] }
  0x33   :  { %1076 = vmatpush3.msra.mxu1 %v124_v39  ;;  %1042 = vmatprep.subr.mxu0 %v107_v40  ;;  %v158_v37 = vld [vmem:[%s2092_s1 + $0x458] sm:$0xff]  ;;  %v173_v39 = vld [vmem:[%s2092_s1 + $0x4d0] sm:$0xff] }
  0x34   :  { %1077 = vmatprep.subr.mxu1 %v139_v41  ;;  %1043 = vmatpush3.msra.mxu0 %v91_v42  ;;  %v190_v38 = vld [vmem:[%s2092_s1 + $0x558] sm:$0xff]  ;;  %v205_v40 = vld [vmem:[%s2092_s1 + $0x5d0] sm:$0xff] }
  0x35   :  { %1078 = vmatpush3.msra.mxu1 %v123_v43  ;;  %1044 = vmatprep.subr.mxu0 %v106_v44  ;;  %v157_v41 = vld [vmem:[%s2092_s1 + $0x450] sm:$0xff]  ;;  %v172_v43 = vld [vmem:[%s2092_s1 + $0x4c8] sm:$0xff] }
  0x36   :  { %1079 = vmatprep.subr.mxu1 %v138_v45  ;;  %1045 = vmatpush3.msra.mxu0 %v90_v46  ;;  %v189_v42 = vld [vmem:[%s2092_s1 + $0x550] sm:$0xff]  ;;  %v204_v44 = vld [vmem:[%s2092_s1 + $0x5c8] sm:$0xff] }
  0x37   :  { %1080 = vmatpush3.msra.mxu1 %v122_v47  ;;  %1046 = vmatprep.subr.mxu0 %v105_v48  ;;  %v156_v45 = vld [vmem:[%s2092_s1 + $0x448] sm:$0xff]  ;;  %v171_v47 = vld [vmem:[%s2092_s1 + $0x4c0] sm:$0xff] }
  0x38   :  { %1081 = vmatprep.subr.mxu1 %v137_v49  ;;  %1047 = vmatpush3.msra.mxu0 %v89_v50  ;;  %v188_v46 = vld [vmem:[%s2092_s1 + $0x548] sm:$0xff]  ;;  %v203_v48 = vld [vmem:[%s2092_s1 + $0x5c0] sm:$0xff] }
  0x39   :  { %1082 = vmatpush3.msra.mxu1 %v121_v52  ;;  %1048 = vmatprep.subr.mxu0 %v104_v53  ;;  %v155_v49 = vld [vmem:[%s2092_s1 + $0x440] sm:$0xff]  ;;  %v170_v52 = vld [vmem:[%s2092_s1 + $0x4b8] sm:$0xff] }
  0x3a   :  { %1083 = vmatprep.subr.mxu1 %v136_v54  ;;  %1049 = vmatpush3.msra.mxu0 %v88_v55  ;;  %v187_v50 = vld [vmem:[%s2092_s1 + $0x540] sm:$0xff]  ;;  %v202_v53 = vld [vmem:[%s2092_s1 + $0x5b8] sm:$0xff] }
  0x3b   :  { %1084 = vmatpush3.msra.mxu1 %v120_v56  ;;  %1050 = vmatprep.subr.mxu0 %v103_v58  ;;  %v154_v54 = vld [vmem:[%s2092_s1 + $0x438] sm:$0xff]  ;;  %v169_v56 = vld [vmem:[%s2092_s1 + $0x4b0] sm:$0xff] }
  0x3c   :  { %1085 = vmatprep.subr.mxu1 %v135_v59  ;;  %1051 = vmatpush3.msra.mxu0 %v87_v60  ;;  %v186_v55 = vld [vmem:[%s2092_s1 + $0x538] sm:$0xff]  ;;  %v153_v58 = vld [vmem:[%s2092_s1 + $0x430] sm:$0xff]  ;;  %v168_v60 = vld [vmem:[%s2092_s1 + $0x4a8] sm:$0xff] }
  0x3d   :  { %1086 = vmatpush3.msra.mxu1 %v119_v61  ;;  %1052 = vmatprep.subr.mxu0 %v102_v62  ;;  %v185_v59 = vld [vmem:[%s2092_s1 + $0x530] sm:$0xff]  ;;  %v200_v61 = vld [vmem:[%s2092_s1 + $0x5a8] sm:$0xff] }
  0x3e   :  { %1087 = vmatprep.subr.mxu1 %v134_v63  ;;  %1053 = vmatpush3.msra.mxu0 %v86_v1 }
  0x3f   :  { %1088 = vmatpush3.msra.mxu1 %v118_v2  ;;  %1054 = vmatprep.subr.mxu0 %v101_v3 }
  0x40   :  { %1089 = vmatprep.subr.mxu1 %v133_v4  ;;  %1055 = vmatpush3.msra.mxu0 %v85_v6 }
  0x41   :  { %1090 = vmatpush3.msra.mxu1 %v117_v7  ;;  %1056 = vmatprep.subr.mxu0 %v100_v8 }
  0x42   :  { %1091 = vmatprep.subr.mxu1 %v132_v9  ;;  %1057 = vmatpush3.msra.mxu0 %v84_v11 }
  0x43   :  { %1092 = vmatpush3.msra.mxu1 %v116_v12  ;;  %1058 = vmatprep.subr.mxu0 %v99_v13 }
  0x44   :  { %1093 = vmatprep.subr.mxu1 %v131_v14  ;;  %1059 = vmatpush3.msra.mxu0 %v83_v16 }
  0x45   :  { %574 = vmatprep.mubr.f32.mxu0 %v318_v15  ;;  %1094 = vmatpush3.msra.mxu1 %v115_v17 }
  0x46   :  { %575 = vmatmul.mubr.f32.vlgmr.msra.gmra.mxu0 %v310_v5  ;;  %644 = vmatprep.mubr.f32.mxu1 %v319_v18 }
  0x47   :  { %1098 = vmatprep.subr.mxu0 %v178_v19  ;;  %1133 = vmatprep.subr.mxu1 %v210_v20 }
  0x48   :  { %645 = vmatmul.mubr.f32.vlgmr.msra.gmra.mxu1 %v317_v10  ;;  %1099 = vmatpush3.msra.mxu0 %v162_v21 }
  0x49   :  { %1134 = vmatpush3.msra.mxu1 %v194_v22  ;;  %1100 = vmatprep.subr.mxu0 %v177_v23 }
  0x4a   :  { %1135 = vmatprep.subr.mxu1 %v209_v24  ;;  %1101 = vmatpush3.msra.mxu0 %v161_v25 }
  0x4b   :  { %1136 = vmatpush3.msra.mxu1 %v193_v26  ;;  %1102 = vmatprep.subr.mxu0 %v176_v27 }
  0x4c   :  { %1137 = vmatprep.subr.mxu1 %v208_v28  ;;  %1103 = vmatpush3.msra.mxu0 %v160_v29 }
  0x4d   :  { %1138 = vmatpush3.msra.mxu1 %v192_v30  ;;  %1104 = vmatprep.subr.mxu0 %v175_v31 }
  0x4e   :  { %1139 = vmatprep.subr.mxu1 %v207_v32  ;;  %1105 = vmatpush3.msra.mxu0 %v159_v33 }
  0x4f   :  { %1140 = vmatpush3.msra.mxu1 %v191_v34  ;;  %1106 = vmatprep.subr.mxu0 %v174_v35 }
  0x50   :  { %1141 = vmatprep.subr.mxu1 %v206_v36  ;;  %1107 = vmatpush3.msra.mxu0 %v158_v37 }
  0x51   :  { %1142 = vmatpush3.msra.mxu1 %v190_v38  ;;  %1108 = vmatprep.subr.mxu0 %v173_v39 }
  0x52   :  { %1143 = vmatprep.subr.mxu1 %v205_v40  ;;  %1109 = vmatpush3.msra.mxu0 %v157_v41 }
  0x53   :  { %1144 = vmatpush3.msra.mxu1 %v189_v42  ;;  %1110 = vmatprep.subr.mxu0 %v172_v43 }
  0x54   :  { %1145 = vmatprep.subr.mxu1 %v204_v44  ;;  %1111 = vmatpush3.msra.mxu0 %v156_v45 }
  0x55   :  { %1146 = vmatpush3.msra.mxu1 %v188_v46  ;;  %1112 = vmatprep.subr.mxu0 %v171_v47 }
  0x56   :  { %1147 = vmatprep.subr.mxu1 %v203_v48  ;;  %1113 = vmatpush3.msra.mxu0 %v155_v49 }
  0x57   :  { %1148 = vmatpush3.msra.mxu1 %v187_v50  ;;  %1114 = vmatprep.subr.mxu0 %v170_v52 }
  0x58   :  { %1149 = vmatprep.subr.mxu1 %v202_v53  ;;  %1115 = vmatpush3.msra.mxu0 %v154_v54 }
  0x59   :  { %1150 = vmatpush3.msra.mxu1 %v186_v55 }
  0x5a   :  { %8 = vsyncpa [#allocation3], 0  ;;  %1116 = vmatprep.subr.mxu0 %v169_v56  ;;  %1151 = vmatprep.subr.mxu1 %v201_v57  ;;  %v152_v62 = vld [vmem:[%s2092_s1 + $0x428] sm:$0xff]  ;;  %v17_v0 = vld [vmem:[%s2091_s0 + $0x10] sm:$0xff]  ;;  %vm930_vm0 = vcmask 74752  }
  0x5b   :  { %v184_v63 = vld [vmem:[%s2092_s1 + $0x528] sm:$0xff]  ;;  %1117 = vmatpush3.msra.mxu0 %v153_v58  ;;  %1152 = vmatpush3.msra.mxu1 %v185_v59  ;;  %v167_v1 = vld [vmem:[%s2092_s1 + $0x4a0] sm:$0xff]  ;;  %v166_v5 = vld [vmem:[%s2092_s1 + $0x498] sm:$0xff]  ;;  %v320_v7 = vcombine.high %v17_v0, %v17_v0  ;;  %v327_v12 = vrot.slane %v17_v0, %v1430_v51 }
  0x5c   :  { %v199_v2 = vld [vmem:[%s2092_s1 + $0x5a0] sm:$0xff]  ;;  %1118 = vmatprep.subr.mxu0 %v168_v60  ;;  %1153 = vmatprep.subr.mxu1 %v200_v61  ;;  %v198_v6 = vld [vmem:[%s2092_s1 + $0x598] sm:$0xff]  ;;  %v165_v10 = vld [vmem:[%s2092_s1 + $0x490] sm:$0xff] }
  0x5d   :  { %v151_v3 = vld [vmem:[%s2092_s1 + $0x420] sm:$0xff]  ;;  %1119 = vmatpush3.msra.mxu0 %v152_v62  ;;  %1154 = vmatpush3.msra.mxu1 %v184_v63  ;;  %v150_v8 = vld [vmem:[%s2092_s1 + $0x418] sm:$0xff]  ;;  %v197_v11 = vld [vmem:[%s2092_s1 + $0x590] sm:$0xff]  ;;  %v334_v17 = vrot.slane %v320_v7, %v1430_v51  ;;  %v335_v22 = vcombine.high %v327_v12, %v327_v12 }
  0x5e   :  { %v183_v4 = vld [vmem:[%s2092_s1 + $0x520] sm:$0xff]  ;;  %1120 = vmatprep.subr.mxu0 %v167_v1  ;;  %1155 = vmatprep.subr.mxu1 %v199_v2  ;;  %v182_v9 = vld [vmem:[%s2092_s1 + $0x518] sm:$0xff]  ;;  %v149_v13 = vld [vmem:[%s2092_s1 + $0x410] sm:$0xff] }
  0x5f   :  { %1121 = vmatpush3.msra.mxu0 %v151_v3  ;;  %1156 = vmatpush3.msra.mxu1 %v183_v4  ;;  %v181_v14 = vld [vmem:[%s2092_s1 + $0x510] sm:$0xff]  ;;  %v164_v15 = vld [vmem:[%s2092_s1 + $0x488] sm:$0xff]  ;;  %v163_v20 = vld [vmem:[%s2092_s1 + $0x480] sm:$0xff]  ;;  %v336_v25 = vcombine.high %v334_v17, %v334_v17 }
  0x60   :  { %1122 = vmatprep.subr.mxu0 %v166_v5  ;;  %1157 = vmatprep.subr.mxu1 %v198_v6  ;;  %v196_v16 = vld [vmem:[%s2092_s1 + $0x588] sm:$0xff]  ;;  %v195_v21 = vld [vmem:[%s2092_s1 + $0x580] sm:$0xff]  ;;  %v242_v26 = vld [vmem:[%s2092_s1 + $0x6f8] sm:$0xff] }
  0x61   :  { %1123 = vmatpush3.msra.mxu0 %v150_v8  ;;  %1158 = vmatpush3.msra.mxu1 %v182_v9  ;;  %v148_v18 = vld [vmem:[%s2092_s1 + $0x408] sm:$0xff]  ;;  %v147_v23 = vld [vmem:[%s2092_s1 + $0x400] sm:$0xff]  ;;  %v274_v27 = vld [vmem:[%s2092_s1 + $0x7f8] sm:$0xff] }
  0x62   :  { %1124 = vmatprep.subr.mxu0 %v165_v10  ;;  %1159 = vmatprep.subr.mxu1 %v197_v11  ;;  %v180_v19 = vld [vmem:[%s2092_s1 + $0x508] sm:$0xff]  ;;  %v179_v24 = vld [vmem:[%s2092_s1 + $0x500] sm:$0xff]  ;;  %v226_v28 = vld [vmem:[%s2092_s1 + $0x678] sm:$0xff] }
  0x63   :  { %1125 = vmatpush3.msra.mxu0 %v149_v13  ;;  %1160 = vmatpush3.msra.mxu1 %v181_v14  ;;  %v258_v29 = vld [vmem:[%s2092_s1 + $0x778] sm:$0xff]  ;;  %v241_v30 = vld [vmem:[%s2092_s1 + $0x6f0] sm:$0xff]  ;;  %v240_v34 = vld [vmem:[%s2092_s1 + $0x6e8] sm:$0xff] }
  0x64   :  { %1126 = vmatprep.subr.mxu0 %v164_v15  ;;  %1161 = vmatprep.subr.mxu1 %v196_v16  ;;  %v273_v31 = vld [vmem:[%s2092_s1 + $0x7f0] sm:$0xff]  ;;  %v272_v35 = vld [vmem:[%s2092_s1 + $0x7e8] sm:$0xff]  ;;  %v239_v38 = vld [vmem:[%s2092_s1 + $0x6e0] sm:$0xff] }
  0x65   :  { %1127 = vmatpush3.msra.mxu0 %v148_v18  ;;  %1162 = vmatpush3.msra.mxu1 %v180_v19  ;;  %v225_v32 = vld [vmem:[%s2092_s1 + $0x670] sm:$0xff]  ;;  %v224_v36 = vld [vmem:[%s2092_s1 + $0x668] sm:$0xff]  ;;  %v271_v39 = vld [vmem:[%s2092_s1 + $0x7e0] sm:$0xff] }
  0x66   :  { %1128 = vmatprep.subr.mxu0 %v163_v20  ;;  %1163 = vmatprep.subr.mxu1 %v195_v21  ;;  %v257_v33 = vld [vmem:[%s2092_s1 + $0x770] sm:$0xff]  ;;  %v256_v37 = vld [vmem:[%s2092_s1 + $0x768] sm:$0xff]  ;;  %v223_v40 = vld [vmem:[%s2092_s1 + $0x660] sm:$0xff] }
  0x67   :  { %1129 = vmatpush3.msra.mxu0 %v147_v23  ;;  %714 = vmatprep.mubr.f32.mxu0 %v335_v22  ;;  %v255_v41 = vld [vmem:[%s2092_s1 + $0x760] sm:$0xff]  ;;  %v238_v42 = vld [vmem:[%s2092_s1 + $0x6d8] sm:$0xff]  ;;  %v237_v46 = vld [vmem:[%s2092_s1 + $0x6d0] sm:$0xff] }
  0x68   :  { %1164 = vmatpush3.msra.mxu1 %v179_v24  ;;  %715 = vmatmul.mubr.f32.vlgmr.msra.gmra.mxu0 %v327_v12  ;;  %v270_v43 = vld [vmem:[%s2092_s1 + $0x7d8] sm:$0xff]  ;;  %v269_v47 = vld [vmem:[%s2092_s1 + $0x7d0] sm:$0xff]  ;;  %v236_v50 = vld [vmem:[%s2092_s1 + $0x6c8] sm:$0xff] }
  0x69   :  { %784 = vmatprep.mubr.f32.mxu1 %v336_v25  ;;  %1168 = vmatprep.subr.mxu0 %v242_v26  ;;  %v222_v44 = vld [vmem:[%s2092_s1 + $0x658] sm:$0xff]  ;;  %v221_v48 = vld [vmem:[%s2092_s1 + $0x650] sm:$0xff]  ;;  %v268_v52 = vld [vmem:[%s2092_s1 + $0x7c8] sm:$0xff] }
  0x6a   :  { %1203 = vmatprep.subr.mxu1 %v274_v27  ;;  %785 = vmatmul.mubr.f32.vlgmr.msra.gmra.mxu1 %v334_v17  ;;  %v254_v45 = vld [vmem:[%s2092_s1 + $0x758] sm:$0xff]  ;;  %v253_v49 = vld [vmem:[%s2092_s1 + $0x750] sm:$0xff]  ;;  %v220_v53 = vld [vmem:[%s2092_s1 + $0x648] sm:$0xff] }
  0x6b   :  { %1169 = vmatpush3.msra.mxu0 %v226_v28  ;;  %1204 = vmatpush3.msra.mxu1 %v258_v29  ;;  %v252_v54 = vld [vmem:[%s2092_s1 + $0x748] sm:$0xff]  ;;  %v235_v55 = vld [vmem:[%s2092_s1 + $0x6c0] sm:$0xff]  ;;  %v234_v59 = vld [vmem:[%s2092_s1 + $0x6b8] sm:$0xff] }
  0x6c   :  { %1170 = vmatprep.subr.mxu0 %v241_v30  ;;  %1205 = vmatprep.subr.mxu1 %v273_v31  ;;  %v267_v56 = vld [vmem:[%s2092_s1 + $0x7c0] sm:$0xff]  ;;  %v266_v60 = vld [vmem:[%s2092_s1 + $0x7b8] sm:$0xff]  ;;  %v233_v63 = vld [vmem:[%s2092_s1 + $0x6b0] sm:$0xff] }
  0x6d   :  { %1171 = vmatpush3.msra.mxu0 %v225_v32  ;;  %1206 = vmatpush3.msra.mxu1 %v257_v33  ;;  %v219_v57 = vld [vmem:[%s2092_s1 + $0x640] sm:$0xff]  ;;  %v218_v61 = vld [vmem:[%s2092_s1 + $0x638] sm:$0xff]  ;;  %v265_v0 = vld [vmem:[%s2092_s1 + $0x7b0] sm:$0xff] }
  0x6e   :  { %1172 = vmatprep.subr.mxu0 %v240_v34  ;;  %1207 = vmatprep.subr.mxu1 %v272_v35  ;;  %v251_v58 = vld [vmem:[%s2092_s1 + $0x740] sm:$0xff]  ;;  %v250_v62 = vld [vmem:[%s2092_s1 + $0x738] sm:$0xff]  ;;  %v217_v1 = vld [vmem:[%s2092_s1 + $0x630] sm:$0xff] }
  0x6f   :  { %1173 = vmatpush3.msra.mxu0 %v224_v36  ;;  %1208 = vmatpush3.msra.mxu1 %v256_v37  ;;  %v249_v2 = vld [vmem:[%s2092_s1 + $0x730] sm:$0xff]  ;;  %v232_v3 = vld [vmem:[%s2092_s1 + $0x6a8] sm:$0xff]  ;;  %v18_v5 = vld [vmem:[%s2091_s0 + $0x18] sm:$0xff] }
  0x70   :  { %1174 = vmatprep.subr.mxu0 %v239_v38  ;;  %1209 = vmatprep.subr.mxu1 %v271_v39  ;;  %v264_v4 = vld [vmem:[%s2092_s1 + $0x7a8] sm:$0xff]  ;;  %v231_v8 = vld [vmem:[%s2092_s1 + $0x6a0] sm:$0xff]  ;;  %v337_v12 = vcombine.high %v18_v5, %v18_v5  ;;  %v230_v13 = vld [vmem:[%s2092_s1 + $0x698] sm:$0xff]  ;;  %v344_v19 = vrot.slane %v18_v5, %v1430_v51 }
  0x71   :  { %1175 = vmatpush3.msra.mxu0 %v223_v40  ;;  %1210 = vmatpush3.msra.mxu1 %v255_v41  ;;  %v216_v6 = vld [vmem:[%s2092_s1 + $0x628] sm:$0xff]  ;;  %v263_v9 = vld [vmem:[%s2092_s1 + $0x7a0] sm:$0xff]  ;;  %v262_v14 = vld [vmem:[%s2092_s1 + $0x798] sm:$0xff] }
  0x72   :  { %1176 = vmatprep.subr.mxu0 %v238_v42  ;;  %1211 = vmatprep.subr.mxu1 %v270_v43  ;;  %v248_v7 = vld [vmem:[%s2092_s1 + $0x728] sm:$0xff]  ;;  %v215_v10 = vld [vmem:[%s2092_s1 + $0x620] sm:$0xff]  ;;  %v214_v15 = vld [vmem:[%s2092_s1 + $0x618] sm:$0xff]  ;;  %v351_v22 = vrot.slane %v337_v12, %v1430_v51  ;;  %v352_v28 = vcombine.high %v344_v19, %v344_v19 }
  0x73   :  { %1177 = vmatpush3.msra.mxu0 %v222_v44  ;;  %1212 = vmatpush3.msra.mxu1 %v254_v45  ;;  %v247_v11 = vld [vmem:[%s2092_s1 + $0x720] sm:$0xff]  ;;  %v246_v16 = vld [vmem:[%s2092_s1 + $0x718] sm:$0xff]  ;;  %v229_v17 = vld [vmem:[%s2092_s1 + $0x690] sm:$0xff] }
  0x74   :  { %1178 = vmatprep.subr.mxu0 %v237_v46  ;;  %1213 = vmatprep.subr.mxu1 %v269_v47  ;;  %v261_v18 = vld [vmem:[%s2092_s1 + $0x790] sm:$0xff]  ;;  %v228_v23 = vld [vmem:[%s2092_s1 + $0x688] sm:$0xff]  ;;  %v227_v26 = vld [vmem:[%s2092_s1 + $0x680] sm:$0xff]  ;;  %v353_v30 = vcombine.high %v351_v22, %v351_v22 }
  0x75   :  { %1179 = vmatpush3.msra.mxu0 %v221_v48  ;;  %1214 = vmatpush3.msra.mxu1 %v253_v49  ;;  %v213_v20 = vld [vmem:[%s2092_s1 + $0x610] sm:$0xff]  ;;  %v260_v24 = vld [vmem:[%s2092_s1 + $0x788] sm:$0xff]  ;;  %v259_v27 = vld [vmem:[%s2092_s1 + $0x780] sm:$0xff] }
  0x76   :  { %1180 = vmatprep.subr.mxu0 %v236_v50  ;;  %1215 = vmatprep.subr.mxu1 %v268_v52  ;;  %v245_v21 = vld [vmem:[%s2092_s1 + $0x710] sm:$0xff]  ;;  %v212_v25 = vld [vmem:[%s2092_s1 + $0x608] sm:$0xff]  ;;  %v211_v29 = vld [vmem:[%s2092_s1 + $0x600] sm:$0xff] }
  0x77   :  { %1181 = vmatpush3.msra.mxu0 %v220_v53  ;;  %1216 = vmatpush3.msra.mxu1 %v252_v54  ;;  %v244_v51 = vld [vmem:[%s2092_s1 + $0x708] sm:$0xff]  ;;  %v243_v31 = vld [vmem:[%s2092_s1 + $0x700] sm:$0xff]  ;;  %s1271_s1 = smov [#allocation2]  }
  0x78   :  { %1182 = vmatprep.subr.mxu0 %v235_v55  ;;  %1217 = vmatprep.subr.mxu1 %v267_v56  ;;  %v957_v37 = vld [vmem:[%s2093_s2] ss:$0 sm:$0xff]  ;;  %s949_s2 = sshll.u32 %s1271_s1, 4  ;;  %s950_s2 = int_to_ptr.vmem [resolvable:$true] %s949_s2 }
  0x79   :  { %1183 = vmatpush3.msra.mxu0 %v219_v57  ;;  %1218 = vmatpush3.msra.mxu1 %v251_v58  ;;  %s1248_s19 = scalar_lea.vmem %s950_s2, 32  ;;  %p1253_p1 = scmp.lt.s32.totalorder %s950_s2, %s950_s2 }
  0x7a   :  { %1184 = vmatprep.subr.mxu0 %v234_v59  ;;  %1219 = vmatprep.subr.mxu1 %v266_v60  ;;  %p1249_p0 = scmp.ne.s32.totalorder %s950_s2, %s1248_s19  ;;  %p1254_p2 = scmp.lt.s32.totalorder %s1248_s19, %s1248_s19 }
  0x7b   :  { %1185 = vmatpush3.msra.mxu0 %v218_v61  ;;  %1220 = vmatpush3.msra.mxu1 %v250_v62 }
  0x7c   :  { %1186 = vmatprep.subr.mxu0 %v233_v63  ;;  %1221 = vmatprep.subr.mxu1 %v265_v0  ;;  %p1255_p3 = por %p1254_p2, %p1253_p1 }
  0x7d   :  { %1187 = vmatpush3.msra.mxu0 %v217_v1  ;;  %1222 = vmatpush3.msra.mxu1 %v249_v2 }
  0x7e   :  { %1188 = vmatprep.subr.mxu0 %v232_v3  ;;  %1223 = vmatprep.subr.mxu1 %v264_v4  ;;  %p1256_p4 = pnand %p1255_p3, %p1249_p0 }
  0x7f   :  { %1189 = vmatpush3.msra.mxu0 %v216_v6  ;;  %1224 = vmatpush3.msra.mxu1 %v248_v7 }
  0x80   :  { %1190 = vmatprep.subr.mxu0 %v231_v8  ;;  %1225 = vmatprep.subr.mxu1 %v263_v9 }
  0x81   :  { %1191 = vmatpush3.msra.mxu0 %v215_v10  ;;  %1226 = vmatpush3.msra.mxu1 %v247_v11 }
  0x82   :  { %1192 = vmatprep.subr.mxu0 %v230_v13  ;;  %1227 = vmatprep.subr.mxu1 %v262_v14 }
  0x83   :  { %1193 = vmatpush3.msra.mxu0 %v214_v15  ;;  %1228 = vmatpush3.msra.mxu1 %v246_v16 }
  0x84   :  { %1194 = vmatprep.subr.mxu0 %v229_v17  ;;  %1229 = vmatprep.subr.mxu1 %v261_v18 }
  0x85   :  { %1195 = vmatpush3.msra.mxu0 %v213_v20  ;;  %1230 = vmatpush3.msra.mxu1 %v245_v21 }
  0x86   :  { %1196 = vmatprep.subr.mxu0 %v228_v23  ;;  %1231 = vmatprep.subr.mxu1 %v260_v24 }
  0x87   :  { %1197 = vmatpush3.msra.mxu0 %v212_v25  ;;  %1232 = vmatpush3.msra.mxu1 %v244_v51 }
  0x88   :  { %1198 = vmatprep.subr.mxu0 %v227_v26  ;;  %1233 = vmatprep.subr.mxu1 %v259_v27 }
  0x89   :  { %1199 = vmatpush3.msra.mxu0 %v211_v29  ;;  %854 = vmatprep.mubr.f32.mxu0 %v352_v28 }
  0x8a   :  { %1234 = vmatpush3.msra.mxu1 %v243_v31  ;;  %924 = vmatprep.mubr.f32.mxu1 %v353_v30 }
  0x8b   :  { %855 = vmatmul.mubr.f32.vlgmr.msra.gmra.mxu0 %v344_v19  ;;  %925 = vmatmul.mubr.f32.vlgmr.msra.gmra.mxu1 %v351_v22 }
  0xe4   :  { %v990_v32 = vpop.f32.mrf.mxu0 }
  0xe6   :  { %v1025_v33 = vpop.f32.mrf.mxu1  ;;  %v991_v34 = vpop.f32.mrf.mxu0 }
  0xe7   :  { %v992_v36 = vadd.f32 %v991_v34, %v990_v32 }
  0xe8   :  { %v1026_v38 = vpop.f32.mrf.mxu1 }
  0xe9   :  { %v437_v41 = vadd.f32 %v992_v36, %v957_v37  ;;  %v1027_v42 = vadd.f32 %v1026_v38, %v1025_v33 }
  0xeb   :  { %v507_v46 = vadd.f32 %v1027_v42, %v437_v41 }
 0x106   :  { %v1060_v35 = vpop.f32.mrf.mxu0 }
 0x108   :  { %v1095_v39 = vpop.f32.mrf.mxu1  ;;  %v1061_v40 = vpop.f32.mrf.mxu0 }
 0x109   :  { %v1062_v44 = vadd.f32 %v1061_v40, %v1060_v35 }
 0x10a   :  { %v1096_v45 = vpop.f32.mrf.mxu1 }
 0x10b   :  { %v577_v49 = vadd.f32 %v1062_v44, %v507_v46  ;;  %v1097_v50 = vadd.f32 %v1096_v45, %v1095_v39 }
 0x10d   :  { %v647_v54 = vadd.f32 %v1097_v50, %v577_v49 }
 0x128   :  { %v1130_v43 = vpop.f32.mrf.mxu0 }
 0x12a   :  { %v1165_v47 = vpop.f32.mrf.mxu1  ;;  %v1131_v48 = vpop.f32.mrf.mxu0 }
 0x12b   :  { %v1132_v52 = vadd.f32 %v1131_v48, %v1130_v43 }
 0x12c   :  { %v1166_v53 = vpop.f32.mrf.mxu1 }
 0x12d   :  { %v717_v55 = vadd.f32 %v1132_v52, %v647_v54  ;;  %v1167_v56 = vadd.f32 %v1166_v53, %v1165_v47 }
 0x12f   :  { %v787_v61 = vadd.f32 %v1167_v56, %v717_v55 }
 0x14b   :  { %v1200_v57 = vpop.f32.mrf.mxu0  ;;  %v1235_v58 = vpop.f32.mrf.mxu1 }
 0x14d   :  { %v1201_v59 = vpop.f32.mrf.mxu0  ;;  %v1236_v60 = vpop.f32.mrf.mxu1 }
 0x14e   :  { %v1202_v62 = vadd.f32 %v1201_v59, %v1200_v57  ;;  %v1237_v0 = vadd.f32 %v1236_v60, %v1235_v58 }
 0x150   :  { %v857_v63 = vadd.f32 %v1202_v62, %v787_v61 }
 0x152   :  { %v927_v1 = vadd.f32 %v1237_v0, %v857_v63 }
 0x154   :  { %v931_v2 = vsel %vm930_vm0, %v927_v1, -inf }
 0x155   :  { %932 = vmax.xlane.f32.xlu0 %v931_v2 }
 0x1de   :  { %v933_v3 = vpop.xlane.xlu0 %932 }
 0x1df   :  { %v934_v4 = vsub.f32 %v927_v1, %v933_v3 }
 0x1e1   :  { %v935_v5 = vmul.f32 1.442695, %v934_v4 }
 0x1e3   :  { %1244 = vpow2.f32 %v935_v5 }
 0x1f0   :  { %v1245_v6 = vpop.eup %1244 }
 0x1f1   :  { %v937_v7 = vsel %vm930_vm0, %v1245_v6, 0.0 }
 0x1f2   :  { %938 = vadd.xlane.f32.xlu0 %v937_v7 }
 0x27b   :  { %v939_v8 = vpop.xlane.xlu0 %938 }
 0x27c   :  { %1246 = vrcp.f32 %v939_v8 }
 0x289   :  { %v1247_v9 = vpop.eup %1246 }
 0x28a   :  { %v941_v10 = vmul.f32 %v1247_v9, %v1245_v6 }
 0x28c   :  { %942 = vst.msk [vmem:[#allocation2] sm:$0x3] %vm930_vm0, %v941_v10 }
 0x28d   :  { %1259 = shalt.err (!%p1256_p4)
}
 0x28e   :  { %952 = dma.vmem_to_hbm [thread:$0]  %s950_s2, 32, %s2094_s3, [#allocation3]  }
 0x28f   :  { %1268 = dma.done.wait [#allocation3], 32  }
 0x290   :  { %1269 = vsyncadd [#allocation3], 4294967264 }
 0x291   :  { %956 = vsyncpa [#allocation3], 1 }

// kernel: classifier_forward.8
= control target key start
LH: loop header
LB: loop body
LE: loop exit
PB: predicated region body
PF: predicated region fallthrough
CT: control target
= control target key end

     0   :  { %s2953_s12 = smov 0   ;;  %s6657_s0 = inlined_call_operand.vmem [shape: f32[2,4,2304], index: 0, kind: input, shape index: {}]   ;;  %s6658_s1 = inlined_call_operand.vmem [shape: f32[2304,512], index: 1, kind: input, shape index: {}]   ;;  %s6659_s2 = inlined_call_operand.vmem [shape: f32[1,512], index: 2, kind: input, shape index: {}]   ;;  %s6660_s3 = inlined_call_operand.vmem [shape: f32[2,4,512], index: 3, kind: output, shape index: {}]  }
   0x1 LB: > { %s2887_s13 = sadd.s32 4294967295, %s2931_s12   ;;  %p2891_p0 = scmp.ge.s32.totalorder %s2931_s12, 1  ;;  %s2931_s12 = sphi %s2953_s12, %s13_s12  }
   0x2   : > { %p137_p1 = scmp.lt.s32.totalorder %s2931_s12, 3 }
   0x4   : > { %p138_p2 = pnand %p2891_p0, %p137_p1 }
   0x5   : > { %p3167_p3 = scmp.lt.s32.totalorder (!%p138_p2), %s2887_s13, 1 }
   0x6   : > { %141 = sbr.rel (%p138_p2) target bundleno = 838 (0x346), region = 32 }
   0xb   : > { %v237_v0 = vld [vmem:[%s6658_s1 + $0x1c8] sm:$0xff]  ;;  %v236_v5 = vld [vmem:[%s6658_s1 + $0x1c0] sm:$0xff]  ;;  %s6663_s13 = smov (!%p3167_p3, %s2887_s13), 1  ;;  %vm2725_vm0 = vcmask 1043456  }
   0xc   : > { %v241_v1 = vld [vmem:[%s6658_s1 + $0x1e8] sm:$0xff]  ;;  %v240_v6 = vld [vmem:[%s6658_s1 + $0x1e0] sm:$0xff]  ;;  %s2898_s6 = smul.u32 72, %s6663_s13  ;;  %s2897_s16 = sshll.u32 %s6663_s13, 4 }
   0xd   : > { %v365_v2 = vld [vmem:[%s6658_s1 + $0x5c8] sm:$0xff]  ;;  %v1406_v3 = vpack.c.bf16 %v241_v1, %v237_v0  ;;  %v1405_v8 = vpack.c.bf16 %v240_v6, %v236_v5  ;;  %v364_v9 = vld [vmem:[%s6658_s1 + $0x5c0] sm:$0xff]  ;;  %s6586_s28 = scalar_lea.vmem %s6660_s3, %s2897_s16 }
   0xe   : > { %v369_v4 = vld [vmem:[%s6658_s1 + $0x5e8] sm:$0xff]  ;;  %v368_v10 = vld [vmem:[%s6658_s1 + $0x5e0] sm:$0xff]  ;;  %s3253_s27 = scalar_lea.vmem %s6657_s0, %s2898_s6 }
   0xf   : > { %v1470_v7 = vpack.c.bf16 %v369_v4, %v365_v2  ;;  %v229_v11 = vld [vmem:[%s6658_s1 + $0x188] sm:$0xff]  ;;  %1975 = vmatprep.subr.bf16.mxu0 %v1406_v3  ;;  %v1469_v12 = vpack.c.bf16 %v368_v10, %v364_v9  ;;  %v228_v18 = vld [vmem:[%s6658_s1 + $0x180] sm:$0xff] }
  0x10   : > { %v233_v13 = vld [vmem:[%s6658_s1 + $0x1a8] sm:$0xff]  ;;  %1976 = vmatpush1.bf16.msra.mxu0 %v1405_v8  ;;  %v232_v19 = vld [vmem:[%s6658_s1 + $0x1a0] sm:$0xff] }
  0x11   : > { %v357_v14 = vld [vmem:[%s6658_s1 + $0x588] sm:$0xff]  ;;  %2016 = vmatprep.subr.bf16.mxu1 %v1470_v7  ;;  %v1402_v16 = vpack.c.bf16 %v233_v13, %v229_v11  ;;  %v356_v20 = vld [vmem:[%s6658_s1 + $0x580] sm:$0xff]  ;;  %v1401_v21 = vpack.c.bf16 %v232_v19, %v228_v18 }
  0x12   : > { %v361_v15 = vld [vmem:[%s6658_s1 + $0x5a8] sm:$0xff]  ;;  %2017 = vmatpush1.bf16.msra.mxu1 %v1469_v12  ;;  %v360_v22 = vld [vmem:[%s6658_s1 + $0x5a0] sm:$0xff] }
  0x13   : > { %v1466_v17 = vpack.c.bf16 %v361_v15, %v357_v14  ;;  %v221_v23 = vld [vmem:[%s6658_s1 + $0x148] sm:$0xff]  ;;  %1977 = vmatprep.subr.bf16.mxu0 %v1402_v16  ;;  %v1465_v25 = vpack.c.bf16 %v360_v22, %v356_v20  ;;  %v220_v29 = vld [vmem:[%s6658_s1 + $0x140] sm:$0xff] }
  0x14   : > { %v225_v24 = vld [vmem:[%s6658_s1 + $0x168] sm:$0xff]  ;;  %v224_v31 = vld [vmem:[%s6658_s1 + $0x160] sm:$0xff]  ;;  %1978 = vmatpush1.bf16.msra.mxu0 %v1401_v21 }
  0x15   : > { %2018 = vmatprep.subr.bf16.mxu1 %v1466_v17  ;;  %v1398_v26 = vpack.c.bf16 %v225_v24, %v221_v23  ;;  %v349_v27 = vld [vmem:[%s6658_s1 + $0x548] sm:$0xff]  ;;  %v348_v32 = vld [vmem:[%s6658_s1 + $0x540] sm:$0xff]  ;;  %v1397_v34 = vpack.c.bf16 %v224_v31, %v220_v29 }
  0x16   : > { %v353_v28 = vld [vmem:[%s6658_s1 + $0x568] sm:$0xff]  ;;  %v352_v33 = vld [vmem:[%s6658_s1 + $0x560] sm:$0xff]  ;;  %2019 = vmatpush1.bf16.msra.mxu1 %v1465_v25 }
  0x17   : > { %v1462_v30 = vpack.c.bf16 %v353_v28, %v349_v27  ;;  %v213_v35 = vld [vmem:[%s6658_s1 + $0x108] sm:$0xff]  ;;  %1979 = vmatprep.subr.bf16.mxu0 %v1398_v26  ;;  %v1461_v38 = vpack.c.bf16 %v352_v33, %v348_v32  ;;  %v212_v41 = vld [vmem:[%s6658_s1 + $0x100] sm:$0xff] }
  0x18   : > { %v217_v36 = vld [vmem:[%s6658_s1 + $0x128] sm:$0xff]  ;;  %v216_v42 = vld [vmem:[%s6658_s1 + $0x120] sm:$0xff]  ;;  %1980 = vmatpush1.bf16.msra.mxu0 %v1397_v34 }
  0x19   : > { %v341_v37 = vld [vmem:[%s6658_s1 + $0x508] sm:$0xff]  ;;  %v1394_v39 = vpack.c.bf16 %v217_v36, %v213_v35  ;;  %2020 = vmatprep.subr.bf16.mxu1 %v1462_v30  ;;  %v340_v44 = vld [vmem:[%s6658_s1 + $0x500] sm:$0xff]  ;;  %v1393_v50 = vpack.c.bf16 %v216_v42, %v212_v41 }
  0x1a   : > { %v345_v40 = vld [vmem:[%s6658_s1 + $0x528] sm:$0xff]  ;;  %v344_v45 = vld [vmem:[%s6658_s1 + $0x520] sm:$0xff]  ;;  %2021 = vmatpush1.bf16.msra.mxu1 %v1461_v38 }
  0x1b   : > { %v1458_v43 = vpack.c.bf16 %v345_v40, %v341_v37  ;;  %v205_v46 = vld [vmem:[%s6658_s1 + $0xc8] sm:$0xff]  ;;  %1981 = vmatprep.subr.bf16.mxu0 %v1394_v39  ;;  %v1457_v51 = vpack.c.bf16 %v344_v45, %v340_v44  ;;  %v204_v53 = vld [vmem:[%s6658_s1 + $0xc0] sm:$0xff] }
  0x1c   : > { %v209_v47 = vld [vmem:[%s6658_s1 + $0xe8] sm:$0xff]  ;;  %v208_v54 = vld [vmem:[%s6658_s1 + $0xe0] sm:$0xff]  ;;  %1982 = vmatpush1.bf16.msra.mxu0 %v1393_v50 }
  0x1d   : > { %v333_v48 = vld [vmem:[%s6658_s1 + $0x4c8] sm:$0xff]  ;;  %v1390_v52 = vpack.c.bf16 %v209_v47, %v205_v46  ;;  %v332_v55 = vld [vmem:[%s6658_s1 + $0x4c0] sm:$0xff]  ;;  %2022 = vmatprep.subr.bf16.mxu1 %v1458_v43  ;;  %v1389_v62 = vpack.c.bf16 %v208_v54, %v204_v53 }
  0x1e   : > { %v337_v49 = vld [vmem:[%s6658_s1 + $0x4e8] sm:$0xff]  ;;  %v336_v57 = vld [vmem:[%s6658_s1 + $0x4e0] sm:$0xff]  ;;  %2023 = vmatpush1.bf16.msra.mxu1 %v1457_v51 }
  0x1f   : > { %v1454_v56 = vpack.c.bf16 %v337_v49, %v333_v48  ;;  %v197_v58 = vld [vmem:[%s6658_s1 + $0x88] sm:$0xff]  ;;  %1983 = vmatprep.subr.bf16.mxu0 %v1390_v52  ;;  %v1453_v63 = vpack.c.bf16 %v336_v57, %v332_v55  ;;  %v196_v1 = vld [vmem:[%s6658_s1 + $0x80] sm:$0xff] }
  0x20   : > { %v201_v59 = vld [vmem:[%s6658_s1 + $0xa8] sm:$0xff]  ;;  %v200_v2 = vld [vmem:[%s6658_s1 + $0xa0] sm:$0xff]  ;;  %1984 = vmatpush1.bf16.msra.mxu0 %v1389_v62 }
  0x21   : > { %v325_v60 = vld [vmem:[%s6658_s1 + $0x488] sm:$0xff]  ;;  %v1386_v0 = vpack.c.bf16 %v201_v59, %v197_v58  ;;  %v324_v3 = vld [vmem:[%s6658_s1 + $0x480] sm:$0xff]  ;;  %2024 = vmatprep.subr.bf16.mxu1 %v1454_v56  ;;  %v1385_v10 = vpack.c.bf16 %v200_v2, %v196_v1 }
  0x22   : > { %v329_v61 = vld [vmem:[%s6658_s1 + $0x4a8] sm:$0xff]  ;;  %v328_v5 = vld [vmem:[%s6658_s1 + $0x4a0] sm:$0xff]  ;;  %2025 = vmatpush1.bf16.msra.mxu1 %v1453_v63 }
  0x23   : > { %v1450_v4 = vpack.c.bf16 %v329_v61, %v325_v60  ;;  %v189_v6 = vld [vmem:[%s6658_s1 + $0x48] sm:$0xff]  ;;  %1985 = vmatprep.subr.bf16.mxu0 %v1386_v0  ;;  %v1449_v11 = vpack.c.bf16 %v328_v5, %v324_v3  ;;  %v188_v13 = vld [vmem:[%s6658_s1 + $0x40] sm:$0xff] }
  0x24   : > { %v193_v7 = vld [vmem:[%s6658_s1 + $0x68] sm:$0xff]  ;;  %v192_v14 = vld [vmem:[%s6658_s1 + $0x60] sm:$0xff]  ;;  %1986 = vmatpush1.bf16.msra.mxu0 %v1385_v10 }
  0x25   : > { %v317_v8 = vld [vmem:[%s6658_s1 + $0x448] sm:$0xff]  ;;  %v1382_v12 = vpack.c.bf16 %v193_v7, %v189_v6  ;;  %v316_v15 = vld [vmem:[%s6658_s1 + $0x440] sm:$0xff]  ;;  %2026 = vmatprep.subr.bf16.mxu1 %v1450_v4  ;;  %v1381_v22 = vpack.c.bf16 %v192_v14, %v188_v13 }
  0x26   : > { %v321_v9 = vld [vmem:[%s6658_s1 + $0x468] sm:$0xff]  ;;  %v320_v17 = vld [vmem:[%s6658_s1 + $0x460] sm:$0xff]  ;;  %2027 = vmatpush1.bf16.msra.mxu1 %v1449_v11 }
  0x27   : > { %v1446_v16 = vpack.c.bf16 %v321_v9, %v317_v8  ;;  %v181_v18 = vld [vmem:[%s6658_s1 + $0x8] sm:$0xff]  ;;  %1987 = vmatprep.subr.bf16.mxu0 %v1382_v12  ;;  %v1445_v23 = vpack.c.bf16 %v320_v17, %v316_v15  ;;  %v180_v25 = vld [vmem:[%s6658_s1] sm:$0xff] }
  0x28   : > { %v185_v19 = vld [vmem:[%s6658_s1 + $0x28] sm:$0xff]  ;;  %v184_v26 = vld [vmem:[%s6658_s1 + $0x20] sm:$0xff]  ;;  %1988 = vmatpush1.bf16.msra.mxu0 %v1381_v22 }
  0x29   : > { %v309_v20 = vld [vmem:[%s6658_s1 + $0x408] sm:$0xff]  ;;  %v1378_v24 = vpack.c.bf16 %v185_v19, %v181_v18  ;;  %v308_v27 = vld [vmem:[%s6658_s1 + $0x400] sm:$0xff]  ;;  %2028 = vmatprep.subr.bf16.mxu1 %v1446_v16  ;;  %v1377_v34 = vpack.c.bf16 %v184_v26, %v180_v25 }
  0x2a   : > { %v313_v21 = vld [vmem:[%s6658_s1 + $0x428] sm:$0xff]  ;;  %v312_v29 = vld [vmem:[%s6658_s1 + $0x420] sm:$0xff]  ;;  %2029 = vmatpush1.bf16.msra.mxu1 %v1445_v23 }
  0x2b   : > { %v1442_v28 = vpack.c.bf16 %v313_v21, %v309_v20  ;;  %v301_v30 = vld [vmem:[%s6658_s1 + $0x3c8] sm:$0xff]  ;;  %1989 = vmatprep.subr.bf16.mxu0 %v1378_v24  ;;  %v1441_v35 = vpack.c.bf16 %v312_v29, %v308_v27  ;;  %v300_v37 = vld [vmem:[%s6658_s1 + $0x3c0] sm:$0xff] }
  0x2c   : > { %v305_v31 = vld [vmem:[%s6658_s1 + $0x3e8] sm:$0xff]  ;;  %v304_v38 = vld [vmem:[%s6658_s1 + $0x3e0] sm:$0xff]  ;;  %1990 = vmatpush1.bf16.msra.mxu0 %v1377_v34 }
  0x2d   : > { %v429_v32 = vld [vmem:[%s6658_s1 + $0x7c8] sm:$0xff]  ;;  %v1438_v36 = vpack.c.bf16 %v305_v31, %v301_v30  ;;  %v428_v39 = vld [vmem:[%s6658_s1 + $0x7c0] sm:$0xff]  ;;  %2030 = vmatprep.subr.bf16.mxu1 %v1442_v28  ;;  %v1437_v46 = vpack.c.bf16 %v304_v38, %v300_v37 }
  0x2e   : > { %v433_v33 = vld [vmem:[%s6658_s1 + $0x7e8] sm:$0xff]  ;;  %v432_v41 = vld [vmem:[%s6658_s1 + $0x7e0] sm:$0xff]  ;;  %2031 = vmatpush1.bf16.msra.mxu1 %v1441_v35 }
  0x2f   : > { %v1502_v40 = vpack.c.bf16 %v433_v33, %v429_v32  ;;  %v293_v42 = vld [vmem:[%s6658_s1 + $0x388] sm:$0xff]  ;;  %1991 = vmatprep.subr.bf16.mxu0 %v1438_v36  ;;  %v1501_v47 = vpack.c.bf16 %v432_v41, %v428_v39  ;;  %v292_v49 = vld [vmem:[%s6658_s1 + $0x380] sm:$0xff] }
  0x30   : > { %v297_v43 = vld [vmem:[%s6658_s1 + $0x3a8] sm:$0xff]  ;;  %v296_v50 = vld [vmem:[%s6658_s1 + $0x3a0] sm:$0xff]  ;;  %1992 = vmatpush2.bf16.msra.mxu0 %v1437_v46 }
  0x31   : > { %v421_v44 = vld [vmem:[%s6658_s1 + $0x788] sm:$0xff]  ;;  %v1434_v48 = vpack.c.bf16 %v297_v43, %v293_v42  ;;  %v420_v51 = vld [vmem:[%s6658_s1 + $0x780] sm:$0xff]  ;;  %2032 = vmatprep.subr.bf16.mxu1 %v1502_v40  ;;  %v1433_v58 = vpack.c.bf16 %v296_v50, %v292_v49 }
  0x32   : > { %v425_v45 = vld [vmem:[%s6658_s1 + $0x7a8] sm:$0xff]  ;;  %v424_v53 = vld [vmem:[%s6658_s1 + $0x7a0] sm:$0xff]  ;;  %2033 = vmatpush2.bf16.msra.mxu1 %v1501_v47 }
  0x33   : > { %v1498_v52 = vpack.c.bf16 %v425_v45, %v421_v44  ;;  %v285_v54 = vld [vmem:[%s6658_s1 + $0x348] sm:$0xff]  ;;  %1993 = vmatprep.subr.bf16.mxu0 %v1434_v48  ;;  %v1497_v59 = vpack.c.bf16 %v424_v53, %v420_v51  ;;  %v284_v61 = vld [vmem:[%s6658_s1 + $0x340] sm:$0xff] }
  0x34   : > { %v289_v55 = vld [vmem:[%s6658_s1 + $0x368] sm:$0xff]  ;;  %v288_v62 = vld [vmem:[%s6658_s1 + $0x360] sm:$0xff]  ;;  %1994 = vmatpush2.bf16.msra.mxu0 %v1433_v58 }
  0x35   : > { %v413_v56 = vld [vmem:[%s6658_s1 + $0x748] sm:$0xff]  ;;  %v1430_v60 = vpack.c.bf16 %v289_v55, %v285_v54  ;;  %v412_v63 = vld [vmem:[%s6658_s1 + $0x740] sm:$0xff]  ;;  %2034 = vmatprep.subr.bf16.mxu1 %v1498_v52  ;;  %v1429_v6 = vpack.c.bf16 %v288_v62, %v284_v61 }
  0x36   : > { %v417_v57 = vld [vmem:[%s6658_s1 + $0x768] sm:$0xff]  ;;  %v416_v1 = vld [vmem:[%s6658_s1 + $0x760] sm:$0xff]  ;;  %2035 = vmatpush2.bf16.msra.mxu1 %v1497_v59 }
  0x37   : > { %v1494_v0 = vpack.c.bf16 %v417_v57, %v413_v56  ;;  %v277_v2 = vld [vmem:[%s6658_s1 + $0x308] sm:$0xff]  ;;  %v276_v7 = vld [vmem:[%s6658_s1 + $0x300] sm:$0xff]  ;;  %1995 = vmatprep.subr.bf16.mxu0 %v1430_v60  ;;  %v1493_v8 = vpack.c.bf16 %v416_v1, %v412_v63 }
  0x38   : > { %v281_v3 = vld [vmem:[%s6658_s1 + $0x328] sm:$0xff]  ;;  %v280_v10 = vld [vmem:[%s6658_s1 + $0x320] sm:$0xff]  ;;  %1996 = vmatpush2.bf16.msra.mxu0 %v1429_v6 }
  0x39   : > { %v405_v4 = vld [vmem:[%s6658_s1 + $0x708] sm:$0xff]  ;;  %v1426_v9 = vpack.c.bf16 %v281_v3, %v277_v2  ;;  %v404_v11 = vld [vmem:[%s6658_s1 + $0x700] sm:$0xff]  ;;  %2036 = vmatprep.subr.bf16.mxu1 %v1494_v0  ;;  %v1425_v21 = vpack.c.bf16 %v280_v10, %v276_v7 }
  0x3a   : > { %v409_v5 = vld [vmem:[%s6658_s1 + $0x728] sm:$0xff]  ;;  %v408_v12 = vld [vmem:[%s6658_s1 + $0x720] sm:$0xff]  ;;  %2037 = vmatpush2.bf16.msra.mxu1 %v1493_v8 }
  0x3b   : > { %v1490_v13 = vpack.c.bf16 %v409_v5, %v405_v4  ;;  %v269_v14 = vld [vmem:[%s6658_s1 + $0x2c8] sm:$0xff]  ;;  %v3274_v16 = vld [vmem:[%s3253_s27] sm:$0xff]  ;;  %1997 = vmatprep.subr.bf16.mxu0 %v1426_v9  ;;  %v1489_v23 = vpack.c.bf16 %v408_v12, %v404_v11 }
  0x3c   : > { %v273_v15 = vld [vmem:[%s6658_s1 + $0x2e8] sm:$0xff]  ;;  %v1341_v19 = vcombine.high %v3274_v16, %v3274_v16  ;;  %v268_v25 = vld [vmem:[%s6658_s1 + $0x2c0] sm:$0xff]  ;;  %1998 = vmatpush2.bf16.msra.mxu0 %v1425_v21 }
  0x3d   : > { %v397_v17 = vld [vmem:[%s6658_s1 + $0x6c8] sm:$0xff]  ;;  %v1422_v24 = vpack.c.bf16 %v273_v15, %v269_v14  ;;  %v272_v26 = vld [vmem:[%s6658_s1 + $0x2e0] sm:$0xff]  ;;  %2038 = vmatprep.subr.bf16.mxu1 %v1490_v13 }
  0x3e   : > { %v401_v18 = vld [vmem:[%s6658_s1 + $0x6e8] sm:$0xff]  ;;  %v396_v27 = vld [vmem:[%s6658_s1 + $0x6c0] sm:$0xff]  ;;  %v3298_v28 = vpack.c.bf16 %v1341_v19, %v1341_v19  ;;  %v1421_v36 = vpack.c.bf16 %v272_v26, %v268_v25  ;;  %2039 = vmatpush2.bf16.msra.mxu1 %v1489_v23  ;;  %v3411_v19 = vpack.c.bf16 %v3274_v16, %v3274_v16 }
  0x3f   : > { %v3285_v20 = vld [vmem:[%s3253_s27 + $0x8] sm:$0xff]  ;;  %v1486_v29 = vpack.c.bf16 %v401_v18, %v397_v17  ;;  %v400_v30 = vld [vmem:[%s6658_s1 + $0x6e0] sm:$0xff]  ;;  %1999 = vmatprep.subr.bf16.mxu0 %v1422_v24 }
  0x40   : > { %v1342_v22 = vcombine.high %v3285_v20, %v3285_v20  ;;  %v261_v31 = vld [vmem:[%s6658_s1 + $0x288] sm:$0xff]  ;;  %2007 = vmatprep.mubr.bf16.mxu0 %v3298_v28  ;;  %v1485_v37 = vpack.c.bf16 %v400_v30, %v396_v27  ;;  %v260_v39 = vld [vmem:[%s6658_s1 + $0x280] sm:$0xff]  ;;  %2000 = vmatpush2.bf16.msra.mxu0 %v1421_v36  ;;  %v3421_v23 = vpack.c.bf16 %v3285_v20, %v3285_v20 }
  0x41   : > { %v265_v32 = vld [vmem:[%s6658_s1 + $0x2a8] sm:$0xff]  ;;  %v264_v40 = vld [vmem:[%s6658_s1 + $0x2a0] sm:$0xff]  ;;  %2040 = vmatprep.subr.bf16.mxu1 %v1486_v29 }
  0x42   : > { %v3309_v33 = vpack.c.bf16 %v1342_v22, %v1342_v22  ;;  %v389_v34 = vld [vmem:[%s6658_s1 + $0x688] sm:$0xff]  ;;  %v1418_v38 = vpack.c.bf16 %v265_v32, %v261_v31  ;;  %v388_v41 = vld [vmem:[%s6658_s1 + $0x680] sm:$0xff]  ;;  %v1417_v48 = vpack.c.bf16 %v264_v40, %v260_v39  ;;  %2041 = vmatpush2.bf16.msra.mxu1 %v1485_v37 }
  0x43   : > { %v393_v35 = vld [vmem:[%s6658_s1 + $0x6a8] sm:$0xff]  ;;  %v392_v43 = vld [vmem:[%s6658_s1 + $0x6a0] sm:$0xff] }
  0x44   : > { %2048 = vmatprep.mubr.bf16.mxu1 %v3309_v33  ;;  %v1482_v42 = vpack.c.bf16 %v393_v35, %v389_v34  ;;  %v253_v44 = vld [vmem:[%s6658_s1 + $0x248] sm:$0xff]  ;;  %2001 = vmatprep.subr.bf16.mxu0 %v1418_v38  ;;  %v1481_v49 = vpack.c.bf16 %v392_v43, %v388_v41  ;;  %v252_v51 = vld [vmem:[%s6658_s1 + $0x240] sm:$0xff] }
  0x45   : > { %v257_v45 = vld [vmem:[%s6658_s1 + $0x268] sm:$0xff]  ;;  %v256_v52 = vld [vmem:[%s6658_s1 + $0x260] sm:$0xff]  ;;  %2002 = vmatpush2.bf16.msra.mxu0 %v1417_v48 }
  0x46   : > { %v381_v46 = vld [vmem:[%s6658_s1 + $0x648] sm:$0xff]  ;;  %v1414_v50 = vpack.c.bf16 %v257_v45, %v253_v44  ;;  %v380_v53 = vld [vmem:[%s6658_s1 + $0x640] sm:$0xff]  ;;  %2042 = vmatprep.subr.bf16.mxu1 %v1482_v42  ;;  %v1413_v60 = vpack.c.bf16 %v256_v52, %v252_v51 }
  0x47   : > { %v385_v47 = vld [vmem:[%s6658_s1 + $0x668] sm:$0xff]  ;;  %v384_v55 = vld [vmem:[%s6658_s1 + $0x660] sm:$0xff]  ;;  %2043 = vmatpush2.bf16.msra.mxu1 %v1481_v49 }
  0x48   : > { %v1478_v54 = vpack.c.bf16 %v385_v47, %v381_v46  ;;  %v245_v56 = vld [vmem:[%s6658_s1 + $0x208] sm:$0xff]  ;;  %2003 = vmatprep.subr.bf16.mxu0 %v1414_v50  ;;  %v1477_v61 = vpack.c.bf16 %v384_v55, %v380_v53  ;;  %v244_v63 = vld [vmem:[%s6658_s1 + $0x200] sm:$0xff] }
  0x49   : > { %v249_v57 = vld [vmem:[%s6658_s1 + $0x228] sm:$0xff]  ;;  %v248_v0 = vld [vmem:[%s6658_s1 + $0x220] sm:$0xff]  ;;  %2004 = vmatpush2.bf16.msra.mxu0 %v1413_v60 }
  0x4a   : > { %v373_v58 = vld [vmem:[%s6658_s1 + $0x608] sm:$0xff]  ;;  %v1410_v62 = vpack.c.bf16 %v249_v57, %v245_v56  ;;  %v372_v1 = vld [vmem:[%s6658_s1 + $0x600] sm:$0xff]  ;;  %2044 = vmatprep.subr.bf16.mxu1 %v1478_v54  ;;  %v1409_v8 = vpack.c.bf16 %v248_v0, %v244_v63 }
  0x4b   : > { %v377_v59 = vld [vmem:[%s6658_s1 + $0x628] sm:$0xff]  ;;  %v376_v3 = vld [vmem:[%s6658_s1 + $0x620] sm:$0xff]  ;;  %2045 = vmatpush2.bf16.msra.mxu1 %v1477_v61 }
  0x4c   : > { %v1474_v2 = vpack.c.bf16 %v377_v59, %v373_v58  ;;  %v493_v4 = vld [vmem:[%s6658_s1 + $0x9c8] sm:$0xff]  ;;  %2005 = vmatprep.subr.bf16.mxu0 %v1410_v62  ;;  %v1473_v9 = vpack.c.bf16 %v376_v3, %v372_v1  ;;  %v492_v11 = vld [vmem:[%s6658_s1 + $0x9c0] sm:$0xff] }
  0x4d   : > { %v497_v5 = vld [vmem:[%s6658_s1 + $0x9e8] sm:$0xff]  ;;  %v496_v12 = vld [vmem:[%s6658_s1 + $0x9e0] sm:$0xff]  ;;  %2006 = vmatpush2.bf16.msra.mxu0 %v1409_v8 }
  0x4e   : > { %v621_v6 = vld [vmem:[%s6658_s1 + $0xdc8] sm:$0xff]  ;;  %v1534_v10 = vpack.c.bf16 %v497_v5, %v493_v4  ;;  %v620_v13 = vld [vmem:[%s6658_s1 + $0xdc0] sm:$0xff]  ;;  %2046 = vmatprep.subr.bf16.mxu1 %v1474_v2  ;;  %v1533_v24 = vpack.c.bf16 %v496_v12, %v492_v11 }
  0x4f   : > { %v625_v7 = vld [vmem:[%s6658_s1 + $0xde8] sm:$0xff]  ;;  %v624_v15 = vld [vmem:[%s6658_s1 + $0xde0] sm:$0xff]  ;;  %2047 = vmatpush2.bf16.msra.mxu1 %v1473_v9 }
  0x50   : > { %v1598_v14 = vpack.c.bf16 %v625_v7, %v621_v6  ;;  %v485_v17 = vld [vmem:[%s6658_s1 + $0x988] sm:$0xff]  ;;  %2057 = vmatprep.subr.bf16.mxu0 %v1534_v10  ;;  %v1597_v25 = vpack.c.bf16 %v624_v15, %v620_v13  ;;  %v484_v16 = vld [vmem:[%s6658_s1 + $0x980] sm:$0xff]  ;;  %2008 = vmatmul.mubr.bf16.vlgmr.msra.gmra.mxu0 %v3411_v19 }
  0x51   : > { %v489_v18 = vld [vmem:[%s6658_s1 + $0x9a8] sm:$0xff]  ;;  %v488_v27 = vld [vmem:[%s6658_s1 + $0x9a0] sm:$0xff]  ;;  %2058 = vmatpush1.bf16.msra.mxu0 %v1533_v24 }
  0x52   : > { %v613_v21 = vld [vmem:[%s6658_s1 + $0xd88] sm:$0xff]  ;;  %v1530_v26 = vpack.c.bf16 %v489_v18, %v485_v17  ;;  %v612_v29 = vld [vmem:[%s6658_s1 + $0xd80] sm:$0xff]  ;;  %2098 = vmatprep.subr.bf16.mxu1 %v1598_v14  ;;  %2049 = vmatmul.mubr.bf16.vlgmr.msra.gmra.mxu1 %v3421_v23  ;;  %v1529_v36 = vpack.c.bf16 %v488_v27, %v484_v16 }
  0x53   : > { %v617_v22 = vld [vmem:[%s6658_s1 + $0xda8] sm:$0xff]  ;;  %v616_v30 = vld [vmem:[%s6658_s1 + $0xda0] sm:$0xff]  ;;  %2099 = vmatpush1.bf16.msra.mxu1 %v1597_v25 }
  0x54   : > { %v1594_v20 = vpack.c.bf16 %v617_v22, %v613_v21  ;;  %v477_v31 = vld [vmem:[%s6658_s1 + $0x948] sm:$0xff]  ;;  %2059 = vmatprep.subr.bf16.mxu0 %v1530_v26  ;;  %v1593_v37 = vpack.c.bf16 %v616_v30, %v612_v29  ;;  %v476_v39 = vld [vmem:[%s6658_s1 + $0x940] sm:$0xff] }
  0x55   : > { %v481_v32 = vld [vmem:[%s6658_s1 + $0x968] sm:$0xff]  ;;  %v480_v40 = vld [vmem:[%s6658_s1 + $0x960] sm:$0xff]  ;;  %2060 = vmatpush1.bf16.msra.mxu0 %v1529_v36 }
  0x56   : > { %v605_v34 = vld [vmem:[%s6658_s1 + $0xd48] sm:$0xff]  ;;  %v1526_v38 = vpack.c.bf16 %v481_v32, %v477_v31  ;;  %v604_v41 = vld [vmem:[%s6658_s1 + $0xd40] sm:$0xff]  ;;  %2100 = vmatprep.subr.bf16.mxu1 %v1594_v20  ;;  %v1525_v48 = vpack.c.bf16 %v480_v40, %v476_v39 }
  0x57   : > { %v609_v35 = vld [vmem:[%s6658_s1 + $0xd68] sm:$0xff]  ;;  %v608_v43 = vld [vmem:[%s6658_s1 + $0xd60] sm:$0xff]  ;;  %2101 = vmatpush1.bf16.msra.mxu1 %v1593_v37 }
  0x58   : > { %v1590_v42 = vpack.c.bf16 %v609_v35, %v605_v34  ;;  %v469_v44 = vld [vmem:[%s6658_s1 + $0x908] sm:$0xff]  ;;  %2061 = vmatprep.subr.bf16.mxu0 %v1526_v38  ;;  %v1589_v49 = vpack.c.bf16 %v608_v43, %v604_v41  ;;  %v468_v51 = vld [vmem:[%s6658_s1 + $0x900] sm:$0xff]  ;;  %v3564_v34 = vld [vmem:[%s3253_s27 + $0x10] sm:$0xff] }
  0x59   : > { %v473_v45 = vld [vmem:[%s6658_s1 + $0x928] sm:$0xff]  ;;  %v472_v52 = vld [vmem:[%s6658_s1 + $0x920] sm:$0xff]  ;;  %2062 = vmatpush1.bf16.msra.mxu0 %v1525_v48  ;;  %v3567_v35 = vld [vmem:[%s3253_s27 + $0x18] sm:$0xff]  ;;  %v1343_v38 = vcombine.high %v3564_v34, %v3564_v34 }
  0x5a   : > { %v597_v46 = vld [vmem:[%s6658_s1 + $0xd08] sm:$0xff]  ;;  %v1522_v50 = vpack.c.bf16 %v473_v45, %v469_v44  ;;  %v596_v53 = vld [vmem:[%s6658_s1 + $0xd00] sm:$0xff]  ;;  %2102 = vmatprep.subr.bf16.mxu1 %v1590_v42  ;;  %v1521_v60 = vpack.c.bf16 %v472_v52, %v468_v51  ;;  %v1344_v39 = vcombine.high %v3567_v35, %v3567_v35 }
  0x5b   : > { %v601_v47 = vld [vmem:[%s6658_s1 + $0xd28] sm:$0xff]  ;;  %v600_v55 = vld [vmem:[%s6658_s1 + $0xd20] sm:$0xff]  ;;  %2103 = vmatpush1.bf16.msra.mxu1 %v1589_v49 }
  0x5c   : > { %v1586_v54 = vpack.c.bf16 %v601_v47, %v597_v46  ;;  %v461_v56 = vld [vmem:[%s6658_s1 + $0x8c8] sm:$0xff]  ;;  %2063 = vmatprep.subr.bf16.mxu0 %v1522_v50  ;;  %v1585_v61 = vpack.c.bf16 %v600_v55, %v596_v53  ;;  %v460_v63 = vld [vmem:[%s6658_s1 + $0x8c0] sm:$0xff]  ;;  %v3588_v46 = vpack.c.bf16 %v1343_v38, %v1343_v38  ;;  %v3590_v47 = vpack.c.bf16 %v1344_v39, %v1344_v39 }
  0x5d   : > { %v465_v57 = vld [vmem:[%s6658_s1 + $0x8e8] sm:$0xff]  ;;  %v464_v0 = vld [vmem:[%s6658_s1 + $0x8e0] sm:$0xff]  ;;  %2064 = vmatpush1.bf16.msra.mxu0 %v1521_v60 }
  0x5e   : > { %v589_v58 = vld [vmem:[%s6658_s1 + $0xcc8] sm:$0xff]  ;;  %v1518_v62 = vpack.c.bf16 %v465_v57, %v461_v56  ;;  %v588_v1 = vld [vmem:[%s6658_s1 + $0xcc0] sm:$0xff]  ;;  %2104 = vmatprep.subr.bf16.mxu1 %v1586_v54  ;;  %v1517_v8 = vpack.c.bf16 %v464_v0, %v460_v63  ;;  %2089 = vmatprep.mubr.bf16.mxu0 %v3588_v46 }
  0x5f   : > { %v593_v59 = vld [vmem:[%s6658_s1 + $0xce8] sm:$0xff]  ;;  %v592_v3 = vld [vmem:[%s6658_s1 + $0xce0] sm:$0xff]  ;;  %2105 = vmatpush1.bf16.msra.mxu1 %v1585_v61  ;;  %2130 = vmatprep.mubr.bf16.mxu1 %v3590_v47 }
  0x60   : > { %v1582_v2 = vpack.c.bf16 %v593_v59, %v589_v58  ;;  %v453_v4 = vld [vmem:[%s6658_s1 + $0x888] sm:$0xff]  ;;  %2065 = vmatprep.subr.bf16.mxu0 %v1518_v62  ;;  %v1581_v9 = vpack.c.bf16 %v592_v3, %v588_v1  ;;  %v452_v11 = vld [vmem:[%s6658_s1 + $0x880] sm:$0xff] }
  0x61   : > { %v457_v5 = vld [vmem:[%s6658_s1 + $0x8a8] sm:$0xff]  ;;  %v456_v12 = vld [vmem:[%s6658_s1 + $0x8a0] sm:$0xff]  ;;  %2066 = vmatpush1.bf16.msra.mxu0 %v1517_v8 }
  0x62   : > { %v581_v6 = vld [vmem:[%s6658_s1 + $0xc88] sm:$0xff]  ;;  %v1514_v10 = vpack.c.bf16 %v457_v5, %v453_v4  ;;  %v580_v13 = vld [vmem:[%s6658_s1 + $0xc80] sm:$0xff]  ;;  %2106 = vmatprep.subr.bf16.mxu1 %v1582_v2  ;;  %v1513_v24 = vpack.c.bf16 %v456_v12, %v452_v11 }
  0x63   : > { %v585_v7 = vld [vmem:[%s6658_s1 + $0xca8] sm:$0xff]  ;;  %v584_v15 = vld [vmem:[%s6658_s1 + $0xca0] sm:$0xff]  ;;  %2107 = vmatpush1.bf16.msra.mxu1 %v1581_v9 }
  0x64   : > { %v1578_v14 = vpack.c.bf16 %v585_v7, %v581_v6  ;;  %v445_v17 = vld [vmem:[%s6658_s1 + $0x848] sm:$0xff]  ;;  %v444_v25 = vld [vmem:[%s6658_s1 + $0x840] sm:$0xff]  ;;  %2067 = vmatprep.subr.bf16.mxu0 %v1514_v10  ;;  %v1577_v16 = vpack.c.bf16 %v584_v15, %v580_v13 }
  0x65   : > { %v449_v18 = vld [vmem:[%s6658_s1 + $0x868] sm:$0xff]  ;;  %v448_v26 = vld [vmem:[%s6658_s1 + $0x860] sm:$0xff]  ;;  %2068 = vmatpush1.bf16.msra.mxu0 %v1513_v24 }
  0x66   : > { %v573_v21 = vld [vmem:[%s6658_s1 + $0xc48] sm:$0xff]  ;;  %v1510_v27 = vpack.c.bf16 %v449_v18, %v445_v17  ;;  %v572_v29 = vld [vmem:[%s6658_s1 + $0xc40] sm:$0xff]  ;;  %2108 = vmatprep.subr.bf16.mxu1 %v1578_v14  ;;  %v1509_v40 = vpack.c.bf16 %v448_v26, %v444_v25 }
  0x67   : > { %v577_v22 = vld [vmem:[%s6658_s1 + $0xc68] sm:$0xff]  ;;  %v576_v20 = vld [vmem:[%s6658_s1 + $0xc60] sm:$0xff]  ;;  %2109 = vmatpush1.bf16.msra.mxu1 %v1577_v16 }
  0x68   : > { %v437_v30 = vld [vmem:[%s6658_s1 + $0x808] sm:$0xff]  ;;  %v1574_v31 = vpack.c.bf16 %v577_v22, %v573_v21  ;;  %v1573_v41 = vpack.c.bf16 %v576_v20, %v572_v29  ;;  %2069 = vmatprep.subr.bf16.mxu0 %v1510_v27  ;;  %v436_v43 = vld [vmem:[%s6658_s1 + $0x800] sm:$0xff] }
  0x69   : > { %v441_v32 = vld [vmem:[%s6658_s1 + $0x828] sm:$0xff]  ;;  %v440_v44 = vld [vmem:[%s6658_s1 + $0x820] sm:$0xff]  ;;  %2070 = vmatpush1.bf16.msra.mxu0 %v1509_v40 }
  0x6a   : > { %v565_v36 = vld [vmem:[%s6658_s1 + $0xc08] sm:$0xff]  ;;  %v1506_v42 = vpack.c.bf16 %v441_v32, %v437_v30  ;;  %v564_v45 = vld [vmem:[%s6658_s1 + $0xc00] sm:$0xff]  ;;  %2110 = vmatprep.subr.bf16.mxu1 %v1574_v31  ;;  %v1505_v54 = vpack.c.bf16 %v440_v44, %v436_v43 }
  0x6b   : > { %v569_v37 = vld [vmem:[%s6658_s1 + $0xc28] sm:$0xff]  ;;  %v568_v49 = vld [vmem:[%s6658_s1 + $0xc20] sm:$0xff]  ;;  %2111 = vmatpush1.bf16.msra.mxu1 %v1573_v41 }
  0x6c   : > { %v1570_v48 = vpack.c.bf16 %v569_v37, %v565_v36  ;;  %v557_v50 = vld [vmem:[%s6658_s1 + $0xbc8] sm:$0xff]  ;;  %2071 = vmatprep.subr.bf16.mxu0 %v1506_v42  ;;  %v1569_v55 = vpack.c.bf16 %v568_v49, %v564_v45  ;;  %v556_v57 = vld [vmem:[%s6658_s1 + $0xbc0] sm:$0xff] }
  0x6d   : > { %v561_v51 = vld [vmem:[%s6658_s1 + $0xbe8] sm:$0xff]  ;;  %v560_v58 = vld [vmem:[%s6658_s1 + $0xbe0] sm:$0xff]  ;;  %2072 = vmatpush1.bf16.msra.mxu0 %v1505_v54 }
  0x6e   : > { %v685_v52 = vld [vmem:[%s6658_s1 + $0xfc8] sm:$0xff]  ;;  %v1566_v56 = vpack.c.bf16 %v561_v51, %v557_v50  ;;  %v684_v59 = vld [vmem:[%s6658_s1 + $0xfc0] sm:$0xff]  ;;  %2112 = vmatprep.subr.bf16.mxu1 %v1570_v48  ;;  %v1565_v2 = vpack.c.bf16 %v560_v58, %v556_v57 }
  0x6f   : > { %v689_v53 = vld [vmem:[%s6658_s1 + $0xfe8] sm:$0xff]  ;;  %v688_v61 = vld [vmem:[%s6658_s1 + $0xfe0] sm:$0xff]  ;;  %2113 = vmatpush1.bf16.msra.mxu1 %v1569_v55 }
  0x70   : > { %v1630_v60 = vpack.c.bf16 %v689_v53, %v685_v52  ;;  %v549_v62 = vld [vmem:[%s6658_s1 + $0xb88] sm:$0xff]  ;;  %2073 = vmatprep.subr.bf16.mxu0 %v1566_v56  ;;  %v1629_v3 = vpack.c.bf16 %v688_v61, %v684_v59  ;;  %v548_v5 = vld [vmem:[%s6658_s1 + $0xb80] sm:$0xff] }
  0x71   : > { %v553_v63 = vld [vmem:[%s6658_s1 + $0xba8] sm:$0xff]  ;;  %v552_v6 = vld [vmem:[%s6658_s1 + $0xba0] sm:$0xff]  ;;  %2074 = vmatpush2.bf16.msra.mxu0 %v1565_v2 }
  0x72   : > { %v677_v0 = vld [vmem:[%s6658_s1 + $0xf88] sm:$0xff]  ;;  %v1562_v4 = vpack.c.bf16 %v553_v63, %v549_v62  ;;  %v676_v7 = vld [vmem:[%s6658_s1 + $0xf80] sm:$0xff]  ;;  %2114 = vmatprep.subr.bf16.mxu1 %v1630_v60  ;;  %v1561_v14 = vpack.c.bf16 %v552_v6, %v548_v5 }
  0x73   : > { %v681_v1 = vld [vmem:[%s6658_s1 + $0xfa8] sm:$0xff]  ;;  %v680_v9 = vld [vmem:[%s6658_s1 + $0xfa0] sm:$0xff]  ;;  %2115 = vmatpush2.bf16.msra.mxu1 %v1629_v3 }
  0x74   : > { %v1626_v8 = vpack.c.bf16 %v681_v1, %v677_v0  ;;  %v541_v10 = vld [vmem:[%s6658_s1 + $0xb48] sm:$0xff]  ;;  %2075 = vmatprep.subr.bf16.mxu0 %v1562_v4  ;;  %v1625_v15 = vpack.c.bf16 %v680_v9, %v676_v7  ;;  %v540_v18 = vld [vmem:[%s6658_s1 + $0xb40] sm:$0xff] }
  0x75   : > { %v545_v11 = vld [vmem:[%s6658_s1 + $0xb68] sm:$0xff]  ;;  %v544_v21 = vld [vmem:[%s6658_s1 + $0xb60] sm:$0xff]  ;;  %2076 = vmatpush2.bf16.msra.mxu0 %v1561_v14 }
  0x76   : > { %v669_v12 = vld [vmem:[%s6658_s1 + $0xf48] sm:$0xff]  ;;  %v1558_v17 = vpack.c.bf16 %v545_v11, %v541_v10  ;;  %v668_v22 = vld [vmem:[%s6658_s1 + $0xf40] sm:$0xff]  ;;  %2116 = vmatprep.subr.bf16.mxu1 %v1626_v8  ;;  %v1557_v20 = vpack.c.bf16 %v544_v21, %v540_v18 }
  0x77   : > { %v673_v13 = vld [vmem:[%s6658_s1 + $0xf68] sm:$0xff]  ;;  %v672_v25 = vld [vmem:[%s6658_s1 + $0xf60] sm:$0xff]  ;;  %2117 = vmatpush2.bf16.msra.mxu1 %v1625_v15 }
  0x78   : > { %v1622_v24 = vpack.c.bf16 %v673_v13, %v669_v12  ;;  %v533_v26 = vld [vmem:[%s6658_s1 + $0xb08] sm:$0xff]  ;;  %2077 = vmatprep.subr.bf16.mxu0 %v1558_v17  ;;  %v1621_v30 = vpack.c.bf16 %v672_v25, %v668_v22  ;;  %v532_v32 = vld [vmem:[%s6658_s1 + $0xb00] sm:$0xff] }
  0x79   : > { %v537_v16 = vld [vmem:[%s6658_s1 + $0xb28] sm:$0xff]  ;;  %v536_v36 = vld [vmem:[%s6658_s1 + $0xb20] sm:$0xff]  ;;  %2078 = vmatpush2.bf16.msra.mxu0 %v1557_v20 }
  0x7a   : > { %v661_v27 = vld [vmem:[%s6658_s1 + $0xf08] sm:$0xff]  ;;  %v1554_v31 = vpack.c.bf16 %v537_v16, %v533_v26  ;;  %v660_v37 = vld [vmem:[%s6658_s1 + $0xf00] sm:$0xff]  ;;  %2118 = vmatprep.subr.bf16.mxu1 %v1622_v24  ;;  %v1553_v44 = vpack.c.bf16 %v536_v36, %v532_v32 }
  0x7b   : > { %v665_v29 = vld [vmem:[%s6658_s1 + $0xf28] sm:$0xff]  ;;  %v664_v39 = vld [vmem:[%s6658_s1 + $0xf20] sm:$0xff]  ;;  %2119 = vmatpush2.bf16.msra.mxu1 %v1621_v30 }
  0x7c   : > { %v1618_v38 = vpack.c.bf16 %v665_v29, %v661_v27  ;;  %v525_v40 = vld [vmem:[%s6658_s1 + $0xac8] sm:$0xff]  ;;  %2079 = vmatprep.subr.bf16.mxu0 %v1554_v31  ;;  %v1617_v45 = vpack.c.bf16 %v664_v39, %v660_v37  ;;  %v524_v49 = vld [vmem:[%s6658_s1 + $0xac0] sm:$0xff] }
  0x7d   : > { %v529_v41 = vld [vmem:[%s6658_s1 + $0xae8] sm:$0xff]  ;;  %v528_v50 = vld [vmem:[%s6658_s1 + $0xae0] sm:$0xff]  ;;  %2080 = vmatpush2.bf16.msra.mxu0 %v1553_v44 }
  0x7e   : > { %v653_v42 = vld [vmem:[%s6658_s1 + $0xec8] sm:$0xff]  ;;  %v1550_v48 = vpack.c.bf16 %v529_v41, %v525_v40  ;;  %v652_v51 = vld [vmem:[%s6658_s1 + $0xec0] sm:$0xff]  ;;  %2120 = vmatprep.subr.bf16.mxu1 %v1618_v38  ;;  %v1549_v58 = vpack.c.bf16 %v528_v50, %v524_v49 }
  0x7f   : > { %v657_v43 = vld [vmem:[%s6658_s1 + $0xee8] sm:$0xff]  ;;  %v656_v53 = vld [vmem:[%s6658_s1 + $0xee0] sm:$0xff]  ;;  %2121 = vmatpush2.bf16.msra.mxu1 %v1617_v45 }
  0x80   : > { %v1614_v52 = vpack.c.bf16 %v657_v43, %v653_v42  ;;  %v517_v54 = vld [vmem:[%s6658_s1 + $0xa88] sm:$0xff]  ;;  %2081 = vmatprep.subr.bf16.mxu0 %v1550_v48  ;;  %v1613_v59 = vpack.c.bf16 %v656_v53, %v652_v51  ;;  %v516_v61 = vld [vmem:[%s6658_s1 + $0xa80] sm:$0xff]  ;;  %v3821_v48 = vpack.c.bf16 %v3564_v34, %v3564_v34  ;;  %v3831_v51 = vpack.c.bf16 %v3567_v35, %v3567_v35 }
  0x81   : > { %v521_v55 = vld [vmem:[%s6658_s1 + $0xaa8] sm:$0xff]  ;;  %v520_v62 = vld [vmem:[%s6658_s1 + $0xaa0] sm:$0xff]  ;;  %2082 = vmatpush2.bf16.msra.mxu0 %v1549_v58 }
  0x82   : > { %v645_v56 = vld [vmem:[%s6658_s1 + $0xe88] sm:$0xff]  ;;  %v1546_v60 = vpack.c.bf16 %v521_v55, %v517_v54  ;;  %v644_v63 = vld [vmem:[%s6658_s1 + $0xe80] sm:$0xff]  ;;  %2122 = vmatprep.subr.bf16.mxu1 %v1614_v52  ;;  %v1545_v6 = vpack.c.bf16 %v520_v62, %v516_v61 }
  0x83   : > { %v649_v57 = vld [vmem:[%s6658_s1 + $0xea8] sm:$0xff]  ;;  %v648_v1 = vld [vmem:[%s6658_s1 + $0xea0] sm:$0xff]  ;;  %2123 = vmatpush2.bf16.msra.mxu1 %v1613_v59 }
  0x84   : > { %v1610_v0 = vpack.c.bf16 %v649_v57, %v645_v56  ;;  %v509_v2 = vld [vmem:[%s6658_s1 + $0xa48] sm:$0xff]  ;;  %2083 = vmatprep.subr.bf16.mxu0 %v1546_v60  ;;  %v1609_v7 = vpack.c.bf16 %v648_v1, %v644_v63  ;;  %v508_v9 = vld [vmem:[%s6658_s1 + $0xa40] sm:$0xff] }
  0x85   : > { %v513_v3 = vld [vmem:[%s6658_s1 + $0xa68] sm:$0xff]  ;;  %v512_v10 = vld [vmem:[%s6658_s1 + $0xa60] sm:$0xff]  ;;  %2084 = vmatpush2.bf16.msra.mxu0 %v1545_v6 }
  0x86   : > { %v637_v4 = vld [vmem:[%s6658_s1 + $0xe48] sm:$0xff]  ;;  %v1542_v8 = vpack.c.bf16 %v513_v3, %v509_v2  ;;  %v636_v11 = vld [vmem:[%s6658_s1 + $0xe40] sm:$0xff]  ;;  %2124 = vmatprep.subr.bf16.mxu1 %v1610_v0  ;;  %v1541_v21 = vpack.c.bf16 %v512_v10, %v508_v9 }
  0x87   : > { %v641_v5 = vld [vmem:[%s6658_s1 + $0xe68] sm:$0xff]  ;;  %v640_v13 = vld [vmem:[%s6658_s1 + $0xe60] sm:$0xff]  ;;  %2125 = vmatpush2.bf16.msra.mxu1 %v1609_v7 }
  0x88   : > { %v1606_v12 = vpack.c.bf16 %v641_v5, %v637_v4  ;;  %v501_v14 = vld [vmem:[%s6658_s1 + $0xa08] sm:$0xff]  ;;  %2085 = vmatprep.subr.bf16.mxu0 %v1542_v8  ;;  %v1605_v22 = vpack.c.bf16 %v640_v13, %v636_v11  ;;  %v500_v25 = vld [vmem:[%s6658_s1 + $0xa00] sm:$0xff] }
  0x89   : > { %v505_v15 = vld [vmem:[%s6658_s1 + $0xa28] sm:$0xff]  ;;  %v504_v26 = vld [vmem:[%s6658_s1 + $0xa20] sm:$0xff]  ;;  %2086 = vmatpush2.bf16.msra.mxu0 %v1541_v21 }
  0x8a   : > { %v629_v17 = vld [vmem:[%s6658_s1 + $0xe08] sm:$0xff]  ;;  %v1538_v24 = vpack.c.bf16 %v505_v15, %v501_v14  ;;  %v628_v16 = vld [vmem:[%s6658_s1 + $0xe00] sm:$0xff]  ;;  %2126 = vmatprep.subr.bf16.mxu1 %v1606_v12  ;;  %v1537_v36 = vpack.c.bf16 %v504_v26, %v500_v25 }
  0x8b   : > { %v633_v18 = vld [vmem:[%s6658_s1 + $0xe28] sm:$0xff]  ;;  %v632_v29 = vld [vmem:[%s6658_s1 + $0xe20] sm:$0xff]  ;;  %2127 = vmatpush2.bf16.msra.mxu1 %v1605_v22 }
  0x8c   : > { %v1602_v27 = vpack.c.bf16 %v633_v18, %v629_v17  ;;  %v749_v20 = vld [vmem:[%s6658_s1 + $0x11c8] sm:$0xff]  ;;  %2087 = vmatprep.subr.bf16.mxu0 %v1538_v24  ;;  %v1601_v37 = vpack.c.bf16 %v632_v29, %v628_v16  ;;  %v748_v39 = vld [vmem:[%s6658_s1 + $0x11c0] sm:$0xff] }
  0x8d   : > { %v753_v30 = vld [vmem:[%s6658_s1 + $0x11e8] sm:$0xff]  ;;  %v752_v40 = vld [vmem:[%s6658_s1 + $0x11e0] sm:$0xff]  ;;  %2088 = vmatpush2.bf16.msra.mxu0 %v1537_v36 }
  0x8e   : > { %v877_v31 = vld [vmem:[%s6658_s1 + $0x15c8] sm:$0xff]  ;;  %v1662_v38 = vpack.c.bf16 %v753_v30, %v749_v20  ;;  %v876_v41 = vld [vmem:[%s6658_s1 + $0x15c0] sm:$0xff]  ;;  %2128 = vmatprep.subr.bf16.mxu1 %v1602_v27  ;;  %v1661_v52 = vpack.c.bf16 %v752_v40, %v748_v39 }
  0x8f   : > { %v881_v32 = vld [vmem:[%s6658_s1 + $0x15e8] sm:$0xff]  ;;  %v880_v43 = vld [vmem:[%s6658_s1 + $0x15e0] sm:$0xff]  ;;  %2129 = vmatpush2.bf16.msra.mxu1 %v1601_v37 }
  0x90   : > { %v1726_v42 = vpack.c.bf16 %v881_v32, %v877_v31  ;;  %v741_v44 = vld [vmem:[%s6658_s1 + $0x1188] sm:$0xff]  ;;  %v740_v53 = vld [vmem:[%s6658_s1 + $0x1180] sm:$0xff]  ;;  %2139 = vmatprep.subr.bf16.mxu0 %v1662_v38  ;;  %v1725_v54 = vpack.c.bf16 %v880_v43, %v876_v41  ;;  %2090 = vmatmul.mubr.bf16.vlgmr.msra.gmra.mxu0 %v3821_v48 }
  0x91   : > { %v745_v45 = vld [vmem:[%s6658_s1 + $0x11a8] sm:$0xff]  ;;  %v744_v34 = vld [vmem:[%s6658_s1 + $0x11a0] sm:$0xff]  ;;  %2140 = vmatpush1.bf16.msra.mxu0 %v1661_v52 }
  0x92   : > { %v869_v49 = vld [vmem:[%s6658_s1 + $0x1588] sm:$0xff]  ;;  %v1658_v55 = vpack.c.bf16 %v745_v45, %v741_v44  ;;  %v868_v56 = vld [vmem:[%s6658_s1 + $0x1580] sm:$0xff]  ;;  %2180 = vmatprep.subr.bf16.mxu1 %v1726_v42  ;;  %2131 = vmatmul.mubr.bf16.vlgmr.msra.gmra.mxu1 %v3831_v51  ;;  %v1657_v2 = vpack.c.bf16 %v744_v34, %v740_v53 }
  0x93   : > { %v873_v50 = vld [vmem:[%s6658_s1 + $0x15a8] sm:$0xff]  ;;  %v3843_v57 = vld [vmem:[%s3253_s27 + $0x20] sm:$0xff]  ;;  %2181 = vmatpush1.bf16.msra.mxu1 %v1725_v54 }
  0x94   : > { %v3846_v35 = vld [vmem:[%s3253_s27 + $0x28] sm:$0xff]  ;;  %v1722_v58 = vpack.c.bf16 %v873_v50, %v869_v49  ;;  %v872_v59 = vld [vmem:[%s6658_s1 + $0x15a0] sm:$0xff]  ;;  %v1345_v62 = vcombine.high %v3843_v57, %v3843_v57  ;;  %2141 = vmatprep.subr.bf16.mxu0 %v1658_v55 }
  0x95   : > { %v733_v60 = vld [vmem:[%s6658_s1 + $0x1148] sm:$0xff]  ;;  %v1346_v63 = vcombine.high %v3846_v35, %v3846_v35  ;;  %v1721_v5 = vpack.c.bf16 %v872_v59, %v868_v56  ;;  %v732_v7 = vld [vmem:[%s6658_s1 + $0x1140] sm:$0xff]  ;;  %2142 = vmatpush1.bf16.msra.mxu0 %v1657_v2 }
  0x96   : > { %v737_v61 = vld [vmem:[%s6658_s1 + $0x1168] sm:$0xff]  ;;  %v3869_v3 = vpack.c.bf16 %v1345_v62, %v1345_v62  ;;  %v736_v8 = vld [vmem:[%s6658_s1 + $0x1160] sm:$0xff]  ;;  %2182 = vmatprep.subr.bf16.mxu1 %v1722_v58 }
  0x97   : > { %v861_v0 = vld [vmem:[%s6658_s1 + $0x1548] sm:$0xff]  ;;  %v3871_v4 = vpack.c.bf16 %v1346_v63, %v1346_v63  ;;  %v1654_v6 = vpack.c.bf16 %v737_v61, %v733_v60  ;;  %v860_v9 = vld [vmem:[%s6658_s1 + $0x1540] sm:$0xff]  ;;  %v1653_v17 = vpack.c.bf16 %v736_v8, %v732_v7  ;;  %2183 = vmatpush1.bf16.msra.mxu1 %v1721_v5 }
  0x98   : > { %v865_v1 = vld [vmem:[%s6658_s1 + $0x1568] sm:$0xff]  ;;  %v864_v11 = vld [vmem:[%s6658_s1 + $0x1560] sm:$0xff]  ;;  %2171 = vmatprep.mubr.bf16.mxu0 %v3869_v3 }
  0x99   : > { %v1718_v10 = vpack.c.bf16 %v865_v1, %v861_v0  ;;  %v725_v12 = vld [vmem:[%s6658_s1 + $0x1108] sm:$0xff]  ;;  %2212 = vmatprep.mubr.bf16.mxu1 %v3871_v4  ;;  %2143 = vmatprep.subr.bf16.mxu0 %v1654_v6  ;;  %v1717_v18 = vpack.c.bf16 %v864_v11, %v860_v9  ;;  %v724_v22 = vld [vmem:[%s6658_s1 + $0x1100] sm:$0xff] }
  0x9a   : > { %v729_v13 = vld [vmem:[%s6658_s1 + $0x1128] sm:$0xff]  ;;  %v728_v24 = vld [vmem:[%s6658_s1 + $0x1120] sm:$0xff]  ;;  %2144 = vmatpush1.bf16.msra.mxu0 %v1653_v17 }
  0x9b   : > { %v853_v14 = vld [vmem:[%s6658_s1 + $0x1508] sm:$0xff]  ;;  %v1650_v21 = vpack.c.bf16 %v729_v13, %v725_v12  ;;  %v852_v25 = vld [vmem:[%s6658_s1 + $0x1500] sm:$0xff]  ;;  %2184 = vmatprep.subr.bf16.mxu1 %v1718_v10  ;;  %v1649_v31 = vpack.c.bf16 %v728_v24, %v724_v22 }
  0x9c   : > { %v857_v15 = vld [vmem:[%s6658_s1 + $0x1528] sm:$0xff]  ;;  %v856_v16 = vld [vmem:[%s6658_s1 + $0x1520] sm:$0xff]  ;;  %2185 = vmatpush1.bf16.msra.mxu1 %v1717_v18 }
  0x9d   : > { %v1714_v26 = vpack.c.bf16 %v857_v15, %v853_v14  ;;  %v717_v27 = vld [vmem:[%s6658_s1 + $0x10c8] sm:$0xff]  ;;  %2145 = vmatprep.subr.bf16.mxu0 %v1650_v21  ;;  %v1713_v32 = vpack.c.bf16 %v856_v16, %v852_v25  ;;  %v716_v37 = vld [vmem:[%s6658_s1 + $0x10c0] sm:$0xff] }
  0x9e   : > { %v721_v29 = vld [vmem:[%s6658_s1 + $0x10e8] sm:$0xff]  ;;  %v720_v38 = vld [vmem:[%s6658_s1 + $0x10e0] sm:$0xff]  ;;  %2146 = vmatpush1.bf16.msra.mxu0 %v1649_v31 }
  0x9f   : > { %v845_v20 = vld [vmem:[%s6658_s1 + $0x14c8] sm:$0xff]  ;;  %v1646_v36 = vpack.c.bf16 %v721_v29, %v717_v27  ;;  %v844_v39 = vld [vmem:[%s6658_s1 + $0x14c0] sm:$0xff]  ;;  %2186 = vmatprep.subr.bf16.mxu1 %v1714_v26  ;;  %v1645_v49 = vpack.c.bf16 %v720_v38, %v716_v37 }
  0xa0   : > { %v849_v30 = vld [vmem:[%s6658_s1 + $0x14e8] sm:$0xff]  ;;  %v848_v41 = vld [vmem:[%s6658_s1 + $0x14e0] sm:$0xff]  ;;  %2187 = vmatpush1.bf16.msra.mxu1 %v1713_v32 }
  0xa1   : > { %v1710_v40 = vpack.c.bf16 %v849_v30, %v845_v20  ;;  %v709_v42 = vld [vmem:[%s6658_s1 + $0x1088] sm:$0xff]  ;;  %2147 = vmatprep.subr.bf16.mxu0 %v1646_v36  ;;  %v1709_v50 = vpack.c.bf16 %v848_v41, %v844_v39  ;;  %v708_v53 = vld [vmem:[%s6658_s1 + $0x1080] sm:$0xff] }
  0xa2   : > { %v713_v43 = vld [vmem:[%s6658_s1 + $0x10a8] sm:$0xff]  ;;  %v712_v34 = vld [vmem:[%s6658_s1 + $0x10a0] sm:$0xff]  ;;  %2148 = vmatpush1.bf16.msra.mxu0 %v1645_v49 }
  0xa3   : > { %v837_v44 = vld [vmem:[%s6658_s1 + $0x1488] sm:$0xff]  ;;  %v1642_v52 = vpack.c.bf16 %v713_v43, %v709_v42  ;;  %v836_v54 = vld [vmem:[%s6658_s1 + $0x1480] sm:$0xff]  ;;  %2188 = vmatprep.subr.bf16.mxu1 %v1710_v40  ;;  %v1641_v62 = vpack.c.bf16 %v712_v34, %v708_v53 }
  0xa4   : > { %v841_v45 = vld [vmem:[%s6658_s1 + $0x14a8] sm:$0xff]  ;;  %v840_v56 = vld [vmem:[%s6658_s1 + $0x14a0] sm:$0xff]  ;;  %2189 = vmatpush1.bf16.msra.mxu1 %v1709_v50 }
  0xa5   : > { %v1706_v55 = vpack.c.bf16 %v841_v45, %v837_v44  ;;  %v701_v58 = vld [vmem:[%s6658_s1 + $0x1048] sm:$0xff]  ;;  %2149 = vmatprep.subr.bf16.mxu0 %v1642_v52  ;;  %v1705_v63 = vpack.c.bf16 %v840_v56, %v836_v54  ;;  %v700_v1 = vld [vmem:[%s6658_s1 + $0x1040] sm:$0xff] }
  0xa6   : > { %v705_v59 = vld [vmem:[%s6658_s1 + $0x1068] sm:$0xff]  ;;  %v704_v2 = vld [vmem:[%s6658_s1 + $0x1060] sm:$0xff]  ;;  %2150 = vmatpush1.bf16.msra.mxu0 %v1641_v62 }
  0xa7   : > { %v829_v60 = vld [vmem:[%s6658_s1 + $0x1448] sm:$0xff]  ;;  %v1638_v0 = vpack.c.bf16 %v705_v59, %v701_v58  ;;  %v828_v5 = vld [vmem:[%s6658_s1 + $0x1440] sm:$0xff]  ;;  %2190 = vmatprep.subr.bf16.mxu1 %v1706_v55  ;;  %v1637_v12 = vpack.c.bf16 %v704_v2, %v700_v1 }
  0xa8   : > { %v833_v61 = vld [vmem:[%s6658_s1 + $0x1468] sm:$0xff]  ;;  %v832_v7 = vld [vmem:[%s6658_s1 + $0x1460] sm:$0xff]  ;;  %2191 = vmatpush1.bf16.msra.mxu1 %v1705_v63 }
  0xa9   : > { %v1702_v6 = vpack.c.bf16 %v833_v61, %v829_v60  ;;  %v693_v8 = vld [vmem:[%s6658_s1 + $0x1008] sm:$0xff]  ;;  %2151 = vmatprep.subr.bf16.mxu0 %v1638_v0  ;;  %v1701_v13 = vpack.c.bf16 %v832_v7, %v828_v5  ;;  %v692_v15 = vld [vmem:[%s6658_s1 + $0x1000] sm:$0xff] }
  0xaa   : > { %v697_v9 = vld [vmem:[%s6658_s1 + $0x1028] sm:$0xff]  ;;  %v696_v17 = vld [vmem:[%s6658_s1 + $0x1020] sm:$0xff]  ;;  %2152 = vmatpush1.bf16.msra.mxu0 %v1637_v12 }
  0xab   : > { %v821_v10 = vld [vmem:[%s6658_s1 + $0x1408] sm:$0xff]  ;;  %v1634_v14 = vpack.c.bf16 %v697_v9, %v693_v8  ;;  %v820_v18 = vld [vmem:[%s6658_s1 + $0x1400] sm:$0xff]  ;;  %2192 = vmatprep.subr.bf16.mxu1 %v1702_v6  ;;  %v1633_v27 = vpack.c.bf16 %v696_v17, %v692_v15 }
  0xac   : > { %v825_v11 = vld [vmem:[%s6658_s1 + $0x1428] sm:$0xff]  ;;  %v824_v22 = vld [vmem:[%s6658_s1 + $0x1420] sm:$0xff]  ;;  %2193 = vmatpush1.bf16.msra.mxu1 %v1701_v13 }
  0xad   : > { %v1698_v21 = vpack.c.bf16 %v825_v11, %v821_v10  ;;  %v813_v24 = vld [vmem:[%s6658_s1 + $0x13c8] sm:$0xff]  ;;  %2153 = vmatprep.subr.bf16.mxu0 %v1634_v14  ;;  %v1697_v29 = vpack.c.bf16 %v824_v22, %v820_v18  ;;  %v812_v30 = vld [vmem:[%s6658_s1 + $0x13c0] sm:$0xff] }
  0xae   : > { %v817_v25 = vld [vmem:[%s6658_s1 + $0x13e8] sm:$0xff]  ;;  %v816_v31 = vld [vmem:[%s6658_s1 + $0x13e0] sm:$0xff]  ;;  %2154 = vmatpush1.bf16.msra.mxu0 %v1633_v27 }
  0xaf   : > { %v941_v26 = vld [vmem:[%s6658_s1 + $0x17c8] sm:$0xff]  ;;  %v1694_v20 = vpack.c.bf16 %v817_v25, %v813_v24  ;;  %v940_v32 = vld [vmem:[%s6658_s1 + $0x17c0] sm:$0xff]  ;;  %2194 = vmatprep.subr.bf16.mxu1 %v1698_v21  ;;  %v1693_v42 = vpack.c.bf16 %v816_v31, %v812_v30 }
  0xb0   : > { %v945_v16 = vld [vmem:[%s6658_s1 + $0x17e8] sm:$0xff]  ;;  %v944_v37 = vld [vmem:[%s6658_s1 + $0x17e0] sm:$0xff]  ;;  %2195 = vmatpush1.bf16.msra.mxu1 %v1697_v29 }
  0xb1   : > { %v1758_v36 = vpack.c.bf16 %v945_v16, %v941_v26  ;;  %v805_v38 = vld [vmem:[%s6658_s1 + $0x1388] sm:$0xff]  ;;  %2155 = vmatprep.subr.bf16.mxu0 %v1694_v20  ;;  %v1757_v43 = vpack.c.bf16 %v944_v37, %v940_v32  ;;  %v804_v45 = vld [vmem:[%s6658_s1 + $0x1380] sm:$0xff] }
  0xb2   : > { %v809_v39 = vld [vmem:[%s6658_s1 + $0x13a8] sm:$0xff]  ;;  %v808_v49 = vld [vmem:[%s6658_s1 + $0x13a0] sm:$0xff]  ;;  %2156 = vmatpush2.bf16.msra.mxu0 %v1693_v42 }
  0xb3   : > { %v933_v40 = vld [vmem:[%s6658_s1 + $0x1788] sm:$0xff]  ;;  %v1690_v44 = vpack.c.bf16 %v809_v39, %v805_v38  ;;  %v932_v50 = vld [vmem:[%s6658_s1 + $0x1780] sm:$0xff]  ;;  %2196 = vmatprep.subr.bf16.mxu1 %v1758_v36  ;;  %v1689_v58 = vpack.c.bf16 %v808_v49, %v804_v45 }
  0xb4   : > { %v937_v41 = vld [vmem:[%s6658_s1 + $0x17a8] sm:$0xff]  ;;  %v936_v53 = vld [vmem:[%s6658_s1 + $0x17a0] sm:$0xff]  ;;  %2197 = vmatpush2.bf16.msra.mxu1 %v1757_v43 }
  0xb5   : > { %v1754_v52 = vpack.c.bf16 %v937_v41, %v933_v40  ;;  %v797_v34 = vld [vmem:[%s6658_s1 + $0x1348] sm:$0xff]  ;;  %2157 = vmatprep.subr.bf16.mxu0 %v1690_v44  ;;  %v1753_v59 = vpack.c.bf16 %v936_v53, %v932_v50  ;;  %v796_v61 = vld [vmem:[%s6658_s1 + $0x1340] sm:$0xff] }
  0xb6   : > { %v801_v54 = vld [vmem:[%s6658_s1 + $0x1368] sm:$0xff]  ;;  %v800_v62 = vld [vmem:[%s6658_s1 + $0x1360] sm:$0xff]  ;;  %2158 = vmatpush2.bf16.msra.mxu0 %v1689_v58 }
  0xb7   : > { %v925_v55 = vld [vmem:[%s6658_s1 + $0x1748] sm:$0xff]  ;;  %v1686_v60 = vpack.c.bf16 %v801_v54, %v797_v34  ;;  %v924_v63 = vld [vmem:[%s6658_s1 + $0x1740] sm:$0xff]  ;;  %2198 = vmatprep.subr.bf16.mxu1 %v1754_v52  ;;  %v1685_v8 = vpack.c.bf16 %v800_v62, %v796_v61 }
  0xb8   : > { %v929_v56 = vld [vmem:[%s6658_s1 + $0x1768] sm:$0xff]  ;;  %v928_v1 = vld [vmem:[%s6658_s1 + $0x1760] sm:$0xff]  ;;  %2199 = vmatpush2.bf16.msra.mxu1 %v1753_v59 }
  0xb9   : > { %v1750_v0 = vpack.c.bf16 %v929_v56, %v925_v55  ;;  %v789_v2 = vld [vmem:[%s6658_s1 + $0x1308] sm:$0xff]  ;;  %2159 = vmatprep.subr.bf16.mxu0 %v1686_v60  ;;  %v1749_v9 = vpack.c.bf16 %v928_v1, %v924_v63  ;;  %v788_v11 = vld [vmem:[%s6658_s1 + $0x1300] sm:$0xff] }
  0xba   : > { %v793_v5 = vld [vmem:[%s6658_s1 + $0x1328] sm:$0xff]  ;;  %v792_v12 = vld [vmem:[%s6658_s1 + $0x1320] sm:$0xff]  ;;  %2160 = vmatpush2.bf16.msra.mxu0 %v1685_v8 }
  0xbb   : > { %v917_v6 = vld [vmem:[%s6658_s1 + $0x1708] sm:$0xff]  ;;  %v1682_v10 = vpack.c.bf16 %v793_v5, %v789_v2  ;;  %v916_v13 = vld [vmem:[%s6658_s1 + $0x1700] sm:$0xff]  ;;  %2200 = vmatprep.subr.bf16.mxu1 %v1750_v0  ;;  %v1681_v24 = vpack.c.bf16 %v792_v12, %v788_v11 }
  0xbc   : > { %v921_v7 = vld [vmem:[%s6658_s1 + $0x1728] sm:$0xff]  ;;  %v920_v15 = vld [vmem:[%s6658_s1 + $0x1720] sm:$0xff]  ;;  %2201 = vmatpush2.bf16.msra.mxu1 %v1749_v9 }
  0xbd   : > { %v1746_v14 = vpack.c.bf16 %v921_v7, %v917_v6  ;;  %v781_v17 = vld [vmem:[%s6658_s1 + $0x12c8] sm:$0xff]  ;;  %2161 = vmatprep.subr.bf16.mxu0 %v1682_v10  ;;  %v1745_v25 = vpack.c.bf16 %v920_v15, %v916_v13  ;;  %v780_v16 = vld [vmem:[%s6658_s1 + $0x12c0] sm:$0xff] }
  0xbe   : > { %v785_v18 = vld [vmem:[%s6658_s1 + $0x12e8] sm:$0xff]  ;;  %v784_v27 = vld [vmem:[%s6658_s1 + $0x12e0] sm:$0xff]  ;;  %2162 = vmatpush2.bf16.msra.mxu0 %v1681_v24 }
  0xbf   : > { %v909_v21 = vld [vmem:[%s6658_s1 + $0x16c8] sm:$0xff]  ;;  %v1678_v26 = vpack.c.bf16 %v785_v18, %v781_v17  ;;  %v908_v29 = vld [vmem:[%s6658_s1 + $0x16c0] sm:$0xff]  ;;  %2202 = vmatprep.subr.bf16.mxu1 %v1746_v14  ;;  %v1677_v38 = vpack.c.bf16 %v784_v27, %v780_v16  ;;  %v4212_v17 = vld [vmem:[%s3253_s27 + $0x30] sm:$0xff] }
  0xc0   : > { %v913_v22 = vld [vmem:[%s6658_s1 + $0x16e8] sm:$0xff]  ;;  %v912_v30 = vld [vmem:[%s6658_s1 + $0x16e0] sm:$0xff]  ;;  %2203 = vmatpush2.bf16.msra.mxu1 %v1745_v25 }
  0xc1   : > { %v1742_v20 = vpack.c.bf16 %v913_v22, %v909_v21  ;;  %v773_v31 = vld [vmem:[%s6658_s1 + $0x1288] sm:$0xff]  ;;  %2163 = vmatprep.subr.bf16.mxu0 %v1678_v26  ;;  %v1741_v39 = vpack.c.bf16 %v912_v30, %v908_v29  ;;  %v772_v41 = vld [vmem:[%s6658_s1 + $0x1280] sm:$0xff]  ;;  %v4215_v21 = vld [vmem:[%s3253_s27 + $0x38] sm:$0xff] }
  0xc2   : > { %v777_v32 = vld [vmem:[%s6658_s1 + $0x12a8] sm:$0xff]  ;;  %v776_v42 = vld [vmem:[%s6658_s1 + $0x12a0] sm:$0xff]  ;;  %2164 = vmatpush2.bf16.msra.mxu0 %v1677_v38  ;;  %v1348_v38 = vcombine.high %v4215_v21, %v4215_v21 }
  0xc3   : > { %v901_v36 = vld [vmem:[%s6658_s1 + $0x1688] sm:$0xff]  ;;  %v1674_v40 = vpack.c.bf16 %v777_v32, %v773_v31  ;;  %v900_v43 = vld [vmem:[%s6658_s1 + $0x1680] sm:$0xff]  ;;  %2204 = vmatprep.subr.bf16.mxu1 %v1742_v20  ;;  %v1673_v34 = vpack.c.bf16 %v776_v42, %v772_v41  ;;  %v1347_v31 = vcombine.high %v4212_v17, %v4212_v17  ;;  %v4239_v32 = vpack.c.bf16 %v3843_v57, %v3843_v57 }
  0xc4   : > { %v905_v37 = vld [vmem:[%s6658_s1 + $0x16a8] sm:$0xff]  ;;  %v904_v45 = vld [vmem:[%s6658_s1 + $0x16a0] sm:$0xff]  ;;  %2205 = vmatpush2.bf16.msra.mxu1 %v1741_v39  ;;  %v4251_v39 = vpack.c.bf16 %v3846_v35, %v3846_v35 }
  0xc5   : > { %v1738_v44 = vpack.c.bf16 %v905_v37, %v901_v36  ;;  %v765_v49 = vld [vmem:[%s6658_s1 + $0x1248] sm:$0xff]  ;;  %2165 = vmatprep.subr.bf16.mxu0 %v1674_v40  ;;  %v1737_v54 = vpack.c.bf16 %v904_v45, %v900_v43  ;;  %v764_v56 = vld [vmem:[%s6658_s1 + $0x1240] sm:$0xff] }
  0xc6   : > { %v769_v50 = vld [vmem:[%s6658_s1 + $0x1268] sm:$0xff]  ;;  %v768_v58 = vld [vmem:[%s6658_s1 + $0x1260] sm:$0xff]  ;;  %2166 = vmatpush2.bf16.msra.mxu0 %v1673_v34 }
  0xc7   : > { %v893_v52 = vld [vmem:[%s6658_s1 + $0x1648] sm:$0xff]  ;;  %v1670_v55 = vpack.c.bf16 %v769_v50, %v765_v49  ;;  %v892_v59 = vld [vmem:[%s6658_s1 + $0x1640] sm:$0xff]  ;;  %2206 = vmatprep.subr.bf16.mxu1 %v1738_v44  ;;  %v1669_v2 = vpack.c.bf16 %v768_v58, %v764_v56 }
  0xc8   : > { %v897_v53 = vld [vmem:[%s6658_s1 + $0x1668] sm:$0xff]  ;;  %v896_v61 = vld [vmem:[%s6658_s1 + $0x1660] sm:$0xff]  ;;  %2207 = vmatpush2.bf16.msra.mxu1 %v1737_v54  ;;  %v4280_v54 = vpack.c.bf16 %v1348_v38, %v1348_v38 }
  0xc9   : > { %v1734_v60 = vpack.c.bf16 %v897_v53, %v893_v52  ;;  %v757_v62 = vld [vmem:[%s6658_s1 + $0x1208] sm:$0xff]  ;;  %2167 = vmatprep.subr.bf16.mxu0 %v1670_v55  ;;  %v1733_v5 = vpack.c.bf16 %v896_v61, %v892_v59  ;;  %v756_v7 = vld [vmem:[%s6658_s1 + $0x1200] sm:$0xff]  ;;  %v4271_v52 = vpack.c.bf16 %v1347_v31, %v1347_v31 }
  0xca   : > { %v761_v63 = vld [vmem:[%s6658_s1 + $0x1228] sm:$0xff]  ;;  %v760_v8 = vld [vmem:[%s6658_s1 + $0x1220] sm:$0xff]  ;;  %2168 = vmatpush2.bf16.msra.mxu0 %v1669_v2 }
  0xcb   : > { %v885_v0 = vld [vmem:[%s6658_s1 + $0x1608] sm:$0xff]  ;;  %v1666_v6 = vpack.c.bf16 %v761_v63, %v757_v62  ;;  %v884_v9 = vld [vmem:[%s6658_s1 + $0x1600] sm:$0xff]  ;;  %2208 = vmatprep.subr.bf16.mxu1 %v1734_v60  ;;  %v1665_v18 = vpack.c.bf16 %v760_v8, %v756_v7 }
  0xcc   : > { %v889_v1 = vld [vmem:[%s6658_s1 + $0x1628] sm:$0xff]  ;;  %v888_v11 = vld [vmem:[%s6658_s1 + $0x1620] sm:$0xff]  ;;  %2209 = vmatpush2.bf16.msra.mxu1 %v1733_v5 }
  0xcd   : > { %v1730_v10 = vpack.c.bf16 %v889_v1, %v885_v0  ;;  %v1005_v12 = vld [vmem:[%s6658_s1 + $0x19c8] sm:$0xff]  ;;  %2169 = vmatprep.subr.bf16.mxu0 %v1666_v6  ;;  %v1729_v22 = vpack.c.bf16 %v888_v11, %v884_v9  ;;  %v1004_v25 = vld [vmem:[%s6658_s1 + $0x19c0] sm:$0xff] }
  0xce   : > { %v1009_v13 = vld [vmem:[%s6658_s1 + $0x19e8] sm:$0xff]  ;;  %v1008_v26 = vld [vmem:[%s6658_s1 + $0x19e0] sm:$0xff]  ;;  %2170 = vmatpush2.bf16.msra.mxu0 %v1665_v18 }
  0xcf   : > { %v1133_v14 = vld [vmem:[%s6658_s1 + $0x1dc8] sm:$0xff]  ;;  %v1790_v24 = vpack.c.bf16 %v1009_v13, %v1005_v12  ;;  %v1132_v16 = vld [vmem:[%s6658_s1 + $0x1dc0] sm:$0xff]  ;;  %2210 = vmatprep.subr.bf16.mxu1 %v1730_v10  ;;  %v1789_v40 = vpack.c.bf16 %v1008_v26, %v1004_v25 }
  0xd0   : > { %v1137_v15 = vld [vmem:[%s6658_s1 + $0x1de8] sm:$0xff]  ;;  %v1136_v29 = vld [vmem:[%s6658_s1 + $0x1de0] sm:$0xff]  ;;  %2211 = vmatpush2.bf16.msra.mxu1 %v1729_v22 }
  0xd1   : > { %v1854_v27 = vpack.c.bf16 %v1137_v15, %v1133_v14  ;;  %v997_v20 = vld [vmem:[%s6658_s1 + $0x1988] sm:$0xff]  ;;  %2221 = vmatprep.subr.bf16.mxu0 %v1790_v24  ;;  %v1853_v57 = vpack.c.bf16 %v1136_v29, %v1132_v16  ;;  %v996_v42 = vld [vmem:[%s6658_s1 + $0x1980] sm:$0xff]  ;;  %2172 = vmatmul.mubr.bf16.vlgmr.msra.gmra.mxu0 %v4239_v32 }
  0xd2   : > { %v1001_v30 = vld [vmem:[%s6658_s1 + $0x19a8] sm:$0xff]  ;;  %v1000_v43 = vld [vmem:[%s6658_s1 + $0x19a0] sm:$0xff]  ;;  %2222 = vmatpush1.bf16.msra.mxu0 %v1789_v40  ;;  %2253 = vmatprep.mubr.bf16.mxu0 %v4271_v52 }
  0xd3   : > { %v1125_v36 = vld [vmem:[%s6658_s1 + $0x1d88] sm:$0xff]  ;;  %v1786_v41 = vpack.c.bf16 %v1001_v30, %v997_v20  ;;  %v1124_v44 = vld [vmem:[%s6658_s1 + $0x1d80] sm:$0xff]  ;;  %2262 = vmatprep.subr.bf16.mxu1 %v1854_v27  ;;  %2213 = vmatmul.mubr.bf16.vlgmr.msra.gmra.mxu1 %v4251_v39  ;;  %v1785_v55 = vpack.c.bf16 %v1000_v43, %v996_v42 }
  0xd4   : > { %v1129_v37 = vld [vmem:[%s6658_s1 + $0x1da8] sm:$0xff]  ;;  %v1128_v45 = vld [vmem:[%s6658_s1 + $0x1da0] sm:$0xff]  ;;  %2263 = vmatpush1.bf16.msra.mxu1 %v1853_v57  ;;  %2294 = vmatprep.mubr.bf16.mxu1 %v4280_v54 }
  0xd5   : > { %v1850_v35 = vpack.c.bf16 %v1129_v37, %v1125_v36  ;;  %v989_v49 = vld [vmem:[%s6658_s1 + $0x1948] sm:$0xff]  ;;  %2223 = vmatprep.subr.bf16.mxu0 %v1786_v41  ;;  %v1849_v56 = vpack.c.bf16 %v1128_v45, %v1124_v44  ;;  %v988_v59 = vld [vmem:[%s6658_s1 + $0x1940] sm:$0xff] }
  0xd6   : > { %v993_v50 = vld [vmem:[%s6658_s1 + $0x1968] sm:$0xff]  ;;  %v992_v60 = vld [vmem:[%s6658_s1 + $0x1960] sm:$0xff]  ;;  %2224 = vmatpush1.bf16.msra.mxu0 %v1785_v55 }
  0xd7   : > { %v1117_v53 = vld [vmem:[%s6658_s1 + $0x1d48] sm:$0xff]  ;;  %v1782_v58 = vpack.c.bf16 %v993_v50, %v989_v49  ;;  %v1116_v61 = vld [vmem:[%s6658_s1 + $0x1d40] sm:$0xff]  ;;  %2264 = vmatprep.subr.bf16.mxu1 %v1850_v35  ;;  %v1781_v6 = vpack.c.bf16 %v992_v60, %v988_v59 }
  0xd8   : > { %v1121_v34 = vld [vmem:[%s6658_s1 + $0x1d68] sm:$0xff]  ;;  %v1120_v63 = vld [vmem:[%s6658_s1 + $0x1d60] sm:$0xff]  ;;  %2265 = vmatpush1.bf16.msra.mxu1 %v1849_v56 }
  0xd9   : > { %v1846_v62 = vpack.c.bf16 %v1121_v34, %v1117_v53  ;;  %v981_v0 = vld [vmem:[%s6658_s1 + $0x1908] sm:$0xff]  ;;  %2225 = vmatprep.subr.bf16.mxu0 %v1782_v58  ;;  %v1845_v7 = vpack.c.bf16 %v1120_v63, %v1116_v61  ;;  %v980_v9 = vld [vmem:[%s6658_s1 + $0x1900] sm:$0xff] }
  0xda   : > { %v985_v1 = vld [vmem:[%s6658_s1 + $0x1928] sm:$0xff]  ;;  %v984_v10 = vld [vmem:[%s6658_s1 + $0x1920] sm:$0xff]  ;;  %2226 = vmatpush1.bf16.msra.mxu0 %v1781_v6 }
  0xdb   : > { %v1109_v2 = vld [vmem:[%s6658_s1 + $0x1d08] sm:$0xff]  ;;  %v1778_v8 = vpack.c.bf16 %v985_v1, %v981_v0  ;;  %v1108_v11 = vld [vmem:[%s6658_s1 + $0x1d00] sm:$0xff]  ;;  %2266 = vmatprep.subr.bf16.mxu1 %v1846_v62  ;;  %v1777_v24 = vpack.c.bf16 %v984_v10, %v980_v9 }
  0xdc   : > { %v1113_v5 = vld [vmem:[%s6658_s1 + $0x1d28] sm:$0xff]  ;;  %v1112_v13 = vld [vmem:[%s6658_s1 + $0x1d20] sm:$0xff]  ;;  %2267 = vmatpush1.bf16.msra.mxu1 %v1845_v7 }
  0xdd   : > { %v1842_v12 = vpack.c.bf16 %v1113_v5, %v1109_v2  ;;  %v973_v14 = vld [vmem:[%s6658_s1 + $0x18c8] sm:$0xff]  ;;  %2227 = vmatprep.subr.bf16.mxu0 %v1778_v8  ;;  %v1841_v25 = vpack.c.bf16 %v1112_v13, %v1108_v11  ;;  %v972_v16 = vld [vmem:[%s6658_s1 + $0x18c0] sm:$0xff] }
  0xde   : > { %v977_v15 = vld [vmem:[%s6658_s1 + $0x18e8] sm:$0xff]  ;;  %v976_v27 = vld [vmem:[%s6658_s1 + $0x18e0] sm:$0xff]  ;;  %2228 = vmatpush1.bf16.msra.mxu0 %v1777_v24 }
  0xdf   : > { %v1101_v18 = vld [vmem:[%s6658_s1 + $0x1cc8] sm:$0xff]  ;;  %v1774_v26 = vpack.c.bf16 %v977_v15, %v973_v14  ;;  %v1100_v29 = vld [vmem:[%s6658_s1 + $0x1cc0] sm:$0xff]  ;;  %2268 = vmatprep.subr.bf16.mxu1 %v1842_v12  ;;  %v1773_v40 = vpack.c.bf16 %v976_v27, %v972_v16 }
  0xe0   : > { %v1105_v22 = vld [vmem:[%s6658_s1 + $0x1ce8] sm:$0xff]  ;;  %v1104_v30 = vld [vmem:[%s6658_s1 + $0x1ce0] sm:$0xff]  ;;  %2269 = vmatpush1.bf16.msra.mxu1 %v1841_v25 }
  0xe1   : > { %v1838_v20 = vpack.c.bf16 %v1105_v22, %v1101_v18  ;;  %v965_v31 = vld [vmem:[%s6658_s1 + $0x1888] sm:$0xff]  ;;  %2229 = vmatprep.subr.bf16.mxu0 %v1774_v26  ;;  %v1837_v57 = vpack.c.bf16 %v1104_v30, %v1100_v29  ;;  %v964_v42 = vld [vmem:[%s6658_s1 + $0x1880] sm:$0xff] }
  0xe2   : > { %v969_v36 = vld [vmem:[%s6658_s1 + $0x18a8] sm:$0xff]  ;;  %v968_v43 = vld [vmem:[%s6658_s1 + $0x18a0] sm:$0xff]  ;;  %2230 = vmatpush1.bf16.msra.mxu0 %v1773_v40 }
  0xe3   : > { %v1093_v37 = vld [vmem:[%s6658_s1 + $0x1c88] sm:$0xff]  ;;  %v1770_v41 = vpack.c.bf16 %v969_v36, %v965_v31  ;;  %v1092_v44 = vld [vmem:[%s6658_s1 + $0x1c80] sm:$0xff]  ;;  %2270 = vmatprep.subr.bf16.mxu1 %v1838_v20  ;;  %v1769_v55 = vpack.c.bf16 %v968_v43, %v964_v42 }
  0xe4   : > { %v1097_v38 = vld [vmem:[%s6658_s1 + $0x1ca8] sm:$0xff]  ;;  %v1096_v45 = vld [vmem:[%s6658_s1 + $0x1ca0] sm:$0xff]  ;;  %2271 = vmatpush1.bf16.msra.mxu1 %v1837_v57 }
  0xe5   : > { %v1834_v35 = vpack.c.bf16 %v1097_v38, %v1093_v37  ;;  %v957_v49 = vld [vmem:[%s6658_s1 + $0x1848] sm:$0xff]  ;;  %2231 = vmatprep.subr.bf16.mxu0 %v1770_v41  ;;  %v1833_v56 = vpack.c.bf16 %v1096_v45, %v1092_v44  ;;  %v956_v59 = vld [vmem:[%s6658_s1 + $0x1840] sm:$0xff] }
  0xe6   : > { %v961_v50 = vld [vmem:[%s6658_s1 + $0x1868] sm:$0xff]  ;;  %v960_v60 = vld [vmem:[%s6658_s1 + $0x1860] sm:$0xff]  ;;  %2232 = vmatpush1.bf16.msra.mxu0 %v1769_v55 }
  0xe7   : > { %v1085_v53 = vld [vmem:[%s6658_s1 + $0x1c48] sm:$0xff]  ;;  %v1766_v58 = vpack.c.bf16 %v961_v50, %v957_v49  ;;  %v1084_v61 = vld [vmem:[%s6658_s1 + $0x1c40] sm:$0xff]  ;;  %2272 = vmatprep.subr.bf16.mxu1 %v1834_v35  ;;  %v1765_v6 = vpack.c.bf16 %v960_v60, %v956_v59 }
  0xe8   : > { %v1089_v34 = vld [vmem:[%s6658_s1 + $0x1c68] sm:$0xff]  ;;  %v1088_v63 = vld [vmem:[%s6658_s1 + $0x1c60] sm:$0xff]  ;;  %2273 = vmatpush1.bf16.msra.mxu1 %v1833_v56 }
  0xe9   : > { %v1830_v62 = vpack.c.bf16 %v1089_v34, %v1085_v53  ;;  %v949_v0 = vld [vmem:[%s6658_s1 + $0x1808] sm:$0xff]  ;;  %2233 = vmatprep.subr.bf16.mxu0 %v1766_v58  ;;  %v1829_v7 = vpack.c.bf16 %v1088_v63, %v1084_v61  ;;  %v948_v9 = vld [vmem:[%s6658_s1 + $0x1800] sm:$0xff] }
  0xea   : > { %v953_v1 = vld [vmem:[%s6658_s1 + $0x1828] sm:$0xff]  ;;  %v952_v10 = vld [vmem:[%s6658_s1 + $0x1820] sm:$0xff]  ;;  %2234 = vmatpush1.bf16.msra.mxu0 %v1765_v6 }
  0xeb   : > { %v1077_v2 = vld [vmem:[%s6658_s1 + $0x1c08] sm:$0xff]  ;;  %v1762_v8 = vpack.c.bf16 %v953_v1, %v949_v0  ;;  %v1076_v11 = vld [vmem:[%s6658_s1 + $0x1c00] sm:$0xff]  ;;  %2274 = vmatprep.subr.bf16.mxu1 %v1830_v62  ;;  %v1761_v24 = vpack.c.bf16 %v952_v10, %v948_v9 }
  0xec   : > { %v1081_v5 = vld [vmem:[%s6658_s1 + $0x1c28] sm:$0xff]  ;;  %v1080_v13 = vld [vmem:[%s6658_s1 + $0x1c20] sm:$0xff]  ;;  %2275 = vmatpush1.bf16.msra.mxu1 %v1829_v7 }
  0xed   : > { %v1826_v12 = vpack.c.bf16 %v1081_v5, %v1077_v2  ;;  %v1069_v14 = vld [vmem:[%s6658_s1 + $0x1bc8] sm:$0xff]  ;;  %2235 = vmatprep.subr.bf16.mxu0 %v1762_v8  ;;  %v1825_v25 = vpack.c.bf16 %v1080_v13, %v1076_v11  ;;  %v1068_v16 = vld [vmem:[%s6658_s1 + $0x1bc0] sm:$0xff] }
  0xee   : > { %v1073_v15 = vld [vmem:[%s6658_s1 + $0x1be8] sm:$0xff]  ;;  %v1072_v27 = vld [vmem:[%s6658_s1 + $0x1be0] sm:$0xff]  ;;  %2236 = vmatpush1.bf16.msra.mxu0 %v1761_v24 }
  0xef   : > { %v1197_v18 = vld [vmem:[%s6658_s1 + $0x1fc8] sm:$0xff]  ;;  %v1822_v26 = vpack.c.bf16 %v1073_v15, %v1069_v14  ;;  %v1196_v29 = vld [vmem:[%s6658_s1 + $0x1fc0] sm:$0xff]  ;;  %2276 = vmatprep.subr.bf16.mxu1 %v1826_v12  ;;  %v1821_v40 = vpack.c.bf16 %v1072_v27, %v1068_v16 }
  0xf0   : > { %v1201_v22 = vld [vmem:[%s6658_s1 + $0x1fe8] sm:$0xff]  ;;  %v1200_v30 = vld [vmem:[%s6658_s1 + $0x1fe0] sm:$0xff]  ;;  %2277 = vmatpush1.bf16.msra.mxu1 %v1825_v25 }
  0xf1   : > { %v1886_v20 = vpack.c.bf16 %v1201_v22, %v1197_v18  ;;  %v1061_v31 = vld [vmem:[%s6658_s1 + $0x1b88] sm:$0xff]  ;;  %2237 = vmatprep.subr.bf16.mxu0 %v1822_v26  ;;  %v1885_v57 = vpack.c.bf16 %v1200_v30, %v1196_v29  ;;  %v1060_v42 = vld [vmem:[%s6658_s1 + $0x1b80] sm:$0xff] }
  0xf2   : > { %v1065_v36 = vld [vmem:[%s6658_s1 + $0x1ba8] sm:$0xff]  ;;  %v1064_v43 = vld [vmem:[%s6658_s1 + $0x1ba0] sm:$0xff]  ;;  %2238 = vmatpush2.bf16.msra.mxu0 %v1821_v40 }
  0xf3   : > { %v1189_v37 = vld [vmem:[%s6658_s1 + $0x1f88] sm:$0xff]  ;;  %v1818_v41 = vpack.c.bf16 %v1065_v36, %v1061_v31  ;;  %v1188_v44 = vld [vmem:[%s6658_s1 + $0x1f80] sm:$0xff]  ;;  %2278 = vmatprep.subr.bf16.mxu1 %v1886_v20  ;;  %v1817_v55 = vpack.c.bf16 %v1064_v43, %v1060_v42 }
  0xf4   : > { %v1193_v38 = vld [vmem:[%s6658_s1 + $0x1fa8] sm:$0xff]  ;;  %v1192_v45 = vld [vmem:[%s6658_s1 + $0x1fa0] sm:$0xff]  ;;  %2279 = vmatpush2.bf16.msra.mxu1 %v1885_v57 }
  0xf5   : > { %v1882_v35 = vpack.c.bf16 %v1193_v38, %v1189_v37  ;;  %v1053_v49 = vld [vmem:[%s6658_s1 + $0x1b48] sm:$0xff]  ;;  %2239 = vmatprep.subr.bf16.mxu0 %v1818_v41  ;;  %v1881_v56 = vpack.c.bf16 %v1192_v45, %v1188_v44  ;;  %v1052_v59 = vld [vmem:[%s6658_s1 + $0x1b40] sm:$0xff] }
  0xf6   : > { %v1057_v50 = vld [vmem:[%s6658_s1 + $0x1b68] sm:$0xff]  ;;  %v1056_v60 = vld [vmem:[%s6658_s1 + $0x1b60] sm:$0xff]  ;;  %2240 = vmatpush2.bf16.msra.mxu0 %v1817_v55 }
  0xf7   : > { %v1181_v53 = vld [vmem:[%s6658_s1 + $0x1f48] sm:$0xff]  ;;  %v1814_v58 = vpack.c.bf16 %v1057_v50, %v1053_v49  ;;  %v1180_v61 = vld [vmem:[%s6658_s1 + $0x1f40] sm:$0xff]  ;;  %2280 = vmatprep.subr.bf16.mxu1 %v1882_v35  ;;  %v1813_v6 = vpack.c.bf16 %v1056_v60, %v1052_v59 }
  0xf8   : > { %v1185_v34 = vld [vmem:[%s6658_s1 + $0x1f68] sm:$0xff]  ;;  %v1184_v63 = vld [vmem:[%s6658_s1 + $0x1f60] sm:$0xff]  ;;  %2281 = vmatpush2.bf16.msra.mxu1 %v1881_v56  ;;  %v1955_v56 = vlaneseq }
  0xf9   : > { %v1878_v62 = vpack.c.bf16 %v1185_v34, %v1181_v53  ;;  %v1045_v0 = vld [vmem:[%s6658_s1 + $0x1b08] sm:$0xff]  ;;  %2241 = vmatprep.subr.bf16.mxu0 %v1814_v58  ;;  %v1877_v7 = vpack.c.bf16 %v1184_v63, %v1180_v61  ;;  %v1044_v9 = vld [vmem:[%s6658_s1 + $0x1b00] sm:$0xff] }
  0xfa   : > { %v1049_v1 = vld [vmem:[%s6658_s1 + $0x1b28] sm:$0xff]  ;;  %v1048_v10 = vld [vmem:[%s6658_s1 + $0x1b20] sm:$0xff]  ;;  %2242 = vmatpush2.bf16.msra.mxu0 %v1813_v6 }
  0xfb   : > { %v1173_v2 = vld [vmem:[%s6658_s1 + $0x1f08] sm:$0xff]  ;;  %v1810_v8 = vpack.c.bf16 %v1049_v1, %v1045_v0  ;;  %v1172_v11 = vld [vmem:[%s6658_s1 + $0x1f00] sm:$0xff]  ;;  %2282 = vmatprep.subr.bf16.mxu1 %v1878_v62  ;;  %v1809_v24 = vpack.c.bf16 %v1048_v10, %v1044_v9 }
  0xfc   : > { %v1177_v5 = vld [vmem:[%s6658_s1 + $0x1f28] sm:$0xff]  ;;  %v1176_v13 = vld [vmem:[%s6658_s1 + $0x1f20] sm:$0xff]  ;;  %2283 = vmatpush2.bf16.msra.mxu1 %v1877_v7 }
  0xfd   : > { %v1874_v12 = vpack.c.bf16 %v1177_v5, %v1173_v2  ;;  %v1037_v14 = vld [vmem:[%s6658_s1 + $0x1ac8] sm:$0xff]  ;;  %2243 = vmatprep.subr.bf16.mxu0 %v1810_v8  ;;  %v1873_v25 = vpack.c.bf16 %v1176_v13, %v1172_v11  ;;  %v1036_v16 = vld [vmem:[%s6658_s1 + $0x1ac0] sm:$0xff]  ;;  %v4597_v8 = vshrl.u32 %v1955_v56, 7 }
  0xfe   : > { %v1041_v15 = vld [vmem:[%s6658_s1 + $0x1ae8] sm:$0xff]  ;;  %v1040_v27 = vld [vmem:[%s6658_s1 + $0x1ae0] sm:$0xff]  ;;  %2244 = vmatpush2.bf16.msra.mxu0 %v1809_v24  ;;  %v239_v24 = vld [vmem:[%s6658_s1 + $0x1d8] sm:$0xff] }
  0xff   : > { %v1165_v18 = vld [vmem:[%s6658_s1 + $0x1ec8] sm:$0xff]  ;;  %v1806_v26 = vpack.c.bf16 %v1041_v15, %v1037_v14  ;;  %v1164_v29 = vld [vmem:[%s6658_s1 + $0x1ec0] sm:$0xff]  ;;  %2284 = vmatprep.subr.bf16.mxu1 %v1874_v12  ;;  %v1805_v40 = vpack.c.bf16 %v1040_v27, %v1036_v16 }
 0x100   : > { %v1169_v22 = vld [vmem:[%s6658_s1 + $0x1ee8] sm:$0xff]  ;;  %v1168_v30 = vld [vmem:[%s6658_s1 + $0x1ee0] sm:$0xff]  ;;  %2285 = vmatpush2.bf16.msra.mxu1 %v1873_v25  ;;  %v243_v25 = vld [vmem:[%s6658_s1 + $0x1f8] sm:$0xff] }
 0x101   : > { %v1870_v20 = vpack.c.bf16 %v1169_v22, %v1165_v18  ;;  %v1029_v31 = vld [vmem:[%s6658_s1 + $0x1a88] sm:$0xff]  ;;  %2245 = vmatprep.subr.bf16.mxu0 %v1806_v26  ;;  %v1869_v57 = vpack.c.bf16 %v1168_v30, %v1164_v29  ;;  %v1028_v42 = vld [vmem:[%s6658_s1 + $0x1a80] sm:$0xff]  ;;  %v1957_v29 = vsub.s32 0, %v4597_v8 }
 0x102   : > { %v1033_v36 = vld [vmem:[%s6658_s1 + $0x1aa8] sm:$0xff]  ;;  %v1032_v43 = vld [vmem:[%s6658_s1 + $0x1aa0] sm:$0xff]  ;;  %2246 = vmatpush2.bf16.msra.mxu0 %v1805_v40  ;;  %v242_v40 = vld [vmem:[%s6658_s1 + $0x1f0] sm:$0xff] }
 0x103   : > { %v1157_v37 = vld [vmem:[%s6658_s1 + $0x1e88] sm:$0xff]  ;;  %v1802_v41 = vpack.c.bf16 %v1033_v36, %v1029_v31  ;;  %v1156_v44 = vld [vmem:[%s6658_s1 + $0x1e80] sm:$0xff]  ;;  %2286 = vmatprep.subr.bf16.mxu1 %v1870_v20  ;;  %v1801_v55 = vpack.c.bf16 %v1032_v43, %v1028_v42 }
 0x104   : > { %v1161_v38 = vld [vmem:[%s6658_s1 + $0x1ea8] sm:$0xff]  ;;  %v1160_v45 = vld [vmem:[%s6658_s1 + $0x1ea0] sm:$0xff]  ;;  %2287 = vmatpush2.bf16.msra.mxu1 %v1869_v57  ;;  %v1961_v57 = vsub.s32 1, %v4597_v8 }
 0x105   : > { %v1866_v35 = vpack.c.bf16 %v1161_v38, %v1157_v37  ;;  %v1021_v49 = vld [vmem:[%s6658_s1 + $0x1a48] sm:$0xff]  ;;  %2247 = vmatprep.subr.bf16.mxu0 %v1802_v41  ;;  %v1865_v58 = vpack.c.bf16 %v1160_v45, %v1156_v44  ;;  %v1020_v60 = vld [vmem:[%s6658_s1 + $0x1a40] sm:$0xff]  ;;  %v238_v37 = vld [vmem:[%s6658_s1 + $0x1d0] sm:$0xff]  ;;  %v1408_v38 = vpack.c.bf16 %v243_v25, %v239_v24  ;;  %v4653_v44 = vpack.c.bf16 %v4212_v17, %v4212_v17 }
 0x106   : > { %v1025_v50 = vld [vmem:[%s6658_s1 + $0x1a68] sm:$0xff]  ;;  %v1024_v61 = vld [vmem:[%s6658_s1 + $0x1a60] sm:$0xff]  ;;  %2248 = vmatpush2.bf16.msra.mxu0 %v1801_v55  ;;  %v235_v45 = vld [vmem:[%s6658_s1 + $0x1b8] sm:$0xff] }
 0x107   : > { %v1149_v53 = vld [vmem:[%s6658_s1 + $0x1e48] sm:$0xff]  ;;  %v1798_v59 = vpack.c.bf16 %v1025_v50, %v1021_v49  ;;  %v1148_v62 = vld [vmem:[%s6658_s1 + $0x1e40] sm:$0xff]  ;;  %2288 = vmatprep.subr.bf16.mxu1 %v1866_v35  ;;  %v1797_v7 = vpack.c.bf16 %v1024_v61, %v1020_v60  ;;  %v231_v35 = vld [vmem:[%s6658_s1 + $0x198] sm:$0xff]  ;;  %v4663_v49 = vpack.c.bf16 %v4215_v21, %v4215_v21 }
 0x108   : > { %v1153_v34 = vld [vmem:[%s6658_s1 + $0x1e68] sm:$0xff]  ;;  %v1152_v0 = vld [vmem:[%s6658_s1 + $0x1e60] sm:$0xff]  ;;  %2289 = vmatpush2.bf16.msra.mxu1 %v1865_v58  ;;  %v230_v58 = vld [vmem:[%s6658_s1 + $0x190] sm:$0xff] }
 0x109   : > { %v1862_v63 = vpack.c.bf16 %v1153_v34, %v1149_v53  ;;  %v1013_v1 = vld [vmem:[%s6658_s1 + $0x1a08] sm:$0xff]  ;;  %2249 = vmatprep.subr.bf16.mxu0 %v1798_v59  ;;  %v1861_v9 = vpack.c.bf16 %v1152_v0, %v1148_v62  ;;  %v1012_v11 = vld [vmem:[%s6658_s1 + $0x1a00] sm:$0xff]  ;;  %v1407_v34 = vpack.c.bf16 %v242_v40, %v238_v37  ;;  %v1404_v59 = vpack.c.bf16 %v235_v45, %v231_v35  ;;  %v234_v60 = vld [vmem:[%s6658_s1 + $0x1b0] sm:$0xff] }
 0x10a   : > { %v1017_v2 = vld [vmem:[%s6658_s1 + $0x1a28] sm:$0xff]  ;;  %v1016_v12 = vld [vmem:[%s6658_s1 + $0x1a20] sm:$0xff]  ;;  %2250 = vmatpush2.bf16.msra.mxu0 %v1797_v7  ;;  %v226_v25 = vld [vmem:[%s6658_s1 + $0x170] sm:$0xff] }
 0x10b   : > { %v1141_v5 = vld [vmem:[%s6658_s1 + $0x1e08] sm:$0xff]  ;;  %v1794_v10 = vpack.c.bf16 %v1017_v2, %v1013_v1  ;;  %v1140_v13 = vld [vmem:[%s6658_s1 + $0x1e00] sm:$0xff]  ;;  %2290 = vmatprep.subr.bf16.mxu1 %v1862_v63  ;;  %v1793_v16 = vpack.c.bf16 %v1016_v12, %v1012_v11  ;;  %v223_v1 = vld [vmem:[%s6658_s1 + $0x158] sm:$0xff] }
 0x10c   : > { %v1145_v6 = vld [vmem:[%s6658_s1 + $0x1e28] sm:$0xff]  ;;  %v1144_v15 = vld [vmem:[%s6658_s1 + $0x1e20] sm:$0xff]  ;;  %2291 = vmatpush2.bf16.msra.mxu1 %v1861_v9  ;;  %v227_v2 = vld [vmem:[%s6658_s1 + $0x178] sm:$0xff] }
 0x10d   : > { %v1858_v14 = vpack.c.bf16 %v1145_v6, %v1141_v5  ;;  %v1261_v18 = vld [vmem:[%s6658_s1 + $0x21c8] sm:$0xff]  ;;  %v4624_v26 = vld [vmem:[%s3253_s27 + $0x40] sm:$0xff]  ;;  %2251 = vmatprep.subr.bf16.mxu0 %v1794_v10  ;;  %v1857_v20 = vpack.c.bf16 %v1144_v15, %v1140_v13  ;;  %v1403_v10 = vpack.c.bf16 %v234_v60, %v230_v58  ;;  %v1400_v24 = vpack.c.bf16 %v227_v2, %v223_v1  ;;  %v218_v45 = vld [vmem:[%s6658_s1 + $0x130] sm:$0xff] }
 0x10e   : > { %v1265_v22 = vld [vmem:[%s6658_s1 + $0x21e8] sm:$0xff]  ;;  %v1953_v27 = vld [vmem:[%s6659_s2] sm:$0xf]  ;;  %v1349_v43 = vcombine.high %v4624_v26, %v4624_v26  ;;  %2252 = vmatpush2.bf16.msra.mxu0 %v1793_v16  ;;  %v206_v60 = vld [vmem:[%s6658_s1 + $0xd0] sm:$0xff] }
 0x10f   : > { %v1918_v30 = vpack.c.bf16 %v1265_v22, %v1261_v18  ;;  %v1260_v31 = vld [vmem:[%s6658_s1 + $0x21c0] sm:$0xff]  ;;  %2292 = vmatprep.subr.bf16.mxu1 %v1858_v14  ;;  %v1253_v41 = vld [vmem:[%s6658_s1 + $0x2188] sm:$0xff]  ;;  %v1958_v50 = vrot.slane %v1953_v27, %v1957_v29  ;;  %v1962_v21 = vrot.slane %v1953_v27, %v1961_v57  ;;  %v222_v14 = vld [vmem:[%s6658_s1 + $0x150] sm:$0xff] }
 0x110   : > { %v1264_v36 = vld [vmem:[%s6658_s1 + $0x21e0] sm:$0xff]  ;;  %v1257_v42 = vld [vmem:[%s6658_s1 + $0x21a8] sm:$0xff]  ;;  %2293 = vmatpush2.bf16.msra.mxu1 %v1857_v20  ;;  %v4683_v63 = vpack.c.bf16 %v1349_v43, %v1349_v43  ;;  %v2009_v0 = vpop.f32.mrf.mxu0  ;;  %v215_v20 = vld [vmem:[%s6658_s1 + $0x118] sm:$0xff]  ;;  %v1399_v40 = vpack.c.bf16 %v226_v25, %v222_v14 }
 0x111   : > { %v1917_v53 = vpack.c.bf16 %v1264_v36, %v1260_v31  ;;  %2303 = vmatprep.subr.bf16.mxu0 %v1918_v30  ;;  %v1914_v17 = vpack.c.bf16 %v1257_v42, %v1253_v41  ;;  %v1252_v55 = vld [vmem:[%s6658_s1 + $0x2180] sm:$0xff]  ;;  %2344 = vmatprep.subr.bf16.mxu1 %v1408_v38  ;;  %v1245_v61 = vld [vmem:[%s6658_s1 + $0x2148] sm:$0xff]  ;;  %v2010_v5 = vadd.f32 %v2009_v0, %v1958_v50  ;;  %v219_v30 = vld [vmem:[%s6658_s1 + $0x138] sm:$0xff] }
 0x112   : > { %v1256_v56 = vld [vmem:[%s6658_s1 + $0x21a0] sm:$0xff]  ;;  %v1249_v62 = vld [vmem:[%s6658_s1 + $0x2168] sm:$0xff]  ;;  %2254 = vmatmul.mubr.bf16.vlgmr.msra.gmra.mxu0 %v4653_v44  ;;  %v2050_v6 = vpop.f32.mrf.mxu1  ;;  %v2011_v9 = vpop.f32.mrf.mxu0  ;;  %v1396_v35 = vpack.c.bf16 %v219_v30, %v215_v20  ;;  %v199_v2 = vld [vmem:[%s6658_s1 + $0x98] sm:$0xff] }
 0x113   : > { %2295 = vmatmul.mubr.bf16.vlgmr.msra.gmra.mxu1 %v4663_v49  ;;  %2304 = vmatpush1.bf16.msra.mxu0 %v1917_v53  ;;  %v1913_v7 = vpack.c.bf16 %v1256_v56, %v1252_v55  ;;  %v1910_v11 = vpack.c.bf16 %v1249_v62, %v1245_v61  ;;  %v1244_v12 = vld [vmem:[%s6658_s1 + $0x2140] sm:$0xff]  ;;  %v4702_v15 = vadd.f32 %v2050_v6, %v2010_v5  ;;  %v1237_v16 = vld [vmem:[%s6658_s1 + $0x2108] sm:$0xff]  ;;  %v210_v62 = vld [vmem:[%s6658_s1 + $0xf0] sm:$0xff] }
 0x114   : > { %2345 = vmatpush1.bf16.msra.mxu1 %v1407_v34  ;;  %2305 = vmatprep.subr.bf16.mxu0 %v1914_v17  ;;  %v1248_v13 = vld [vmem:[%s6658_s1 + $0x2160] sm:$0xff]  ;;  %v2012_v18 = vadd.f32 %v2011_v9, %v1962_v21  ;;  %v2052_v22 = vpop.f32.mrf.mxu1  ;;  %v1241_v27 = vld [vmem:[%s6658_s1 + $0x2128] sm:$0xff]  ;;  %v2013_v29 = vpop.f32.mrf.mxu0  ;;  %v207_v34 = vld [vmem:[%s6658_s1 + $0xd8] sm:$0xff] }
 0x115   : > { %2346 = vmatprep.subr.bf16.mxu1 %v1404_v59  ;;  %2335 = vmatprep.mubr.bf16.mxu0 %v4683_v63  ;;  %v1909_v37 = vpack.c.bf16 %v1248_v13, %v1244_v12  ;;  %v1906_v57 = vpack.c.bf16 %v1241_v27, %v1237_v16  ;;  %v1236_v41 = vld [vmem:[%s6658_s1 + $0x2100] sm:$0xff]  ;;  %v1229_v50 = vld [vmem:[%s6658_s1 + $0x20c8] sm:$0xff]  ;;  %v211_v17 = vld [vmem:[%s6658_s1 + $0xf8] sm:$0xff] }
 0x116   : > { %2376 = vmatprep.mubr.bf16.mxu1 %v3298_v28  ;;  %v4721_v31 = vadd.f32 %v2052_v22, %v2012_v18  ;;  %v2054_v36 = vpop.f32.mrf.mxu1  ;;  %v2014_v38 = vpop.f32.mrf.mxu0  ;;  %v1240_v42 = vld [vmem:[%s6658_s1 + $0x2120] sm:$0xff]  ;;  %v214_v28 = vld [vmem:[%s6658_s1 + $0x110] sm:$0xff]  ;;  %v1233_v53 = vld [vmem:[%s6658_s1 + $0x20e8] sm:$0xff]  ;;  %v1392_v61 = vpack.c.bf16 %v211_v17, %v207_v34 }
 0x117   : > { %2306 = vmatpush1.bf16.msra.mxu0 %v1913_v7  ;;  %v1905_v55 = vpack.c.bf16 %v1240_v42, %v1236_v41  ;;  %v1395_v56 = vpack.c.bf16 %v218_v45, %v214_v28  ;;  %v1902_v58 = vpack.c.bf16 %v1233_v53, %v1229_v50  ;;  %v1228_v21 = vld [vmem:[%s6658_s1 + $0x20c0] sm:$0xff]  ;;  %v1221_v0 = vld [vmem:[%s6658_s1 + $0x2088] sm:$0xff]  ;;  %v203_v5 = vld [vmem:[%s6658_s1 + $0xb8] sm:$0xff]  ;;  %v1391_v7 = vpack.c.bf16 %v210_v62, %v206_v60 }
 0x118   : > { %2347 = vmatpush1.bf16.msra.mxu1 %v1403_v10  ;;  %2307 = vmatprep.subr.bf16.mxu0 %v1910_v11  ;;  %v2055_v43 = vpop.f32.mrf.mxu1  ;;  %v1232_v59 = vld [vmem:[%s6658_s1 + $0x20e0] sm:$0xff]  ;;  %v1225_v1 = vld [vmem:[%s6658_s1 + $0x20a8] sm:$0xff]  ;;  %v198_v12 = vld [vmem:[%s6658_s1 + $0x90] sm:$0xff]  ;;  %v1388_v13 = vpack.c.bf16 %v203_v5, %v199_v2 }
 0x119   : > { %2348 = vmatprep.subr.bf16.mxu1 %v1400_v24  ;;  %v1901_v6 = vpack.c.bf16 %v1232_v59, %v1228_v21  ;;  %v1898_v9 = vpack.c.bf16 %v1225_v1, %v1221_v0  ;;  %v1220_v10 = vld [vmem:[%s6658_s1 + $0x2080] sm:$0xff]  ;;  %v202_v14 = vld [vmem:[%s6658_s1 + $0xb0] sm:$0xff]  ;;  %v1213_v18 = vld [vmem:[%s6658_s1 + $0x2048] sm:$0xff] }
 0x11a   : > { %v1224_v11 = vld [vmem:[%s6658_s1 + $0x20a0] sm:$0xff]  ;;  %v1217_v22 = vld [vmem:[%s6658_s1 + $0x2068] sm:$0xff]  ;;  %v191_v24 = vld [vmem:[%s6658_s1 + $0x58] sm:$0xff]  ;;  %v1387_v27 = vpack.c.bf16 %v202_v14, %v198_v12 }
 0x11b   : > { %2308 = vmatpush1.bf16.msra.mxu0 %v1909_v37  ;;  %v195_v25 = vld [vmem:[%s6658_s1 + $0x78] sm:$0xff]  ;;  %v1897_v16 = vpack.c.bf16 %v1224_v11, %v1220_v10  ;;  %v1894_v29 = vpack.c.bf16 %v1217_v22, %v1213_v18  ;;  %v1212_v20 = vld [vmem:[%s6658_s1 + $0x2040] sm:$0xff]  ;;  %v190_v36 = vld [vmem:[%s6658_s1 + $0x50] sm:$0xff] }
 0x11c   : > { %2349 = vmatpush1.bf16.msra.mxu1 %v1399_v40  ;;  %2309 = vmatprep.subr.bf16.mxu0 %v1906_v57  ;;  %v1216_v30 = vld [vmem:[%s6658_s1 + $0x2060] sm:$0xff]  ;;  %v1384_v37 = vpack.c.bf16 %v195_v25, %v191_v24  ;;  %v194_v38 = vld [vmem:[%s6658_s1 + $0x70] sm:$0xff]  ;;  %v1205_v40 = vld [vmem:[%s6658_s1 + $0x2008] sm:$0xff] }
 0x11d   : > { %2350 = vmatprep.subr.bf16.mxu1 %v1396_v35  ;;  %v1209_v57 = vld [vmem:[%s6658_s1 + $0x2028] sm:$0xff]  ;;  %v183_v41 = vld [vmem:[%s6658_s1 + $0x18] sm:$0xff]  ;;  %v1893_v28 = vpack.c.bf16 %v1216_v30, %v1212_v20  ;;  %v1383_v43 = vpack.c.bf16 %v194_v38, %v190_v36  ;;  %v1204_v45 = vld [vmem:[%s6658_s1 + $0x2000] sm:$0xff] }
 0x11e   : > { %v187_v42 = vld [vmem:[%s6658_s1 + $0x38] sm:$0xff]  ;;  %v1890_v35 = vpack.c.bf16 %v1209_v57, %v1205_v40  ;;  %v1208_v50 = vld [vmem:[%s6658_s1 + $0x2020] sm:$0xff]  ;;  %v182_v53 = vld [vmem:[%s6658_s1 + $0x10] sm:$0xff] }
 0x11f   : > { %2310 = vmatpush1.bf16.msra.mxu0 %v1905_v55  ;;  %v1380_v34 = vpack.c.bf16 %v187_v42, %v183_v41  ;;  %v186_v17 = vld [vmem:[%s6658_s1 + $0x30] sm:$0xff]  ;;  %v1325_v55 = vld [vmem:[%s6658_s1 + $0x23c8] sm:$0xff]  ;;  %v307_v21 = vld [vmem:[%s6658_s1 + $0x3f8] sm:$0xff]  ;;  %v1889_v59 = vpack.c.bf16 %v1208_v50, %v1204_v45 }
 0x120   : > { %2351 = vmatpush1.bf16.msra.mxu1 %v1395_v56  ;;  %2311 = vmatprep.subr.bf16.mxu0 %v1902_v58  ;;  %v1329_v56 = vld [vmem:[%s6658_s1 + $0x23e8] sm:$0xff]  ;;  %v303_v58 = vld [vmem:[%s6658_s1 + $0x3d8] sm:$0xff]  ;;  %v1379_v60 = vpack.c.bf16 %v186_v17, %v182_v53  ;;  %v1324_v62 = vld [vmem:[%s6658_s1 + $0x23c0] sm:$0xff] }
 0x121   : > { %2352 = vmatprep.subr.bf16.mxu1 %v1392_v61  ;;  %v1950_v61 = vpack.c.bf16 %v1329_v56, %v1325_v55  ;;  %v1328_v0 = vld [vmem:[%s6658_s1 + $0x23e0] sm:$0xff]  ;;  %v302_v1 = vld [vmem:[%s6658_s1 + $0x3d0] sm:$0xff]  ;;  %v1440_v2 = vpack.c.bf16 %v307_v21, %v303_v58  ;;  %v299_v10 = vld [vmem:[%s6658_s1 + $0x3b8] sm:$0xff] }
 0x122   : > { %v306_v5 = vld [vmem:[%s6658_s1 + $0x3f0] sm:$0xff]  ;;  %v1949_v11 = vpack.c.bf16 %v1328_v0, %v1324_v62  ;;  %v1316_v14 = vld [vmem:[%s6658_s1 + $0x2380] sm:$0xff]  ;;  %v291_v20 = vld [vmem:[%s6658_s1 + $0x378] sm:$0xff] }
 0x123   : > { %2312 = vmatpush1.bf16.msra.mxu0 %v1901_v6  ;;  %v1317_v6 = vld [vmem:[%s6658_s1 + $0x2388] sm:$0xff]  ;;  %v1439_v12 = vpack.c.bf16 %v306_v5, %v302_v1  ;;  %v1320_v18 = vld [vmem:[%s6658_s1 + $0x23a0] sm:$0xff]  ;;  %v294_v22 = vld [vmem:[%s6658_s1 + $0x390] sm:$0xff] }
 0x124   : > { %2353 = vmatpush1.bf16.msra.mxu1 %v1391_v7  ;;  %2313 = vmatprep.subr.bf16.mxu0 %v1898_v9  ;;  %v1321_v7 = vld [vmem:[%s6658_s1 + $0x23a8] sm:$0xff]  ;;  %v295_v9 = vld [vmem:[%s6658_s1 + $0x398] sm:$0xff]  ;;  %v298_v25 = vld [vmem:[%s6658_s1 + $0x3b0] sm:$0xff]  ;;  %v1945_v30 = vpack.c.bf16 %v1320_v18, %v1316_v14 }
 0x125   : > { %2354 = vmatprep.subr.bf16.mxu1 %v1388_v13  ;;  %v1946_v13 = vpack.c.bf16 %v1321_v7, %v1317_v6  ;;  %v1436_v24 = vpack.c.bf16 %v299_v10, %v295_v9  ;;  %v1435_v36 = vpack.c.bf16 %v298_v25, %v294_v22  ;;  %v1308_v38 = vld [vmem:[%s6658_s1 + $0x2340] sm:$0xff]  ;;  %v286_v57 = vld [vmem:[%s6658_s1 + $0x350] sm:$0xff]  ;;  %v283_v45 = vld [vmem:[%s6658_s1 + $0x338] sm:$0xff] }
 0x126   : > { %v1312_v40 = vld [vmem:[%s6658_s1 + $0x2360] sm:$0xff]  ;;  %v290_v42 = vld [vmem:[%s6658_s1 + $0x370] sm:$0xff]  ;;  %v275_v62 = vld [vmem:[%s6658_s1 + $0x2f8] sm:$0xff] }
 0x127   : > { %2314 = vmatpush1.bf16.msra.mxu0 %v1897_v16  ;;  %v1309_v16 = vld [vmem:[%s6658_s1 + $0x2348] sm:$0xff]  ;;  %v1941_v50 = vpack.c.bf16 %v1312_v40, %v1308_v38  ;;  %v1431_v53 = vpack.c.bf16 %v290_v42, %v286_v57  ;;  %v1300_v17 = vld [vmem:[%s6658_s1 + $0x2300] sm:$0xff]  ;;  %v278_v56 = vld [vmem:[%s6658_s1 + $0x310] sm:$0xff] }
 0x128   : > { %2355 = vmatpush1.bf16.msra.mxu1 %v1387_v27  ;;  %2315 = vmatprep.subr.bf16.mxu0 %v1894_v29  ;;  %v1313_v27 = vld [vmem:[%s6658_s1 + $0x2368] sm:$0xff]  ;;  %v287_v29 = vld [vmem:[%s6658_s1 + $0x358] sm:$0xff]  ;;  %v1304_v55 = vld [vmem:[%s6658_s1 + $0x2320] sm:$0xff] }
 0x129   : > { %2356 = vmatprep.subr.bf16.mxu1 %v1384_v37  ;;  %v1942_v37 = vpack.c.bf16 %v1313_v27, %v1309_v16  ;;  %v1432_v41 = vpack.c.bf16 %v291_v20, %v287_v29  ;;  %v282_v21 = vld [vmem:[%s6658_s1 + $0x330] sm:$0xff]  ;;  %v1937_v0 = vpack.c.bf16 %v1304_v55, %v1300_v17  ;;  %v1292_v5 = vld [vmem:[%s6658_s1 + $0x22c0] sm:$0xff]  ;;  %v267_v14 = vld [vmem:[%s6658_s1 + $0x2b8] sm:$0xff] }
 0x12a   : > { %v1427_v1 = vpack.c.bf16 %v282_v21, %v278_v56  ;;  %v1296_v6 = vld [vmem:[%s6658_s1 + $0x22e0] sm:$0xff]  ;;  %v270_v7 = vld [vmem:[%s6658_s1 + $0x2d0] sm:$0xff]  ;;  %v259_v38 = vld [vmem:[%s6658_s1 + $0x278] sm:$0xff] }
 0x12b   : > { %2316 = vmatpush1.bf16.msra.mxu0 %v1893_v28  ;;  %v1301_v28 = vld [vmem:[%s6658_s1 + $0x2308] sm:$0xff]  ;;  %v274_v10 = vld [vmem:[%s6658_s1 + $0x2f0] sm:$0xff]  ;;  %v1933_v18 = vpack.c.bf16 %v1296_v6, %v1292_v5  ;;  %v1284_v25 = vld [vmem:[%s6658_s1 + $0x2280] sm:$0xff] }
 0x12c   : > { %2357 = vmatpush1.bf16.msra.mxu1 %v1383_v43  ;;  %2317 = vmatprep.subr.bf16.mxu0 %v1890_v35  ;;  %v1305_v43 = vld [vmem:[%s6658_s1 + $0x2328] sm:$0xff]  ;;  %v279_v35 = vld [vmem:[%s6658_s1 + $0x318] sm:$0xff]  ;;  %v1423_v22 = vpack.c.bf16 %v274_v10, %v270_v7  ;;  %v1288_v16 = vld [vmem:[%s6658_s1 + $0x22a0] sm:$0xff] }
 0x12d   : > { %2358 = vmatprep.subr.bf16.mxu1 %v1380_v34  ;;  %v1938_v34 = vpack.c.bf16 %v1305_v43, %v1301_v28  ;;  %v1428_v58 = vpack.c.bf16 %v283_v45, %v279_v35  ;;  %v262_v27 = vld [vmem:[%s6658_s1 + $0x290] sm:$0xff]  ;;  %v1929_v40 = vpack.c.bf16 %v1288_v16, %v1284_v25  ;;  %v1276_v42 = vld [vmem:[%s6658_s1 + $0x2240] sm:$0xff]  ;;  %v251_v17 = vld [vmem:[%s6658_s1 + $0x238] sm:$0xff] }
 0x12e   : > { %v266_v20 = vld [vmem:[%s6658_s1 + $0x2b0] sm:$0xff]  ;;  %v1280_v28 = vld [vmem:[%s6658_s1 + $0x2260] sm:$0xff]  ;;  %v499_v5 = vld [vmem:[%s6658_s1 + $0x9f8] sm:$0xff] }
 0x12f   : > { %2318 = vmatpush1.bf16.msra.mxu0 %v1889_v59  ;;  %v1293_v59 = vld [vmem:[%s6658_s1 + $0x22c8] sm:$0xff]  ;;  %v1419_v57 = vpack.c.bf16 %v266_v20, %v262_v27  ;;  %v254_v43 = vld [vmem:[%s6658_s1 + $0x250] sm:$0xff]  ;;  %v1925_v55 = vpack.c.bf16 %v1280_v28, %v1276_v42  ;;  %v1268_v21 = vld [vmem:[%s6658_s1 + $0x2200] sm:$0xff] }
 0x130   : > { %2359 = vmatpush1.bf16.msra.mxu1 %v1379_v60  ;;  %2319 = vmatprep.subr.bf16.mxu0 %v1950_v61  ;;  %v1297_v60 = vld [vmem:[%s6658_s1 + $0x22e8] sm:$0xff]  ;;  %v271_v61 = vld [vmem:[%s6658_s1 + $0x2d8] sm:$0xff]  ;;  %v258_v45 = vld [vmem:[%s6658_s1 + $0x270] sm:$0xff] }
 0x131   : > { %2360 = vmatprep.subr.bf16.mxu1 %v1440_v2  ;;  %v1934_v2 = vpack.c.bf16 %v1297_v60, %v1293_v59  ;;  %v1424_v9 = vpack.c.bf16 %v275_v62, %v271_v61  ;;  %v1415_v56 = vpack.c.bf16 %v258_v45, %v254_v43  ;;  %v1272_v59 = vld [vmem:[%s6658_s1 + $0x2220] sm:$0xff]  ;;  %v246_v60 = vld [vmem:[%s6658_s1 + $0x210] sm:$0xff]  ;;  %v487_v25 = vld [vmem:[%s6658_s1 + $0x998] sm:$0xff] }
 0x132   : > { %v250_v62 = vld [vmem:[%s6658_s1 + $0x230] sm:$0xff]  ;;  %v1921_v6 = vpack.c.bf16 %v1272_v59, %v1268_v21  ;;  %v491_v16 = vld [vmem:[%s6658_s1 + $0x9b8] sm:$0xff] }
 0x133   : > { %2320 = vmatpush2.bf16.msra.mxu0 %v1949_v11  ;;  %v1285_v11 = vld [vmem:[%s6658_s1 + $0x2288] sm:$0xff]  ;;  %v1411_v7 = vpack.c.bf16 %v250_v62, %v246_v60  ;;  %v366_v10 = vld [vmem:[%s6658_s1 + $0x5d0] sm:$0xff]  ;;  %v479_v42 = vld [vmem:[%s6658_s1 + $0x958] sm:$0xff] }
 0x134   : > { %2361 = vmatpush2.bf16.msra.mxu1 %v1439_v12  ;;  %2321 = vmatprep.subr.bf16.mxu0 %v1946_v13  ;;  %v1289_v12 = vld [vmem:[%s6658_s1 + $0x22a8] sm:$0xff]  ;;  %v263_v13 = vld [vmem:[%s6658_s1 + $0x298] sm:$0xff]  ;;  %v482_v59 = vld [vmem:[%s6658_s1 + $0x970] sm:$0xff] }
 0x135   : > { %2362 = vmatprep.subr.bf16.mxu1 %v1436_v24  ;;  %v1930_v24 = vpack.c.bf16 %v1289_v12, %v1285_v11  ;;  %v1420_v29 = vpack.c.bf16 %v267_v14, %v263_v13  ;;  %v370_v11 = vld [vmem:[%s6658_s1 + $0x5f0] sm:$0xff]  ;;  %v483_v28 = vld [vmem:[%s6658_s1 + $0x978] sm:$0xff] }
 0x136   : > { %v494_v12 = vld [vmem:[%s6658_s1 + $0x9d0] sm:$0xff]  ;;  %v1471_v27 = vpack.c.bf16 %v370_v11, %v366_v10  ;;  %v1528_v21 = vpack.c.bf16 %v483_v28, %v479_v42  ;;  %v343_v60 = vld [vmem:[%s6658_s1 + $0x518] sm:$0xff] }
 0x137   : > { %2322 = vmatpush2.bf16.msra.mxu0 %v1945_v30  ;;  %v1277_v30 = vld [vmem:[%s6658_s1 + $0x2248] sm:$0xff]  ;;  %v498_v14 = vld [vmem:[%s6658_s1 + $0x9f0] sm:$0xff] }
 0x138   : > { %2363 = vmatpush2.bf16.msra.mxu1 %v1435_v36  ;;  %2323 = vmatprep.subr.bf16.mxu0 %v1942_v37  ;;  %v1281_v36 = vld [vmem:[%s6658_s1 + $0x2268] sm:$0xff]  ;;  %v255_v37 = vld [vmem:[%s6658_s1 + $0x258] sm:$0xff]  ;;  %v346_v10 = vld [vmem:[%s6658_s1 + $0x530] sm:$0xff] }
 0x139   : > { %2364 = vmatprep.subr.bf16.mxu1 %v1432_v41  ;;  %v1926_v41 = vpack.c.bf16 %v1281_v36, %v1277_v30  ;;  %v1416_v35 = vpack.c.bf16 %v259_v38, %v255_v37  ;;  %v358_v30 = vld [vmem:[%s6658_s1 + $0x590] sm:$0xff]  ;;  %v1532_v37 = vpack.c.bf16 %v491_v16, %v487_v25  ;;  %v467_v25 = vld [vmem:[%s6658_s1 + $0x8f8] sm:$0xff] }
 0x13a   : > { %v486_v36 = vld [vmem:[%s6658_s1 + $0x990] sm:$0xff] }
 0x13b   : > { %2324 = vmatpush2.bf16.msra.mxu0 %v1941_v50  ;;  %v1269_v50 = vld [vmem:[%s6658_s1 + $0x2208] sm:$0xff]  ;;  %v490_v38 = vld [vmem:[%s6658_s1 + $0x9b0] sm:$0xff] }
 0x13c   : > { %2365 = vmatpush2.bf16.msra.mxu1 %v1431_v53  ;;  %2325 = vmatprep.subr.bf16.mxu0 %v1938_v34  ;;  %v1273_v53 = vld [vmem:[%s6658_s1 + $0x2228] sm:$0xff]  ;;  %v247_v34 = vld [vmem:[%s6658_s1 + $0x218] sm:$0xff] }
 0x13d   : > { %2366 = vmatprep.subr.bf16.mxu1 %v1428_v58  ;;  %v1922_v58 = vpack.c.bf16 %v1273_v53, %v1269_v50  ;;  %v1412_v61 = vpack.c.bf16 %v251_v17, %v247_v34  ;;  %v1531_v53 = vpack.c.bf16 %v490_v38, %v486_v36  ;;  %v350_v17 = vld [vmem:[%s6658_s1 + $0x550] sm:$0xff]  ;;  %v327_v38 = vld [vmem:[%s6658_s1 + $0x498] sm:$0xff] }
 0x13f   : > { %2326 = vmatpush2.bf16.msra.mxu0 %v1937_v0  ;;  %v367_v0 = vld [vmem:[%s6658_s1 + $0x5d8] sm:$0xff] }
 0x140   : > { %2367 = vmatpush2.bf16.msra.mxu1 %v1427_v1  ;;  %2327 = vmatprep.subr.bf16.mxu0 %v1934_v2  ;;  %v371_v1 = vld [vmem:[%s6658_s1 + $0x5f8] sm:$0xff] }
 0x141   : > { %2368 = vmatprep.subr.bf16.mxu1 %v1424_v9  ;;  %v495_v2 = vld [vmem:[%s6658_s1 + $0x9d8] sm:$0xff]  ;;  %v1472_v9 = vpack.c.bf16 %v371_v1, %v367_v0 }
 0x142   : > { %v1536_v13 = vpack.c.bf16 %v499_v5, %v495_v2  ;;  %v475_v0 = vld [vmem:[%s6658_s1 + $0x938] sm:$0xff] }
 0x143   : > { %2328 = vmatpush2.bf16.msra.mxu0 %v1933_v18  ;;  %v359_v18 = vld [vmem:[%s6658_s1 + $0x598] sm:$0xff] }
 0x144   : > { %2369 = vmatpush2.bf16.msra.mxu1 %v1423_v22  ;;  %2329 = vmatprep.subr.bf16.mxu0 %v1930_v24  ;;  %v363_v22 = vld [vmem:[%s6658_s1 + $0x5b8] sm:$0xff]  ;;  %v5055_v24 = vpack.c.bf16 %v4624_v26, %v4624_v26  ;;  %v362_v26 = vld [vmem:[%s6658_s1 + $0x5b0] sm:$0xff] }
 0x145   : > { %2370 = vmatprep.subr.bf16.mxu1 %v1420_v29  ;;  %v1535_v29 = vpack.c.bf16 %v498_v14, %v494_v12  ;;  %v1468_v20 = vpack.c.bf16 %v363_v22, %v359_v18  ;;  %v1467_v45 = vpack.c.bf16 %v362_v26, %v358_v30  ;;  %v335_v14 = vld [vmem:[%s6658_s1 + $0x4d8] sm:$0xff]  ;;  %v338_v30 = vld [vmem:[%s6658_s1 + $0x4f0] sm:$0xff] }
 0x146   : > { %v339_v18 = vld [vmem:[%s6658_s1 + $0x4f8] sm:$0xff]  ;;  %v462_v26 = vld [vmem:[%s6658_s1 + $0x8d0] sm:$0xff] }
 0x147   : > { %2330 = vmatpush2.bf16.msra.mxu0 %v1929_v40  ;;  %v351_v40 = vld [vmem:[%s6658_s1 + $0x558] sm:$0xff] }
 0x148   : > { %2371 = vmatpush2.bf16.msra.mxu1 %v1419_v57  ;;  %2331 = vmatprep.subr.bf16.mxu0 %v1926_v41  ;;  %v355_v57 = vld [vmem:[%s6658_s1 + $0x578] sm:$0xff] }
 0x149   : > { %2372 = vmatprep.subr.bf16.mxu1 %v1416_v35  ;;  %v1464_v34 = vpack.c.bf16 %v355_v57, %v351_v40  ;;  %v463_v22 = vld [vmem:[%s6658_s1 + $0x8d8] sm:$0xff] }
 0x14a   : > { %v1520_v36 = vpack.c.bf16 %v467_v25, %v463_v22  ;;  %v331_v40 = vld [vmem:[%s6658_s1 + $0x4b8] sm:$0xff] }
 0x14b   : > { %2332 = vmatpush2.bf16.msra.mxu0 %v1925_v55  ;;  %v354_v55 = vld [vmem:[%s6658_s1 + $0x570] sm:$0xff]  ;;  %v455_v57 = vld [vmem:[%s6658_s1 + $0x898] sm:$0xff] }
 0x14c   : > { %2373 = vmatpush2.bf16.msra.mxu1 %v1415_v56  ;;  %2333 = vmatprep.subr.bf16.mxu0 %v1922_v58  ;;  %v1463_v5 = vpack.c.bf16 %v354_v55, %v350_v17  ;;  %v319_v17 = vld [vmem:[%s6658_s1 + $0x458] sm:$0xff] }
 0x14d   : > { %2374 = vmatprep.subr.bf16.mxu1 %v1412_v61  ;;  %v347_v61 = vld [vmem:[%s6658_s1 + $0x538] sm:$0xff] }
 0x14e   : > { %v323_v55 = vld [vmem:[%s6658_s1 + $0x478] sm:$0xff] }
 0x14f   : > { %2334 = vmatpush2.bf16.msra.mxu0 %v1921_v6  ;;  %v435_v22 = vld [vmem:[%s6658_s1 + $0x7f8] sm:$0xff] }
 0x150   : > { %2375 = vmatpush2.bf16.msra.mxu1 %v1411_v7  ;;  %2385 = vmatprep.subr.bf16.mxu0 %v1472_v9  ;;  %v2091_v41 = vpop.f32.mrf.mxu0  ;;  %v1460_v7 = vpack.c.bf16 %v347_v61, %v343_v60  ;;  %v342_v9 = vld [vmem:[%s6658_s1 + $0x510] sm:$0xff]  ;;  %v559_v25 = vld [vmem:[%s6658_s1 + $0xbd8] sm:$0xff] }
 0x151   : > { %2426 = vmatprep.subr.bf16.mxu1 %v1536_v13  ;;  %v2092_v43 = vadd.f32 %v2091_v41, %v4702_v15  ;;  %v478_v15 = vld [vmem:[%s6658_s1 + $0x950] sm:$0xff]  ;;  %v1459_v16 = vpack.c.bf16 %v346_v10, %v342_v9  ;;  %v459_v41 = vld [vmem:[%s6658_s1 + $0x8b8] sm:$0xff] }
 0x152   : > { %2336 = vmatmul.mubr.bf16.vlgmr.msra.gmra.mxu0 %v5055_v24  ;;  %v2132_v35 = vpop.f32.mrf.mxu1  ;;  %v2093_v50 = vpop.f32.mrf.mxu0  ;;  %v474_v13 = vld [vmem:[%s6658_s1 + $0x930] sm:$0xff] }
 0x153   : > { %2377 = vmatmul.mubr.bf16.vlgmr.msra.gmra.mxu1 %v3411_v19  ;;  %2386 = vmatpush1.bf16.msra.mxu0 %v1471_v27  ;;  %v5099_v19 = vadd.f32 %v2132_v35, %v2092_v43  ;;  %v2094_v56 = vadd.f32 %v2093_v50, %v4721_v31  ;;  %v471_v31 = vld [vmem:[%s6658_s1 + $0x918] sm:$0xff]  ;;  %v1452_v43 = vpack.c.bf16 %v331_v40, %v327_v38  ;;  %v326_v35 = vld [vmem:[%s6658_s1 + $0x490] sm:$0xff] }
 0x154   : > { %2427 = vmatpush1.bf16.msra.mxu1 %v1535_v29  ;;  %2387 = vmatprep.subr.bf16.mxu0 %v1468_v20  ;;  %v2134_v58 = vpop.f32.mrf.mxu1  ;;  %v2095_v62 = vpop.f32.mrf.mxu0  ;;  %v1524_v12 = vpack.c.bf16 %v475_v0, %v471_v31  ;;  %v1456_v29 = vpack.c.bf16 %v339_v18, %v335_v14  ;;  %v334_v20 = vld [vmem:[%s6658_s1 + $0x4d0] sm:$0xff]  ;;  %v431_v18 = vld [vmem:[%s6658_s1 + $0x7d8] sm:$0xff] }
 0x155   : > { %2428 = vmatprep.subr.bf16.mxu1 %v1532_v37  ;;  %2417 = vmatprep.mubr.bf16.mxu0 %v3309_v33  ;;  %v5119_v1 = vadd.f32 %v2134_v58, %v2094_v56  ;;  %v1527_v33 = vpack.c.bf16 %v482_v59, %v478_v15  ;;  %v466_v37 = vld [vmem:[%s6658_s1 + $0x8f0] sm:$0xff]  ;;  %v1455_v42 = vpack.c.bf16 %v338_v30, %v334_v20  ;;  %v447_v15 = vld [vmem:[%s6658_s1 + $0x858] sm:$0xff] }
 0x156   : > { %2458 = vmatprep.mubr.bf16.mxu1 %v3588_v46  ;;  %v2136_v2 = vpop.f32.mrf.mxu1  ;;  %v2096_v6 = vpop.f32.mrf.mxu0  ;;  %v470_v46 = vld [vmem:[%s6658_s1 + $0x910] sm:$0xff]  ;;  %v1519_v28 = vpack.c.bf16 %v466_v37, %v462_v26  ;;  %v451_v56 = vld [vmem:[%s6658_s1 + $0x878] sm:$0xff]  ;;  %v1448_v59 = vpack.c.bf16 %v323_v55, %v319_v17  ;;  %v1504_v20 = vpack.c.bf16 %v435_v22, %v431_v18 }
 0x157   : > { %2388 = vmatpush1.bf16.msra.mxu0 %v1467_v45  ;;  %v1523_v27 = vpack.c.bf16 %v474_v13, %v470_v46  ;;  %v330_v45 = vld [vmem:[%s6658_s1 + $0x4b0] sm:$0xff]  ;;  %v1512_v31 = vpack.c.bf16 %v451_v56, %v447_v15  ;;  %v311_v2 = vld [vmem:[%s6658_s1 + $0x418] sm:$0xff] }
 0x158   : > { %2429 = vmatpush1.bf16.msra.mxu1 %v1531_v53  ;;  %2389 = vmatprep.subr.bf16.mxu0 %v1464_v34  ;;  %v2137_v11 = vpop.f32.mrf.mxu1  ;;  %v454_v50 = vld [vmem:[%s6658_s1 + $0x890] sm:$0xff]  ;;  %v1516_v53 = vpack.c.bf16 %v459_v41, %v455_v57  ;;  %v1451_v58 = vpack.c.bf16 %v330_v45, %v326_v35  ;;  %v439_v6 = vld [vmem:[%s6658_s1 + $0x818] sm:$0xff] }
 0x159   : > { %2430 = vmatprep.subr.bf16.mxu1 %v1528_v21  ;;  %v458_v34 = vld [vmem:[%s6658_s1 + $0x8b0] sm:$0xff]  ;;  %v423_v40 = vld [vmem:[%s6658_s1 + $0x798] sm:$0xff] }
 0x15a   : > { %v1515_v21 = vpack.c.bf16 %v458_v34, %v454_v50  ;;  %v318_v60 = vld [vmem:[%s6658_s1 + $0x450] sm:$0xff]  ;;  %v427_v57 = vld [vmem:[%s6658_s1 + $0x7b8] sm:$0xff] }
 0x15b   : > { %2390 = vmatpush1.bf16.msra.mxu0 %v1463_v5  ;;  %v322_v61 = vld [vmem:[%s6658_s1 + $0x470] sm:$0xff]  ;;  %v315_v5 = vld [vmem:[%s6658_s1 + $0x438] sm:$0xff]  ;;  %v1500_v35 = vpack.c.bf16 %v427_v57, %v423_v40 }
 0x15c   : > { %2431 = vmatpush1.bf16.msra.mxu1 %v1527_v33  ;;  %2391 = vmatprep.subr.bf16.mxu0 %v1460_v7  ;;  %v446_v62 = vld [vmem:[%s6658_s1 + $0x850] sm:$0xff]  ;;  %v443_v33 = vld [vmem:[%s6658_s1 + $0x838] sm:$0xff]  ;;  %v1447_v7 = vpack.c.bf16 %v322_v61, %v318_v60  ;;  %v1444_v10 = vpack.c.bf16 %v315_v5, %v311_v2 }
 0x15d   : > { %2432 = vmatprep.subr.bf16.mxu1 %v1524_v12  ;;  %v450_v0 = vld [vmem:[%s6658_s1 + $0x870] sm:$0xff]  ;;  %v1508_v13 = vpack.c.bf16 %v443_v33, %v439_v6  ;;  %v551_v41 = vld [vmem:[%s6658_s1 + $0xb98] sm:$0xff] }
 0x15e   : > { %v1511_v9 = vpack.c.bf16 %v450_v0, %v446_v62  ;;  %v310_v46 = vld [vmem:[%s6658_s1 + $0x410] sm:$0xff]  ;;  %v415_v55 = vld [vmem:[%s6658_s1 + $0x758] sm:$0xff] }
 0x15f   : > { %2392 = vmatpush1.bf16.msra.mxu0 %v1459_v16  ;;  %v314_v11 = vld [vmem:[%s6658_s1 + $0x430] sm:$0xff]  ;;  %v563_v16 = vld [vmem:[%s6658_s1 + $0xbf8] sm:$0xff] }
 0x160   : > { %2433 = vmatpush1.bf16.msra.mxu1 %v1523_v27  ;;  %2393 = vmatprep.subr.bf16.mxu0 %v1456_v29  ;;  %v438_v12 = vld [vmem:[%s6658_s1 + $0x810] sm:$0xff]  ;;  %v1443_v27 = vpack.c.bf16 %v314_v11, %v310_v46  ;;  %v1568_v37 = vpack.c.bf16 %v563_v16, %v559_v25  ;;  %v419_v15 = vld [vmem:[%s6658_s1 + $0x778] sm:$0xff] }
 0x161   : > { %2434 = vmatprep.subr.bf16.mxu1 %v1520_v36  ;;  %v442_v14 = vld [vmem:[%s6658_s1 + $0x830] sm:$0xff]  ;;  %v543_v56 = vld [vmem:[%s6658_s1 + $0xb58] sm:$0xff]  ;;  %v1496_v60 = vpack.c.bf16 %v419_v15, %v415_v55 }
 0x162   : > { %v1507_v29 = vpack.c.bf16 %v442_v14, %v438_v12  ;;  %v430_v30 = vld [vmem:[%s6658_s1 + $0x7d0] sm:$0xff]  ;;  %v407_v5 = vld [vmem:[%s6658_s1 + $0x718] sm:$0xff] }
 0x163   : > { %2394 = vmatpush1.bf16.msra.mxu0 %v1455_v42  ;;  %v434_v26 = vld [vmem:[%s6658_s1 + $0x7f0] sm:$0xff]  ;;  %v555_v42 = vld [vmem:[%s6658_s1 + $0xbb8] sm:$0xff] }
 0x164   : > { %2435 = vmatpush1.bf16.msra.mxu1 %v1519_v28  ;;  %2395 = vmatprep.subr.bf16.mxu0 %v1452_v43  ;;  %v558_v36 = vld [vmem:[%s6658_s1 + $0xbd0] sm:$0xff]  ;;  %v1503_v28 = vpack.c.bf16 %v434_v26, %v430_v30  ;;  %v1564_v34 = vpack.c.bf16 %v555_v42, %v551_v41  ;;  %v411_v6 = vld [vmem:[%s6658_s1 + $0x738] sm:$0xff] }
 0x165   : > { %2436 = vmatprep.subr.bf16.mxu1 %v1516_v53  ;;  %v562_v38 = vld [vmem:[%s6658_s1 + $0xbf0] sm:$0xff]  ;;  %v535_v33 = vld [vmem:[%s6658_s1 + $0xb18] sm:$0xff]  ;;  %v1492_v46 = vpack.c.bf16 %v411_v6, %v407_v5 }
 0x166   : > { %v1567_v43 = vpack.c.bf16 %v562_v38, %v558_v36  ;;  %v422_v45 = vld [vmem:[%s6658_s1 + $0x790] sm:$0xff]  ;;  %v399_v22 = vld [vmem:[%s6658_s1 + $0x6d8] sm:$0xff] }
 0x167   : > { %2396 = vmatpush1.bf16.msra.mxu0 %v1451_v58  ;;  %v426_v50 = vld [vmem:[%s6658_s1 + $0x7b0] sm:$0xff]  ;;  %v547_v58 = vld [vmem:[%s6658_s1 + $0xb78] sm:$0xff] }
 0x168   : > { %2437 = vmatpush1.bf16.msra.mxu1 %v1515_v21  ;;  %2397 = vmatprep.subr.bf16.mxu0 %v1448_v59  ;;  %v550_v53 = vld [vmem:[%s6658_s1 + $0xb90] sm:$0xff]  ;;  %v1499_v21 = vpack.c.bf16 %v426_v50, %v422_v45  ;;  %v1560_v0 = vpack.c.bf16 %v547_v58, %v543_v56  ;;  %v403_v25 = vld [vmem:[%s6658_s1 + $0x6f8] sm:$0xff] }
 0x169   : > { %2438 = vmatprep.subr.bf16.mxu1 %v1512_v31  ;;  %v554_v17 = vld [vmem:[%s6658_s1 + $0xbb0] sm:$0xff]  ;;  %v527_v16 = vld [vmem:[%s6658_s1 + $0xad8] sm:$0xff]  ;;  %v1488_v30 = vpack.c.bf16 %v403_v25, %v399_v22 }
 0x16a   : > { %v1563_v59 = vpack.c.bf16 %v554_v17, %v550_v53  ;;  %v414_v61 = vld [vmem:[%s6658_s1 + $0x750] sm:$0xff]  ;;  %v391_v57 = vld [vmem:[%s6658_s1 + $0x698] sm:$0xff] }
 0x16b   : > { %2398 = vmatpush1.bf16.msra.mxu0 %v1447_v7  ;;  %v418_v62 = vld [vmem:[%s6658_s1 + $0x770] sm:$0xff]  ;;  %v539_v7 = vld [vmem:[%s6658_s1 + $0xb38] sm:$0xff] }
 0x16c   : > { %2439 = vmatpush1.bf16.msra.mxu1 %v1511_v9  ;;  %2399 = vmatprep.subr.bf16.mxu0 %v1444_v10  ;;  %v542_v31 = vld [vmem:[%s6658_s1 + $0xb50] sm:$0xff]  ;;  %v1495_v9 = vpack.c.bf16 %v418_v62, %v414_v61  ;;  %v1556_v14 = vpack.c.bf16 %v539_v7, %v535_v33  ;;  %v395_v41 = vld [vmem:[%s6658_s1 + $0x6b8] sm:$0xff] }
 0x16d   : > { %2440 = vmatprep.subr.bf16.mxu1 %v1508_v13  ;;  %v546_v2 = vld [vmem:[%s6658_s1 + $0xb70] sm:$0xff]  ;;  %v519_v42 = vld [vmem:[%s6658_s1 + $0xa98] sm:$0xff]  ;;  %v1484_v45 = vpack.c.bf16 %v395_v41, %v391_v57 }
 0x16e   : > { %v1559_v10 = vpack.c.bf16 %v546_v2, %v542_v31  ;;  %v406_v11 = vld [vmem:[%s6658_s1 + $0x710] sm:$0xff]  ;;  %v383_v15 = vld [vmem:[%s6658_s1 + $0x658] sm:$0xff] }
 0x16f   : > { %2400 = vmatpush1.bf16.msra.mxu0 %v1443_v27  ;;  %v410_v12 = vld [vmem:[%s6658_s1 + $0x730] sm:$0xff]  ;;  %v531_v27 = vld [vmem:[%s6658_s1 + $0xaf8] sm:$0xff] }
 0x170   : > { %2441 = vmatpush1.bf16.msra.mxu1 %v1507_v29  ;;  %2401 = vmatprep.subr.bf16.mxu0 %v1504_v20  ;;  %v534_v13 = vld [vmem:[%s6658_s1 + $0xb10] sm:$0xff]  ;;  %v1491_v29 = vpack.c.bf16 %v410_v12, %v406_v11  ;;  %v1552_v38 = vpack.c.bf16 %v531_v27, %v527_v16  ;;  %v387_v56 = vld [vmem:[%s6658_s1 + $0x678] sm:$0xff] }
 0x171   : > { %2442 = vmatprep.subr.bf16.mxu1 %v1568_v37  ;;  %v538_v18 = vld [vmem:[%s6658_s1 + $0xb30] sm:$0xff]  ;;  %v511_v58 = vld [vmem:[%s6658_s1 + $0xa58] sm:$0xff]  ;;  %v1480_v61 = vpack.c.bf16 %v387_v56, %v383_v15 }
 0x172   : > { %v1555_v20 = vpack.c.bf16 %v538_v18, %v534_v13  ;;  %v398_v26 = vld [vmem:[%s6658_s1 + $0x6d0] sm:$0xff]  ;;  %v375_v6 = vld [vmem:[%s6658_s1 + $0x618] sm:$0xff] }
 0x173   : > { %2402 = vmatpush2.bf16.msra.mxu0 %v1503_v28  ;;  %v402_v36 = vld [vmem:[%s6658_s1 + $0x6f0] sm:$0xff]  ;;  %v523_v28 = vld [vmem:[%s6658_s1 + $0xab8] sm:$0xff] }
 0x174   : > { %2443 = vmatpush2.bf16.msra.mxu1 %v1567_v43  ;;  %2403 = vmatprep.subr.bf16.mxu0 %v1500_v35  ;;  %v526_v37 = vld [vmem:[%s6658_s1 + $0xad0] sm:$0xff]  ;;  %v1487_v43 = vpack.c.bf16 %v402_v36, %v398_v26  ;;  %v1548_v17 = vpack.c.bf16 %v523_v28, %v519_v42  ;;  %v379_v33 = vld [vmem:[%s6658_s1 + $0x638] sm:$0xff] }
 0x175   : > { %2444 = vmatprep.subr.bf16.mxu1 %v1564_v34  ;;  %v530_v40 = vld [vmem:[%s6658_s1 + $0xaf0] sm:$0xff]  ;;  %v503_v7 = vld [vmem:[%s6658_s1 + $0xa18] sm:$0xff]  ;;  %v1476_v11 = vpack.c.bf16 %v379_v33, %v375_v6 }
 0x176   : > { %v1551_v35 = vpack.c.bf16 %v530_v40, %v526_v37  ;;  %v390_v50 = vld [vmem:[%s6658_s1 + $0x690] sm:$0xff]  ;;  %v623_v25 = vld [vmem:[%s6658_s1 + $0xdd8] sm:$0xff] }
 0x177   : > { %2404 = vmatpush2.bf16.msra.mxu0 %v1499_v21  ;;  %v394_v53 = vld [vmem:[%s6658_s1 + $0x6b0] sm:$0xff]  ;;  %v515_v21 = vld [vmem:[%s6658_s1 + $0xa78] sm:$0xff] }
 0x178   : > { %2445 = vmatpush2.bf16.msra.mxu1 %v1563_v59  ;;  %2405 = vmatprep.subr.bf16.mxu0 %v1496_v60  ;;  %v518_v34 = vld [vmem:[%s6658_s1 + $0xa90] sm:$0xff]  ;;  %v1483_v59 = vpack.c.bf16 %v394_v53, %v390_v50  ;;  %v1544_v2 = vpack.c.bf16 %v515_v21, %v511_v58  ;;  %v627_v16 = vld [vmem:[%s6658_s1 + $0xdf8] sm:$0xff] }
 0x179   : > { %2446 = vmatprep.subr.bf16.mxu1 %v1560_v0  ;;  %v522_v55 = vld [vmem:[%s6658_s1 + $0xab0] sm:$0xff]  ;;  %v751_v27 = vld [vmem:[%s6658_s1 + $0x11d8] sm:$0xff]  ;;  %v1600_v26 = vpack.c.bf16 %v627_v16, %v623_v25 }
 0x17a   : > { %v1547_v60 = vpack.c.bf16 %v522_v55, %v518_v34  ;;  %v382_v62 = vld [vmem:[%s6658_s1 + $0x650] sm:$0xff]  ;;  %v615_v41 = vld [vmem:[%s6658_s1 + $0xd98] sm:$0xff] }
 0x17b   : > { %2406 = vmatpush2.bf16.msra.mxu0 %v1495_v9  ;;  %v386_v31 = vld [vmem:[%s6658_s1 + $0x670] sm:$0xff]  ;;  %v507_v9 = vld [vmem:[%s6658_s1 + $0xa38] sm:$0xff] }
 0x17c   : > { %2447 = vmatpush2.bf16.msra.mxu1 %v1559_v10  ;;  %2407 = vmatprep.subr.bf16.mxu0 %v1492_v46  ;;  %v510_v0 = vld [vmem:[%s6658_s1 + $0xa50] sm:$0xff]  ;;  %v1479_v10 = vpack.c.bf16 %v386_v31, %v382_v62  ;;  %v1540_v18 = vpack.c.bf16 %v507_v9, %v503_v7  ;;  %v619_v42 = vld [vmem:[%s6658_s1 + $0xdb8] sm:$0xff] }
 0x17d   : > { %2448 = vmatprep.subr.bf16.mxu1 %v1556_v14  ;;  %v514_v5 = vld [vmem:[%s6658_s1 + $0xa70] sm:$0xff]  ;;  %v743_v28 = vld [vmem:[%s6658_s1 + $0x1198] sm:$0xff]  ;;  %v1596_v50 = vpack.c.bf16 %v619_v42, %v615_v41 }
 0x17e   : > { %v1543_v46 = vpack.c.bf16 %v514_v5, %v510_v0  ;;  %v374_v12 = vld [vmem:[%s6658_s1 + $0x610] sm:$0xff]  ;;  %v607_v56 = vld [vmem:[%s6658_s1 + $0xd58] sm:$0xff] }
 0x17f   : > { %2408 = vmatpush2.bf16.msra.mxu0 %v1491_v29  ;;  %v378_v13 = vld [vmem:[%s6658_s1 + $0x630] sm:$0xff]  ;;  %v755_v29 = vld [vmem:[%s6658_s1 + $0x11f8] sm:$0xff] }
 0x180   : > { %2449 = vmatpush2.bf16.msra.mxu1 %v1555_v20  ;;  %2409 = vmatprep.subr.bf16.mxu0 %v1488_v30  ;;  %v502_v14 = vld [vmem:[%s6658_s1 + $0xa10] sm:$0xff]  ;;  %v1475_v20 = vpack.c.bf16 %v378_v13, %v374_v12  ;;  %v1664_v40 = vpack.c.bf16 %v755_v29, %v751_v27  ;;  %v611_v58 = vld [vmem:[%s6658_s1 + $0xd78] sm:$0xff] }
 0x181   : > { %2450 = vmatprep.subr.bf16.mxu1 %v1552_v38  ;;  %v506_v22 = vld [vmem:[%s6658_s1 + $0xa30] sm:$0xff]  ;;  %v731_v13 = vld [vmem:[%s6658_s1 + $0x1138] sm:$0xff] }
 0x182   : > { %v1539_v30 = vpack.c.bf16 %v506_v22, %v502_v14  ;;  %v622_v36 = vld [vmem:[%s6658_s1 + $0xdd0] sm:$0xff] }
 0x183   : > { %2410 = vmatpush2.bf16.msra.mxu0 %v1487_v43  ;;  %v626_v37 = vld [vmem:[%s6658_s1 + $0xdf0] sm:$0xff]  ;;  %v747_v43 = vld [vmem:[%s6658_s1 + $0x11b8] sm:$0xff] }
 0x184   : > { %2451 = vmatpush2.bf16.msra.mxu1 %v1551_v35  ;;  %2411 = vmatprep.subr.bf16.mxu0 %v1484_v45  ;;  %v750_v38 = vld [vmem:[%s6658_s1 + $0x11d0] sm:$0xff]  ;;  %v1599_v35 = vpack.c.bf16 %v626_v37, %v622_v36  ;;  %v1660_v55 = vpack.c.bf16 %v747_v43, %v743_v28  ;;  %v591_v36 = vld [vmem:[%s6658_s1 + $0xcd8] sm:$0xff] }
 0x185   : > { %2452 = vmatprep.subr.bf16.mxu1 %v1548_v17  ;;  %v754_v57 = vld [vmem:[%s6658_s1 + $0x11f0] sm:$0xff]  ;;  %v595_v37 = vld [vmem:[%s6658_s1 + $0xcf8] sm:$0xff] }
 0x186   : > { %v1663_v45 = vpack.c.bf16 %v754_v57, %v750_v38  ;;  %v614_v53 = vld [vmem:[%s6658_s1 + $0xd90] sm:$0xff]  ;;  %v719_v38 = vld [vmem:[%s6658_s1 + $0x10d8] sm:$0xff]  ;;  %v1584_v42 = vpack.c.bf16 %v595_v37, %v591_v36 }
 0x187   : > { %2412 = vmatpush2.bf16.msra.mxu0 %v1483_v59  ;;  %v618_v34 = vld [vmem:[%s6658_s1 + $0xdb0] sm:$0xff]  ;;  %v735_v59 = vld [vmem:[%s6658_s1 + $0x1158] sm:$0xff] }
 0x188   : > { %2453 = vmatpush2.bf16.msra.mxu1 %v1547_v60  ;;  %2413 = vmatprep.subr.bf16.mxu0 %v1480_v61  ;;  %v742_v17 = vld [vmem:[%s6658_s1 + $0x1190] sm:$0xff]  ;;  %v739_v60 = vld [vmem:[%s6658_s1 + $0x1178] sm:$0xff]  ;;  %v1595_v31 = vpack.c.bf16 %v618_v34, %v614_v53 }
 0x189   : > { %2454 = vmatprep.subr.bf16.mxu1 %v1544_v2  ;;  %v746_v15 = vld [vmem:[%s6658_s1 + $0x11b0] sm:$0xff]  ;;  %v1656_v9 = vpack.c.bf16 %v739_v60, %v735_v59  ;;  %v583_v53 = vld [vmem:[%s6658_s1 + $0xc98] sm:$0xff] }
 0x18a   : > { %v1659_v2 = vpack.c.bf16 %v746_v15, %v742_v17  ;;  %v606_v5 = vld [vmem:[%s6658_s1 + $0xd50] sm:$0xff]  ;;  %v587_v34 = vld [vmem:[%s6658_s1 + $0xcb8] sm:$0xff] }
 0x18b   : > { %2414 = vmatpush2.bf16.msra.mxu0 %v1479_v10  ;;  %v610_v6 = vld [vmem:[%s6658_s1 + $0xd70] sm:$0xff]  ;;  %v711_v17 = vld [vmem:[%s6658_s1 + $0x1098] sm:$0xff] }
 0x18c   : > { %2455 = vmatpush2.bf16.msra.mxu1 %v1543_v46  ;;  %2415 = vmatprep.subr.bf16.mxu0 %v1476_v11  ;;  %v738_v10 = vld [vmem:[%s6658_s1 + $0x1170] sm:$0xff]  ;;  %v599_v46 = vld [vmem:[%s6658_s1 + $0xd18] sm:$0xff]  ;;  %v1591_v22 = vpack.c.bf16 %v610_v6, %v606_v5 }
 0x18d   : > { %2456 = vmatprep.subr.bf16.mxu1 %v1540_v18  ;;  %v603_v11 = vld [vmem:[%s6658_s1 + $0xd38] sm:$0xff]  ;;  %v598_v27 = vld [vmem:[%s6658_s1 + $0xd10] sm:$0xff] }
 0x18e   : > { %v1588_v16 = vpack.c.bf16 %v603_v11, %v599_v46  ;;  %v602_v29 = vld [vmem:[%s6658_s1 + $0xd30] sm:$0xff]  ;;  %v567_v11 = vld [vmem:[%s6658_s1 + $0xc18] sm:$0xff] }
 0x18f   : > { %2416 = vmatpush2.bf16.msra.mxu0 %v1475_v20  ;;  %v1587_v57 = vpack.c.bf16 %v602_v29, %v598_v27  ;;  %v590_v28 = vld [vmem:[%s6658_s1 + $0xcd0] sm:$0xff]  ;;  %v819_v36 = vld [vmem:[%s6658_s1 + $0x13f8] sm:$0xff] }
 0x190   : > { %2457 = vmatpush2.bf16.msra.mxu1 %v1539_v30  ;;  %2467 = vmatprep.subr.bf16.mxu0 %v1600_v26  ;;  %v730_v26 = vld [vmem:[%s6658_s1 + $0x1130] sm:$0xff] }
 0x191   : > { %2508 = vmatprep.subr.bf16.mxu1 %v1664_v40  ;;  %v2173_v21 = vpop.f32.mrf.mxu0  ;;  %v723_v40 = vld [vmem:[%s6658_s1 + $0x10f8] sm:$0xff]  ;;  %v594_v43 = vld [vmem:[%s6658_s1 + $0xcf0] sm:$0xff] }
 0x192   : > { %2418 = vmatmul.mubr.bf16.vlgmr.msra.gmra.mxu0 %v3421_v23  ;;  %v2174_v61 = vadd.f32 %v2173_v21, %v5099_v19  ;;  %v1592_v23 = vpack.c.bf16 %v611_v58, %v607_v56  ;;  %v734_v19 = vld [vmem:[%s6658_s1 + $0x1150] sm:$0xff]  ;;  %v1583_v15 = vpack.c.bf16 %v594_v43, %v590_v28  ;;  %v1580_v58 = vpack.c.bf16 %v587_v34, %v583_v53  ;;  %v811_v53 = vld [vmem:[%s6658_s1 + $0x13b8] sm:$0xff] }
 0x193   : > { %v2214_v62 = vpop.f32.mrf.mxu1  ;;  %2459 = vmatmul.mubr.bf16.vlgmr.msra.gmra.mxu1 %v3821_v48  ;;  %2468 = vmatpush1.bf16.msra.mxu0 %v1599_v35  ;;  %v2175_v0 = vpop.f32.mrf.mxu0  ;;  %v718_v35 = vld [vmem:[%s6658_s1 + $0x10d0] sm:$0xff] }
 0x194   : > { %2509 = vmatpush1.bf16.msra.mxu1 %v1663_v45  ;;  %2469 = vmatprep.subr.bf16.mxu0 %v1596_v50  ;;  %v5493_v48 = vadd.f32 %v2214_v62, %v2174_v61  ;;  %v2176_v33 = vadd.f32 %v2175_v0, %v5119_v1  ;;  %v727_v1 = vld [vmem:[%s6658_s1 + $0x1118] sm:$0xff]  ;;  %v1648_v45 = vpack.c.bf16 %v723_v40, %v719_v38  ;;  %v722_v50 = vld [vmem:[%s6658_s1 + $0x10f0] sm:$0xff] }
 0x195   : > { %v2216_v7 = vpop.f32.mrf.mxu1  ;;  %2510 = vmatprep.subr.bf16.mxu1 %v1660_v55  ;;  %2499 = vmatprep.mubr.bf16.mxu0 %v3590_v47  ;;  %v2177_v12 = vpop.f32.mrf.mxu0  ;;  %v1655_v47 = vpack.c.bf16 %v738_v10, %v734_v19  ;;  %v1652_v30 = vpack.c.bf16 %v731_v13, %v727_v1  ;;  %v715_v55 = vld [vmem:[%s6658_s1 + $0x10b8] sm:$0xff]  ;;  %v1647_v56 = vpack.c.bf16 %v722_v50, %v718_v35  ;;  %v582_v21 = vld [vmem:[%s6658_s1 + $0xc90] sm:$0xff] }
 0x196   : > { %2540 = vmatprep.mubr.bf16.mxu1 %v3869_v3  ;;  %v5513_v14 = vadd.f32 %v2216_v7, %v2176_v33  ;;  %v726_v3 = vld [vmem:[%s6658_s1 + $0x1110] sm:$0xff]  ;;  %v1644_v61 = vpack.c.bf16 %v715_v55, %v711_v17  ;;  %v579_v0 = vld [vmem:[%s6658_s1 + $0xc78] sm:$0xff] }
 0x197   : > { %v2218_v18 = vpop.f32.mrf.mxu1  ;;  %2470 = vmatpush1.bf16.msra.mxu0 %v1595_v31  ;;  %v2178_v25 = vpop.f32.mrf.mxu0  ;;  %v1651_v41 = vpack.c.bf16 %v730_v26, %v726_v3  ;;  %v586_v59 = vld [vmem:[%s6658_s1 + $0xcb0] sm:$0xff]  ;;  %v575_v31 = vld [vmem:[%s6658_s1 + $0xc58] sm:$0xff] }
 0x198   : > { %2511 = vmatpush1.bf16.msra.mxu1 %v1659_v2  ;;  %2471 = vmatprep.subr.bf16.mxu0 %v1592_v23  ;;  %v710_v60 = vld [vmem:[%s6658_s1 + $0x1090] sm:$0xff]  ;;  %v703_v2 = vld [vmem:[%s6658_s1 + $0x1058] sm:$0xff]  ;;  %v1579_v5 = vpack.c.bf16 %v586_v59, %v582_v21  ;;  %v1576_v19 = vpack.c.bf16 %v579_v0, %v575_v31 }
 0x199   : > { %v2219_v20 = vpop.f32.mrf.mxu1  ;;  %2512 = vmatprep.subr.bf16.mxu1 %v1656_v9  ;;  %v714_v62 = vld [vmem:[%s6658_s1 + $0x10b0] sm:$0xff]  ;;  %v707_v23 = vld [vmem:[%s6658_s1 + $0x1078] sm:$0xff] }
 0x19a   : > { %v1643_v6 = vpack.c.bf16 %v714_v62, %v710_v60  ;;  %v574_v33 = vld [vmem:[%s6658_s1 + $0xc50] sm:$0xff]  ;;  %v1640_v10 = vpack.c.bf16 %v707_v23, %v703_v2  ;;  %v571_v12 = vld [vmem:[%s6658_s1 + $0xc38] sm:$0xff] }
 0x19b   : > { %2472 = vmatpush1.bf16.msra.mxu0 %v1591_v22  ;;  %v578_v7 = vld [vmem:[%s6658_s1 + $0xc70] sm:$0xff]  ;;  %v695_v1 = vld [vmem:[%s6658_s1 + $0x1018] sm:$0xff]  ;;  %v1572_v25 = vpack.c.bf16 %v571_v12, %v567_v11 }
 0x19c   : > { %2513 = vmatpush1.bf16.msra.mxu1 %v1655_v47  ;;  %2473 = vmatprep.subr.bf16.mxu0 %v1588_v16  ;;  %v702_v9 = vld [vmem:[%s6658_s1 + $0x1050] sm:$0xff]  ;;  %v699_v13 = vld [vmem:[%s6658_s1 + $0x1038] sm:$0xff]  ;;  %v1575_v18 = vpack.c.bf16 %v578_v7, %v574_v33 }
 0x19d   : > { %2514 = vmatprep.subr.bf16.mxu1 %v1652_v30  ;;  %v706_v46 = vld [vmem:[%s6658_s1 + $0x1070] sm:$0xff]  ;;  %v1636_v29 = vpack.c.bf16 %v699_v13, %v695_v1  ;;  %v687_v20 = vld [vmem:[%s6658_s1 + $0xfd8] sm:$0xff] }
 0x19e   : > { %v1639_v22 = vpack.c.bf16 %v706_v46, %v702_v9  ;;  %v566_v47 = vld [vmem:[%s6658_s1 + $0xc10] sm:$0xff]  ;;  %v691_v30 = vld [vmem:[%s6658_s1 + $0xff8] sm:$0xff] }
 0x19f   : > { %2474 = vmatpush1.bf16.msra.mxu0 %v1587_v57  ;;  %v570_v16 = vld [vmem:[%s6658_s1 + $0xc30] sm:$0xff]  ;;  %v815_v26 = vld [vmem:[%s6658_s1 + $0x13d8] sm:$0xff]  ;;  %v1632_v40 = vpack.c.bf16 %v691_v30, %v687_v20 }
 0x1a0   : > { %2515 = vmatpush1.bf16.msra.mxu1 %v1651_v41  ;;  %2475 = vmatprep.subr.bf16.mxu0 %v1584_v42  ;;  %v694_v27 = vld [vmem:[%s6658_s1 + $0x1010] sm:$0xff]  ;;  %v1571_v37 = vpack.c.bf16 %v570_v16, %v566_v47  ;;  %v1696_v28 = vpack.c.bf16 %v819_v36, %v815_v26  ;;  %v679_v35 = vld [vmem:[%s6658_s1 + $0xf98] sm:$0xff] }
 0x1a1   : > { %2516 = vmatprep.subr.bf16.mxu1 %v1648_v45  ;;  %v698_v3 = vld [vmem:[%s6658_s1 + $0x1030] sm:$0xff]  ;;  %v683_v45 = vld [vmem:[%s6658_s1 + $0xfb8] sm:$0xff] }
 0x1a2   : > { %v1635_v38 = vpack.c.bf16 %v698_v3, %v694_v27  ;;  %v686_v57 = vld [vmem:[%s6658_s1 + $0xfd0] sm:$0xff]  ;;  %v807_v50 = vld [vmem:[%s6658_s1 + $0x1398] sm:$0xff]  ;;  %v1628_v55 = vpack.c.bf16 %v683_v45, %v679_v35 }
 0x1a3   : > { %2476 = vmatpush1.bf16.msra.mxu0 %v1583_v15  ;;  %v690_v41 = vld [vmem:[%s6658_s1 + $0xff0] sm:$0xff]  ;;  %v1692_v21 = vpack.c.bf16 %v811_v53, %v807_v50  ;;  %v671_v60 = vld [vmem:[%s6658_s1 + $0xf58] sm:$0xff] }
 0x1a4   : > { %2517 = vmatpush1.bf16.msra.mxu1 %v1647_v56  ;;  %2477 = vmatprep.subr.bf16.mxu0 %v1580_v58  ;;  %v814_v42 = vld [vmem:[%s6658_s1 + $0x13d0] sm:$0xff]  ;;  %v1631_v34 = vpack.c.bf16 %v690_v41, %v686_v57  ;;  %v799_v62 = vld [vmem:[%s6658_s1 + $0x1358] sm:$0xff] }
 0x1a5   : > { %2518 = vmatprep.subr.bf16.mxu1 %v1644_v61  ;;  %v818_v43 = vld [vmem:[%s6658_s1 + $0x13f0] sm:$0xff]  ;;  %v675_v61 = vld [vmem:[%s6658_s1 + $0xf78] sm:$0xff] }
 0x1a6   : > { %v1695_v17 = vpack.c.bf16 %v818_v43, %v814_v42  ;;  %v678_v15 = vld [vmem:[%s6658_s1 + $0xf90] sm:$0xff]  ;;  %v803_v31 = vld [vmem:[%s6658_s1 + $0x1378] sm:$0xff]  ;;  %v1624_v23 = vpack.c.bf16 %v675_v61, %v671_v60 }
 0x1a7   : > { %2478 = vmatpush1.bf16.msra.mxu0 %v1579_v5  ;;  %v682_v56 = vld [vmem:[%s6658_s1 + $0xfb0] sm:$0xff]  ;;  %v1688_v33 = vpack.c.bf16 %v803_v31, %v799_v62  ;;  %v663_v9 = vld [vmem:[%s6658_s1 + $0xf18] sm:$0xff] }
 0x1a8   : > { %2519 = vmatpush1.bf16.msra.mxu1 %v1643_v6  ;;  %2479 = vmatprep.subr.bf16.mxu0 %v1576_v19  ;;  %v806_v58 = vld [vmem:[%s6658_s1 + $0x1390] sm:$0xff]  ;;  %v1627_v0 = vpack.c.bf16 %v682_v56, %v678_v15  ;;  %v791_v46 = vld [vmem:[%s6658_s1 + $0x1318] sm:$0xff] }
 0x1a9   : > { %2520 = vmatprep.subr.bf16.mxu1 %v1640_v10  ;;  %v810_v59 = vld [vmem:[%s6658_s1 + $0x13b0] sm:$0xff]  ;;  %v667_v10 = vld [vmem:[%s6658_s1 + $0xf38] sm:$0xff] }
 0x1aa   : > { %v1691_v2 = vpack.c.bf16 %v810_v59, %v806_v58  ;;  %v670_v5 = vld [vmem:[%s6658_s1 + $0xf50] sm:$0xff]  ;;  %v795_v11 = vld [vmem:[%s6658_s1 + $0x1338] sm:$0xff]  ;;  %v1620_v13 = vpack.c.bf16 %v667_v10, %v663_v9 }
 0x1ab   : > { %2480 = vmatpush1.bf16.msra.mxu0 %v1575_v18  ;;  %v674_v6 = vld [vmem:[%s6658_s1 + $0xf70] sm:$0xff]  ;;  %v1684_v47 = vpack.c.bf16 %v795_v11, %v791_v46  ;;  %v655_v27 = vld [vmem:[%s6658_s1 + $0xed8] sm:$0xff] }
 0x1ac   : > { %2521 = vmatpush1.bf16.msra.mxu1 %v1639_v22  ;;  %2481 = vmatprep.subr.bf16.mxu0 %v1572_v25  ;;  %v798_v19 = vld [vmem:[%s6658_s1 + $0x1350] sm:$0xff]  ;;  %v1623_v12 = vpack.c.bf16 %v674_v6, %v670_v5  ;;  %v783_v3 = vld [vmem:[%s6658_s1 + $0x12d8] sm:$0xff] }
 0x1ad   : > { %2522 = vmatprep.subr.bf16.mxu1 %v1636_v29  ;;  %v802_v7 = vld [vmem:[%s6658_s1 + $0x1370] sm:$0xff]  ;;  %v659_v29 = vld [vmem:[%s6658_s1 + $0xef8] sm:$0xff] }
 0x1ae   : > { %v1687_v1 = vpack.c.bf16 %v802_v7, %v798_v19  ;;  %v662_v18 = vld [vmem:[%s6658_s1 + $0xf10] sm:$0xff]  ;;  %v787_v20 = vld [vmem:[%s6658_s1 + $0x12f8] sm:$0xff]  ;;  %v1616_v36 = vpack.c.bf16 %v659_v29, %v655_v27 }
 0x1af   : > { %2482 = vmatpush1.bf16.msra.mxu0 %v1571_v37  ;;  %v666_v22 = vld [vmem:[%s6658_s1 + $0xf30] sm:$0xff]  ;;  %v1680_v57 = vpack.c.bf16 %v787_v20, %v783_v3  ;;  %v647_v42 = vld [vmem:[%s6658_s1 + $0xe98] sm:$0xff] }
 0x1b0   : > { %2523 = vmatpush1.bf16.msra.mxu1 %v1635_v38  ;;  %2483 = vmatprep.subr.bf16.mxu0 %v1632_v40  ;;  %v790_v25 = vld [vmem:[%s6658_s1 + $0x1310] sm:$0xff]  ;;  %v1619_v30 = vpack.c.bf16 %v666_v22, %v662_v18  ;;  %v775_v43 = vld [vmem:[%s6658_s1 + $0x1298] sm:$0xff] }
 0x1b1   : > { %2524 = vmatprep.subr.bf16.mxu1 %v1696_v28  ;;  %v794_v16 = vld [vmem:[%s6658_s1 + $0x1330] sm:$0xff]  ;;  %v651_v28 = vld [vmem:[%s6658_s1 + $0xeb8] sm:$0xff] }
 0x1b2   : > { %v1683_v26 = vpack.c.bf16 %v794_v16, %v790_v25  ;;  %v654_v37 = vld [vmem:[%s6658_s1 + $0xed0] sm:$0xff]  ;;  %v779_v35 = vld [vmem:[%s6658_s1 + $0x12b8] sm:$0xff]  ;;  %v1612_v53 = vpack.c.bf16 %v651_v28, %v647_v42 }
 0x1b3   : > { %2484 = vmatpush2.bf16.msra.mxu0 %v1631_v34  ;;  %v658_v38 = vld [vmem:[%s6658_s1 + $0xef0] sm:$0xff]  ;;  %v1676_v15 = vpack.c.bf16 %v779_v35, %v775_v43  ;;  %v639_v58 = vld [vmem:[%s6658_s1 + $0xe58] sm:$0xff] }
 0x1b4   : > { %2525 = vmatpush2.bf16.msra.mxu1 %v1695_v17  ;;  %2485 = vmatprep.subr.bf16.mxu0 %v1628_v55  ;;  %v782_v40 = vld [vmem:[%s6658_s1 + $0x12d0] sm:$0xff]  ;;  %v1615_v45 = vpack.c.bf16 %v658_v38, %v654_v37  ;;  %v767_v59 = vld [vmem:[%s6658_s1 + $0x1258] sm:$0xff] }
 0x1b5   : > { %2526 = vmatprep.subr.bf16.mxu1 %v1692_v21  ;;  %v786_v41 = vld [vmem:[%s6658_s1 + $0x12f0] sm:$0xff]  ;;  %v643_v21 = vld [vmem:[%s6658_s1 + $0xe78] sm:$0xff] }
 0x1b6   : > { %v1679_v50 = vpack.c.bf16 %v786_v41, %v782_v40  ;;  %v646_v34 = vld [vmem:[%s6658_s1 + $0xe90] sm:$0xff]  ;;  %v771_v60 = vld [vmem:[%s6658_s1 + $0x1278] sm:$0xff]  ;;  %v1608_v31 = vpack.c.bf16 %v643_v21, %v639_v58 }
 0x1b7   : > { %2486 = vmatpush2.bf16.msra.mxu0 %v1627_v0  ;;  %v650_v17 = vld [vmem:[%s6658_s1 + $0xeb0] sm:$0xff]  ;;  %v1672_v5 = vpack.c.bf16 %v771_v60, %v767_v59  ;;  %v631_v19 = vld [vmem:[%s6658_s1 + $0xe18] sm:$0xff] }
 0x1b8   : > { %2527 = vmatpush2.bf16.msra.mxu1 %v1691_v2  ;;  %2487 = vmatprep.subr.bf16.mxu0 %v1624_v23  ;;  %v774_v55 = vld [vmem:[%s6658_s1 + $0x1290] sm:$0xff]  ;;  %v1611_v61 = vpack.c.bf16 %v650_v17, %v646_v34  ;;  %v759_v7 = vld [vmem:[%s6658_s1 + $0x1218] sm:$0xff] }
 0x1b9   : > { %2528 = vmatprep.subr.bf16.mxu1 %v1688_v33  ;;  %v778_v56 = vld [vmem:[%s6658_s1 + $0x12b0] sm:$0xff]  ;;  %v635_v33 = vld [vmem:[%s6658_s1 + $0xe38] sm:$0xff] }
 0x1ba   : > { %v1675_v62 = vpack.c.bf16 %v778_v56, %v774_v55  ;;  %v638_v0 = vld [vmem:[%s6658_s1 + $0xe50] sm:$0xff]  ;;  %v763_v9 = vld [vmem:[%s6658_s1 + $0x1238] sm:$0xff]  ;;  %v1604_v11 = vpack.c.bf16 %v635_v33, %v631_v19 }
 0x1bb   : > { %2488 = vmatpush2.bf16.msra.mxu0 %v1623_v12  ;;  %v642_v2 = vld [vmem:[%s6658_s1 + $0xe70] sm:$0xff]  ;;  %v1668_v18 = vpack.c.bf16 %v763_v9, %v759_v7  ;;  %v879_v25 = vld [vmem:[%s6658_s1 + $0x15d8] sm:$0xff] }
 0x1bc   : > { %2529 = vmatpush2.bf16.msra.mxu1 %v1687_v1  ;;  %2489 = vmatprep.subr.bf16.mxu0 %v1620_v13  ;;  %v766_v23 = vld [vmem:[%s6658_s1 + $0x1250] sm:$0xff]  ;;  %v1607_v10 = vpack.c.bf16 %v642_v2, %v638_v0  ;;  %v1007_v16 = vld [vmem:[%s6658_s1 + $0x19d8] sm:$0xff] }
 0x1bd   : > { %2530 = vmatprep.subr.bf16.mxu1 %v1684_v47  ;;  %v770_v6 = vld [vmem:[%s6658_s1 + $0x1270] sm:$0xff]  ;;  %v883_v47 = vld [vmem:[%s6658_s1 + $0x15f8] sm:$0xff] }
 0x1be   : > { %v1671_v46 = vpack.c.bf16 %v770_v6, %v766_v23  ;;  %v630_v12 = vld [vmem:[%s6658_s1 + $0xe10] sm:$0xff]  ;;  %v1011_v27 = vld [vmem:[%s6658_s1 + $0x19f8] sm:$0xff]  ;;  %v1728_v20 = vpack.c.bf16 %v883_v47, %v879_v25 }
 0x1bf   : > { %2490 = vmatpush2.bf16.msra.mxu0 %v1619_v30  ;;  %v634_v1 = vld [vmem:[%s6658_s1 + $0xe30] sm:$0xff]  ;;  %v1792_v37 = vpack.c.bf16 %v1011_v27, %v1007_v16  ;;  %v871_v40 = vld [vmem:[%s6658_s1 + $0x1598] sm:$0xff] }
 0x1c0   : > { %2531 = vmatpush2.bf16.msra.mxu1 %v1683_v26  ;;  %2491 = vmatprep.subr.bf16.mxu0 %v1616_v36  ;;  %v758_v13 = vld [vmem:[%s6658_s1 + $0x1210] sm:$0xff]  ;;  %v1603_v29 = vpack.c.bf16 %v634_v1, %v630_v12  ;;  %v999_v41 = vld [vmem:[%s6658_s1 + $0x1998] sm:$0xff] }
 0x1c1   : > { %2532 = vmatprep.subr.bf16.mxu1 %v1680_v57  ;;  %v762_v22 = vld [vmem:[%s6658_s1 + $0x1230] sm:$0xff]  ;;  %v875_v57 = vld [vmem:[%s6658_s1 + $0x15b8] sm:$0xff] }
 0x1c2   : > { %v1667_v3 = vpack.c.bf16 %v762_v22, %v758_v13  ;;  %v878_v30 = vld [vmem:[%s6658_s1 + $0x15d0] sm:$0xff]  ;;  %v1003_v42 = vld [vmem:[%s6658_s1 + $0x19b8] sm:$0xff]  ;;  %v1724_v35 = vpack.c.bf16 %v875_v57, %v871_v40 }
 0x1c3   : > { %2492 = vmatpush2.bf16.msra.mxu0 %v1615_v45  ;;  %v882_v26 = vld [vmem:[%s6658_s1 + $0x15f0] sm:$0xff]  ;;  %v1788_v34 = vpack.c.bf16 %v1003_v42, %v999_v41  ;;  %v863_v55 = vld [vmem:[%s6658_s1 + $0x1558] sm:$0xff] }
 0x1c4   : > { %2533 = vmatpush2.bf16.msra.mxu1 %v1679_v50  ;;  %2493 = vmatprep.subr.bf16.mxu0 %v1612_v53  ;;  %v1006_v36 = vld [vmem:[%s6658_s1 + $0x19d0] sm:$0xff]  ;;  %v1727_v28 = vpack.c.bf16 %v882_v26, %v878_v30  ;;  %v991_v58 = vld [vmem:[%s6658_s1 + $0x1958] sm:$0xff] }
 0x1c5   : > { %2534 = vmatprep.subr.bf16.mxu1 %v1676_v15  ;;  %v1010_v38 = vld [vmem:[%s6658_s1 + $0x19f0] sm:$0xff]  ;;  %v867_v15 = vld [vmem:[%s6658_s1 + $0x1578] sm:$0xff] }
 0x1c6   : > { %v1791_v43 = vpack.c.bf16 %v1010_v38, %v1006_v36  ;;  %v870_v45 = vld [vmem:[%s6658_s1 + $0x1590] sm:$0xff]  ;;  %v995_v21 = vld [vmem:[%s6658_s1 + $0x1978] sm:$0xff] }
 0x1c7   : > { %2494 = vmatpush2.bf16.msra.mxu0 %v1611_v61  ;;  %v874_v50 = vld [vmem:[%s6658_s1 + $0x15b0] sm:$0xff]  ;;  %v855_v19 = vld [vmem:[%s6658_s1 + $0x1518] sm:$0xff] }
 0x1c8   : > { %2535 = vmatpush2.bf16.msra.mxu1 %v1675_v62  ;;  %2495 = vmatprep.subr.bf16.mxu0 %v1608_v31  ;;  %v998_v53 = vld [vmem:[%s6658_s1 + $0x1990] sm:$0xff]  ;;  %v1723_v61 = vpack.c.bf16 %v874_v50, %v870_v45  ;;  %v1720_v31 = vpack.c.bf16 %v867_v15, %v863_v55  ;;  %v859_v33 = vld [vmem:[%s6658_s1 + $0x1538] sm:$0xff] }
 0x1c9   : > { %2536 = vmatprep.subr.bf16.mxu1 %v1672_v5  ;;  %v1002_v17 = vld [vmem:[%s6658_s1 + $0x19b0] sm:$0xff]  ;;  %v1784_v5 = vpack.c.bf16 %v995_v21, %v991_v58  ;;  %v983_v9 = vld [vmem:[%s6658_s1 + $0x1918] sm:$0xff]  ;;  %v1716_v13 = vpack.c.bf16 %v859_v33, %v855_v19 }
 0x1ca   : > { %v862_v0 = vld [vmem:[%s6658_s1 + $0x1550] sm:$0xff]  ;;  %v847_v16 = vld [vmem:[%s6658_s1 + $0x14d8] sm:$0xff] }
 0x1cb   : > { %2496 = vmatpush2.bf16.msra.mxu0 %v1607_v10  ;;  %v866_v2 = vld [vmem:[%s6658_s1 + $0x1570] sm:$0xff]  ;;  %v987_v10 = vld [vmem:[%s6658_s1 + $0x1938] sm:$0xff] }
 0x1cc   : > { %2537 = vmatpush2.bf16.msra.mxu1 %v1671_v46  ;;  %2497 = vmatprep.subr.bf16.mxu0 %v1604_v11  ;;  %v994_v6 = vld [vmem:[%s6658_s1 + $0x1970] sm:$0xff]  ;;  %v1719_v11 = vpack.c.bf16 %v866_v2, %v862_v0  ;;  %v1780_v25 = vpack.c.bf16 %v987_v10, %v983_v9  ;;  %v851_v27 = vld [vmem:[%s6658_s1 + $0x14f8] sm:$0xff] }
 0x1cd   : > { %2538 = vmatprep.subr.bf16.mxu1 %v1668_v18  ;;  %v858_v18 = vld [vmem:[%s6658_s1 + $0x1530] sm:$0xff]  ;;  %v1712_v26 = vpack.c.bf16 %v851_v27, %v847_v16  ;;  %v839_v41 = vld [vmem:[%s6658_s1 + $0x1498] sm:$0xff] }
 0x1ce   : > { %v986_v47 = vld [vmem:[%s6658_s1 + $0x1930] sm:$0xff]  ;;  %v843_v42 = vld [vmem:[%s6658_s1 + $0x14b8] sm:$0xff] }
 0x1cf   : > { %2498 = vmatpush2.bf16.msra.mxu0 %v1603_v29  ;;  %v975_v29 = vld [vmem:[%s6658_s1 + $0x18d8] sm:$0xff]  ;;  %v846_v36 = vld [vmem:[%s6658_s1 + $0x14d0] sm:$0xff]  ;;  %v1708_v50 = vpack.c.bf16 %v843_v42, %v839_v41 }
 0x1d0   : > { %2539 = vmatpush2.bf16.msra.mxu1 %v1667_v3  ;;  %2549 = vmatprep.subr.bf16.mxu0 %v1728_v20  ;;  %v979_v3 = vld [vmem:[%s6658_s1 + $0x18f8] sm:$0xff]  ;;  %v974_v38 = vld [vmem:[%s6658_s1 + $0x18d0] sm:$0xff] }
 0x1d1   : > { %2590 = vmatprep.subr.bf16.mxu1 %v1792_v37  ;;  %v850_v37 = vld [vmem:[%s6658_s1 + $0x14f0] sm:$0xff]  ;;  %v1776_v40 = vpack.c.bf16 %v979_v3, %v975_v29  ;;  %v835_v58 = vld [vmem:[%s6658_s1 + $0x1478] sm:$0xff] }
 0x1d2   : > { %v2255_v56 = vpop.f32.mrf.mxu0  ;;  %2500 = vmatmul.mubr.bf16.vlgmr.msra.gmra.mxu0 %v3831_v51  ;;  %v1787_v51 = vpack.c.bf16 %v1002_v17, %v998_v53  ;;  %v978_v57 = vld [vmem:[%s6658_s1 + $0x18f0] sm:$0xff]  ;;  %v959_v21 = vld [vmem:[%s6658_s1 + $0x1858] sm:$0xff] }
 0x1d3   : > { %v2256_v59 = vadd.f32 %v2255_v56, %v5493_v48  ;;  %v2296_v60 = vpop.f32.mrf.mxu1  ;;  %2541 = vmatmul.mubr.bf16.vlgmr.msra.gmra.mxu1 %v4239_v32  ;;  %2550 = vmatpush1.bf16.msra.mxu0 %v1727_v28  ;;  %v990_v32 = vld [vmem:[%s6658_s1 + $0x1950] sm:$0xff]  ;;  %v967_v28 = vld [vmem:[%s6658_s1 + $0x1898] sm:$0xff]  ;;  %v1775_v45 = vpack.c.bf16 %v978_v57, %v974_v38 }
 0x1d4   : > { %2591 = vmatpush1.bf16.msra.mxu1 %v1791_v43  ;;  %v5878_v62 = vpop.f32.mrf.mxu0  ;;  %2551 = vmatprep.subr.bf16.mxu0 %v1724_v35  ;;  %v1783_v1 = vpack.c.bf16 %v994_v6, %v990_v32  ;;  %v971_v43 = vld [vmem:[%s6658_s1 + $0x18b8] sm:$0xff]  ;;  %v1711_v35 = vpack.c.bf16 %v850_v37, %v846_v36  ;;  %v838_v53 = vld [vmem:[%s6658_s1 + $0x1490] sm:$0xff] }
 0x1d5   : > { %v5889_v48 = vadd.f32 %v2296_v60, %v2256_v59  ;;  %v5891_v23 = vpop.f32.mrf.mxu1  ;;  %2592 = vmatprep.subr.bf16.mxu1 %v1788_v34  ;;  %2581 = vmatprep.mubr.bf16.mxu0 %v3871_v4  ;;  %v854_v4 = vld [vmem:[%s6658_s1 + $0x1510] sm:$0xff]  ;;  %v1772_v55 = vpack.c.bf16 %v971_v43, %v967_v28  ;;  %v831_v56 = vld [vmem:[%s6658_s1 + $0x1458] sm:$0xff] }
 0x1d6   : > { %v2259_v7 = vpop.f32.mrf.mxu0  ;;  %2622 = vmatprep.mubr.bf16.mxu1 %v4271_v52  ;;  %v982_v52 = vld [vmem:[%s6658_s1 + $0x1910] sm:$0xff]  ;;  %v1715_v20 = vpack.c.bf16 %v858_v18, %v854_v4  ;;  %v963_v59 = vld [vmem:[%s6658_s1 + $0x1878] sm:$0xff] }
 0x1d7   : > { %v2300_v46 = vpop.f32.mrf.mxu1  ;;  %2552 = vmatpush1.bf16.msra.mxu0 %v1723_v61  ;;  %v1779_v30 = vpack.c.bf16 %v986_v47, %v982_v52  ;;  %v842_v34 = vld [vmem:[%s6658_s1 + $0x14b0] sm:$0xff]  ;;  %v1768_v32 = vpack.c.bf16 %v963_v59, %v959_v21  ;;  %v823_v6 = vld [vmem:[%s6658_s1 + $0x1418] sm:$0xff] }
 0x1d8   : > { %2593 = vmatpush1.bf16.msra.mxu1 %v1787_v51  ;;  %v2260_v12 = vpop.f32.mrf.mxu0  ;;  %2553 = vmatprep.subr.bf16.mxu0 %v1720_v31  ;;  %v966_v17 = vld [vmem:[%s6658_s1 + $0x1890] sm:$0xff]  ;;  %v1707_v60 = vpack.c.bf16 %v842_v34, %v838_v53  ;;  %v1704_v51 = vpack.c.bf16 %v835_v58, %v831_v56  ;;  %v827_v19 = vld [vmem:[%s6658_s1 + $0x1438] sm:$0xff] }
 0x1d9   : > { %v2301_v22 = vpop.f32.mrf.mxu1  ;;  %2594 = vmatprep.subr.bf16.mxu1 %v1784_v5  ;;  %v970_v15 = vld [vmem:[%s6658_s1 + $0x18b0] sm:$0xff]  ;;  %v951_v33 = vld [vmem:[%s6658_s1 + $0x1818] sm:$0xff]  ;;  %v1700_v46 = vpack.c.bf16 %v827_v19, %v823_v6 }
 0x1da   : > { %v1771_v61 = vpack.c.bf16 %v970_v15, %v966_v17  ;;  %v830_v31 = vld [vmem:[%s6658_s1 + $0x1450] sm:$0xff]  ;;  %v955_v7 = vld [vmem:[%s6658_s1 + $0x1838] sm:$0xff] }
 0x1db   : > { %2554 = vmatpush1.bf16.msra.mxu0 %v1719_v11  ;;  %v834_v0 = vld [vmem:[%s6658_s1 + $0x1470] sm:$0xff]  ;;  %v943_v18 = vld [vmem:[%s6658_s1 + $0x17d8] sm:$0xff] }
 0x1dc   : > { %2595 = vmatpush1.bf16.msra.mxu1 %v1783_v1  ;;  %2555 = vmatprep.subr.bf16.mxu0 %v1716_v13  ;;  %v958_v2 = vld [vmem:[%s6658_s1 + $0x1850] sm:$0xff]  ;;  %v1703_v9 = vpack.c.bf16 %v834_v0, %v830_v31  ;;  %v1764_v13 = vpack.c.bf16 %v955_v7, %v951_v33  ;;  %v947_v52 = vld [vmem:[%s6658_s1 + $0x17f8] sm:$0xff] }
 0x1dd   : > { %2596 = vmatprep.subr.bf16.mxu1 %v1780_v25  ;;  %v962_v5 = vld [vmem:[%s6658_s1 + $0x1870] sm:$0xff]  ;;  %v1071_v22 = vld [vmem:[%s6658_s1 + $0x1bd8] sm:$0xff]  ;;  %v1760_v27 = vpack.c.bf16 %v947_v52, %v943_v18 }
 0x1de   : > { %v1767_v10 = vpack.c.bf16 %v962_v5, %v958_v2  ;;  %v822_v11 = vld [vmem:[%s6658_s1 + $0x1410] sm:$0xff]  ;;  %v1075_v25 = vld [vmem:[%s6658_s1 + $0x1bf8] sm:$0xff] }
 0x1df   : > { %2556 = vmatpush1.bf16.msra.mxu0 %v1715_v20  ;;  %v826_v12 = vld [vmem:[%s6658_s1 + $0x1430] sm:$0xff]  ;;  %v935_v36 = vld [vmem:[%s6658_s1 + $0x1798] sm:$0xff] }
 0x1e0   : > { %2597 = vmatpush1.bf16.msra.mxu1 %v1779_v30  ;;  %2557 = vmatprep.subr.bf16.mxu0 %v1712_v26  ;;  %v950_v1 = vld [vmem:[%s6658_s1 + $0x1810] sm:$0xff]  ;;  %v1699_v47 = vpack.c.bf16 %v826_v12, %v822_v11  ;;  %v1824_v30 = vpack.c.bf16 %v1075_v25, %v1071_v22  ;;  %v939_v37 = vld [vmem:[%s6658_s1 + $0x17b8] sm:$0xff] }
 0x1e1   : > { %2598 = vmatprep.subr.bf16.mxu1 %v1776_v40  ;;  %v954_v4 = vld [vmem:[%s6658_s1 + $0x1830] sm:$0xff]  ;;  %v1063_v38 = vld [vmem:[%s6658_s1 + $0x1b98] sm:$0xff]  ;;  %v1756_v42 = vpack.c.bf16 %v939_v37, %v935_v36 }
 0x1e2   : > { %v1763_v16 = vpack.c.bf16 %v954_v4, %v950_v1  ;;  %v942_v29 = vld [vmem:[%s6658_s1 + $0x17d0] sm:$0xff]  ;;  %v1067_v40 = vld [vmem:[%s6658_s1 + $0x1bb8] sm:$0xff] }
 0x1e3   : > { %2558 = vmatpush1.bf16.msra.mxu0 %v1711_v35  ;;  %v946_v3 = vld [vmem:[%s6658_s1 + $0x17f0] sm:$0xff]  ;;  %v927_v53 = vld [vmem:[%s6658_s1 + $0x1758] sm:$0xff] }
 0x1e4   : > { %2599 = vmatpush1.bf16.msra.mxu1 %v1775_v45  ;;  %2559 = vmatprep.subr.bf16.mxu0 %v1708_v50  ;;  %v1070_v20 = vld [vmem:[%s6658_s1 + $0x1bd0] sm:$0xff]  ;;  %v1759_v57 = vpack.c.bf16 %v946_v3, %v942_v29  ;;  %v1820_v45 = vpack.c.bf16 %v1067_v40, %v1063_v38  ;;  %v931_v34 = vld [vmem:[%s6658_s1 + $0x1778] sm:$0xff] }
 0x1e5   : > { %2600 = vmatprep.subr.bf16.mxu1 %v1772_v55  ;;  %v1074_v26 = vld [vmem:[%s6658_s1 + $0x1bf0] sm:$0xff]  ;;  %v1055_v17 = vld [vmem:[%s6658_s1 + $0x1b58] sm:$0xff]  ;;  %v1752_v58 = vpack.c.bf16 %v931_v34, %v927_v53 }
 0x1e6   : > { %v1823_v41 = vpack.c.bf16 %v1074_v26, %v1070_v20  ;;  %v934_v28 = vld [vmem:[%s6658_s1 + $0x1790] sm:$0xff]  ;;  %v1059_v55 = vld [vmem:[%s6658_s1 + $0x1b78] sm:$0xff] }
 0x1e7   : > { %2560 = vmatpush1.bf16.msra.mxu0 %v1707_v60  ;;  %v938_v43 = vld [vmem:[%s6658_s1 + $0x17b0] sm:$0xff]  ;;  %v919_v31 = vld [vmem:[%s6658_s1 + $0x1718] sm:$0xff] }
 0x1e8   : > { %2601 = vmatpush1.bf16.msra.mxu1 %v1771_v61  ;;  %2561 = vmatprep.subr.bf16.mxu0 %v1704_v51  ;;  %v1062_v35 = vld [vmem:[%s6658_s1 + $0x1b90] sm:$0xff]  ;;  %v1755_v15 = vpack.c.bf16 %v938_v43, %v934_v28  ;;  %v1816_v61 = vpack.c.bf16 %v1059_v55, %v1055_v17  ;;  %v923_v0 = vld [vmem:[%s6658_s1 + $0x1738] sm:$0xff] }
 0x1e9   : > { %2602 = vmatprep.subr.bf16.mxu1 %v1768_v32  ;;  %v1066_v50 = vld [vmem:[%s6658_s1 + $0x1bb0] sm:$0xff]  ;;  %v1047_v2 = vld [vmem:[%s6658_s1 + $0x1b18] sm:$0xff]  ;;  %v1748_v19 = vpack.c.bf16 %v923_v0, %v919_v31 }
 0x1ea   : > { %v1819_v56 = vpack.c.bf16 %v1066_v50, %v1062_v35  ;;  %v926_v21 = vld [vmem:[%s6658_s1 + $0x1750] sm:$0xff]  ;;  %v1051_v32 = vld [vmem:[%s6658_s1 + $0x1b38] sm:$0xff] }
 0x1eb   : > { %2562 = vmatpush1.bf16.msra.mxu0 %v1703_v9  ;;  %v930_v59 = vld [vmem:[%s6658_s1 + $0x1770] sm:$0xff]  ;;  %v911_v11 = vld [vmem:[%s6658_s1 + $0x16d8] sm:$0xff] }
 0x1ec   : > { %2603 = vmatpush1.bf16.msra.mxu1 %v1767_v10  ;;  %2563 = vmatprep.subr.bf16.mxu0 %v1700_v46  ;;  %v1054_v60 = vld [vmem:[%s6658_s1 + $0x1b50] sm:$0xff]  ;;  %v1751_v5 = vpack.c.bf16 %v930_v59, %v926_v21  ;;  %v1812_v10 = vpack.c.bf16 %v1051_v32, %v1047_v2  ;;  %v915_v12 = vld [vmem:[%s6658_s1 + $0x16f8] sm:$0xff] }
 0x1ed   : > { %2604 = vmatprep.subr.bf16.mxu1 %v1764_v13  ;;  %v1058_v51 = vld [vmem:[%s6658_s1 + $0x1b70] sm:$0xff]  ;;  %v1039_v1 = vld [vmem:[%s6658_s1 + $0x1ad8] sm:$0xff]  ;;  %v1744_v52 = vpack.c.bf16 %v915_v12, %v911_v11 }
 0x1ee   : > { %v1815_v6 = vpack.c.bf16 %v1058_v51, %v1054_v60  ;;  %v918_v33 = vld [vmem:[%s6658_s1 + $0x1710] sm:$0xff]  ;;  %v1043_v13 = vld [vmem:[%s6658_s1 + $0x1af8] sm:$0xff] }
 0x1ef   : > { %2564 = vmatpush1.bf16.msra.mxu0 %v1699_v47  ;;  %v922_v7 = vld [vmem:[%s6658_s1 + $0x1730] sm:$0xff]  ;;  %v903_v29 = vld [vmem:[%s6658_s1 + $0x1698] sm:$0xff] }
 0x1f0   : > { %2605 = vmatpush1.bf16.msra.mxu1 %v1763_v16  ;;  %2565 = vmatprep.subr.bf16.mxu0 %v1760_v27  ;;  %v1046_v9 = vld [vmem:[%s6658_s1 + $0x1b10] sm:$0xff]  ;;  %v1747_v4 = vpack.c.bf16 %v922_v7, %v918_v33  ;;  %v1808_v16 = vpack.c.bf16 %v1043_v13, %v1039_v1  ;;  %v907_v3 = vld [vmem:[%s6658_s1 + $0x16b8] sm:$0xff] }
 0x1f1   : > { %2606 = vmatprep.subr.bf16.mxu1 %v1824_v30  ;;  %v1050_v46 = vld [vmem:[%s6658_s1 + $0x1b30] sm:$0xff]  ;;  %v1031_v20 = vld [vmem:[%s6658_s1 + $0x1a98] sm:$0xff]  ;;  %v1740_v37 = vpack.c.bf16 %v907_v3, %v903_v29 }
 0x1f2   : > { %v1811_v18 = vpack.c.bf16 %v1050_v46, %v1046_v9  ;;  %v910_v22 = vld [vmem:[%s6658_s1 + $0x16d0] sm:$0xff]  ;;  %v1035_v30 = vld [vmem:[%s6658_s1 + $0x1ab8] sm:$0xff] }
 0x1f3   : > { %2566 = vmatpush2.bf16.msra.mxu0 %v1759_v57  ;;  %v914_v25 = vld [vmem:[%s6658_s1 + $0x16f0] sm:$0xff]  ;;  %v895_v28 = vld [vmem:[%s6658_s1 + $0x1658] sm:$0xff] }
 0x1f4   : > { %2607 = vmatpush2.bf16.msra.mxu1 %v1823_v41  ;;  %2567 = vmatprep.subr.bf16.mxu0 %v1756_v42  ;;  %v1038_v47 = vld [vmem:[%s6658_s1 + $0x1ad0] sm:$0xff]  ;;  %v1743_v26 = vpack.c.bf16 %v914_v25, %v910_v22  ;;  %v1804_v41 = vpack.c.bf16 %v1035_v30, %v1031_v20  ;;  %v899_v43 = vld [vmem:[%s6658_s1 + $0x1678] sm:$0xff] }
 0x1f5   : > { %2608 = vmatprep.subr.bf16.mxu1 %v1820_v45  ;;  %v1042_v27 = vld [vmem:[%s6658_s1 + $0x1af0] sm:$0xff]  ;;  %v1023_v35 = vld [vmem:[%s6658_s1 + $0x1a58] sm:$0xff]  ;;  %v1736_v34 = vpack.c.bf16 %v899_v43, %v895_v28 }
 0x1f6   : > { %v1807_v36 = vpack.c.bf16 %v1042_v27, %v1038_v47  ;;  %v902_v38 = vld [vmem:[%s6658_s1 + $0x1690] sm:$0xff]  ;;  %v1027_v45 = vld [vmem:[%s6658_s1 + $0x1a78] sm:$0xff]  ;;  %v2258_v27 = vadd.f32 %v5878_v62, %v5513_v14 }
 0x1f7   : > { %2568 = vmatpush2.bf16.msra.mxu0 %v1755_v15  ;;  %v906_v40 = vld [vmem:[%s6658_s1 + $0x16b0] sm:$0xff]  ;;  %v887_v21 = vld [vmem:[%s6658_s1 + $0x1618] sm:$0xff] }
 0x1f8   : > { %2609 = vmatpush2.bf16.msra.mxu1 %v1819_v56  ;;  %2569 = vmatprep.subr.bf16.mxu0 %v1752_v58  ;;  %v1030_v57 = vld [vmem:[%s6658_s1 + $0x1a90] sm:$0xff]  ;;  %v1739_v50 = vpack.c.bf16 %v906_v40, %v902_v38  ;;  %v1800_v56 = vpack.c.bf16 %v1027_v45, %v1023_v35  ;;  %v891_v59 = vld [vmem:[%s6658_s1 + $0x1638] sm:$0xff] }
 0x1f9   : > { %2610 = vmatprep.subr.bf16.mxu1 %v1816_v61  ;;  %v1034_v42 = vld [vmem:[%s6658_s1 + $0x1ab0] sm:$0xff]  ;;  %v1015_v60 = vld [vmem:[%s6658_s1 + $0x1a18] sm:$0xff]  ;;  %v1732_v0 = vpack.c.bf16 %v891_v59, %v887_v21 }
 0x1fa   : > { %v1803_v53 = vpack.c.bf16 %v1034_v42, %v1030_v57  ;;  %v894_v17 = vld [vmem:[%s6658_s1 + $0x1650] sm:$0xff]  ;;  %v1019_v61 = vld [vmem:[%s6658_s1 + $0x1a38] sm:$0xff]  ;;  %v2299_v42 = vadd.f32 %v5891_v23, %v2258_v27 }
 0x1fb   : > { %2570 = vmatpush2.bf16.msra.mxu0 %v1751_v5  ;;  %v898_v55 = vld [vmem:[%s6658_s1 + $0x1670] sm:$0xff]  ;;  %v1135_v33 = vld [vmem:[%s6658_s1 + $0x1dd8] sm:$0xff] }
 0x1fc   : > { %2611 = vmatpush2.bf16.msra.mxu1 %v1815_v6  ;;  %2571 = vmatprep.subr.bf16.mxu0 %v1748_v19  ;;  %v1022_v15 = vld [vmem:[%s6658_s1 + $0x1a50] sm:$0xff]  ;;  %v1735_v51 = vpack.c.bf16 %v898_v55, %v894_v17  ;;  %v1796_v6 = vpack.c.bf16 %v1019_v61, %v1015_v60  ;;  %v1139_v7 = vld [vmem:[%s6658_s1 + $0x1df8] sm:$0xff] }
 0x1fd   : > { %2612 = vmatprep.subr.bf16.mxu1 %v1812_v10  ;;  %v1026_v58 = vld [vmem:[%s6658_s1 + $0x1a70] sm:$0xff]  ;;  %v1263_v9 = vld [vmem:[%s6658_s1 + $0x21d8] sm:$0xff]  ;;  %v1856_v12 = vpack.c.bf16 %v1139_v7, %v1135_v33 }
 0x1fe   : > { %v1799_v31 = vpack.c.bf16 %v1026_v58, %v1022_v15  ;;  %v886_v2 = vld [vmem:[%s6658_s1 + $0x1610] sm:$0xff]  ;;  %v1267_v10 = vld [vmem:[%s6658_s1 + $0x21f8] sm:$0xff] }
 0x1ff   : > { %2572 = vmatpush2.bf16.msra.mxu0 %v1747_v4  ;;  %v890_v32 = vld [vmem:[%s6658_s1 + $0x1630] sm:$0xff]  ;;  %v1127_v22 = vld [vmem:[%s6658_s1 + $0x1d98] sm:$0xff] }
 0x200   : > { %2613 = vmatpush2.bf16.msra.mxu1 %v1811_v18  ;;  %2573 = vmatprep.subr.bf16.mxu0 %v1744_v52  ;;  %v1014_v5 = vld [vmem:[%s6658_s1 + $0x1a10] sm:$0xff]  ;;  %v1731_v46 = vpack.c.bf16 %v890_v32, %v886_v2  ;;  %v1920_v18 = vpack.c.bf16 %v1267_v10, %v1263_v9  ;;  %v1131_v25 = vld [vmem:[%s6658_s1 + $0x1db8] sm:$0xff] }
 0x201   : > { %2614 = vmatprep.subr.bf16.mxu1 %v1808_v16  ;;  %v1018_v19 = vld [vmem:[%s6658_s1 + $0x1a30] sm:$0xff]  ;;  %v1255_v47 = vld [vmem:[%s6658_s1 + $0x2198] sm:$0xff]  ;;  %v1852_v20 = vpack.c.bf16 %v1131_v25, %v1127_v22 }
 0x202   : > { %v1795_v11 = vpack.c.bf16 %v1018_v19, %v1014_v5  ;;  %v1134_v1 = vld [vmem:[%s6658_s1 + $0x1dd0] sm:$0xff]  ;;  %v1259_v16 = vld [vmem:[%s6658_s1 + $0x21b8] sm:$0xff] }
 0x203   : > { %2574 = vmatpush2.bf16.msra.mxu0 %v1743_v26  ;;  %v1138_v13 = vld [vmem:[%s6658_s1 + $0x1df0] sm:$0xff]  ;;  %v1916_v14 = vpack.c.bf16 %v1259_v16, %v1255_v47  ;;  %v1123_v38 = vld [vmem:[%s6658_s1 + $0x1d78] sm:$0xff] }
 0x204   : > { %2615 = vmatpush2.bf16.msra.mxu1 %v1807_v36  ;;  %2575 = vmatprep.subr.bf16.mxu0 %v1740_v37  ;;  %v1262_v4 = vld [vmem:[%s6658_s1 + $0x21d0] sm:$0xff]  ;;  %v1855_v29 = vpack.c.bf16 %v1138_v13, %v1134_v1  ;;  %v1119_v37 = vld [vmem:[%s6658_s1 + $0x1d58] sm:$0xff] }
 0x205   : > { %2616 = vmatprep.subr.bf16.mxu1 %v1804_v41  ;;  %v1266_v52 = vld [vmem:[%s6658_s1 + $0x21f0] sm:$0xff]  ;;  %v1247_v57 = vld [vmem:[%s6658_s1 + $0x2158] sm:$0xff] }
 0x206   : > { %v1919_v3 = vpack.c.bf16 %v1266_v52, %v1262_v4  ;;  %v1126_v30 = vld [vmem:[%s6658_s1 + $0x1d90] sm:$0xff]  ;;  %v1251_v41 = vld [vmem:[%s6658_s1 + $0x2178] sm:$0xff] }
 0x207   : > { %2576 = vmatpush2.bf16.msra.mxu0 %v1739_v50  ;;  %v1130_v26 = vld [vmem:[%s6658_s1 + $0x1db0] sm:$0xff]  ;;  %v1848_v50 = vpack.c.bf16 %v1123_v38, %v1119_v37  ;;  %v1912_v55 = vpack.c.bf16 %v1251_v41, %v1247_v57  ;;  %v1115_v58 = vld [vmem:[%s6658_s1 + $0x1d38] sm:$0xff] }
 0x208   : > { %2617 = vmatpush2.bf16.msra.mxu1 %v1803_v53  ;;  %2577 = vmatprep.subr.bf16.mxu0 %v1736_v34  ;;  %v1254_v36 = vld [vmem:[%s6658_s1 + $0x2190] sm:$0xff]  ;;  %v1851_v35 = vpack.c.bf16 %v1130_v26, %v1126_v30  ;;  %v1239_v59 = vld [vmem:[%s6658_s1 + $0x2118] sm:$0xff] }
 0x209   : > { %2618 = vmatprep.subr.bf16.mxu1 %v1800_v56  ;;  %v1258_v62 = vld [vmem:[%s6658_s1 + $0x21b0] sm:$0xff]  ;;  %v1111_v56 = vld [vmem:[%s6658_s1 + $0x1d18] sm:$0xff] }
 0x20a   : > { %v1915_v45 = vpack.c.bf16 %v1258_v62, %v1254_v36  ;;  %v1118_v53 = vld [vmem:[%s6658_s1 + $0x1d50] sm:$0xff]  ;;  %v1243_v60 = vld [vmem:[%s6658_s1 + $0x2138] sm:$0xff]  ;;  %v1844_v19 = vpack.c.bf16 %v1115_v58, %v1111_v56 }
 0x20b   : > { %2578 = vmatpush2.bf16.msra.mxu0 %v1735_v51  ;;  %v1250_v15 = vld [vmem:[%s6658_s1 + $0x2170] sm:$0xff]  ;;  %v1103_v9 = vld [vmem:[%s6658_s1 + $0x1cd8] sm:$0xff] }
 0x20c   : > { %2619 = vmatpush2.bf16.msra.mxu1 %v1799_v31  ;;  %2579 = vmatprep.subr.bf16.mxu0 %v1732_v0  ;;  %v1114_v2 = vld [vmem:[%s6658_s1 + $0x1d30] sm:$0xff]  ;;  %v1107_v1 = vld [vmem:[%s6658_s1 + $0x1cf8] sm:$0xff] }
 0x20d   : > { %2620 = vmatprep.subr.bf16.mxu1 %v1796_v6  ;;  %v1238_v33 = vld [vmem:[%s6658_s1 + $0x2110] sm:$0xff]  ;;  %v1231_v13 = vld [vmem:[%s6658_s1 + $0x20d8] sm:$0xff]  ;;  %v1840_v26 = vpack.c.bf16 %v1107_v1, %v1103_v9 }
 0x20e   : > { %v1242_v7 = vld [vmem:[%s6658_s1 + $0x2130] sm:$0xff]  ;;  %v1235_v4 = vld [vmem:[%s6658_s1 + $0x20f8] sm:$0xff] }
 0x20f   : > { %2580 = vmatpush2.bf16.msra.mxu0 %v1731_v46  ;;  %v1907_v30 = vpack.c.bf16 %v1242_v7, %v1238_v33  ;;  %v1904_v36 = vpack.c.bf16 %v1235_v4, %v1231_v13  ;;  %v1234_v62 = vld [vmem:[%s6658_s1 + $0x20f0] sm:$0xff]  ;;  %v1095_v37 = vld [vmem:[%s6658_s1 + $0x1c98] sm:$0xff] }
 0x210   : > { %2621 = vmatpush2.bf16.msra.mxu1 %v1795_v11  ;;  %2631 = vmatprep.subr.bf16.mxu0 %v1856_v12  ;;  %v1908_v12 = vpack.c.bf16 %v1243_v60, %v1239_v59  ;;  %v1222_v56 = vld [vmem:[%s6658_s1 + $0x2090] sm:$0xff] }
 0x211   : > { %2672 = vmatprep.subr.bf16.mxu1 %v1920_v18  ;;  %v1226_v58 = vld [vmem:[%s6658_s1 + $0x20b0] sm:$0xff] }
 0x212   : > { %v2337_v40 = vpop.f32.mrf.mxu0  ;;  %2582 = vmatmul.mubr.bf16.vlgmr.msra.gmra.mxu0 %v4251_v39  ;;  %v1899_v33 = vpack.c.bf16 %v1226_v58, %v1222_v56 }
 0x213   : > { %v2338_v28 = vadd.f32 %v2337_v40, %v5889_v48  ;;  %v6275_v43 = vpop.f32.mrf.mxu1  ;;  %2623 = vmatmul.mubr.bf16.vlgmr.msra.gmra.mxu1 %v4653_v44  ;;  %2632 = vmatpush1.bf16.msra.mxu0 %v1855_v29  ;;  %v1122_v48 = vld [vmem:[%s6658_s1 + $0x1d70] sm:$0xff] }
 0x214   : > { %2673 = vmatpush1.bf16.msra.mxu1 %v1919_v3  ;;  %v2339_v39 = vpop.f32.mrf.mxu0  ;;  %2633 = vmatprep.subr.bf16.mxu0 %v1852_v20  ;;  %v1246_v44 = vld [vmem:[%s6658_s1 + $0x2150] sm:$0xff]  ;;  %v1847_v0 = vpack.c.bf16 %v1122_v48, %v1118_v53 }
 0x215   : > { %vm2713_vm1 = vcmp.ge.f32.partialorder %v2338_v28, 0.0  ;;  %v2717_v23 = vmul.f32 0.2, %v2338_v28  ;;  %v2340_v34 = vadd.f32 %v2339_v39, %v2299_v42  ;;  %v6287_v17 = vpop.f32.mrf.mxu1  ;;  %2674 = vmatprep.subr.bf16.mxu1 %v1916_v14  ;;  %2663 = vmatprep.mubr.bf16.mxu0 %v4280_v54  ;;  %v1110_v54 = vld [vmem:[%s6658_s1 + $0x1d10] sm:$0xff]  ;;  %v1911_v6 = vpack.c.bf16 %v1250_v15, %v1246_v44  ;;  %v1099_v42 = vld [vmem:[%s6658_s1 + $0x1cb8] sm:$0xff] }
 0x216   : > { %v2341_v21 = vpop.f32.mrf.mxu0  ;;  %2704 = vmatprep.mubr.bf16.mxu1 %v4683_v63  ;;  %v1843_v27 = vpack.c.bf16 %v1114_v2, %v1110_v54  ;;  %v1102_v29 = vld [vmem:[%s6658_s1 + $0x1cd0] sm:$0xff]  ;;  %v1215_v54 = vld [vmem:[%s6658_s1 + $0x2058] sm:$0xff] }
 0x217   : > { %v6306_v61 = vsel %vm2713_vm1, %v2338_v28, %v2717_v23  ;;  %vm2714_vm2 = vcmp.ge.f32.partialorder %v2340_v34, 0.0  ;;  %v2718_v51 = vmul.f32 0.2, %v2340_v34  ;;  %v2382_v31 = vpop.f32.mrf.mxu1  ;;  %2634 = vmatpush1.bf16.msra.mxu0 %v1851_v35  ;;  %v1106_v3 = vld [vmem:[%s6658_s1 + $0x1cf0] sm:$0xff]  ;;  %v1223_v28 = vld [vmem:[%s6658_s1 + $0x2098] sm:$0xff] }
 0x218   : > { %v2726_v32 = vsel %vm2725_vm0, %v6306_v61, 0.0  ;;  %v2758_v63 = vmul.f32 %v6306_v61, %v6306_v61  ;;  %2675 = vmatpush1.bf16.msra.mxu1 %v1915_v45  ;;  %v2342_v5 = vpop.f32.mrf.mxu0  ;;  %2635 = vmatprep.subr.bf16.mxu0 %v1848_v50  ;;  %v1230_v14 = vld [vmem:[%s6658_s1 + $0x20d0] sm:$0xff]  ;;  %v1227_v35 = vld [vmem:[%s6658_s1 + $0x20b8] sm:$0xff]  ;;  %v1839_v39 = vpack.c.bf16 %v1106_v3, %v1102_v29 }
 0x219   : > { %v2727_v10 = vrot.slane %v2726_v32, 4  ;;  %v6328_v46 = vsel %vm2714_vm2, %v2340_v34, %v2718_v51  ;;  %v2383_v11 = vpop.f32.mrf.mxu1  ;;  %2676 = vmatprep.subr.bf16.mxu1 %v1912_v55  ;;  %v1094_v44 = vld [vmem:[%s6658_s1 + $0x1c90] sm:$0xff]  ;;  %v1903_v34 = vpack.c.bf16 %v1234_v62, %v1230_v14  ;;  %v1836_v55 = vpack.c.bf16 %v1099_v42, %v1095_v37  ;;  %v1087_v21 = vld [vmem:[%s6658_s1 + $0x1c58] sm:$0xff] }
 0x21a   : > { %v2762_v18 = vsel %vm2725_vm0, %v2758_v63, 0.0  ;;  %v2733_v52 = vsel %vm2725_vm0, %v6328_v46, 0.0  ;;  %v2759_v22 = vmul.f32 %v6328_v46, %v6328_v46  ;;  %v1098_v23 = vld [vmem:[%s6658_s1 + $0x1cb0] sm:$0xff]  ;;  %v1900_v15 = vpack.c.bf16 %v1227_v35, %v1223_v28  ;;  %v1219_v2 = vld [vmem:[%s6658_s1 + $0x2078] sm:$0xff] }
 0x21b   : > { %v2728_v25 = vadd.f32 %v2727_v10, %v2726_v32  ;;  %v2763_v47 = vrot.slane %v2762_v18, 4  ;;  %v2734_v16 = vrot.slane %v2733_v52, 4  ;;  %2636 = vmatpush1.bf16.msra.mxu0 %v1847_v0  ;;  %v1091_v0 = vld [vmem:[%s6658_s1 + $0x1c78] sm:$0xff]  ;;  %v1835_v32 = vpack.c.bf16 %v1098_v23, %v1094_v44  ;;  %v1086_v10 = vld [vmem:[%s6658_s1 + $0x1c50] sm:$0xff] }
 0x21c   : > { %v2769_v20 = vsel %vm2725_vm0, %v2759_v22, 0.0  ;;  %2677 = vmatpush1.bf16.msra.mxu1 %v1911_v6  ;;  %2637 = vmatprep.subr.bf16.mxu0 %v1844_v19  ;;  %v1832_v7 = vpack.c.bf16 %v1091_v0, %v1087_v21  ;;  %v1896_v9 = vpack.c.bf16 %v1219_v2, %v1215_v54  ;;  %v1090_v11 = vld [vmem:[%s6658_s1 + $0x1c70] sm:$0xff]  ;;  %v1079_v22 = vld [vmem:[%s6658_s1 + $0x1c18] sm:$0xff] }
 0x21d   : > { %v2729_v38 = vrot.slane %v2728_v25, 2  ;;  %v2764_v40 = vadd.f32 %v2763_v47, %v2762_v18  ;;  %v2735_v57 = vadd.f32 %v2734_v16, %v2733_v52  ;;  %v2770_v41 = vrot.slane %v2769_v20, 4  ;;  %2678 = vmatprep.subr.bf16.mxu1 %v1908_v12  ;;  %v1214_v12 = vld [vmem:[%s6658_s1 + $0x2050] sm:$0xff]  ;;  %v1207_v47 = vld [vmem:[%s6658_s1 + $0x2018] sm:$0xff] }
 0x21e   : > { %v1218_v52 = vld [vmem:[%s6658_s1 + $0x2070] sm:$0xff]  ;;  %v1211_v16 = vld [vmem:[%s6658_s1 + $0x2038] sm:$0xff] }
 0x21f   : > { %v2730_v45 = vadd.f32 %v2729_v38, %v2728_v25  ;;  %v2765_v50 = vrot.slane %v2764_v40, 2  ;;  %v2736_v53 = vrot.slane %v2735_v57, 2  ;;  %v2771_v48 = vadd.f32 %v2770_v41, %v2769_v20  ;;  %2638 = vmatpush1.bf16.msra.mxu0 %v1843_v27  ;;  %v1083_v25 = vld [vmem:[%s6658_s1 + $0x1c38] sm:$0xff]  ;;  %v1078_v14 = vld [vmem:[%s6658_s1 + $0x1c10] sm:$0xff] }
 0x220   : > { %2679 = vmatpush1.bf16.msra.mxu1 %v1907_v30  ;;  %2639 = vmatprep.subr.bf16.mxu0 %v1840_v26  ;;  %v1831_v20 = vpack.c.bf16 %v1090_v11, %v1086_v10  ;;  %v1895_v26 = vpack.c.bf16 %v1218_v52, %v1214_v12  ;;  %v1082_v62 = vld [vmem:[%s6658_s1 + $0x1c30] sm:$0xff]  ;;  %v1199_v42 = vld [vmem:[%s6658_s1 + $0x1fd8] sm:$0xff] }
 0x221   : > { %v2731_v59 = vrot.slane %v2730_v45, 1  ;;  %v2766_v60 = vadd.f32 %v2765_v50, %v2764_v40  ;;  %v2737_v51 = vadd.f32 %v2736_v53, %v2735_v57  ;;  %v2772_v31 = vrot.slane %v2771_v48, 2  ;;  %2680 = vmatprep.subr.bf16.mxu1 %v1904_v36  ;;  %v1206_v37 = vld [vmem:[%s6658_s1 + $0x2010] sm:$0xff]  ;;  %v1203_v28 = vld [vmem:[%s6658_s1 + $0x1ff8] sm:$0xff] }
 0x222   : > { %v1828_v36 = vpack.c.bf16 %v1083_v25, %v1079_v22  ;;  %v1892_v57 = vpack.c.bf16 %v1211_v16, %v1207_v47  ;;  %v1210_v41 = vld [vmem:[%s6658_s1 + $0x2030] sm:$0xff]  ;;  %v1827_v53 = vpack.c.bf16 %v1082_v62, %v1078_v14  ;;  %v1888_v23 = vpack.c.bf16 %v1203_v28, %v1199_v42  ;;  %v1323_v0 = vld [vmem:[%s6658_s1 + $0x23b8] sm:$0xff] }
 0x223   : > { %v2732_v63 = vadd.f32 %v2731_v59, %v2730_v45  ;;  %v2767_v5 = vrot.slane %v2766_v60, 1  ;;  %v2738_v6 = vrot.slane %v2737_v51, 1  ;;  %v2773_v19 = vadd.f32 %v2772_v31, %v2771_v48  ;;  %2640 = vmatpush1.bf16.msra.mxu0 %v1839_v39  ;;  %v1327_v39 = vld [vmem:[%s6658_s1 + $0x23d8] sm:$0xff]  ;;  %v1330_v21 = vld [vmem:[%s6658_s1 + $0x23f0] sm:$0xff] }
 0x224   : > { %2681 = vmatpush1.bf16.msra.mxu1 %v1903_v34  ;;  %2641 = vmatprep.subr.bf16.mxu0 %v1836_v55  ;;  %v1331_v45 = vld [vmem:[%s6658_s1 + $0x23f8] sm:$0xff]  ;;  %v1891_v44 = vpack.c.bf16 %v1210_v41, %v1206_v37  ;;  %v1198_v34 = vld [vmem:[%s6658_s1 + $0x1fd0] sm:$0xff] }
 0x225   : > { %v6402_v1 = vmul.f32 0.25, %v2732_v63  ;;  %v2768_v13 = vadd.f32 %v2767_v5, %v2766_v60  ;;  %v2739_v4 = vadd.f32 %v2738_v6, %v2737_v51  ;;  %v2774_v18 = vrot.slane %v2773_v19, 1  ;;  %2682 = vmatprep.subr.bf16.mxu1 %v1900_v15  ;;  %v1202_v55 = vld [vmem:[%s6658_s1 + $0x1ff0] sm:$0xff]  ;;  %v1191_v59 = vld [vmem:[%s6658_s1 + $0x1f98] sm:$0xff] }
 0x226   : > { %v1326_v15 = vld [vmem:[%s6658_s1 + $0x23d0] sm:$0xff]  ;;  %v1952_v58 = vpack.c.bf16 %v1331_v45, %v1327_v39  ;;  %v1195_v60 = vld [vmem:[%s6658_s1 + $0x1fb8] sm:$0xff]  ;;  %v1887_v54 = vpack.c.bf16 %v1202_v55, %v1198_v34 }
 0x227   : > { %v2790_v27 = vmul.f32 0.25, %v2768_v13  ;;  %v2794_v29 = vmul.f32 %v6402_v1, %v6402_v1  ;;  %v6421_v3 = vmul.f32 0.25, %v2739_v4  ;;  %2642 = vmatpush1.bf16.msra.mxu0 %v1835_v32  ;;  %v2775_v30 = vadd.f32 %v2774_v18, %v2773_v19  ;;  %v1319_v31 = vld [vmem:[%s6658_s1 + $0x2398] sm:$0xff]  ;;  %v1190_v5 = vld [vmem:[%s6658_s1 + $0x1f90] sm:$0xff] }
 0x228   : > { %2683 = vmatpush1.bf16.msra.mxu1 %v1899_v33  ;;  %2643 = vmatprep.subr.bf16.mxu0 %v1832_v7  ;;  %v1951_v32 = vpack.c.bf16 %v1330_v21, %v1326_v15  ;;  %v1884_v63 = vpack.c.bf16 %v1195_v60, %v1191_v59  ;;  %v1194_v6 = vld [vmem:[%s6658_s1 + $0x1fb0] sm:$0xff]  ;;  %v1948_v33 = vpack.c.bf16 %v1323_v0, %v1319_v31  ;;  %v1187_v10 = vld [vmem:[%s6658_s1 + $0x1f78] sm:$0xff] }
 0x229   : > { %v2798_v38 = vsub.f32 %v2790_v27, %v2794_v29  ;;  %v2795_v40 = vmul.f32 %v6421_v3, %v6421_v3  ;;  %2684 = vmatprep.subr.bf16.mxu1 %v1896_v9  ;;  %v2791_v35 = vmul.f32 0.25, %v2775_v30  ;;  %v1318_v19 = vld [vmem:[%s6658_s1 + $0x2390] sm:$0xff]  ;;  %v1183_v9 = vld [vmem:[%s6658_s1 + $0x1f58] sm:$0xff]  ;;  %v1883_v13 = vpack.c.bf16 %v1194_v6, %v1190_v5 }
 0x22a   : > { %v1322_v7 = vld [vmem:[%s6658_s1 + $0x23b0] sm:$0xff]  ;;  %v1311_v11 = vld [vmem:[%s6658_s1 + $0x2358] sm:$0xff]  ;;  %v1880_v18 = vpack.c.bf16 %v1187_v10, %v1183_v9  ;;  %v2807_v21 = vsub.f32 %v6328_v46, %v6421_v3 }
 0x22b   : > { %v2802_v50 = vmax.f32 %v2798_v38, 0.0  ;;  %2644 = vmatpush1.bf16.msra.mxu0 %v1831_v20  ;;  %v2799_v48 = vsub.f32 %v2791_v35, %v2795_v40  ;;  %v1315_v12 = vld [vmem:[%s6658_s1 + $0x2378] sm:$0xff]  ;;  %v1947_v4 = vpack.c.bf16 %v1322_v7, %v1318_v19  ;;  %v1182_v52 = vld [vmem:[%s6658_s1 + $0x1f50] sm:$0xff] }
 0x22c   : > { %2685 = vmatpush1.bf16.msra.mxu1 %v1895_v26  ;;  %2645 = vmatprep.subr.bf16.mxu0 %v1828_v36  ;;  %v1186_v22 = vld [vmem:[%s6658_s1 + $0x1f70] sm:$0xff]  ;;  %v1944_v47 = vpack.c.bf16 %v1315_v12, %v1311_v11  ;;  %v1175_v27 = vld [vmem:[%s6658_s1 + $0x1f18] sm:$0xff] }
 0x22d   : > { %v2810_v56 = vadd.f32 1e-05, %v2802_v50  ;;  %2686 = vmatprep.subr.bf16.mxu1 %v1892_v57  ;;  %v2803_v51 = vmax.f32 %v2799_v48, 0.0  ;;  %v1310_v25 = vld [vmem:[%s6658_s1 + $0x2350] sm:$0xff]  ;;  %v1179_v29 = vld [vmem:[%s6658_s1 + $0x1f38] sm:$0xff]  ;;  %v1879_v26 = vpack.c.bf16 %v1186_v22, %v1182_v52 }
 0x22e   : > { %v1314_v16 = vld [vmem:[%s6658_s1 + $0x2370] sm:$0xff]  ;;  %v1303_v20 = vld [vmem:[%s6658_s1 + $0x2318] sm:$0xff]  ;;  %v1876_v14 = vpack.c.bf16 %v1179_v29, %v1175_v27 }
 0x22f   : > { %2646 = vmatpush1.bf16.msra.mxu0 %v1827_v53  ;;  %2916 = vrsqrt.f32 %v2810_v56  ;;  %v2811_v2 = vadd.f32 1e-05, %v2803_v51  ;;  %v1307_v30 = vld [vmem:[%s6658_s1 + $0x2338] sm:$0xff]  ;;  %v1943_v36 = vpack.c.bf16 %v1314_v16, %v1310_v25  ;;  %v1174_v62 = vld [vmem:[%s6658_s1 + $0x1f10] sm:$0xff] }
 0x230   : > { %2687 = vmatpush1.bf16.msra.mxu1 %v1891_v44  ;;  %2647 = vmatprep.subr.bf16.mxu0 %v1888_v23  ;;  %v1178_v37 = vld [vmem:[%s6658_s1 + $0x1f30] sm:$0xff]  ;;  %v1940_v40 = vpack.c.bf16 %v1307_v30, %v1303_v20  ;;  %v1167_v41 = vld [vmem:[%s6658_s1 + $0x1ed8] sm:$0xff] }
 0x231   : > { %2688 = vmatprep.subr.bf16.mxu1 %v1952_v58  ;;  %2918 = vrsqrt.f32 %v2811_v2  ;;  %v1302_v38 = vld [vmem:[%s6658_s1 + $0x2310] sm:$0xff]  ;;  %v1171_v42 = vld [vmem:[%s6658_s1 + $0x1ef8] sm:$0xff]  ;;  %v1875_v39 = vpack.c.bf16 %v1178_v37, %v1174_v62  ;;  %v2806_v58 = vsub.f32 %v6306_v61, %v6402_v1 }
 0x232   : > { %v1306_v57 = vld [vmem:[%s6658_s1 + $0x2330] sm:$0xff]  ;;  %v1295_v28 = vld [vmem:[%s6658_s1 + $0x22d8] sm:$0xff]  ;;  %v1872_v53 = vpack.c.bf16 %v1171_v42, %v1167_v41  ;;  %v2924_v41 = vld [vmem:[%s6659_s2] sm:$0xf] }
 0x233   : > { %2648 = vmatpush2.bf16.msra.mxu0 %v1887_v54  ;;  %v1299_v35 = vld [vmem:[%s6658_s1 + $0x22f8] sm:$0xff]  ;;  %v1166_v45 = vld [vmem:[%s6658_s1 + $0x1ed0] sm:$0xff]  ;;  %v1939_v50 = vpack.c.bf16 %v1306_v57, %v1302_v38  ;;  %v1969_v38 = vsub.s32 3, %v4597_v8 }
 0x234   : > { %2689 = vmatpush2.bf16.msra.mxu1 %v1951_v32  ;;  %2649 = vmatprep.subr.bf16.mxu0 %v1884_v63  ;;  %v1170_v48 = vld [vmem:[%s6658_s1 + $0x1ef0] sm:$0xff]  ;;  %v1936_v55 = vpack.c.bf16 %v1299_v35, %v1295_v28  ;;  %v1159_v15 = vld [vmem:[%s6658_s1 + $0x1e98] sm:$0xff] }
 0x235   : > { %2690 = vmatprep.subr.bf16.mxu1 %v1948_v33  ;;  %v1294_v44 = vld [vmem:[%s6658_s1 + $0x22d0] sm:$0xff]  ;;  %v1163_v56 = vld [vmem:[%s6658_s1 + $0x1eb8] sm:$0xff]  ;;  %v1871_v31 = vpack.c.bf16 %v1170_v48, %v1166_v45  ;;  %v1970_v28 = vrot.slane %v2924_v41, %v1969_v38 }
 0x236   : > { %v1298_v23 = vld [vmem:[%s6658_s1 + $0x22f0] sm:$0xff]  ;;  %v1287_v59 = vld [vmem:[%s6658_s1 + $0x2298] sm:$0xff]  ;;  %v1868_v61 = vpack.c.bf16 %v1163_v56, %v1159_v15 }
 0x237   : > { %2650 = vmatpush2.bf16.msra.mxu0 %v1883_v13  ;;  %v1291_v60 = vld [vmem:[%s6658_s1 + $0x22b8] sm:$0xff]  ;;  %v1935_v0 = vpack.c.bf16 %v1298_v23, %v1294_v44  ;;  %v1158_v46 = vld [vmem:[%s6658_s1 + $0x1e90] sm:$0xff] }
 0x238   : > { %2691 = vmatpush2.bf16.msra.mxu1 %v1947_v4  ;;  %2651 = vmatprep.subr.bf16.mxu0 %v1880_v18  ;;  %v1162_v1 = vld [vmem:[%s6658_s1 + $0x1eb0] sm:$0xff]  ;;  %v1932_v32 = vpack.c.bf16 %v1291_v60, %v1287_v59  ;;  %v1151_v5 = vld [vmem:[%s6658_s1 + $0x1e58] sm:$0xff] }
 0x239   : > { %2692 = vmatprep.subr.bf16.mxu1 %v1944_v47  ;;  %v1286_v3 = vld [vmem:[%s6658_s1 + $0x2290] sm:$0xff]  ;;  %v1155_v6 = vld [vmem:[%s6658_s1 + $0x1e78] sm:$0xff]  ;;  %v1867_v9 = vpack.c.bf16 %v1162_v1, %v1158_v46 }
 0x23a   : > { %v1290_v63 = vld [vmem:[%s6658_s1 + $0x22b0] sm:$0xff]  ;;  %v1279_v33 = vld [vmem:[%s6658_s1 + $0x2258] sm:$0xff]  ;;  %v1864_v11 = vpack.c.bf16 %v1155_v6, %v1151_v5 }
 0x23b   : > { %2652 = vmatpush2.bf16.msra.mxu0 %v1879_v26  ;;  %v1283_v7 = vld [vmem:[%s6658_s1 + $0x2278] sm:$0xff]  ;;  %v1931_v10 = vpack.c.bf16 %v1290_v63, %v1286_v3  ;;  %v1150_v12 = vld [vmem:[%s6658_s1 + $0x1e50] sm:$0xff] }
 0x23c   : > { %2693 = vmatpush2.bf16.msra.mxu1 %v1943_v36  ;;  %2653 = vmatprep.subr.bf16.mxu0 %v1876_v14  ;;  %v2917_v34 = vpop.eup %2916  ;;  %v1154_v13 = vld [vmem:[%s6658_s1 + $0x1e70] sm:$0xff]  ;;  %v1928_v18 = vpack.c.bf16 %v1283_v7, %v1279_v33  ;;  %v1143_v22 = vld [vmem:[%s6658_s1 + $0x1e18] sm:$0xff]  ;;  %v1965_v36 = vsub.s32 2, %v4597_v8  ;;  %v2381_v8 = vadd.f32 %v6287_v17, %v1970_v28 }
 0x23d   : > { %2694 = vmatprep.subr.bf16.mxu1 %v1940_v40  ;;  %v2818_v54 = vmul.f32 %v2917_v34, %v2806_v58  ;;  %v1278_v4 = vld [vmem:[%s6658_s1 + $0x2250] sm:$0xff]  ;;  %v1147_v25 = vld [vmem:[%s6658_s1 + $0x1e38] sm:$0xff]  ;;  %v1863_v27 = vpack.c.bf16 %v1154_v13, %v1150_v12 }
 0x23e   : > { %v2919_v51 = vpop.eup %2918  ;;  %v1282_v52 = vld [vmem:[%s6658_s1 + $0x2270] sm:$0xff]  ;;  %v1271_v47 = vld [vmem:[%s6658_s1 + $0x2218] sm:$0xff]  ;;  %v1860_v20 = vpack.c.bf16 %v1147_v25, %v1143_v22  ;;  %v1966_v42 = vrot.slane %v2924_v41, %v1965_v36 }
 0x23f   : > { %2654 = vmatpush2.bf16.msra.mxu0 %v1875_v39  ;;  %v2819_v2 = vmul.f32 %v2919_v51, %v2807_v21  ;;  %v1275_v16 = vld [vmem:[%s6658_s1 + $0x2238] sm:$0xff]  ;;  %v1927_v29 = vpack.c.bf16 %v1282_v52, %v1278_v4  ;;  %v1142_v30 = vld [vmem:[%s6658_s1 + $0x1e10] sm:$0xff] }
 0x240   : > { %2695 = vmatpush2.bf16.msra.mxu1 %v1939_v50  ;;  %2655 = vmatprep.subr.bf16.mxu0 %v1872_v53  ;;  %v1146_v26 = vld [vmem:[%s6658_s1 + $0x1e30] sm:$0xff]  ;;  %v1924_v14 = vpack.c.bf16 %v1275_v16, %v1271_v47  ;;  %v2379_v35 = vadd.f32 %v6275_v43, %v1966_v42 }
 0x241   : > { %2696 = vmatprep.subr.bf16.mxu1 %v1936_v55  ;;  %v2826_v19 = vcombine.low %v2818_v54, %v2819_v2  ;;  %v1270_v62 = vld [vmem:[%s6658_s1 + $0x2210] sm:$0xff]  ;;  %v1859_v40 = vpack.c.bf16 %v1146_v26, %v1142_v30 }
 0x242   : > { %v1274_v37 = vld [vmem:[%s6658_s1 + $0x2230] sm:$0xff] }
 0x243   : > { %2656 = vmatpush2.bf16.msra.mxu0 %v1871_v31  ;;  %2830 = vst [vmem:[%s6586_s28] sm:$0xff] %v2826_v19  ;;  %v1923_v57 = vpack.c.bf16 %v1274_v37, %v1270_v62 }
 0x244   : > { %2697 = vmatpush2.bf16.msra.mxu1 %v1935_v0  ;;  %2657 = vmatprep.subr.bf16.mxu0 %v1868_v61 }
 0x245   : > { %2698 = vmatprep.subr.bf16.mxu1 %v1932_v32 }
 0x247   : > { %2658 = vmatpush2.bf16.msra.mxu0 %v1867_v9 }
 0x248   : > { %2699 = vmatpush2.bf16.msra.mxu1 %v1931_v10  ;;  %2659 = vmatprep.subr.bf16.mxu0 %v1864_v11 }
 0x249   : > { %2700 = vmatprep.subr.bf16.mxu1 %v1928_v18 }
 0x24b   : > { %2660 = vmatpush2.bf16.msra.mxu0 %v1863_v27 }
 0x24c   : > { %2701 = vmatpush2.bf16.msra.mxu1 %v1927_v29  ;;  %2661 = vmatprep.subr.bf16.mxu0 %v1860_v20 }
 0x24d   : > { %2702 = vmatprep.subr.bf16.mxu1 %v1924_v14 }
 0x24f   : > { %2662 = vmatpush2.bf16.msra.mxu0 %v1859_v40 }
 0x250   : > { %2703 = vmatpush2.bf16.msra.mxu1 %v1923_v57 }
 0x252   : > { %v2419_v39 = vpop.f32.mrf.mxu0  ;;  %2664 = vmatmul.mubr.bf16.vlgmr.msra.gmra.mxu0 %v4663_v49 }
 0x253   : > { %v2420_v45 = vadd.f32 %v2419_v39, %v2379_v35  ;;  %v2460_v50 = vpop.f32.mrf.mxu1  ;;  %2705 = vmatmul.mubr.bf16.vlgmr.msra.gmra.mxu1 %v5055_v24 }
 0x254   : > { %v2421_v53 = vpop.f32.mrf.mxu0 }
 0x255   : > { %v2461_v48 = vadd.f32 %v2460_v50, %v2420_v45  ;;  %v2422_v44 = vadd.f32 %v2421_v53, %v2381_v8  ;;  %v2462_v23 = vpop.f32.mrf.mxu1 }
 0x256   : > { %v2423_v34 = vpop.f32.mrf.mxu0 }
 0x257   : > { %v2463_v55 = vadd.f32 %v2462_v23, %v2422_v44  ;;  %v2464_v15 = vpop.f32.mrf.mxu1 }
 0x258   : > { %v2424_v56 = vpop.f32.mrf.mxu0 }
 0x259   : > { %v2465_v58 = vpop.f32.mrf.mxu1 }
 0x292   : > { %v2501_v21 = vpop.f32.mrf.mxu0 }
 0x293   : > { %v2502_v43 = vadd.f32 %v2501_v21, %v2461_v48  ;;  %v2542_v59 = vpop.f32.mrf.mxu1 }
 0x294   : > { %v2503_v60 = vpop.f32.mrf.mxu0 }
 0x295   : > { %v2543_v49 = vadd.f32 %v2542_v59, %v2502_v43  ;;  %v2504_v51 = vadd.f32 %v2503_v60, %v2463_v55  ;;  %v2544_v17 = vpop.f32.mrf.mxu1 }
 0x296   : > { %v2505_v31 = vpop.f32.mrf.mxu0 }
 0x297   : > { %v2545_v0 = vadd.f32 %v2544_v17, %v2504_v51  ;;  %v2546_v54 = vpop.f32.mrf.mxu1 }
 0x298   : > { %v2506_v24 = vpop.f32.mrf.mxu0 }
 0x299   : > { %v2547_v2 = vpop.f32.mrf.mxu1 }
 0x2d2   : > { %v2583_v61 = vpop.f32.mrf.mxu0 }
 0x2d3   : > { %v2584_v46 = vadd.f32 %v2583_v61, %v2543_v49  ;;  %v2624_v1 = vpop.f32.mrf.mxu1 }
 0x2d4   : > { %v2585_v3 = vpop.f32.mrf.mxu0 }
 0x2d5   : > { %v2625_v32 = vadd.f32 %v2624_v1, %v2584_v46  ;;  %v2626_v63 = vpop.f32.mrf.mxu1  ;;  %v2586_v7 = vadd.f32 %v2585_v3, %v2545_v0 }
 0x2d6   : > { %v2587_v5 = vpop.f32.mrf.mxu0 }
 0x2d7   : > { %v2628_v6 = vpop.f32.mrf.mxu1  ;;  %v2627_v10 = vadd.f32 %v2626_v63, %v2586_v7 }
 0x2d8   : > { %v2588_v19 = vpop.f32.mrf.mxu0 }
 0x2d9   : > { %v2629_v33 = vpop.f32.mrf.mxu1 }
 0x312   : > { %v2665_v9 = vpop.f32.mrf.mxu0 }
 0x313   : > { %v2666_v11 = vadd.f32 %v2665_v9, %v2625_v32  ;;  %v2706_v12 = vpop.f32.mrf.mxu1 }
 0x314   : > { %v2667_v13 = vpop.f32.mrf.mxu0 }
 0x315   : > { %v2707_v4 = vadd.f32 %v2706_v12, %v2666_v11  ;;  %v2668_v18 = vadd.f32 %v2667_v13, %v2627_v10  ;;  %v2708_v52 = vpop.f32.mrf.mxu1 }
 0x316   : > { %v2669_v22 = vpop.f32.mrf.mxu0 }
 0x317   : > { %vm2715_vm3 = vcmp.ge.f32.partialorder %v2707_v4, 0.0  ;;  %v2719_v25 = vmul.f32 0.2, %v2707_v4  ;;  %v2709_v47 = vadd.f32 %v2708_v52, %v2668_v18  ;;  %v2710_v16 = vpop.f32.mrf.mxu1 }
 0x318   : > { %v2670_v27 = vpop.f32.mrf.mxu0 }
 0x319   : > { %v2723_v29 = vsel %vm2715_vm3, %v2707_v4, %v2719_v25  ;;  %vm2716_vm4 = vcmp.ge.f32.partialorder %v2709_v47, 0.0  ;;  %v2720_v20 = vmul.f32 0.2, %v2709_v47  ;;  %v2711_v30 = vpop.f32.mrf.mxu1 }
 0x31a   : > { %v2740_v26 = vsel %vm2725_vm0, %v2723_v29, 0.0  ;;  %v2760_v36 = vmul.f32 %v2723_v29, %v2723_v29 }
 0x31b   : > { %v2741_v14 = vrot.slane %v2740_v26, 4  ;;  %v2724_v62 = vsel %vm2716_vm4, %v2709_v47, %v2720_v20 }
 0x31c   : > { %v2776_v37 = vsel %vm2725_vm0, %v2760_v36, 0.0  ;;  %v2747_v38 = vsel %vm2725_vm0, %v2724_v62, 0.0  ;;  %v2761_v40 = vmul.f32 %v2724_v62, %v2724_v62 }
 0x31d   : > { %v2742_v57 = vadd.f32 %v2741_v14, %v2740_v26  ;;  %v2777_v41 = vrot.slane %v2776_v37, 4  ;;  %v2748_v42 = vrot.slane %v2747_v38, 4 }
 0x31e   : > { %v2783_v28 = vsel %vm2725_vm0, %v2761_v40, 0.0 }
 0x31f   : > { %v2743_v35 = vrot.slane %v2742_v57, 2  ;;  %v2778_v39 = vadd.f32 %v2777_v41, %v2776_v37  ;;  %v2749_v8 = vadd.f32 %v2748_v42, %v2747_v38  ;;  %v2784_v45 = vrot.slane %v2783_v28, 4 }
 0x321   : > { %v2744_v50 = vadd.f32 %v2743_v35, %v2742_v57  ;;  %v2779_v53 = vrot.slane %v2778_v39, 2  ;;  %v2750_v48 = vrot.slane %v2749_v8, 2  ;;  %v2785_v44 = vadd.f32 %v2784_v45, %v2783_v28 }
 0x323   : > { %v2745_v23 = vrot.slane %v2744_v50, 1  ;;  %v2780_v34 = vadd.f32 %v2779_v53, %v2778_v39  ;;  %v2751_v55 = vadd.f32 %v2750_v48, %v2749_v8  ;;  %v2786_v15 = vrot.slane %v2785_v44, 2 }
 0x325   : > { %v2746_v56 = vadd.f32 %v2745_v23, %v2744_v50  ;;  %v2781_v58 = vrot.slane %v2780_v34, 1  ;;  %v2752_v21 = vrot.slane %v2751_v55, 1  ;;  %v2787_v43 = vadd.f32 %v2786_v15, %v2785_v44 }
 0x327   : > { %v2756_v59 = vmul.f32 0.25, %v2746_v56  ;;  %v2782_v60 = vadd.f32 %v2781_v58, %v2780_v34  ;;  %v2753_v49 = vadd.f32 %v2752_v21, %v2751_v55  ;;  %v2788_v51 = vrot.slane %v2787_v43, 1 }
 0x329   : > { %v2792_v17 = vmul.f32 0.25, %v2782_v60  ;;  %v2796_v31 = vmul.f32 %v2756_v59, %v2756_v59  ;;  %v2757_v0 = vmul.f32 0.25, %v2753_v49  ;;  %v2789_v54 = vadd.f32 %v2788_v51, %v2787_v43 }
 0x32a   : > { %v2808_v6 = vsub.f32 %v2723_v29, %v2756_v59 }
 0x32b   : > { %v2800_v24 = vsub.f32 %v2792_v17, %v2796_v31  ;;  %v2797_v2 = vmul.f32 %v2757_v0, %v2757_v0  ;;  %v2793_v61 = vmul.f32 0.25, %v2789_v54  ;;  %v2809_v19 = vsub.f32 %v2724_v62, %v2757_v0 }
 0x32d   : > { %v2804_v46 = vmax.f32 %v2800_v24, 0.0  ;;  %v2801_v1 = vsub.f32 %v2793_v61, %v2797_v2 }
 0x32f   : > { %v2812_v3 = vadd.f32 1e-05, %v2804_v46  ;;  %v2805_v32 = vmax.f32 %v2801_v1, 0.0 }
 0x331   : > { %2920 = vrsqrt.f32 %v2812_v3  ;;  %v2813_v63 = vadd.f32 1e-05, %v2805_v32 }
 0x333   : > { %2922 = vrsqrt.f32 %v2813_v63 }
 0x33e   : > { %v2921_v5 = vpop.eup %2920 }
 0x33f   : > { %v2820_v7 = vmul.f32 %v2921_v5, %v2808_v6 }
 0x340   : > { %v2923_v33 = vpop.eup %2922 }
 0x341   : > { %v2821_v9 = vmul.f32 %v2923_v33, %v2809_v19 }
 0x343   : > { %v2827_v10 = vcombine.low %v2820_v7, %v2821_v9 }
 0x345   : > { %2831 = vst [vmem:[%s6586_s28 + $0x8] sm:$0xff] %v2827_v10 }
 0x346 PF: > { %s13_s12 = sadd.s32 1, %s2931_s12  }
 0x347   : > { %p10_p4 = scmp.ge.s32.totalorder %s13_s12, 4  }
 0x349   :  { %12 = sbr.rel (!%p10_p4) target bundleno = 1 (0x1), region = 62 }

</bundles_post_ra>
